<compile_context>
chip_gen: v5e
topology: v5e:2x2
jax: 0.10.0
libtpu: 0.0.40
codegen_flags: <defaults>
</compile_context>

<pallas_src>
import numpy as np
import jax
import jax.numpy as jnp
from jax.experimental import pallas as pl
from jax.experimental.pallas import tpu as pltpu

# ------------------------- configuration ------------------------------------
GRID_K      = 3
NUM_NODES   = GRID_K * GRID_K          # 9
POS_DIM     = 2
EMB_DIM     = 254                      # fixed by reference module
NODE_DIM    = POS_DIM + EMB_DIM        # 256 (lane-dense)
MSG_SZ      = 128
MSG_STEPS   = 3
EDGE_HIDDEN = 128
NODE_HIDDEN = 256
POOL_C1     = 32
PATCH_K     = 3 * 4 * 4                # 48
PATCH_S     = 16 * 16                  # 256 spatial positions
POSE_DIM    = 7
TEMP        = 0.1
NUM_COPIES  = 0

# MXU operand dtype for the MLP weight matmuls (bf16-native MXU on v6e/v7x).
# Accumulation is always f32 (preferred_element_type); elementwise stays f32.
# Set to jnp.float32 for bit-exact f32 matmul operands.
MXU_DTYPE = jnp.bfloat16


# ------------------------- graph structure ----------------------------------
def build_structure():
    xs = np.linspace(0.0, 1.0, GRID_K, dtype=np.float32)
    pos = np.stack(np.meshgrid(xs, xs, indexing="ij"), axis=-1).reshape(-1, 2)
    src, snk = [], []
    for i in range(GRID_K):
        for j in range(GRID_K):
            n = i * GRID_K + j
            for di, dj in ((1, 0), (-1, 0), (0, 1), (0, -1)):
                ii, jj = i + di, j + dj
                if 0 <= ii < GRID_K and 0 <= jj < GRID_K:
                    src.append(n)
                    snk.append(ii * GRID_K + jj)
    return (jnp.asarray(pos, jnp.float32),
            jnp.asarray(np.array(src, np.int32)),
            jnp.asarray(np.array(snk, np.int32)))


def init_params(key):
    node_pos, e_src, e_snk = build_structure()
    keys = jax.random.split(key, 6)

    def lin(k, fan_in, fan_out):
        return (jax.random.normal(k, (fan_in, fan_out), jnp.float32)
                / np.sqrt(fan_in)).astype(jnp.float32)

    gs = jax.nn.one_hot(e_src, NUM_NODES, dtype=jnp.float32)   # (E, NN)
    gk = jax.nn.one_hot(e_snk, NUM_NODES, dtype=jnp.float32)   # (E, NN)
    return dict(
        node_positions=node_pos,
        gs=gs, gk=gk,
        # Pool (embedder): conv 3->32 (k4 s4) ; 1x1 conv (32+7)->254 ; spatial mean
        w1=lin(keys[0], PATCH_K, POOL_C1),
        b1=jnp.zeros((1, POOL_C1), jnp.float32),
        w2=lin(keys[1], POOL_C1 + POSE_DIM, EMB_DIM),
        b2=jnp.zeros((1, EMB_DIM), jnp.float32),
        # EdgeModule: 2*node_dim -> hidden -> msg_sz
        we1=lin(keys[2], 2 * NODE_DIM, EDGE_HIDDEN),
        be1=jnp.zeros((1, EDGE_HIDDEN), jnp.float32),
        we2=lin(keys[3], EDGE_HIDDEN, MSG_SZ),
        be2=jnp.zeros((1, MSG_SZ), jnp.float32),
        # NodeModule: (msg_sz + node_dim) -> hidden -> update_sz (=254)
        wn1=lin(keys[4], MSG_SZ + NODE_DIM, NODE_HIDDEN),
        bn1=jnp.zeros((1, NODE_HIDDEN), jnp.float32),
        wn2=lin(keys[5], NODE_HIDDEN, EMB_DIM),
        bn2=jnp.zeros((1, EMB_DIM), jnp.float32),
    )


def prepare_params(params):
    """Split / pad / cast weights once into kernel-friendly forms.
    Independent of batch size / view count (no kron block-diagonals)."""
    pad_lead2 = lambda w: jnp.pad(w, ((0, 0), (POS_DIM, 0)))   # 2 leading zero cols
    asm = lambda w: w.astype(MXU_DTYPE)                        # MXU operand dtype
    return dict(
        # pool
        w1=params["w1"], b1=params["b1"],
        w2h=asm(pad_lead2(params["w2"][:POOL_C1])),   # (32, 256) bf16
        w2p=pad_lead2(params["w2"][POOL_C1:]),        # (7, 256)  f32
        b2=pad_lead2(params["b2"]),                   # (1, 256)
        # interpolation constants
        np_cols=params["node_positions"],             # (NN, 2)
        np_rows=params["node_positions"].T,           # (2, NN)
        node_pos_pad=jnp.pad(params["node_positions"],
                             ((0, 0), (0, EMB_DIM))), # (NN, 256)
        # per-graph one-hot gather / scatter (index_add) matrices, f32 (exact)
        gs=params["gs"], gk=params["gk"], scat=params["gk"].T,
        # edge / node MLPs (concats removed by weight splitting / padding)
        we1a=asm(params["we1"][:NODE_DIM]), we1b=asm(params["we1"][NODE_DIM:]),
        be1=params["be1"], we2=asm(params["we2"]), be2=params["be2"],
        wn1a=asm(params["wn1"][:MSG_SZ]), wn1b=asm(params["wn1"][MSG_SZ:]),
        bn1=params["bn1"],
        wn2p=asm(pad_lead2(params["wn2"])),            # (256, 256), cols 0:2 = 0
        bn2p=pad_lead2(params["bn2"]),                 # (1, 256),   cols 0:2 = 0
    )


# ------------------------- the single fused Pallas kernel -------------------
def gen_fused_kernel(patch_ref, vpose_ref, vxyt_ref, qpose_ref,
                     w1_ref, b1_ref, w2h_ref, w2p_ref, b2_ref,
                     expand_ref, avg_ref,
                     npc_ref, npr_ref, pospad_ref,
                     gs_ref, gk_ref, scat_ref,
                     we1a_ref, we1b_ref, be1_ref, we2_ref, be2_ref,
                     wn1a_ref, wn1b_ref, bn1_ref, wn2p_ref, bn2p_ref,
                     o_ref):
    """Whole GEN_Composer forward for one batch element:
       pool tower (all V views) -> view softmax interpolation + bmm ->
       MSG_STEPS of message passing -> query softmax interpolation + bmm."""
    f32 = jnp.float32

    # ---------------- Pool tower (batched over the V views) -----------------
    # 4x4/stride-4 conv as one (V*256, 48) @ (48, 32) patch matmul.
    h1 = jnp.maximum(
        jnp.dot(patch_ref[0], w1_ref[...], preferred_element_type=f32)
        + b1_ref[...], 0.0)                                     # (V*256, 32)
    # pose contribution of the 1x1 conv: once per view, broadcast to the 256
    # spatial rows via a constant one-hot matmul (MXU, no per-image passes).
    pose_c = jnp.dot(vpose_ref[0], w2p_ref[...],
                     preferred_element_type=f32)                # (V, 256)
    pose_b = jnp.dot(expand_ref[...], pose_c,
                     preferred_element_type=f32)                # (V*256, 256)
    h2 = jnp.maximum(
        jnp.dot(h1.astype(MXU_DTYPE), w2h_ref[...], preferred_element_type=f32)
        + pose_b + b2_ref[...], 0.0)                            # (V*256, 256)
    # spatial mean via constant (V, V*256) averaging matmul -> (V, 256) emb
    emb = jnp.dot(avg_ref[...], h2, preferred_element_type=f32)

    # --------- view aggregation: softmax interp + scores^T @ emb ------------
    xyt = vxyt_ref[0]                               # (2, V)
    px, py = xyt[0:1, :], xyt[1:2, :]               # (1, V)
    nx, ny = npc_ref[:, 0:1], npc_ref[:, 1:2]       # (NN, 1)
    dxv = px - nx
    dyv = py - ny
    logits_v = -(dxv * dxv + dyv * dyv) * (1.0 / TEMP)      # (NN, V)
    mv = jnp.max(logits_v, axis=0, keepdims=True)
    ev = jnp.exp(logits_v - mv)
    scores_t = ev / jnp.sum(ev, axis=0, keepdims=True)      # softmax over nodes
    x = (jnp.dot(scores_t, emb, preferred_element_type=f32)
         + pospad_ref[...])                                  # (NN, 256)

    # ------------------ message passing (MSG_STEPS) -------------------------
    for _ in range(MSG_STEPS):
        src = jnp.dot(gs_ref[...], x, preferred_element_type=f32)   # (E, 256)
        snk = jnp.dot(gk_ref[...], x, preferred_element_type=f32)   # (E, 256)
        h = jnp.maximum(
            jnp.dot(src.astype(MXU_DTYPE), we1a_ref[...],
                    preferred_element_type=f32)
            + jnp.dot(snk.astype(MXU_DTYPE), we1b_ref[...],
                      preferred_element_type=f32)
            + be1_ref[...], 0.0)                                     # (E, 128)
        msg = (jnp.dot(h.astype(MXU_DTYPE), we2_ref[...],
                       preferred_element_type=f32)
               + be2_ref[...])                                       # (E, 128)
        inc = jnp.dot(scat_ref[...], msg,
                      preferred_element_type=f32)                    # (NN, 128)
        hn = jnp.maximum(
            jnp.dot(inc.astype(MXU_DTYPE), wn1a_ref[...],
                    preferred_element_type=f32)
            + jnp.dot(x.astype(MXU_DTYPE), wn1b_ref[...],
                      preferred_element_type=f32)
            + bn1_ref[...], 0.0)                                     # (NN, 256)
        upd = (jnp.dot(hn.astype(MXU_DTYPE), wn2p_ref[...],
                       preferred_element_type=f32)
               + bn2p_ref[...])                                      # cols 0:2 == 0
        x = x + upd                               # position cols stay frozen

    # ----------- query extraction: softmax interp + attn @ nodes ------------
    qxy = qpose_ref[0][:, 0:POS_DIM]                # (Q, 2)
    dxq = qxy[:, 0:1] - npr_ref[0:1, :]             # (Q, NN)
    dyq = qxy[:, 1:2] - npr_ref[1:2, :]
    logits_q = -(dxq * dxq + dyq * dyq) * (1.0 / TEMP)
    mq = jnp.max(logits_q, axis=-1, keepdims=True)
    eq = jnp.exp(logits_q - mq)
    attn = eq / jnp.sum(eq, axis=-1, keepdims=True)
    o_ref[0] = jnp.dot(attn, x, preferred_element_type=f32)     # (Q, 256)


# ------------------------- module forward -----------------------------------
def gen_composer_forward(prep, view_frames, view_poses, query_poses):
    bs, V = view_frames.shape[:2]
    Q = query_poses.shape[1]
    M = bs * V
    E = prep["gs"].shape[0]
    VROWS = V * PATCH_S

    # --- 4x4/stride-4 patch extraction, features = (c, kh, kw) --------------
    # TODO(synk): 5-D transpose stays in XLA (does not lower inside Mosaic).
    frames = view_frames.reshape(M, 3, 64, 64)
    patches = jnp.transpose(frames.reshape(M, 3, 16, 4, 16, 4),
                            (0, 2, 4, 1, 3, 5)).reshape(bs, VROWS, PATCH_K)

    view_xy_t = jnp.transpose(view_poses[:, :, :POS_DIM], (0, 2, 1))  # (bs,2,V)

    # per-view broadcast / averaging constants for the fused pool (numpy ->
    # compile-time constants under jit; independent of batch size).
    expand = jnp.asarray(np.kron(np.eye(V, dtype=np.float32),
                                 np.ones((PATCH_S, 1), np.float32)))  # (V*256,V)
    avg = jnp.asarray(np.kron(np.eye(V, dtype=np.float32),
                              np.full((1, PATCH_S), 1.0 / PATCH_S,
                                      np.float32)))                   # (V,V*256)

    c2 = lambda b: (0, 0)
    c3 = lambda b: (b, 0, 0)

    extraction = pl.pallas_call(
        gen_fused_kernel,
        out_shape=jax.ShapeDtypeStruct((bs, Q, NODE_DIM), jnp.float32),
        grid=(bs,),
        in_specs=[
            # batched inputs
            pl.BlockSpec((1, VROWS, PATCH_K), c3),
            pl.BlockSpec((1, V, POSE_DIM), c3),
            pl.BlockSpec((1, POS_DIM, V), c3),
            pl.BlockSpec((1, Q, POSE_DIM), c3),
            # pool weights / constants
            pl.BlockSpec((PATCH_K, POOL_C1), c2),
            pl.BlockSpec((1, POOL_C1), c2),
            pl.BlockSpec((POOL_C1, NODE_DIM), c2),
            pl.BlockSpec((POSE_DIM, NODE_DIM), c2),
            pl.BlockSpec((1, NODE_DIM), c2),
            pl.BlockSpec((VROWS, V), c2),
            pl.BlockSpec((V, VROWS), c2),
            # interpolation constants
            pl.BlockSpec((NUM_NODES, POS_DIM), c2),
            pl.BlockSpec((POS_DIM, NUM_NODES), c2),
            pl.BlockSpec((NUM_NODES, NODE_DIM), c2),
            # per-graph gather / scatter
            pl.BlockSpec((E, NUM_NODES), c2),
            pl.BlockSpec((E, NUM_NODES), c2),
            pl.BlockSpec((NUM_NODES, E), c2),
            # edge MLP
            pl.BlockSpec((NODE_DIM, EDGE_HIDDEN), c2),
            pl.BlockSpec((NODE_DIM, EDGE_HIDDEN), c2),
            pl.BlockSpec((1, EDGE_HIDDEN), c2),
            pl.BlockSpec((EDGE_HIDDEN, MSG_SZ), c2),
            pl.BlockSpec((1, MSG_SZ), c2),
            # node MLP
            pl.BlockSpec((MSG_SZ, NODE_HIDDEN), c2),
            pl.BlockSpec((NODE_DIM, NODE_HIDDEN), c2),
            pl.BlockSpec((1, NODE_HIDDEN), c2),
            pl.BlockSpec((NODE_HIDDEN, NODE_DIM), c2),
            pl.BlockSpec((1, NODE_DIM), c2),
        ],
        out_specs=pl.BlockSpec((1, Q, NODE_DIM), c3),
        compiler_params=pltpu.CompilerParams(
            dimension_semantics=("parallel",)),   # batch on both v7x cores
    )(patches, view_poses, view_xy_t, query_poses,
      prep["w1"], prep["b1"], prep["w2h"], prep["w2p"], prep["b2"],
      expand, avg,
      prep["np_cols"], prep["np_rows"], prep["node_pos_pad"],
      prep["gs"], prep["gk"], prep["scat"],
      prep["we1a"], prep["we1b"], prep["be1"], prep["we2"], prep["be2"],
      prep["wn1a"], prep["wn1b"], prep["bn1"], prep["wn2p"], prep["bn2p"])

    if NUM_COPIES > 0:
        extraction = jnp.concatenate(
            [query_poses] * NUM_COPIES + [extraction], axis=2)
    return extraction


# ------------------------- main ----------------------------------------------
if __name__ == "__main__":
    key = jax.random.PRNGKey(0)
    kf, kvp, kqp, kp = jax.random.split(key, 4)

    bs, V, Q = 2, 3, 4
    view_frames = jax.random.normal(kf, (bs, V, 3, 64, 64), jnp.float32)
    view_poses = jax.random.uniform(kvp, (bs, V, POSE_DIM), dtype=jnp.float32)
    query_poses = jax.random.uniform(kqp, (bs, Q, POSE_DIM), dtype=jnp.float32)

    params = init_params(kp)
    prep = prepare_params(params)

    fwd = jax.jit(gen_composer_forward)
    out = jax.block_until_ready(fwd(prep, view_frames, view_poses, query_poses))

    expected = (bs, Q, NUM_COPIES * POSE_DIM + NODE_DIM)
    assert out.shape == expected, (out.shape, expected)
    assert bool(jnp.all(jnp.isfinite(out)))
    print("KERNEL_OK")
</pallas_src>

<mosaic_0001>
module attributes {stable_mosaic.version = 11 : i64} {
  func.func @gen_fused_kernel(%arg0: i32, %arg1: memref<1x768x48xf32, #tpu.memory_space<vmem>>, %arg2: memref<1x3x7xf32, #tpu.memory_space<vmem>>, %arg3: memref<1x2x3xf32, #tpu.memory_space<vmem>>, %arg4: memref<1x4x7xf32, #tpu.memory_space<vmem>>, %arg5: memref<48x32xf32, #tpu.memory_space<vmem>>, %arg6: memref<1x32xf32, #tpu.memory_space<vmem>>, %arg7: memref<32x256xbf16, #tpu.memory_space<vmem>>, %arg8: memref<7x256xf32, #tpu.memory_space<vmem>>, %arg9: memref<1x256xf32, #tpu.memory_space<vmem>>, %arg10: memref<768x3xf32, #tpu.memory_space<vmem>>, %arg11: memref<3x768xf32, #tpu.memory_space<vmem>>, %arg12: memref<9x2xf32, #tpu.memory_space<vmem>>, %arg13: memref<2x9xf32, #tpu.memory_space<vmem>>, %arg14: memref<9x256xf32, #tpu.memory_space<vmem>>, %arg15: memref<24x9xf32, #tpu.memory_space<vmem>>, %arg16: memref<24x9xf32, #tpu.memory_space<vmem>>, %arg17: memref<9x24xf32, #tpu.memory_space<vmem>>, %arg18: memref<256x128xbf16, #tpu.memory_space<vmem>>, %arg19: memref<256x128xbf16, #tpu.memory_space<vmem>>, %arg20: memref<1x128xf32, #tpu.memory_space<vmem>>, %arg21: memref<128x128xbf16, #tpu.memory_space<vmem>>, %arg22: memref<1x128xf32, #tpu.memory_space<vmem>>, %arg23: memref<128x256xbf16, #tpu.memory_space<vmem>>, %arg24: memref<256x256xbf16, #tpu.memory_space<vmem>>, %arg25: memref<1x256xf32, #tpu.memory_space<vmem>>, %arg26: memref<256x256xbf16, #tpu.memory_space<vmem>>, %arg27: memref<1x256xf32, #tpu.memory_space<vmem>>, %arg28: memref<1x4x256xf32, #tpu.memory_space<vmem>>) attributes {dimension_semantics = [#tpu.dimension_semantics<parallel>], iteration_bounds = array<i64: 2>, scalar_prefetch = 0 : i64, scratch_operands = 0 : i64, tpu.core_type = #tpu.core_type<tc>, window_params = [{transform_indices = @transform_0, window_bounds = array<i64: 1, 768, 48>}, {transform_indices = @transform_1, window_bounds = array<i64: 1, 3, 7>}, {transform_indices = @transform_2, window_bounds = array<i64: 1, 2, 3>}, {transform_indices = @transform_3, window_bounds = array<i64: 1, 4, 7>}, {pipeline_mode = #tpu.pipeline_mode<synchronous>, transform_indices = @transform_4, window_bounds = array<i64: 48, 32>}, {pipeline_mode = #tpu.pipeline_mode<synchronous>, transform_indices = @transform_5, window_bounds = array<i64: 1, 32>}, {pipeline_mode = #tpu.pipeline_mode<synchronous>, transform_indices = @transform_6, window_bounds = array<i64: 32, 256>}, {pipeline_mode = #tpu.pipeline_mode<synchronous>, transform_indices = @transform_7, window_bounds = array<i64: 7, 256>}, {pipeline_mode = #tpu.pipeline_mode<synchronous>, transform_indices = @transform_8, window_bounds = array<i64: 1, 256>}, {pipeline_mode = #tpu.pipeline_mode<synchronous>, transform_indices = @transform_9, window_bounds = array<i64: 768, 3>}, {pipeline_mode = #tpu.pipeline_mode<synchronous>, transform_indices = @transform_10, window_bounds = array<i64: 3, 768>}, {pipeline_mode = #tpu.pipeline_mode<synchronous>, transform_indices = @transform_11, window_bounds = array<i64: 9, 2>}, {pipeline_mode = #tpu.pipeline_mode<synchronous>, transform_indices = @transform_12, window_bounds = array<i64: 2, 9>}, {pipeline_mode = #tpu.pipeline_mode<synchronous>, transform_indices = @transform_13, window_bounds = array<i64: 9, 256>}, {pipeline_mode = #tpu.pipeline_mode<synchronous>, transform_indices = @transform_14, window_bounds = array<i64: 24, 9>}, {pipeline_mode = #tpu.pipeline_mode<synchronous>, transform_indices = @transform_15, window_bounds = array<i64: 24, 9>}, {pipeline_mode = #tpu.pipeline_mode<synchronous>, transform_indices = @transform_16, window_bounds = array<i64: 9, 24>}, {pipeline_mode = #tpu.pipeline_mode<synchronous>, transform_indices = @transform_17, window_bounds = array<i64: 256, 128>}, {pipeline_mode = #tpu.pipeline_mode<synchronous>, transform_indices = @transform_18, window_bounds = array<i64: 256, 128>}, {pipeline_mode = #tpu.pipeline_mode<synchronous>, transform_indices = @transform_19, window_bounds = array<i64: 1, 128>}, {pipeline_mode = #tpu.pipeline_mode<synchronous>, transform_indices = @transform_20, window_bounds = array<i64: 128, 128>}, {pipeline_mode = #tpu.pipeline_mode<synchronous>, transform_indices = @transform_21, window_bounds = array<i64: 1, 128>}, {pipeline_mode = #tpu.pipeline_mode<synchronous>, transform_indices = @transform_22, window_bounds = array<i64: 128, 256>}, {pipeline_mode = #tpu.pipeline_mode<synchronous>, transform_indices = @transform_23, window_bounds = array<i64: 256, 256>}, {pipeline_mode = #tpu.pipeline_mode<synchronous>, transform_indices = @transform_24, window_bounds = array<i64: 1, 256>}, {pipeline_mode = #tpu.pipeline_mode<synchronous>, transform_indices = @transform_25, window_bounds = array<i64: 256, 256>}, {pipeline_mode = #tpu.pipeline_mode<synchronous>, transform_indices = @transform_26, window_bounds = array<i64: 1, 256>}, {transform_indices = @transform_27, window_bounds = array<i64: 1, 4, 256>}]} {
    %c0 = arith.constant 0 : index
    %c0_0 = arith.constant 0 : index
    %c0_1 = arith.constant 0 : index
    %0 = vector.load %arg1[%c0, %c0_0, %c0_1] : memref<1x768x48xf32, #tpu.memory_space<vmem>>, vector<1x768x48xf32>
    %1 = vector.shape_cast %0 : vector<1x768x48xf32> to vector<768x48xf32>
    %c0_2 = arith.constant 0 : index
    %c0_3 = arith.constant 0 : index
    %2 = vector.load %arg5[%c0_2, %c0_3] : memref<48x32xf32, #tpu.memory_space<vmem>>, vector<48x32xf32>
    %cst = arith.constant dense<0.000000e+00> : vector<768x32xf32>
    %3 = tpu.matmul %1, %2, %cst {dimension_numbers = #tpu.dot_dimension_numbers<[1], [0], [0], [1], [0, 0, 1, 1], [], []>} : vector<768x48xf32>, vector<48x32xf32>, vector<768x32xf32> -> vector<768x32xf32>
    %c0_4 = arith.constant 0 : index
    %c0_5 = arith.constant 0 : index
    %4 = vector.load %arg6[%c0_4, %c0_5] : memref<1x32xf32, #tpu.memory_space<vmem>>, vector<1x32xf32>
    %5 = vector.broadcast %4 : vector<1x32xf32> to vector<768x32xf32>
    %6 = arith.addf %3, %5 : vector<768x32xf32>
    %cst_6 = arith.constant 0.000000e+00 : f32
    %7 = vector.broadcast %cst_6 : f32 to vector<768x32xf32>
    %8 = arith.maximumf %6, %7 : vector<768x32xf32>
    %c0_7 = arith.constant 0 : index
    %c0_8 = arith.constant 0 : index
    %c0_9 = arith.constant 0 : index
    %9 = vector.load %arg2[%c0_7, %c0_8, %c0_9] : memref<1x3x7xf32, #tpu.memory_space<vmem>>, vector<1x3x7xf32>
    %10 = vector.shape_cast %9 : vector<1x3x7xf32> to vector<3x7xf32>
    %c0_10 = arith.constant 0 : index
    %c0_11 = arith.constant 0 : index
    %11 = vector.load %arg8[%c0_10, %c0_11] : memref<7x256xf32, #tpu.memory_space<vmem>>, vector<7x256xf32>
    %cst_12 = arith.constant dense<0.000000e+00> : vector<3x256xf32>
    %12 = tpu.matmul %10, %11, %cst_12 {dimension_numbers = #tpu.dot_dimension_numbers<[1], [0], [0], [1], [0, 0, 1, 1], [], []>} : vector<3x7xf32>, vector<7x256xf32>, vector<3x256xf32> -> vector<3x256xf32>
    %c0_13 = arith.constant 0 : index
    %c0_14 = arith.constant 0 : index
    %13 = vector.load %arg10[%c0_13, %c0_14] : memref<768x3xf32, #tpu.memory_space<vmem>>, vector<768x3xf32>
    %cst_15 = arith.constant dense<0.000000e+00> : vector<768x256xf32>
    %14 = tpu.matmul %13, %12, %cst_15 {dimension_numbers = #tpu.dot_dimension_numbers<[1], [0], [0], [1], [0, 0, 1, 1], [], []>} : vector<768x3xf32>, vector<3x256xf32>, vector<768x256xf32> -> vector<768x256xf32>
    %15 = arith.truncf %8 : vector<768x32xf32> to vector<768x32xbf16>
    %c0_16 = arith.constant 0 : index
    %c0_17 = arith.constant 0 : index
    %16 = vector.load %arg7[%c0_16, %c0_17] : memref<32x256xbf16, #tpu.memory_space<vmem>>, vector<32x256xbf16>
    %cst_18 = arith.constant dense<0.000000e+00> : vector<768x256xf32>
    %17 = tpu.matmul %15, %16, %cst_18 {dimension_numbers = #tpu.dot_dimension_numbers<[1], [0], [0], [1], [0, 0, 1, 1], [], []>} : vector<768x32xbf16>, vector<32x256xbf16>, vector<768x256xf32> -> vector<768x256xf32>
    %18 = arith.addf %17, %14 : vector<768x256xf32>
    %c0_19 = arith.constant 0 : index
    %c0_20 = arith.constant 0 : index
    %19 = vector.load %arg9[%c0_19, %c0_20] : memref<1x256xf32, #tpu.memory_space<vmem>>, vector<1x256xf32>
    %20 = vector.broadcast %19 : vector<1x256xf32> to vector<768x256xf32>
    %21 = arith.addf %18, %20 : vector<768x256xf32>
    %cst_21 = arith.constant 0.000000e+00 : f32
    %22 = vector.broadcast %cst_21 : f32 to vector<768x256xf32>
    %23 = arith.maximumf %21, %22 : vector<768x256xf32>
    %c0_22 = arith.constant 0 : index
    %c0_23 = arith.constant 0 : index
    %24 = vector.load %arg11[%c0_22, %c0_23] : memref<3x768xf32, #tpu.memory_space<vmem>>, vector<3x768xf32>
    %cst_24 = arith.constant dense<0.000000e+00> : vector<3x256xf32>
    %25 = tpu.matmul %24, %23, %cst_24 {dimension_numbers = #tpu.dot_dimension_numbers<[1], [0], [0], [1], [0, 0, 1, 1], [], []>} : vector<3x768xf32>, vector<768x256xf32>, vector<3x256xf32> -> vector<3x256xf32>
    %c0_25 = arith.constant 0 : index
    %c0_26 = arith.constant 0 : index
    %c0_27 = arith.constant 0 : index
    %26 = vector.load %arg3[%c0_25, %c0_26, %c0_27] : memref<1x2x3xf32, #tpu.memory_space<vmem>>, vector<1x2x3xf32>
    %27 = vector.shape_cast %26 : vector<1x2x3xf32> to vector<2x3xf32>
    %28 = vector.extract_strided_slice %27 {offsets = [0, 0], sizes = [1, 3], strides = [1, 1]} : vector<2x3xf32> to vector<1x3xf32>
    %29 = vector.extract_strided_slice %27 {offsets = [1, 0], sizes = [1, 3], strides = [1, 1]} : vector<2x3xf32> to vector<1x3xf32>
    %c0_28 = arith.constant 0 : index
    %c0_29 = arith.constant 0 : index
    %30 = vector.load %arg12[%c0_28, %c0_29] : memref<9x2xf32, #tpu.memory_space<vmem>>, vector<9x1xf32>
    %c0_30 = arith.constant 0 : index
    %c1 = arith.constant 1 : index
    %31 = vector.load %arg12[%c0_30, %c1] : memref<9x2xf32, #tpu.memory_space<vmem>>, vector<9x1xf32>
    %32 = vector.broadcast %28 : vector<1x3xf32> to vector<9x3xf32>
    %33 = vector.broadcast %30 : vector<9x1xf32> to vector<9x3xf32>
    %34 = arith.subf %32, %33 : vector<9x3xf32>
    %35 = vector.broadcast %29 : vector<1x3xf32> to vector<9x3xf32>
    %36 = vector.broadcast %31 : vector<9x1xf32> to vector<9x3xf32>
    %37 = arith.subf %35, %36 : vector<9x3xf32>
    %38 = arith.mulf %34, %34 : vector<9x3xf32>
    %39 = arith.mulf %37, %37 : vector<9x3xf32>
    %40 = arith.addf %38, %39 : vector<9x3xf32>
    %cst_31 = arith.constant 0.000000e+00 : f32
    %41 = vector.broadcast %cst_31 : f32 to vector<9x3xf32>
    %42 = arith.subf %41, %40 : vector<9x3xf32>
    %cst_32 = arith.constant 1.000000e+01 : f32
    %43 = vector.broadcast %cst_32 : f32 to vector<9x3xf32>
    %44 = arith.mulf %42, %43 : vector<9x3xf32>
    %cst_33 = arith.constant dense<0xFF800000> : vector<3xf32>
    %45 = vector.multi_reduction <maximumf>, %44, %cst_33 [0] : vector<9x3xf32> to vector<3xf32>
    %46 = vector.shape_cast %45 : vector<3xf32> to vector<1x3xf32>
    %47 = vector.broadcast %46 : vector<1x3xf32> to vector<9x3xf32>
    %48 = arith.subf %44, %47 : vector<9x3xf32>
    %49 = math.exp %48 : vector<9x3xf32>
    %cst_34 = arith.constant dense<0.000000e+00> : vector<3xf32>
    %50 = vector.multi_reduction <add>, %49, %cst_34 [0] : vector<9x3xf32> to vector<3xf32>
    %51 = vector.shape_cast %50 : vector<3xf32> to vector<1x3xf32>
    %52 = vector.broadcast %51 : vector<1x3xf32> to vector<9x3xf32>
    %53 = arith.divf %49, %52 : vector<9x3xf32>
    %cst_35 = arith.constant dense<0.000000e+00> : vector<9x256xf32>
    %54 = tpu.matmul %53, %25, %cst_35 {dimension_numbers = #tpu.dot_dimension_numbers<[1], [0], [0], [1], [0, 0, 1, 1], [], []>} : vector<9x3xf32>, vector<3x256xf32>, vector<9x256xf32> -> vector<9x256xf32>
    %c0_36 = arith.constant 0 : index
    %c0_37 = arith.constant 0 : index
    %55 = vector.load %arg14[%c0_36, %c0_37] : memref<9x256xf32, #tpu.memory_space<vmem>>, vector<9x256xf32>
    %56 = arith.addf %54, %55 : vector<9x256xf32>
    %c0_38 = arith.constant 0 : index
    %c0_39 = arith.constant 0 : index
    %57 = vector.load %arg15[%c0_38, %c0_39] : memref<24x9xf32, #tpu.memory_space<vmem>>, vector<24x9xf32>
    %cst_40 = arith.constant dense<0.000000e+00> : vector<24x256xf32>
    %58 = tpu.matmul %57, %56, %cst_40 {dimension_numbers = #tpu.dot_dimension_numbers<[1], [0], [0], [1], [0, 0, 1, 1], [], []>} : vector<24x9xf32>, vector<9x256xf32>, vector<24x256xf32> -> vector<24x256xf32>
    %c0_41 = arith.constant 0 : index
    %c0_42 = arith.constant 0 : index
    %59 = vector.load %arg16[%c0_41, %c0_42] : memref<24x9xf32, #tpu.memory_space<vmem>>, vector<24x9xf32>
    %cst_43 = arith.constant dense<0.000000e+00> : vector<24x256xf32>
    %60 = tpu.matmul %59, %56, %cst_43 {dimension_numbers = #tpu.dot_dimension_numbers<[1], [0], [0], [1], [0, 0, 1, 1], [], []>} : vector<24x9xf32>, vector<9x256xf32>, vector<24x256xf32> -> vector<24x256xf32>
    %61 = arith.truncf %58 : vector<24x256xf32> to vector<24x256xbf16>
    %c0_44 = arith.constant 0 : index
    %c0_45 = arith.constant 0 : index
    %62 = vector.load %arg18[%c0_44, %c0_45] : memref<256x128xbf16, #tpu.memory_space<vmem>>, vector<256x128xbf16>
    %cst_46 = arith.constant dense<0.000000e+00> : vector<24x128xf32>
    %63 = tpu.matmul %61, %62, %cst_46 {dimension_numbers = #tpu.dot_dimension_numbers<[1], [0], [0], [1], [0, 0, 1, 1], [], []>} : vector<24x256xbf16>, vector<256x128xbf16>, vector<24x128xf32> -> vector<24x128xf32>
    %64 = arith.truncf %60 : vector<24x256xf32> to vector<24x256xbf16>
    %c0_47 = arith.constant 0 : index
    %c0_48 = arith.constant 0 : index
    %65 = vector.load %arg19[%c0_47, %c0_48] : memref<256x128xbf16, #tpu.memory_space<vmem>>, vector<256x128xbf16>
    %cst_49 = arith.constant dense<0.000000e+00> : vector<24x128xf32>
    %66 = tpu.matmul %64, %65, %cst_49 {dimension_numbers = #tpu.dot_dimension_numbers<[1], [0], [0], [1], [0, 0, 1, 1], [], []>} : vector<24x256xbf16>, vector<256x128xbf16>, vector<24x128xf32> -> vector<24x128xf32>
    %67 = arith.addf %63, %66 : vector<24x128xf32>
    %c0_50 = arith.constant 0 : index
    %c0_51 = arith.constant 0 : index
    %68 = vector.load %arg20[%c0_50, %c0_51] : memref<1x128xf32, #tpu.memory_space<vmem>>, vector<1x128xf32>
    %69 = vector.broadcast %68 : vector<1x128xf32> to vector<24x128xf32>
    %70 = arith.addf %67, %69 : vector<24x128xf32>
    %cst_52 = arith.constant 0.000000e+00 : f32
    %71 = vector.broadcast %cst_52 : f32 to vector<24x128xf32>
    %72 = arith.maximumf %70, %71 : vector<24x128xf32>
    %73 = arith.truncf %72 : vector<24x128xf32> to vector<24x128xbf16>
    %c0_53 = arith.constant 0 : index
    %c0_54 = arith.constant 0 : index
    %74 = vector.load %arg21[%c0_53, %c0_54] : memref<128x128xbf16, #tpu.memory_space<vmem>>, vector<128x128xbf16>
    %cst_55 = arith.constant dense<0.000000e+00> : vector<24x128xf32>
    %75 = tpu.matmul %73, %74, %cst_55 {dimension_numbers = #tpu.dot_dimension_numbers<[1], [0], [0], [1], [0, 0, 1, 1], [], []>} : vector<24x128xbf16>, vector<128x128xbf16>, vector<24x128xf32> -> vector<24x128xf32>
    %c0_56 = arith.constant 0 : index
    %c0_57 = arith.constant 0 : index
    %76 = vector.load %arg22[%c0_56, %c0_57] : memref<1x128xf32, #tpu.memory_space<vmem>>, vector<1x128xf32>
    %77 = vector.broadcast %76 : vector<1x128xf32> to vector<24x128xf32>
    %78 = arith.addf %75, %77 : vector<24x128xf32>
    %c0_58 = arith.constant 0 : index
    %c0_59 = arith.constant 0 : index
    %79 = vector.load %arg17[%c0_58, %c0_59] : memref<9x24xf32, #tpu.memory_space<vmem>>, vector<9x24xf32>
    %cst_60 = arith.constant dense<0.000000e+00> : vector<9x128xf32>
    %80 = tpu.matmul %79, %78, %cst_60 {dimension_numbers = #tpu.dot_dimension_numbers<[1], [0], [0], [1], [0, 0, 1, 1], [], []>} : vector<9x24xf32>, vector<24x128xf32>, vector<9x128xf32> -> vector<9x128xf32>
    %81 = arith.truncf %80 : vector<9x128xf32> to vector<9x128xbf16>
    %c0_61 = arith.constant 0 : index
    %c0_62 = arith.constant 0 : index
    %82 = vector.load %arg23[%c0_61, %c0_62] : memref<128x256xbf16, #tpu.memory_space<vmem>>, vector<128x256xbf16>
    %cst_63 = arith.constant dense<0.000000e+00> : vector<9x256xf32>
    %83 = tpu.matmul %81, %82, %cst_63 {dimension_numbers = #tpu.dot_dimension_numbers<[1], [0], [0], [1], [0, 0, 1, 1], [], []>} : vector<9x128xbf16>, vector<128x256xbf16>, vector<9x256xf32> -> vector<9x256xf32>
    %84 = arith.truncf %56 : vector<9x256xf32> to vector<9x256xbf16>
    %c0_64 = arith.constant 0 : index
    %c0_65 = arith.constant 0 : index
    %85 = vector.load %arg24[%c0_64, %c0_65] : memref<256x256xbf16, #tpu.memory_space<vmem>>, vector<256x256xbf16>
    %cst_66 = arith.constant dense<0.000000e+00> : vector<9x256xf32>
    %86 = tpu.matmul %84, %85, %cst_66 {dimension_numbers = #tpu.dot_dimension_numbers<[1], [0], [0], [1], [0, 0, 1, 1], [], []>} : vector<9x256xbf16>, vector<256x256xbf16>, vector<9x256xf32> -> vector<9x256xf32>
    %87 = arith.addf %83, %86 : vector<9x256xf32>
    %c0_67 = arith.constant 0 : index
    %c0_68 = arith.constant 0 : index
    %88 = vector.load %arg25[%c0_67, %c0_68] : memref<1x256xf32, #tpu.memory_space<vmem>>, vector<1x256xf32>
    %89 = vector.broadcast %88 : vector<1x256xf32> to vector<9x256xf32>
    %90 = arith.addf %87, %89 : vector<9x256xf32>
    %cst_69 = arith.constant 0.000000e+00 : f32
    %91 = vector.broadcast %cst_69 : f32 to vector<9x256xf32>
    %92 = arith.maximumf %90, %91 : vector<9x256xf32>
    %93 = arith.truncf %92 : vector<9x256xf32> to vector<9x256xbf16>
    %c0_70 = arith.constant 0 : index
    %c0_71 = arith.constant 0 : index
    %94 = vector.load %arg26[%c0_70, %c0_71] : memref<256x256xbf16, #tpu.memory_space<vmem>>, vector<256x256xbf16>
    %cst_72 = arith.constant dense<0.000000e+00> : vector<9x256xf32>
    %95 = tpu.matmul %93, %94, %cst_72 {dimension_numbers = #tpu.dot_dimension_numbers<[1], [0], [0], [1], [0, 0, 1, 1], [], []>} : vector<9x256xbf16>, vector<256x256xbf16>, vector<9x256xf32> -> vector<9x256xf32>
    %c0_73 = arith.constant 0 : index
    %c0_74 = arith.constant 0 : index
    %96 = vector.load %arg27[%c0_73, %c0_74] : memref<1x256xf32, #tpu.memory_space<vmem>>, vector<1x256xf32>
    %97 = vector.broadcast %96 : vector<1x256xf32> to vector<9x256xf32>
    %98 = arith.addf %95, %97 : vector<9x256xf32>
    %99 = arith.addf %56, %98 : vector<9x256xf32>
    %c0_75 = arith.constant 0 : index
    %c0_76 = arith.constant 0 : index
    %100 = vector.load %arg15[%c0_75, %c0_76] : memref<24x9xf32, #tpu.memory_space<vmem>>, vector<24x9xf32>
    %cst_77 = arith.constant dense<0.000000e+00> : vector<24x256xf32>
    %101 = tpu.matmul %100, %99, %cst_77 {dimension_numbers = #tpu.dot_dimension_numbers<[1], [0], [0], [1], [0, 0, 1, 1], [], []>} : vector<24x9xf32>, vector<9x256xf32>, vector<24x256xf32> -> vector<24x256xf32>
    %c0_78 = arith.constant 0 : index
    %c0_79 = arith.constant 0 : index
    %102 = vector.load %arg16[%c0_78, %c0_79] : memref<24x9xf32, #tpu.memory_space<vmem>>, vector<24x9xf32>
    %cst_80 = arith.constant dense<0.000000e+00> : vector<24x256xf32>
    %103 = tpu.matmul %102, %99, %cst_80 {dimension_numbers = #tpu.dot_dimension_numbers<[1], [0], [0], [1], [0, 0, 1, 1], [], []>} : vector<24x9xf32>, vector<9x256xf32>, vector<24x256xf32> -> vector<24x256xf32>
    %104 = arith.truncf %101 : vector<24x256xf32> to vector<24x256xbf16>
    %c0_81 = arith.constant 0 : index
    %c0_82 = arith.constant 0 : index
    %105 = vector.load %arg18[%c0_81, %c0_82] : memref<256x128xbf16, #tpu.memory_space<vmem>>, vector<256x128xbf16>
    %cst_83 = arith.constant dense<0.000000e+00> : vector<24x128xf32>
    %106 = tpu.matmul %104, %105, %cst_83 {dimension_numbers = #tpu.dot_dimension_numbers<[1], [0], [0], [1], [0, 0, 1, 1], [], []>} : vector<24x256xbf16>, vector<256x128xbf16>, vector<24x128xf32> -> vector<24x128xf32>
    %107 = arith.truncf %103 : vector<24x256xf32> to vector<24x256xbf16>
    %c0_84 = arith.constant 0 : index
    %c0_85 = arith.constant 0 : index
    %108 = vector.load %arg19[%c0_84, %c0_85] : memref<256x128xbf16, #tpu.memory_space<vmem>>, vector<256x128xbf16>
    %cst_86 = arith.constant dense<0.000000e+00> : vector<24x128xf32>
    %109 = tpu.matmul %107, %108, %cst_86 {dimension_numbers = #tpu.dot_dimension_numbers<[1], [0], [0], [1], [0, 0, 1, 1], [], []>} : vector<24x256xbf16>, vector<256x128xbf16>, vector<24x128xf32> -> vector<24x128xf32>
    %110 = arith.addf %106, %109 : vector<24x128xf32>
    %c0_87 = arith.constant 0 : index
    %c0_88 = arith.constant 0 : index
    %111 = vector.load %arg20[%c0_87, %c0_88] : memref<1x128xf32, #tpu.memory_space<vmem>>, vector<1x128xf32>
    %112 = vector.broadcast %111 : vector<1x128xf32> to vector<24x128xf32>
    %113 = arith.addf %110, %112 : vector<24x128xf32>
    %cst_89 = arith.constant 0.000000e+00 : f32
    %114 = vector.broadcast %cst_89 : f32 to vector<24x128xf32>
    %115 = arith.maximumf %113, %114 : vector<24x128xf32>
    %116 = arith.truncf %115 : vector<24x128xf32> to vector<24x128xbf16>
    %c0_90 = arith.constant 0 : index
    %c0_91 = arith.constant 0 : index
    %117 = vector.load %arg21[%c0_90, %c0_91] : memref<128x128xbf16, #tpu.memory_space<vmem>>, vector<128x128xbf16>
    %cst_92 = arith.constant dense<0.000000e+00> : vector<24x128xf32>
    %118 = tpu.matmul %116, %117, %cst_92 {dimension_numbers = #tpu.dot_dimension_numbers<[1], [0], [0], [1], [0, 0, 1, 1], [], []>} : vector<24x128xbf16>, vector<128x128xbf16>, vector<24x128xf32> -> vector<24x128xf32>
    %c0_93 = arith.constant 0 : index
    %c0_94 = arith.constant 0 : index
    %119 = vector.load %arg22[%c0_93, %c0_94] : memref<1x128xf32, #tpu.memory_space<vmem>>, vector<1x128xf32>
    %120 = vector.broadcast %119 : vector<1x128xf32> to vector<24x128xf32>
    %121 = arith.addf %118, %120 : vector<24x128xf32>
    %c0_95 = arith.constant 0 : index
    %c0_96 = arith.constant 0 : index
    %122 = vector.load %arg17[%c0_95, %c0_96] : memref<9x24xf32, #tpu.memory_space<vmem>>, vector<9x24xf32>
    %cst_97 = arith.constant dense<0.000000e+00> : vector<9x128xf32>
    %123 = tpu.matmul %122, %121, %cst_97 {dimension_numbers = #tpu.dot_dimension_numbers<[1], [0], [0], [1], [0, 0, 1, 1], [], []>} : vector<9x24xf32>, vector<24x128xf32>, vector<9x128xf32> -> vector<9x128xf32>
    %124 = arith.truncf %123 : vector<9x128xf32> to vector<9x128xbf16>
    %c0_98 = arith.constant 0 : index
    %c0_99 = arith.constant 0 : index
    %125 = vector.load %arg23[%c0_98, %c0_99] : memref<128x256xbf16, #tpu.memory_space<vmem>>, vector<128x256xbf16>
    %cst_100 = arith.constant dense<0.000000e+00> : vector<9x256xf32>
    %126 = tpu.matmul %124, %125, %cst_100 {dimension_numbers = #tpu.dot_dimension_numbers<[1], [0], [0], [1], [0, 0, 1, 1], [], []>} : vector<9x128xbf16>, vector<128x256xbf16>, vector<9x256xf32> -> vector<9x256xf32>
    %127 = arith.truncf %99 : vector<9x256xf32> to vector<9x256xbf16>
    %c0_101 = arith.constant 0 : index
    %c0_102 = arith.constant 0 : index
    %128 = vector.load %arg24[%c0_101, %c0_102] : memref<256x256xbf16, #tpu.memory_space<vmem>>, vector<256x256xbf16>
    %cst_103 = arith.constant dense<0.000000e+00> : vector<9x256xf32>
    %129 = tpu.matmul %127, %128, %cst_103 {dimension_numbers = #tpu.dot_dimension_numbers<[1], [0], [0], [1], [0, 0, 1, 1], [], []>} : vector<9x256xbf16>, vector<256x256xbf16>, vector<9x256xf32> -> vector<9x256xf32>
    %130 = arith.addf %126, %129 : vector<9x256xf32>
    %c0_104 = arith.constant 0 : index
    %c0_105 = arith.constant 0 : index
    %131 = vector.load %arg25[%c0_104, %c0_105] : memref<1x256xf32, #tpu.memory_space<vmem>>, vector<1x256xf32>
    %132 = vector.broadcast %131 : vector<1x256xf32> to vector<9x256xf32>
    %133 = arith.addf %130, %132 : vector<9x256xf32>
    %cst_106 = arith.constant 0.000000e+00 : f32
    %134 = vector.broadcast %cst_106 : f32 to vector<9x256xf32>
    %135 = arith.maximumf %133, %134 : vector<9x256xf32>
    %136 = arith.truncf %135 : vector<9x256xf32> to vector<9x256xbf16>
    %c0_107 = arith.constant 0 : index
    %c0_108 = arith.constant 0 : index
    %137 = vector.load %arg26[%c0_107, %c0_108] : memref<256x256xbf16, #tpu.memory_space<vmem>>, vector<256x256xbf16>
    %cst_109 = arith.constant dense<0.000000e+00> : vector<9x256xf32>
    %138 = tpu.matmul %136, %137, %cst_109 {dimension_numbers = #tpu.dot_dimension_numbers<[1], [0], [0], [1], [0, 0, 1, 1], [], []>} : vector<9x256xbf16>, vector<256x256xbf16>, vector<9x256xf32> -> vector<9x256xf32>
    %c0_110 = arith.constant 0 : index
    %c0_111 = arith.constant 0 : index
    %139 = vector.load %arg27[%c0_110, %c0_111] : memref<1x256xf32, #tpu.memory_space<vmem>>, vector<1x256xf32>
    %140 = vector.broadcast %139 : vector<1x256xf32> to vector<9x256xf32>
    %141 = arith.addf %138, %140 : vector<9x256xf32>
    %142 = arith.addf %99, %141 : vector<9x256xf32>
    %c0_112 = arith.constant 0 : index
    %c0_113 = arith.constant 0 : index
    %143 = vector.load %arg15[%c0_112, %c0_113] : memref<24x9xf32, #tpu.memory_space<vmem>>, vector<24x9xf32>
    %cst_114 = arith.constant dense<0.000000e+00> : vector<24x256xf32>
    %144 = tpu.matmul %143, %142, %cst_114 {dimension_numbers = #tpu.dot_dimension_numbers<[1], [0], [0], [1], [0, 0, 1, 1], [], []>} : vector<24x9xf32>, vector<9x256xf32>, vector<24x256xf32> -> vector<24x256xf32>
    %c0_115 = arith.constant 0 : index
    %c0_116 = arith.constant 0 : index
    %145 = vector.load %arg16[%c0_115, %c0_116] : memref<24x9xf32, #tpu.memory_space<vmem>>, vector<24x9xf32>
    %cst_117 = arith.constant dense<0.000000e+00> : vector<24x256xf32>
    %146 = tpu.matmul %145, %142, %cst_117 {dimension_numbers = #tpu.dot_dimension_numbers<[1], [0], [0], [1], [0, 0, 1, 1], [], []>} : vector<24x9xf32>, vector<9x256xf32>, vector<24x256xf32> -> vector<24x256xf32>
    %147 = arith.truncf %144 : vector<24x256xf32> to vector<24x256xbf16>
    %c0_118 = arith.constant 0 : index
    %c0_119 = arith.constant 0 : index
    %148 = vector.load %arg18[%c0_118, %c0_119] : memref<256x128xbf16, #tpu.memory_space<vmem>>, vector<256x128xbf16>
    %cst_120 = arith.constant dense<0.000000e+00> : vector<24x128xf32>
    %149 = tpu.matmul %147, %148, %cst_120 {dimension_numbers = #tpu.dot_dimension_numbers<[1], [0], [0], [1], [0, 0, 1, 1], [], []>} : vector<24x256xbf16>, vector<256x128xbf16>, vector<24x128xf32> -> vector<24x128xf32>
    %150 = arith.truncf %146 : vector<24x256xf32> to vector<24x256xbf16>
    %c0_121 = arith.constant 0 : index
    %c0_122 = arith.constant 0 : index
    %151 = vector.load %arg19[%c0_121, %c0_122] : memref<256x128xbf16, #tpu.memory_space<vmem>>, vector<256x128xbf16>
    %cst_123 = arith.constant dense<0.000000e+00> : vector<24x128xf32>
    %152 = tpu.matmul %150, %151, %cst_123 {dimension_numbers = #tpu.dot_dimension_numbers<[1], [0], [0], [1], [0, 0, 1, 1], [], []>} : vector<24x256xbf16>, vector<256x128xbf16>, vector<24x128xf32> -> vector<24x128xf32>
    %153 = arith.addf %149, %152 : vector<24x128xf32>
    %c0_124 = arith.constant 0 : index
    %c0_125 = arith.constant 0 : index
    %154 = vector.load %arg20[%c0_124, %c0_125] : memref<1x128xf32, #tpu.memory_space<vmem>>, vector<1x128xf32>
    %155 = vector.broadcast %154 : vector<1x128xf32> to vector<24x128xf32>
    %156 = arith.addf %153, %155 : vector<24x128xf32>
    %cst_126 = arith.constant 0.000000e+00 : f32
    %157 = vector.broadcast %cst_126 : f32 to vector<24x128xf32>
    %158 = arith.maximumf %156, %157 : vector<24x128xf32>
    %159 = arith.truncf %158 : vector<24x128xf32> to vector<24x128xbf16>
    %c0_127 = arith.constant 0 : index
    %c0_128 = arith.constant 0 : index
    %160 = vector.load %arg21[%c0_127, %c0_128] : memref<128x128xbf16, #tpu.memory_space<vmem>>, vector<128x128xbf16>
    %cst_129 = arith.constant dense<0.000000e+00> : vector<24x128xf32>
    %161 = tpu.matmul %159, %160, %cst_129 {dimension_numbers = #tpu.dot_dimension_numbers<[1], [0], [0], [1], [0, 0, 1, 1], [], []>} : vector<24x128xbf16>, vector<128x128xbf16>, vector<24x128xf32> -> vector<24x128xf32>
    %c0_130 = arith.constant 0 : index
    %c0_131 = arith.constant 0 : index
    %162 = vector.load %arg22[%c0_130, %c0_131] : memref<1x128xf32, #tpu.memory_space<vmem>>, vector<1x128xf32>
    %163 = vector.broadcast %162 : vector<1x128xf32> to vector<24x128xf32>
    %164 = arith.addf %161, %163 : vector<24x128xf32>
    %c0_132 = arith.constant 0 : index
    %c0_133 = arith.constant 0 : index
    %165 = vector.load %arg17[%c0_132, %c0_133] : memref<9x24xf32, #tpu.memory_space<vmem>>, vector<9x24xf32>
    %cst_134 = arith.constant dense<0.000000e+00> : vector<9x128xf32>
    %166 = tpu.matmul %165, %164, %cst_134 {dimension_numbers = #tpu.dot_dimension_numbers<[1], [0], [0], [1], [0, 0, 1, 1], [], []>} : vector<9x24xf32>, vector<24x128xf32>, vector<9x128xf32> -> vector<9x128xf32>
    %167 = arith.truncf %166 : vector<9x128xf32> to vector<9x128xbf16>
    %c0_135 = arith.constant 0 : index
    %c0_136 = arith.constant 0 : index
    %168 = vector.load %arg23[%c0_135, %c0_136] : memref<128x256xbf16, #tpu.memory_space<vmem>>, vector<128x256xbf16>
    %cst_137 = arith.constant dense<0.000000e+00> : vector<9x256xf32>
    %169 = tpu.matmul %167, %168, %cst_137 {dimension_numbers = #tpu.dot_dimension_numbers<[1], [0], [0], [1], [0, 0, 1, 1], [], []>} : vector<9x128xbf16>, vector<128x256xbf16>, vector<9x256xf32> -> vector<9x256xf32>
    %170 = arith.truncf %142 : vector<9x256xf32> to vector<9x256xbf16>
    %c0_138 = arith.constant 0 : index
    %c0_139 = arith.constant 0 : index
    %171 = vector.load %arg24[%c0_138, %c0_139] : memref<256x256xbf16, #tpu.memory_space<vmem>>, vector<256x256xbf16>
    %cst_140 = arith.constant dense<0.000000e+00> : vector<9x256xf32>
    %172 = tpu.matmul %170, %171, %cst_140 {dimension_numbers = #tpu.dot_dimension_numbers<[1], [0], [0], [1], [0, 0, 1, 1], [], []>} : vector<9x256xbf16>, vector<256x256xbf16>, vector<9x256xf32> -> vector<9x256xf32>
    %173 = arith.addf %169, %172 : vector<9x256xf32>
    %c0_141 = arith.constant 0 : index
    %c0_142 = arith.constant 0 : index
    %174 = vector.load %arg25[%c0_141, %c0_142] : memref<1x256xf32, #tpu.memory_space<vmem>>, vector<1x256xf32>
    %175 = vector.broadcast %174 : vector<1x256xf32> to vector<9x256xf32>
    %176 = arith.addf %173, %175 : vector<9x256xf32>
    %cst_143 = arith.constant 0.000000e+00 : f32
    %177 = vector.broadcast %cst_143 : f32 to vector<9x256xf32>
    %178 = arith.maximumf %176, %177 : vector<9x256xf32>
    %179 = arith.truncf %178 : vector<9x256xf32> to vector<9x256xbf16>
    %c0_144 = arith.constant 0 : index
    %c0_145 = arith.constant 0 : index
    %180 = vector.load %arg26[%c0_144, %c0_145] : memref<256x256xbf16, #tpu.memory_space<vmem>>, vector<256x256xbf16>
    %cst_146 = arith.constant dense<0.000000e+00> : vector<9x256xf32>
    %181 = tpu.matmul %179, %180, %cst_146 {dimension_numbers = #tpu.dot_dimension_numbers<[1], [0], [0], [1], [0, 0, 1, 1], [], []>} : vector<9x256xbf16>, vector<256x256xbf16>, vector<9x256xf32> -> vector<9x256xf32>
    %c0_147 = arith.constant 0 : index
    %c0_148 = arith.constant 0 : index
    %182 = vector.load %arg27[%c0_147, %c0_148] : memref<1x256xf32, #tpu.memory_space<vmem>>, vector<1x256xf32>
    %183 = vector.broadcast %182 : vector<1x256xf32> to vector<9x256xf32>
    %184 = arith.addf %181, %183 : vector<9x256xf32>
    %185 = arith.addf %142, %184 : vector<9x256xf32>
    %c0_149 = arith.constant 0 : index
    %c0_150 = arith.constant 0 : index
    %c0_151 = arith.constant 0 : index
    %186 = vector.load %arg4[%c0_149, %c0_150, %c0_151] : memref<1x4x7xf32, #tpu.memory_space<vmem>>, vector<1x4x7xf32>
    %187 = vector.shape_cast %186 : vector<1x4x7xf32> to vector<4x7xf32>
    %188 = vector.extract_strided_slice %187 {offsets = [0, 0], sizes = [4, 2], strides = [1, 1]} : vector<4x7xf32> to vector<4x2xf32>
    %189 = vector.extract_strided_slice %188 {offsets = [0, 0], sizes = [4, 1], strides = [1, 1]} : vector<4x2xf32> to vector<4x1xf32>
    %c0_152 = arith.constant 0 : index
    %c0_153 = arith.constant 0 : index
    %190 = vector.load %arg13[%c0_152, %c0_153] : memref<2x9xf32, #tpu.memory_space<vmem>>, vector<1x9xf32>
    %191 = vector.broadcast %189 : vector<4x1xf32> to vector<4x9xf32>
    %192 = vector.broadcast %190 : vector<1x9xf32> to vector<4x9xf32>
    %193 = arith.subf %191, %192 : vector<4x9xf32>
    %194 = vector.extract_strided_slice %188 {offsets = [0, 1], sizes = [4, 1], strides = [1, 1]} : vector<4x2xf32> to vector<4x1xf32>
    %c1_154 = arith.constant 1 : index
    %c0_155 = arith.constant 0 : index
    %195 = vector.load %arg13[%c1_154, %c0_155] : memref<2x9xf32, #tpu.memory_space<vmem>>, vector<1x9xf32>
    %196 = vector.broadcast %194 : vector<4x1xf32> to vector<4x9xf32>
    %197 = vector.broadcast %195 : vector<1x9xf32> to vector<4x9xf32>
    %198 = arith.subf %196, %197 : vector<4x9xf32>
    %199 = arith.mulf %193, %193 : vector<4x9xf32>
    %200 = arith.mulf %198, %198 : vector<4x9xf32>
    %201 = arith.addf %199, %200 : vector<4x9xf32>
    %cst_156 = arith.constant 0.000000e+00 : f32
    %202 = vector.broadcast %cst_156 : f32 to vector<4x9xf32>
    %203 = arith.subf %202, %201 : vector<4x9xf32>
    %cst_157 = arith.constant 1.000000e+01 : f32
    %204 = vector.broadcast %cst_157 : f32 to vector<4x9xf32>
    %205 = arith.mulf %203, %204 : vector<4x9xf32>
    %cst_158 = arith.constant dense<0xFF800000> : vector<4xf32>
    %206 = vector.multi_reduction <maximumf>, %205, %cst_158 [1] : vector<4x9xf32> to vector<4xf32>
    %207 = vector.shape_cast %206 : vector<4xf32> to vector<4x1xf32>
    %208 = vector.broadcast %207 : vector<4x1xf32> to vector<4x9xf32>
    %209 = arith.subf %205, %208 : vector<4x9xf32>
    %210 = math.exp %209 : vector<4x9xf32>
    %cst_159 = arith.constant dense<0.000000e+00> : vector<4xf32>
    %211 = vector.multi_reduction <add>, %210, %cst_159 [1] : vector<4x9xf32> to vector<4xf32>
    %212 = vector.shape_cast %211 : vector<4xf32> to vector<4x1xf32>
    %213 = vector.broadcast %212 : vector<4x1xf32> to vector<4x9xf32>
    %214 = arith.divf %210, %213 : vector<4x9xf32>
    %cst_160 = arith.constant dense<0.000000e+00> : vector<4x256xf32>
    %215 = tpu.matmul %214, %185, %cst_160 {dimension_numbers = #tpu.dot_dimension_numbers<[1], [0], [0], [1], [0, 0, 1, 1], [], []>} : vector<4x9xf32>, vector<9x256xf32>, vector<4x256xf32> -> vector<4x256xf32>
    %c0_161 = arith.constant 0 : index
    %c0_162 = arith.constant 0 : index
    %c0_163 = arith.constant 0 : index
    %216 = vector.load %arg28[%c0_161, %c0_162, %c0_163] : memref<1x4x256xf32, #tpu.memory_space<vmem>>, vector<1x4x256xf32>
    %217 = vector.shape_cast %216 : vector<1x4x256xf32> to vector<4x256xf32>
    %218 = vector.shape_cast %215 : vector<4x256xf32> to vector<1x4x256xf32>
    tpu.vector_store %arg28[%c0_161, %c0_162, %c0_163], %218 {strides = array<i32>} : memref<1x4x256xf32, #tpu.memory_space<vmem>>, vector<1x4x256xf32>,
    return
  }
  func.func @transform_0(%arg0: i32) -> (i32, i32, i32) {
    %c0_i32 = arith.constant 0 : i32
    %c0_i32_0 = arith.constant 0 : i32
    %c0_i32_1 = arith.constant 0 : i32
    return %arg0, %c0_i32, %c0_i32_0 : i32, i32, i32
  }
  func.func @transform_1(%arg0: i32) -> (i32, i32, i32) {
    %c0_i32 = arith.constant 0 : i32
    %c0_i32_0 = arith.constant 0 : i32
    %c0_i32_1 = arith.constant 0 : i32
    return %arg0, %c0_i32, %c0_i32_0 : i32, i32, i32
  }
  func.func @transform_2(%arg0: i32) -> (i32, i32, i32) {
    %c0_i32 = arith.constant 0 : i32
    %c0_i32_0 = arith.constant 0 : i32
    %c0_i32_1 = arith.constant 0 : i32
    return %arg0, %c0_i32, %c0_i32_0 : i32, i32, i32
  }
  func.func @transform_3(%arg0: i32) -> (i32, i32, i32) {
    %c0_i32 = arith.constant 0 : i32
    %c0_i32_0 = arith.constant 0 : i32
    %c0_i32_1 = arith.constant 0 : i32
    return %arg0, %c0_i32, %c0_i32_0 : i32, i32, i32
  }
  func.func @transform_4(%arg0: i32) -> (i32, i32) {
    %c0_i32 = arith.constant 0 : i32
    %c0_i32_0 = arith.constant 0 : i32
    %c0_i32_1 = arith.constant 0 : i32
    return %c0_i32, %c0_i32_0 : i32, i32
  }
  func.func @transform_5(%arg0: i32) -> (i32, i32) {
    %c0_i32 = arith.constant 0 : i32
    %c0_i32_0 = arith.constant 0 : i32
    %c0_i32_1 = arith.constant 0 : i32
    return %c0_i32, %c0_i32_0 : i32, i32
  }
  func.func @transform_6(%arg0: i32) -> (i32, i32) {
    %c0_i32 = arith.constant 0 : i32
    %c0_i32_0 = arith.constant 0 : i32
    %c0_i32_1 = arith.constant 0 : i32
    return %c0_i32, %c0_i32_0 : i32, i32
  }
  func.func @transform_7(%arg0: i32) -> (i32, i32) {
    %c0_i32 = arith.constant 0 : i32
    %c0_i32_0 = arith.constant 0 : i32
    %c0_i32_1 = arith.constant 0 : i32
    return %c0_i32, %c0_i32_0 : i32, i32
  }
  func.func @transform_8(%arg0: i32) -> (i32, i32) {
    %c0_i32 = arith.constant 0 : i32
    %c0_i32_0 = arith.constant 0 : i32
    %c0_i32_1 = arith.constant 0 : i32
    return %c0_i32, %c0_i32_0 : i32, i32
  }
  func.func @transform_9(%arg0: i32) -> (i32, i32) {
    %c0_i32 = arith.constant 0 : i32
    %c0_i32_0 = arith.constant 0 : i32
    %c0_i32_1 = arith.constant 0 : i32
    return %c0_i32, %c0_i32_0 : i32, i32
  }
  func.func @transform_10(%arg0: i32) -> (i32, i32) {
    %c0_i32 = arith.constant 0 : i32
    %c0_i32_0 = arith.constant 0 : i32
    %c0_i32_1 = arith.constant 0 : i32
    return %c0_i32, %c0_i32_0 : i32, i32
  }
  func.func @transform_11(%arg0: i32) -> (i32, i32) {
    %c0_i32 = arith.constant 0 : i32
    %c0_i32_0 = arith.constant 0 : i32
    %c0_i32_1 = arith.constant 0 : i32
    return %c0_i32, %c0_i32_0 : i32, i32
  }
  func.func @transform_12(%arg0: i32) -> (i32, i32) {
    %c0_i32 = arith.constant 0 : i32
    %c0_i32_0 = arith.constant 0 : i32
    %c0_i32_1 = arith.constant 0 : i32
    return %c0_i32, %c0_i32_0 : i32, i32
  }
  func.func @transform_13(%arg0: i32) -> (i32, i32) {
    %c0_i32 = arith.constant 0 : i32
    %c0_i32_0 = arith.constant 0 : i32
    %c0_i32_1 = arith.constant 0 : i32
    return %c0_i32, %c0_i32_0 : i32, i32
  }
  func.func @transform_14(%arg0: i32) -> (i32, i32) {
    %c0_i32 = arith.constant 0 : i32
    %c0_i32_0 = arith.constant 0 : i32
    %c0_i32_1 = arith.constant 0 : i32
    return %c0_i32, %c0_i32_0 : i32, i32
  }
  func.func @transform_15(%arg0: i32) -> (i32, i32) {
    %c0_i32 = arith.constant 0 : i32
    %c0_i32_0 = arith.constant 0 : i32
    %c0_i32_1 = arith.constant 0 : i32
    return %c0_i32, %c0_i32_0 : i32, i32
  }
  func.func @transform_16(%arg0: i32) -> (i32, i32) {
    %c0_i32 = arith.constant 0 : i32
    %c0_i32_0 = arith.constant 0 : i32
    %c0_i32_1 = arith.constant 0 : i32
    return %c0_i32, %c0_i32_0 : i32, i32
  }
  func.func @transform_17(%arg0: i32) -> (i32, i32) {
    %c0_i32 = arith.constant 0 : i32
    %c0_i32_0 = arith.constant 0 : i32
    %c0_i32_1 = arith.constant 0 : i32
    return %c0_i32, %c0_i32_0 : i32, i32
  }
  func.func @transform_18(%arg0: i32) -> (i32, i32) {
    %c0_i32 = arith.constant 0 : i32
    %c0_i32_0 = arith.constant 0 : i32
    %c0_i32_1 = arith.constant 0 : i32
    return %c0_i32, %c0_i32_0 : i32, i32
  }
  func.func @transform_19(%arg0: i32) -> (i32, i32) {
    %c0_i32 = arith.constant 0 : i32
    %c0_i32_0 = arith.constant 0 : i32
    %c0_i32_1 = arith.constant 0 : i32
    return %c0_i32, %c0_i32_0 : i32, i32
  }
  func.func @transform_20(%arg0: i32) -> (i32, i32) {
    %c0_i32 = arith.constant 0 : i32
    %c0_i32_0 = arith.constant 0 : i32
    %c0_i32_1 = arith.constant 0 : i32
    return %c0_i32, %c0_i32_0 : i32, i32
  }
  func.func @transform_21(%arg0: i32) -> (i32, i32) {
    %c0_i32 = arith.constant 0 : i32
    %c0_i32_0 = arith.constant 0 : i32
    %c0_i32_1 = arith.constant 0 : i32
    return %c0_i32, %c0_i32_0 : i32, i32
  }
  func.func @transform_22(%arg0: i32) -> (i32, i32) {
    %c0_i32 = arith.constant 0 : i32
    %c0_i32_0 = arith.constant 0 : i32
    %c0_i32_1 = arith.constant 0 : i32
    return %c0_i32, %c0_i32_0 : i32, i32
  }
  func.func @transform_23(%arg0: i32) -> (i32, i32) {
    %c0_i32 = arith.constant 0 : i32
    %c0_i32_0 = arith.constant 0 : i32
    %c0_i32_1 = arith.constant 0 : i32
    return %c0_i32, %c0_i32_0 : i32, i32
  }
  func.func @transform_24(%arg0: i32) -> (i32, i32) {
    %c0_i32 = arith.constant 0 : i32
    %c0_i32_0 = arith.constant 0 : i32
    %c0_i32_1 = arith.constant 0 : i32
    return %c0_i32, %c0_i32_0 : i32, i32
  }
  func.func @transform_25(%arg0: i32) -> (i32, i32) {
    %c0_i32 = arith.constant 0 : i32
    %c0_i32_0 = arith.constant 0 : i32
    %c0_i32_1 = arith.constant 0 : i32
    return %c0_i32, %c0_i32_0 : i32, i32
  }
  func.func @transform_26(%arg0: i32) -> (i32, i32) {
    %c0_i32 = arith.constant 0 : i32
    %c0_i32_0 = arith.constant 0 : i32
    %c0_i32_1 = arith.constant 0 : i32
    return %c0_i32, %c0_i32_0 : i32, i32
  }
  func.func @transform_27(%arg0: i32) -> (i32, i32, i32) {
    %c0_i32 = arith.constant 0 : i32
    %c0_i32_0 = arith.constant 0 : i32
    %c0_i32_1 = arith.constant 0 : i32
    return %arg0, %c0_i32, %c0_i32_0 : i32, i32, i32
  }
}

</mosaic_0001>

<bundles_post_ra>
// kernel: gen_composer_forward.1
= control target key start
LH: loop header
LB: loop body
LE: loop exit
PB: predicated region body
PF: predicated region fallthrough
CT: control target
= control target key end

     0   :  { %s12091_s0 = inlined_call_operand.vmem [shape: f32[2,768,48], index: 0, kind: input, shape index: {}]   ;;  %s12092_s1 = inlined_call_operand.vmem [shape: f32[2,3,7], index: 1, kind: input, shape index: {}]   ;;  %s12093_s2 = inlined_call_operand.vmem [shape: f32[2,2,3], index: 2, kind: input, shape index: {}]   ;;  %s12094_s3 = inlined_call_operand.vmem [shape: f32[2,4,7], index: 3, kind: input, shape index: {}]   ;;  %s12095_s4 = inlined_call_operand.vmem [shape: f32[48,32], index: 4, kind: input, shape index: {}]   ;;  %s12096_s5 = inlined_call_operand.vmem [shape: f32[1,32], index: 5, kind: input, shape index: {}]   ;;  %s12097_s6 = inlined_call_operand.vmem [shape: bf16[32,256], index: 6, kind: input, shape index: {}]   ;;  %s12098_s7 = inlined_call_operand.vmem [shape: f32[7,256], index: 7, kind: input, shape index: {}]   ;;  %s12099_s8 = inlined_call_operand.vmem [shape: f32[1,256], index: 8, kind: input, shape index: {}]   ;;  %s12100_s9 = inlined_call_operand.vmem [shape: f32[768,3], index: 9, kind: input, shape index: {}]   ;;  %s12101_s10 = inlined_call_operand.vmem [shape: f32[3,768], index: 10, kind: input, shape index: {}]   ;;  %s12102_s11 = inlined_call_operand.vmem [shape: f32[9,2], index: 11, kind: input, shape index: {}]   ;;  %s12103_s12 = inlined_call_operand.vmem [shape: f32[2,9], index: 12, kind: input, shape index: {}]   ;;  %s12104_s13 = inlined_call_operand.vmem [shape: f32[9,256], index: 13, kind: input, shape index: {}]   ;;  %s12105_s14 = inlined_call_operand.vmem [shape: f32[24,9], index: 14, kind: input, shape index: {}]   ;;  %s12106_s15 = inlined_call_operand.vmem [shape: f32[24,9], index: 15, kind: input, shape index: {}]   ;;  %s12107_s16 = inlined_call_operand.vmem [shape: f32[9,24], index: 16, kind: input, shape index: {}]   ;;  %s12108_s17 = inlined_call_operand.vmem [shape: bf16[256,128], index: 17, kind: input, shape index: {}]   ;;  %s12109_s18 = inlined_call_operand.vmem [shape: bf16[256,128], index: 18, kind: input, shape index: {}]   ;;  %s12110_s19 = inlined_call_operand.vmem [shape: f32[1,128], index: 19, kind: input, shape index: {}]   ;;  %s12111_s20 = inlined_call_operand.vmem [shape: bf16[128,128], index: 20, kind: input, shape index: {}]   ;;  %s12112_s21 = inlined_call_operand.vmem [shape: f32[1,128], index: 21, kind: input, shape index: {}]   ;;  %s12113_s22 = inlined_call_operand.vmem [shape: bf16[128,256], index: 22, kind: input, shape index: {}]   ;;  %s12114_s23 = inlined_call_operand.vmem [shape: bf16[256,256], index: 23, kind: input, shape index: {}]   ;;  %s12115_s24 = inlined_call_operand.vmem [shape: f32[1,256], index: 24, kind: input, shape index: {}]   ;;  %s12116_s25 = inlined_call_operand.vmem [shape: bf16[256,256], index: 25, kind: input, shape index: {}]   ;;  %s12117_s26 = inlined_call_operand.vmem [shape: f32[1,256], index: 26, kind: input, shape index: {}]   ;;  %s12118_s27 = inlined_call_operand.hbm [shape: f32[2,4,256], index: 27, kind: output, shape index: {}]  }
   0x1   :  { %12345 = sst [smem:[#allocation107_spill]] %s12091_s0 }
   0x2   :  { %12346 = sst [smem:[#allocation108_spill]] %s12092_s1 }
   0x3   :  { %12347 = sst [smem:[#allocation109_spill]] %s12093_s2 }
   0x4   :  { %12348 = sst [smem:[#allocation110_spill]] %s12094_s3 }
   0x5   :  { %12349 = sst [smem:[#allocation111_spill]] %s12095_s4 }
   0x6   :  { %12350 = sst [smem:[#allocation112_spill]] %s12096_s5 }
   0x7   :  { %12351 = sst [smem:[#allocation113_spill]] %s12097_s6 }
   0x8   :  { %12352 = sst [smem:[#allocation114_spill]] %s12098_s7 }
   0x9   :  { %12353 = sst [smem:[#allocation115_spill]] %s12099_s8 }
   0xa   :  { %12354 = sst [smem:[#allocation116_spill]] %s12100_s9 }
   0xb   :  { %12355 = sst [smem:[#allocation117_spill]] %s12101_s10 }
   0xc   :  { %12356 = sst [smem:[#allocation118_spill]] %s12102_s11 }
   0xd   :  { %12357 = sst [smem:[#allocation119_spill]] %s12103_s12 }
   0xe   :  { %12358 = sst [smem:[#allocation120_spill]] %s12104_s13 }
   0xf   :  { %12359 = sst [smem:[#allocation121_spill]] %s12105_s14 }
  0x10   :  { %12360 = sst [smem:[#allocation122_spill]] %s12118_s27 }
  0x11   :  { %32 = vsyncpa [#allocation3], 0 }
  0x12   :  { %34 = vsyncpa [#allocation3 + $0x1], 0  ;;  %s7901_s7 = smov 0   ;;  %s7903_s4 = smov 0  }
  0x13   :  { %s7905_s8 = smov 0   ;;  %s7907_s30 = smov 0  }
  0x14 LB: > { %12361 = sst [smem:[#allocation5_spill]] %s7745_s7  ;;  %s7922_s9 = sadd.s32 4294967295, %s7757_s30   ;;  %s7757_s30 = sphi %s7907_s30, %s12838_s30   ;;  %s7753_s8 = sphi %s7905_s8, %s12840_s8   ;;  %s7749_s4 = sphi %s7903_s4, %s12842_s4   ;;  %s7745_s7 = sphi %s7901_s7, %s12841_s7  }
  0x15   : > { %12362 = sst [smem:[#allocation6_spill]] %s7753_s8  ;;  %s6486_s5 = sadd.s32 4294967294, %s7757_s30  }
  0x16   : > { %12363 = sst [smem:[#allocation7_spill]] %s7757_s30  ;;  %s7926_s28 = sadd.s32 1, %s7757_s30  }
  0x17   : > { %12364 = sst [smem:[#allocation8_spill]] %s7922_s9  ;;  %s634_s0 = sadd.s32 1, %s7753_s8 }
  0x18   : > { %12365 = sst [smem:[#allocation9_spill]] %s7926_s28  ;;  %s631_s10 = ssub.s32 %s7757_s30, %s7926_s28 }
  0x19   : > { %p644_p0 = scmp.ne.s32.totalorder %s7753_s8, %s7749_s4  ;;  %p632_p1 = scmp.eq.s32.totalorder %s631_s10, 0 }
  0x1a   : > { %p645_p2 = scmp.eq.s32.totalorder %s7922_s9, 1  ;;  %p650_p3 = scmp.ne.s32.totalorder %s7749_s4, %s7745_s7 }
  0x1b   : > { %p651_p4 = scmp.eq.s32.totalorder %s6486_s5, 1  ;;  %p6489_p7 = scmp.ge.s32.totalorder %s7757_s30, 1 }
  0x1c   : > { %s7937_s29 = scalar_select %p632_p1, %s7753_s8, %s634_s0  }
  0x1d   : > { %p7939_p5 = por %p645_p2, %p644_p0  ;;  %p7943_p6 = por %p651_p4, %p650_p3 }
  0x1e   : > { %12366 = sst [smem:[#allocation10_spill]] %s7937_s29  ;;  %p767_p8 = scmp.lt.s32.totalorder %s7757_s30, 3 }
  0x1f   : > { %s12367_s1 = scalar_select %p7939_p5, 1, 0 }
  0x20   : > { %s12369_s6 = scalar_select %p7943_p6, 1, 0 }
  0x21   : > { %12368 = sst [smem:[#allocation11_spill]] %s12367_s1  ;;  %p768_p9 = pnand %p6489_p7, %p767_p8 }
  0x22   : > { %12370 = sst [smem:[#allocation12_spill]] %s12369_s6 }
  0x23   : > { %771 = sbr.rel (%p768_p9) target bundleno = 4942 (0x134e), region = 128 }
  0x28   : > { %s12371_s3 = sld [smem:[#allocation111_spill]]  ;;  %vm1672_vm0 = vcmask 1046528   ;;  %p851_p10 = scmp.lt.s32.totalorder %s7922_s9, 1  ;;  %vm1668_vm1 = vcmask 56320   ;;  %vm975_vm2 = vcmask 392192   ;;  %vm2104_vm3 = vcmask 1042432  }
  0x29   : > { %s12372_s8 = sld [smem:[#allocation114_spill]]  ;;  %vm1815_vm4 = vcmask 23552   ;;  %vm2793_vm5 = vcmask 261120   ;;  %vm4127_vm6 = vcmask 16384   ;;  %vm4242_vm11 = vcmask 1040384  }
  0x2a   : > { %s7964_s11 = scalar_select %p851_p10, %s7922_s9, 1  ;;  %vm4232_vm12 = vcmask 72704   ;;  %vm4801_vm13 = vcmask 195584   ;;  %vm6293_vm14 = vcmask 68608  }
  0x2b   : > { %s12374_s29 = sld [smem:[#allocation108_spill]] }
  0x2c   : > { %s7580_s0 = smul.u32 768, %s7964_s11  ;;  %s12187_s30 = sshll.u32 %s7964_s11, 2 }
  0x2d   : > { %s12375_s27 = sld [smem:[#allocation107_spill]] }
  0x2e   : > { %v970_v0 = vld [vmem:[%s12371_s3 + $0x28] sm:$0xff]  ;;  %v969_v1 = vld [vmem:[%s12371_s3 + $0x20] sm:$0xff]  ;;  %v968_v3 = vld [vmem:[%s12371_s3 + $0x18] sm:$0xff]  ;;  %s12378_s1 = sld [smem:[#allocation112_spill]] }
  0x2f   : > { %1274 = vmatpush.msra.mxu0 %v970_v0  ;;  %s12373_s28 = smov %s12372_s8  ;;  %v1666_v2 = vld [vmem:[%s12372_s8] sm:$0x7f]  ;;  %v967_v4 = vld [vmem:[%s12371_s3 + $0x10] sm:$0xff]  ;;  %v966_v6 = vld [vmem:[%s12371_s3 + $0x8] sm:$0xff]  ;;  %s12499_s2 = sld [smem:[#allocation117_spill]] }
  0x30   : > { %6591 = vmatpush.msk.msra.mxu1 %vm1672_vm0, %v1666_v2  ;;  %v965_v7 = vld [vmem:[%s12371_s3] sm:$0xff]  ;;  %v1667_v21 = vld [vmem:[%s12373_s28 + $0x8] sm:$0x7f]  ;;  %s12582_s5 = sld [smem:[#allocation118_spill]] }
  0x31   : > { %1275 = vmatpush.msra.mxu0 %v969_v1  ;;  %s859_s6 = scalar_lea.vmem %s12374_s29, %s12187_s30  ;;  %6593 = vmatpush.msk.msra.mxu2 %vm1672_vm0, %v1667_v21  ;;  %s12377_s29 = sld [smem:[#allocation116_spill]] }
  0x32   : > { %v1665_v5 = vld [vmem:[%s859_s6] sm:$0x7]  ;;  %s12376_s6 = sld [smem:[#allocation113_spill]]  ;;  %s6493_s30 = sshll.u32 %s7964_s11, 1 }
  0x33   : > { %1276 = vmatpush.msra.mxu0 %v968_v3  ;;  %s7979_s9 = scalar_lea.vmem %s12375_s27, %s7580_s0  ;;  %6592 = vmatmul.msk.f32.vlgmr.msra.gmra.mxu1 %vm1668_vm1, %v1665_v5  ;;  %s12395_s0 = sld [smem:[#allocation115_spill]] }
  0x34   : > { %v869_v8 = vld [vmem:[%s7979_s9] sm:$0xff]  ;;  %v870_v9 = vld [vmem:[%s7979_s9 + $0x8] sm:$0xff]  ;;  %v871_v10 = vld [vmem:[%s7979_s9 + $0x10] sm:$0xff]  ;;  %6594 = vmatmul.msk.f32.vlgmr.msra.gmra.mxu2 %vm1668_vm1, %v1665_v5  ;;  %s12588_s8 = sld [smem:[#allocation109_spill]] }
  0x35   : > { %1277 = vmatpush.msra.mxu0 %v967_v4  ;;  %v872_v11 = vld [vmem:[%s7979_s9 + $0x18] sm:$0xff]  ;;  %v873_v12 = vld [vmem:[%s7979_s9 + $0x20] sm:$0xff]  ;;  %v874_v13 = vld [vmem:[%s7979_s9 + $0x28] sm:$0xff]  ;;  %s12591_s13 = sld [smem:[#allocation120_spill]] }
  0x36   : > { %v875_v14 = vld [vmem:[%s7979_s9 + $0x30] sm:$0xff]  ;;  %v876_v15 = vld [vmem:[%s7979_s9 + $0x38] sm:$0xff]  ;;  %v877_v16 = vld [vmem:[%s7979_s9 + $0x40] sm:$0xff]  ;;  %s12592_s14 = sld [smem:[#allocation121_spill]] }
  0x37   : > { %1278 = vmatpush.msra.mxu0 %v966_v6  ;;  %v878_v17 = vld [vmem:[%s7979_s9 + $0x48] sm:$0xff]  ;;  %v879_v18 = vld [vmem:[%s7979_s9 + $0x50] sm:$0xff]  ;;  %v880_v19 = vld [vmem:[%s7979_s9 + $0x58] sm:$0xff]  ;;  %s12786_s3 = sld [smem:[#allocation110_spill]] }
  0x38   : > { %v881_v20 = vld [vmem:[%s7979_s9 + $0x60] sm:$0xff]  ;;  %v6799_v22 = vld [vmem:[%s12376_s6 + $0x10] sm:$0xf]  ;;  %v7453_v23 = vld [vmem:[%s12376_s6 + $0x14] sm:$0xf0]  ;;  %s12795_s12 = sld [smem:[#allocation119_spill]] }
  0x39   : > { %1279 = vmatpush.msra.mxu0 %v965_v7  ;;  %v6800_v24 = vor.u32 %v7453_v23, %v6799_v22  ;;  %v882_v25 = vld [vmem:[%s7979_s9 + $0x68] sm:$0xff]  ;;  %v6791_v26 = vld [vmem:[%s12376_s6] sm:$0xf]  ;;  %v883_v29 = vld [vmem:[%s7979_s9 + $0x70] sm:$0xff] }
  0x3a   : > { %6495 = vmatmul.msk.f32.vlgmr.msra.gmra.mxu0 %vm975_vm2, %v869_v8  ;;  %v7451_v27 = vld [vmem:[%s12376_s6 + $0x4] sm:$0xf0]  ;;  %v884_v30 = vld [vmem:[%s7979_s9 + $0x78] sm:$0xff]  ;;  %v7452_v33 = vld [vmem:[%s12376_s6 + $0x14] sm:$0xf]  ;;  %s863_s7 = scalar_lea.vmem %s12588_s8, %s6493_s30  ;;  %s12832_s30 = sld [smem:[#allocation8_spill]] }
  0x3b   : > { %2944 = vmatpush.bf16.msrb.mxu2 %v6800_v24  ;;  %v6792_v28 = vor.u32 %v7451_v27, %v6791_v26  ;;  %v8039_v31 = vld [vmem:[%s12377_s29 + $0x8] sm:$0xff]  ;;  %v6801_v34 = vld [vmem:[%s12376_s6 + $0x18] sm:$0xf0]  ;;  %v885_v37 = vld [vmem:[%s7979_s9 + $0x80] sm:$0xff] }
  0x3c   : > { %v6804_v35 = vor.u32 %v7452_v33, %v6801_v34  ;;  %v8056_v38 = vld [vmem:[%s12378_s1] ss:$0 sm:$0xff]  ;;  %v8061_v39 = vld [vmem:[%s12377_s29 + $0x10] sm:$0xff]  ;;  %v886_v42 = vld [vmem:[%s7979_s9 + $0x88] sm:$0xff] }
  0x3d   : > { %v8072_v45 = vld [vmem:[%s12377_s29 + $0x18] sm:$0xff]  ;;  %v887_v49 = vld [vmem:[%s7979_s9 + $0x90] sm:$0xff]  ;;  %v8085_v50 = vld [vmem:[%s12377_s29 + $0x20] sm:$0xff] }
  0x3e   : > { %3193 = vmatpush.bf16.msrb.mxu0 %v6804_v35  ;;  %v888_v53 = vld [vmem:[%s7979_s9 + $0x98] sm:$0xff]  ;;  %v8096_v56 = vld [vmem:[%s12377_s29 + $0x28] sm:$0xff]  ;;  %v889_v60 = vld [vmem:[%s7979_s9 + $0xa0] sm:$0xff] }
  0x3f   : > { %2945 = vmatpush.bf16.msrb.mxu2 %v6792_v28  ;;  %v8109_v61 = vld [vmem:[%s12377_s29 + $0x30] sm:$0xff]  ;;  %v890_v0 = vld [vmem:[%s7979_s9 + $0xa8] sm:$0xff]  ;;  %v8120_v3 = vld [vmem:[%s12377_s29 + $0x38] sm:$0xff] }
  0x40   : > { %v891_v7 = vld [vmem:[%s7979_s9 + $0xb0] sm:$0xff]  ;;  %v8133_v8 = vld [vmem:[%s12377_s29 + $0x40] sm:$0xff]  ;;  %v894_v22 = vld [vmem:[%s7979_s9 + $0xc8] sm:$0xff]  ;;  %s7574_s8 = sshll.u32 %s12832_s30, 3 }
  0x41   : > { %v896_v34 = vld [vmem:[%s7979_s9 + $0xd8] sm:$0xff] }
  0x42   : > { %6496 = vmatmul.msk.f32.gmra.mxu0 %vm975_vm2, %v870_v9 }
  0x4a   : > { %6497 = vmatmul.msk.f32.gmra.mxu0 %vm975_vm2, %v871_v10 }
  0x52   : > { %6498 = vmatmul.msk.f32.gmra.mxu0 %vm975_vm2, %v872_v11  ;;  %v892_v11 = vld [vmem:[%s7979_s9 + $0xb8] sm:$0xff] }
  0x5a   : > { %6499 = vmatmul.msk.f32.gmra.mxu0 %vm975_vm2, %v873_v12 }
  0x62   : > { %6500 = vmatmul.msk.f32.gmra.mxu0 %vm975_vm2, %v874_v13 }
  0x6a   : > { %6501 = vmatmul.msk.f32.gmra.mxu0 %vm975_vm2, %v875_v14  ;;  %v8144_v14 = vld [vmem:[%s12377_s29 + $0x48] sm:$0xff] }
  0x72   : > { %6502 = vmatmul.msk.f32.gmra.mxu0 %vm975_vm2, %v876_v15 }
  0x7a   : > { %6503 = vmatmul.msk.f32.gmra.mxu0 %vm975_vm2, %v877_v16 }
  0x82   : > { %6504 = vmatmul.msk.f32.gmra.mxu0 %vm975_vm2, %v878_v17 }
  0x8a   : > { %6505 = vmatmul.msk.f32.gmra.mxu0 %vm975_vm2, %v879_v18  ;;  %v893_v18 = vld [vmem:[%s7979_s9 + $0xc0] sm:$0xff] }
  0x92   : > { %6506 = vmatmul.msk.f32.gmra.mxu0 %vm975_vm2, %v880_v19  ;;  %v8157_v19 = vld [vmem:[%s12377_s29 + $0x50] sm:$0xff] }
  0x9a   : > { %6507 = vmatmul.msk.f32.gmra.mxu0 %vm975_vm2, %v881_v20 }
  0xa2   : > { %6508 = vmatmul.msk.f32.gmra.mxu0 %vm975_vm2, %v882_v25  ;;  %v8168_v25 = vld [vmem:[%s12377_s29 + $0x58] sm:$0xff] }
  0xaa   : > { %6509 = vmatmul.msk.f32.gmra.mxu0 %vm975_vm2, %v883_v29  ;;  %v895_v29 = vld [vmem:[%s7979_s9 + $0xd0] sm:$0xff] }
  0xb0   : > { %v1696_v32 = vpop.f32.mrf.mxu1 }
  0xb1   : > { %6595 = vmatpush.msk.msrb.mxu1 %vm2104_vm3, %v1696_v32  ;;  %7575 = vmatpush.msk.msra.mxu3 %vm2104_vm3, %v1696_v32 }
  0xb2   : > { %6510 = vmatmul.msk.f32.gmra.mxu0 %vm975_vm2, %v884_v30  ;;  %6597 = vmatmul.msk.f32.vlgmr.msra.gmra.mxu3 %vm1815_vm4, %v8039_v31  ;;  %v8181_v30 = vld [vmem:[%s12377_s29 + $0x60] sm:$0xff] }
  0xb3   : > { %7576 = vmatpush.bf16.msrb.mxu3 %v6804_v35 }
  0xb7   : > { %v1281_v36 = vpop.f32.mrf.mxu0 }
  0xb8   : > { %v1282_v40 = vadd.f32 %v8056_v38, %v1281_v36 }
  0xba   : > { %6511 = vmatmul.msk.f32.gmra.mxu0 %vm975_vm2, %v885_v37  ;;  %6598 = vmatmul.msk.f32.gmra.mxu3 %vm1815_vm4, %v8061_v39  ;;  %v1569_v43 = vmax.f32 %v1282_v40, 0.0  ;;  %v8192_v37 = vld [vmem:[%s12377_s29 + $0x68] sm:$0xff] }
  0xbf   : > { %v1284_v41 = vpop.f32.mrf.mxu0 }
  0xc0   : > { %v1285_v44 = vadd.f32 %v8056_v38, %v1284_v41 }
  0xc2   : > { %v1570_v46 = vmax.f32 %v1285_v44, 0.0  ;;  %6512 = vmatmul.msk.f32.gmra.mxu0 %vm975_vm2, %v886_v42  ;;  %6599 = vmatmul.msk.f32.gmra.mxu3 %vm1815_vm4, %v8072_v45  ;;  %v8205_v44 = vld [vmem:[%s12377_s29 + $0x70] sm:$0xff] }
  0xc4   : > { %v8075_v47 = vpack.c.bf16 %v1570_v46, %v1569_v43  ;;  %v897_v43 = vld [vmem:[%s7979_s9 + $0xe0] sm:$0xff] }
  0xc6   : > { %12379 = vst [vmem:[#allocation13_spill] sm:$0xff] %v8075_v47  ;;  %6805 = vmatmul.msk.bf16.vlgmr.msrb.gmra.mxu2 %vm2793_vm5, %v8075_v47 }
  0xc7   : > { %v1287_v48 = vpop.f32.mrf.mxu0 }
  0xc8   : > { %v1288_v51 = vadd.f32 %v8056_v38, %v1287_v48 }
  0xca   : > { %6513 = vmatmul.msk.f32.gmra.mxu0 %vm975_vm2, %v887_v49  ;;  %6600 = vmatmul.msk.f32.gmra.mxu3 %vm1815_vm4, %v8085_v50  ;;  %v1571_v54 = vmax.f32 %v1288_v51, 0.0  ;;  %v898_v49 = vld [vmem:[%s7979_s9 + $0xe8] sm:$0xff] }
  0xcf   : > { %v1290_v52 = vpop.f32.mrf.mxu0 }
  0xd0   : > { %v1291_v55 = vadd.f32 %v8056_v38, %v1290_v52 }
  0xd2   : > { %v1572_v57 = vmax.f32 %v1291_v55, 0.0  ;;  %6514 = vmatmul.msk.f32.gmra.mxu0 %vm975_vm2, %v888_v53  ;;  %6601 = vmatmul.msk.f32.gmra.mxu3 %vm1815_vm4, %v8096_v56  ;;  %v8216_v53 = vld [vmem:[%s12377_s29 + $0x78] sm:$0xff] }
  0xd4   : > { %v8101_v58 = vpack.c.bf16 %v1572_v57, %v1571_v54  ;;  %v1716_v54 = vpop.f32.mrf.mxu2 }
  0xd5   : > { %6692 = vmatpush.msk.msra.mxu1 %vm2104_vm3, %v1716_v54 }
  0xd6   : > { %12380 = vst [vmem:[#allocation14_spill] sm:$0xff] %v8101_v58  ;;  %6806 = vmatmul.msk.bf16.gmra.mxu2 %vm2793_vm5, %v8101_v58 }
  0xd7   : > { %v1293_v59 = vpop.f32.mrf.mxu0 }
  0xd8   : > { %v1294_v62 = vadd.f32 %v8056_v38, %v1293_v59 }
  0xda   : > { %6515 = vmatmul.msk.f32.gmra.mxu0 %vm975_vm2, %v889_v60  ;;  %6602 = vmatmul.msk.f32.gmra.mxu3 %vm1815_vm4, %v8109_v61  ;;  %v1573_v1 = vmax.f32 %v1294_v62, 0.0  ;;  %v899_v60 = vld [vmem:[%s7979_s9 + $0xf0] sm:$0xff]  ;;  %v8230_v62 = vld [vmem:[%s12377_s29 + $0x80] sm:$0xff] }
  0xdf   : > { %v1296_v63 = vpop.f32.mrf.mxu0 }
  0xe0   : > { %v1297_v2 = vadd.f32 %v8056_v38, %v1296_v63 }
  0xe2   : > { %v1574_v4 = vmax.f32 %v1297_v2, 0.0  ;;  %6516 = vmatmul.msk.f32.gmra.mxu0 %vm975_vm2, %v890_v0  ;;  %6603 = vmatmul.msk.f32.gmra.mxu3 %vm1815_vm4, %v8120_v3 }
  0xe4   : > { %v8125_v5 = vpack.c.bf16 %v1574_v4, %v1573_v1  ;;  %v900_v1 = vld [vmem:[%s7979_s9 + $0xf8] sm:$0xff] }
  0xe6   : > { %12381 = vst [vmem:[#allocation15_spill] sm:$0xff] %v8125_v5  ;;  %6807 = vmatmul.msk.bf16.gmra.mxu2 %vm2793_vm5, %v8125_v5 }
  0xe7   : > { %v1299_v6 = vpop.f32.mrf.mxu0 }
  0xe8   : > { %v1300_v9 = vadd.f32 %v8056_v38, %v1299_v6  ;;  %v8241_v6 = vld [vmem:[%s12377_s29 + $0x88] sm:$0xff] }
  0xea   : > { %6517 = vmatmul.msk.f32.gmra.mxu0 %vm975_vm2, %v891_v7  ;;  %6604 = vmatmul.msk.f32.gmra.mxu3 %vm1815_vm4, %v8133_v8  ;;  %v1575_v12 = vmax.f32 %v1300_v9, 0.0 }
  0xef   : > { %v1302_v10 = vpop.f32.mrf.mxu0 }
  0xf0   : > { %v1303_v13 = vadd.f32 %v8056_v38, %v1302_v10 }
  0xf2   : > { %v1576_v15 = vmax.f32 %v1303_v13, 0.0  ;;  %6518 = vmatmul.msk.f32.gmra.mxu0 %vm975_vm2, %v892_v11  ;;  %6605 = vmatmul.msk.f32.gmra.mxu3 %vm1815_vm4, %v8144_v14  ;;  %v8254_v13 = vld [vmem:[%s12377_s29 + $0x90] sm:$0xff] }
  0xf4   : > { %v8149_v16 = vpack.c.bf16 %v1576_v15, %v1575_v12  ;;  %v901_v12 = vld [vmem:[%s7979_s9 + $0x100] sm:$0xff] }
  0xf6   : > { %12382 = vst [vmem:[#allocation16_spill] sm:$0xff] %v8149_v16  ;;  %6808 = vmatmul.msk.bf16.gmra.mxu2 %vm2793_vm5, %v8149_v16 }
  0xf7   : > { %v1305_v17 = vpop.f32.mrf.mxu0 }
  0xf8   : > { %v1306_v20 = vadd.f32 %v8056_v38, %v1305_v17 }
  0xfa   : > { %6519 = vmatmul.msk.f32.gmra.mxu0 %vm975_vm2, %v893_v18  ;;  %6606 = vmatmul.msk.f32.gmra.mxu3 %vm1815_vm4, %v8157_v19  ;;  %v1577_v23 = vmax.f32 %v1306_v20, 0.0  ;;  %v902_v20 = vld [vmem:[%s7979_s9 + $0x108] sm:$0xff] }
  0xff   : > { %v1308_v21 = vpop.f32.mrf.mxu0 }
 0x100   : > { %v1309_v24 = vadd.f32 %v8056_v38, %v1308_v21 }
 0x102   : > { %v1578_v26 = vmax.f32 %v1309_v24, 0.0  ;;  %6520 = vmatmul.msk.f32.gmra.mxu0 %vm975_vm2, %v894_v22  ;;  %6607 = vmatmul.msk.f32.gmra.mxu3 %vm1815_vm4, %v8168_v25 }
 0x104   : > { %v8173_v27 = vpack.c.bf16 %v1578_v26, %v1577_v23  ;;  %v8265_v23 = vld [vmem:[%s12377_s29 + $0x98] sm:$0xff] }
 0x106   : > { %12383 = vst [vmem:[#allocation17_spill] sm:$0xff] %v8173_v27  ;;  %6809 = vmatmul.msk.bf16.gmra.mxu2 %vm2793_vm5, %v8173_v27 }
 0x107   : > { %v1311_v28 = vpop.f32.mrf.mxu0 }
 0x108   : > { %v1312_v32 = vadd.f32 %v8056_v38, %v1311_v28 }
 0x10a   : > { %6521 = vmatmul.msk.f32.gmra.mxu0 %vm975_vm2, %v895_v29  ;;  %6608 = vmatmul.msk.f32.gmra.mxu3 %vm1815_vm4, %v8181_v30  ;;  %v1579_v35 = vmax.f32 %v1312_v32, 0.0  ;;  %v903_v32 = vld [vmem:[%s7979_s9 + $0x110] sm:$0xff] }
 0x10f   : > { %v1314_v33 = vpop.f32.mrf.mxu0 }
 0x110   : > { %v1315_v36 = vadd.f32 %v8056_v38, %v1314_v33 }
 0x112   : > { %v1580_v40 = vmax.f32 %v1315_v36, 0.0  ;;  %6522 = vmatmul.msk.f32.gmra.mxu0 %vm975_vm2, %v896_v34  ;;  %6609 = vmatmul.msk.f32.gmra.mxu3 %vm1815_vm4, %v8192_v37  ;;  %v8280_v34 = vld [vmem:[%s12377_s29 + $0xa0] sm:$0xff] }
 0x114   : > { %v8197_v41 = vpack.c.bf16 %v1580_v40, %v1579_v35 }
 0x116   : > { %12384 = vst [vmem:[#allocation18_spill] sm:$0xff] %v8197_v41  ;;  %6810 = vmatmul.msk.bf16.gmra.mxu2 %vm2793_vm5, %v8197_v41 }
 0x117   : > { %v1317_v42 = vpop.f32.mrf.mxu0 }
 0x118   : > { %v1318_v46 = vadd.f32 %v8056_v38, %v1317_v42  ;;  %v904_v42 = vld [vmem:[%s7979_s9 + $0x118] sm:$0xff] }
 0x11a   : > { %6523 = vmatmul.msk.f32.gmra.mxu0 %vm975_vm2, %v897_v43  ;;  %6610 = vmatmul.msk.f32.gmra.mxu3 %vm1815_vm4, %v8205_v44  ;;  %v1581_v51 = vmax.f32 %v1318_v46, 0.0 }
 0x11f   : > { %v1320_v48 = vpop.f32.mrf.mxu0 }
 0x120   : > { %v1321_v52 = vadd.f32 %v8056_v38, %v1320_v48 }
 0x122   : > { %v1582_v55 = vmax.f32 %v1321_v52, 0.0  ;;  %6524 = vmatmul.msk.f32.gmra.mxu0 %vm975_vm2, %v898_v49  ;;  %6611 = vmatmul.msk.f32.gmra.mxu3 %vm1815_vm4, %v8216_v53  ;;  %v8291_v49 = vld [vmem:[%s12377_s29 + $0xa8] sm:$0xff] }
 0x124   : > { %v8222_v57 = vpack.c.bf16 %v1582_v55, %v1581_v51 }
 0x126   : > { %12385 = vst [vmem:[#allocation19_spill] sm:$0xff] %v8222_v57  ;;  %6811 = vmatmul.msk.bf16.gmra.mxu2 %vm2793_vm5, %v8222_v57 }
 0x127   : > { %v1323_v59 = vpop.f32.mrf.mxu0 }
 0x128   : > { %v1324_v63 = vadd.f32 %v8056_v38, %v1323_v59 }
 0x12a   : > { %6525 = vmatmul.msk.f32.gmra.mxu0 %vm975_vm2, %v899_v60  ;;  %6612 = vmatmul.msk.f32.gmra.mxu3 %vm1815_vm4, %v8230_v62  ;;  %v1583_v2 = vmax.f32 %v1324_v63, 0.0  ;;  %v905_v60 = vld [vmem:[%s7979_s9 + $0x120] sm:$0xff] }
 0x12f   : > { %v1326_v0 = vpop.f32.mrf.mxu0 }
 0x130   : > { %v1327_v4 = vadd.f32 %v8056_v38, %v1326_v0  ;;  %v8306_v0 = vld [vmem:[%s12377_s29 + $0xb0] sm:$0xff] }
 0x132   : > { %v1584_v7 = vmax.f32 %v1327_v4, 0.0  ;;  %6526 = vmatmul.msk.f32.gmra.mxu0 %vm975_vm2, %v900_v1  ;;  %6613 = vmatmul.msk.f32.gmra.mxu3 %vm1815_vm4, %v8241_v6 }
 0x134   : > { %v8246_v9 = vpack.c.bf16 %v1584_v7, %v1583_v2 }
 0x135   : > { %v2131_v11 = vpop.f32.mrf.mxu3 }
 0x136   : > { %12386 = vst [vmem:[#allocation20_spill] sm:$0xff] %v8246_v9  ;;  %6812 = vmatmul.msk.bf16.gmra.mxu2 %vm2793_vm5, %v8246_v9 }
 0x137   : > { %v1329_v10 = vpop.f32.mrf.mxu0 }
 0x138   : > { %v1330_v15 = vadd.f32 %v8056_v38, %v1329_v10  ;;  %v906_v10 = vld [vmem:[%s7979_s9 + $0x128] sm:$0xff] }
 0x13a   : > { %6527 = vmatmul.msk.f32.gmra.mxu0 %vm975_vm2, %v901_v12  ;;  %6614 = vmatmul.msk.f32.gmra.mxu3 %vm1815_vm4, %v8254_v13  ;;  %v1585_v21 = vmax.f32 %v1330_v15, 0.0 }
 0x13d   : > { %v2134_v18 = vpop.f32.mrf.mxu3 }
 0x13f   : > { %v1332_v17 = vpop.f32.mrf.mxu0 }
 0x140   : > { %v1333_v22 = vadd.f32 %v8056_v38, %v1332_v17  ;;  %v8319_v17 = vld [vmem:[%s12377_s29 + $0xb8] sm:$0xff] }
 0x142   : > { %v1586_v24 = vmax.f32 %v1333_v22, 0.0  ;;  %6528 = vmatmul.msk.f32.gmra.mxu0 %vm975_vm2, %v902_v20  ;;  %6615 = vmatmul.msk.f32.gmra.mxu3 %vm1815_vm4, %v8265_v23  ;;  %v1719_v22 = vld [vmem:[%s12377_s29] sm:$0xff] }
 0x143   : > { %6596 = vmatmul.msk.f32.vlgmr.msrb.gmra.mxu1 %vm1815_vm4, %v1719_v22 }
 0x144   : > { %v8270_v26 = vpack.c.bf16 %v1586_v24, %v1585_v21 }
 0x145   : > { %v2137_v29 = vpop.f32.mrf.mxu3 }
 0x146   : > { %12387 = vst [vmem:[#allocation21_spill] sm:$0xff] %v8270_v26  ;;  %6813 = vmatmul.msk.bf16.gmra.mxu2 %vm2793_vm5, %v8270_v26 }
 0x147   : > { %v1335_v28 = vpop.f32.mrf.mxu0 }
 0x148   : > { %v1336_v35 = vadd.f32 %v8056_v38, %v1335_v28 }
 0x149   : > { %v8275_v33 = vpop.f32.mrf.mxu2 }
 0x14a   : > { %6529 = vmatmul.msk.f32.gmra.mxu0 %vm975_vm2, %v903_v32  ;;  %6616 = vmatmul.msk.f32.gmra.mxu3 %vm1815_vm4, %v8280_v34  ;;  %v1587_v43 = vmax.f32 %v1336_v35, 0.0  ;;  %v8338_v35 = vld [vmem:[%s12377_s29 + $0xc0] sm:$0xff] }
 0x14b   : > { %6693 = vmatmul.msk.f32.vlgmr.msra.gmra.mxu1 %vm1815_vm4, %v1719_v22 }
 0x14d   : > { %v2140_v40 = vpop.f32.mrf.mxu3 }
 0x14f   : > { %v1338_v36 = vpop.f32.mrf.mxu0 }
 0x150   : > { %v1339_v46 = vadd.f32 %v8056_v38, %v1338_v36 }
 0x151   : > { %v2949_v48 = vpop.f32.mrf.mxu2 }
 0x152   : > { %v1588_v51 = vmax.f32 %v1339_v46, 0.0  ;;  %v8293_v52 = vadd.f32 %v2949_v48, %v2131_v11  ;;  %6530 = vmatmul.msk.f32.gmra.mxu0 %vm975_vm2, %v904_v42  ;;  %6617 = vmatmul.msk.f32.gmra.mxu3 %vm1815_vm4, %v8291_v49  ;;  %v908_v48 = vld [vmem:[%s7979_s9 + $0x138] sm:$0xff] }
 0x153   : > { %6694 = vmatmul.msk.f32.gmra.mxu1 %vm1815_vm4, %v8039_v31 }
 0x154   : > { %v8298_v54 = vpack.c.bf16 %v1588_v51, %v1587_v43 }
 0x155   : > { %v2143_v59 = vpop.f32.mrf.mxu3 }
 0x156   : > { %12388 = vst [vmem:[#allocation22_spill] sm:$0xff] %v8298_v54  ;;  %6814 = vmatmul.msk.bf16.gmra.mxu2 %vm2793_vm5, %v8298_v54 }
 0x157   : > { %v1341_v55 = vpop.f32.mrf.mxu0 }
 0x158   : > { %v1342_v2 = vadd.f32 %v8056_v38, %v1341_v55 }
 0x159   : > { %v2952_v63 = vpop.f32.mrf.mxu2 }
 0x15a   : > { %v8308_v1 = vadd.f32 %v2952_v63, %v2134_v18  ;;  %6531 = vmatmul.msk.f32.gmra.mxu0 %vm975_vm2, %v905_v60  ;;  %6618 = vmatmul.msk.f32.gmra.mxu3 %vm1815_vm4, %v8306_v0  ;;  %v1589_v11 = vmax.f32 %v1342_v2, 0.0 }
 0x15b   : > { %6695 = vmatmul.msk.f32.gmra.mxu1 %vm1815_vm4, %v8061_v39 }
 0x15d   : > { %v2146_v7 = vpop.f32.mrf.mxu3 }
 0x15f   : > { %v1344_v4 = vpop.f32.mrf.mxu0 }
 0x160   : > { %v1345_v12 = vadd.f32 %v8056_v38, %v1344_v4 }
 0x161   : > { %v2954_v15 = vpop.f32.mrf.mxu2 }
 0x162   : > { %v1590_v18 = vmax.f32 %v1345_v12, 0.0  ;;  %v8321_v20 = vadd.f32 %v2954_v15, %v2137_v29  ;;  %6532 = vmatmul.msk.f32.gmra.mxu0 %vm975_vm2, %v906_v10  ;;  %6619 = vmatmul.msk.f32.gmra.mxu3 %vm1815_vm4, %v8319_v17  ;;  %v907_v29 = vld [vmem:[%s7979_s9 + $0x130] sm:$0xff]  ;;  %v909_v12 = vld [vmem:[%s7979_s9 + $0x140] sm:$0xff] }
 0x163   : > { %v8371_v15 = vld [vmem:[%s12377_s29 + $0xd0] sm:$0xff]  ;;  %6696 = vmatmul.msk.f32.gmra.mxu1 %vm1815_vm4, %v8072_v45 }
 0x164   : > { %v8326_v21 = vpack.c.bf16 %v1590_v18, %v1589_v11 }
 0x165   : > { %v2149_v28 = vpop.f32.mrf.mxu3 }
 0x166   : > { %12389 = vst [vmem:[#allocation23_spill] sm:$0xff] %v8326_v21  ;;  %6815 = vmatmul.msk.bf16.gmra.mxu2 %vm2793_vm5, %v8326_v21 }
 0x167   : > { %v1347_v24 = vpop.f32.mrf.mxu0 }
 0x168   : > { %v1348_v42 = vadd.f32 %v8056_v38, %v1347_v24 }
 0x169   : > { %v2957_v32 = vpop.f32.mrf.mxu2 }
 0x16a   : > { %v8340_v36 = vadd.f32 %v2957_v32, %v2140_v40  ;;  %6533 = vmatmul.msk.f32.gmra.mxu0 %vm975_vm2, %v907_v29  ;;  %6620 = vmatmul.msk.f32.gmra.mxu3 %vm1815_vm4, %v8338_v35  ;;  %v1591_v51 = vmax.f32 %v1348_v42, 0.0  ;;  %v8352_v40 = vld [vmem:[%s12377_s29 + $0xc8] sm:$0xff] }
 0x16b   : > { %v910_v29 = vld [vmem:[%s7979_s9 + $0x148] sm:$0xff]  ;;  %6697 = vmatmul.msk.f32.gmra.mxu1 %vm1815_vm4, %v8085_v50 }
 0x16d   : > { %v2152_v46 = vpop.f32.mrf.mxu3 }
 0x16f   : > { %v1350_v43 = vpop.f32.mrf.mxu0 }
 0x170   : > { %v1351_v55 = vadd.f32 %v8056_v38, %v1350_v43  ;;  %v8388_v43 = vld [vmem:[%s12377_s29 + $0xd8] sm:$0xff] }
 0x171   : > { %v2959_v60 = vpop.f32.mrf.mxu2 }
 0x172   : > { %v1592_v63 = vmax.f32 %v1351_v55, 0.0  ;;  %v8354_v2 = vadd.f32 %v2959_v60, %v2143_v59  ;;  %6534 = vmatmul.msk.f32.gmra.mxu0 %vm975_vm2, %v908_v48  ;;  %6621 = vmatmul.msk.f32.gmra.mxu3 %vm1815_vm4, %v8352_v40 }
 0x173   : > { %6698 = vmatmul.msk.f32.gmra.mxu1 %vm1815_vm4, %v8096_v56 }
 0x174   : > { %v8357_v4 = vpack.c.bf16 %v1592_v63, %v1591_v51  ;;  %v911_v63 = vld [vmem:[%s7979_s9 + $0x150] sm:$0xff] }
 0x175   : > { %v8365_v11 = vpop.f32.mrf.mxu3 }
 0x176   : > { %12390 = vst [vmem:[#allocation24_spill] sm:$0xff] %v8357_v4  ;;  %6816 = vmatmul.msk.bf16.gmra.mxu2 %vm2793_vm5, %v8357_v4 }
 0x177   : > { %v1353_v10 = vpop.f32.mrf.mxu0 }
 0x178   : > { %v1354_v22 = vadd.f32 %v8056_v38, %v1353_v10  ;;  %v8407_v10 = vld [vmem:[%s12377_s29 + $0xe0] sm:$0xff] }
 0x179   : > { %v2962_v59 = vpop.f32.mrf.mxu2 }
 0x17a   : > { %v8373_v18 = vadd.f32 %v2962_v59, %v2146_v7  ;;  %6535 = vmatmul.msk.f32.gmra.mxu0 %vm975_vm2, %v909_v12  ;;  %6622 = vmatmul.msk.f32.gmra.mxu3 %vm1815_vm4, %v8371_v15  ;;  %v1593_v32 = vmax.f32 %v1354_v22, 0.0 }
 0x17b   : > { %6699 = vmatmul.msk.f32.gmra.mxu1 %vm1815_vm4, %v8109_v61 }
 0x17d   : > { %v8381_v24 = vpop.f32.mrf.mxu3 }
 0x17f   : > { %v1356_v31 = vpop.f32.mrf.mxu0 }
 0x180   : > { %v1357_v42 = vadd.f32 %v8056_v38, %v1356_v31  ;;  %v912_v31 = vld [vmem:[%s7979_s9 + $0x158] sm:$0xff] }
 0x181   : > { %v2964_v7 = vpop.f32.mrf.mxu2 }
 0x182   : > { %v1594_v48 = vmax.f32 %v1357_v42, 0.0  ;;  %v8390_v51 = vadd.f32 %v2964_v7, %v2149_v28  ;;  %6536 = vmatmul.msk.f32.gmra.mxu0 %vm975_vm2, %v910_v29  ;;  %6623 = vmatmul.msk.f32.gmra.mxu3 %vm1815_vm4, %v8388_v43  ;;  %v8426_v42 = vld [vmem:[%s12377_s29 + $0xe8] sm:$0xff] }
 0x183   : > { %6700 = vmatmul.msk.f32.gmra.mxu1 %vm1815_vm4, %v8120_v3 }
 0x184   : > { %v8393_v39 = vpack.c.bf16 %v1594_v48, %v1593_v32 }
 0x185   : > { %v8401_v60 = vpop.f32.mrf.mxu3 }
 0x186   : > { %12391 = vst [vmem:[#allocation25_spill] sm:$0xff] %v8393_v39  ;;  %6817 = vmatmul.msk.bf16.gmra.mxu2 %vm2793_vm5, %v8393_v39 }
 0x187   : > { %v1359_v55 = vpop.f32.mrf.mxu0 }
 0x188   : > { %v1360_v59 = vadd.f32 %v8056_v38, %v1359_v55 }
 0x189   : > { %v2967_v28 = vpop.f32.mrf.mxu2 }
 0x18a   : > { %v8409_v12 = vadd.f32 %v2967_v28, %v2152_v46  ;;  %6537 = vmatmul.msk.f32.gmra.mxu0 %vm975_vm2, %v911_v63  ;;  %6624 = vmatmul.msk.f32.gmra.mxu3 %vm1815_vm4, %v8407_v10  ;;  %v1595_v29 = vmax.f32 %v1360_v59, 0.0  ;;  %v913_v63 = vld [vmem:[%s7979_s9 + $0x160] sm:$0xff]  ;;  %v8443_v59 = vld [vmem:[%s12377_s29 + $0xf0] sm:$0xff] }
 0x18b   : > { %6701 = vmatmul.msk.f32.gmra.mxu1 %vm1815_vm4, %v8133_v8 }
 0x18d   : > { %v8417_v22 = vpop.f32.mrf.mxu3 }
 0x18f   : > { %v1362_v45 = vpop.f32.mrf.mxu0 }
 0x190   : > { %v1363_v32 = vadd.f32 %v8056_v38, %v1362_v45 }
 0x191   : > { %v8421_v46 = vpop.f32.mrf.mxu2 }
 0x192   : > { %v1596_v7 = vmax.f32 %v1363_v32, 0.0  ;;  %6538 = vmatmul.msk.f32.gmra.mxu0 %vm975_vm2, %v912_v31  ;;  %6625 = vmatmul.msk.f32.gmra.mxu3 %vm1815_vm4, %v8426_v42 }
 0x193   : > { %6702 = vmatmul.msk.f32.gmra.mxu1 %vm1815_vm4, %v8144_v14  ;;  %v3436_v14 = vld [vmem:[%s12395_s0] sm:$0x3] }
 0x194   : > { %v8429_v50 = vpack.c.bf16 %v1596_v7, %v1595_v29  ;;  %v914_v29 = vld [vmem:[%s7979_s9 + $0x168] sm:$0xff]  ;;  %v8521_v16 = vperm.slane %v3436_v14, 0 }
 0x195   : > { %v2167_v55 = vpop.f32.mrf.mxu3 }
 0x196   : > { %12392 = vst [vmem:[#allocation26_spill] sm:$0xff] %v8429_v50  ;;  %6818 = vmatmul.msk.bf16.gmra.mxu2 %vm2793_vm5, %v8429_v50 }
 0x197   : > { %v1365_v48 = vpop.f32.mrf.mxu0 }
 0x198   : > { %v1366_v45 = vadd.f32 %v8056_v38, %v1365_v48 }
 0x199   : > { %v8438_v28 = vpop.f32.mrf.mxu2 }
 0x19a   : > { %6539 = vmatmul.msk.f32.gmra.mxu0 %vm975_vm2, %v913_v63  ;;  %6626 = vmatmul.msk.f32.gmra.mxu3 %vm1815_vm4, %v8443_v59  ;;  %v1597_v32 = vmax.f32 %v1366_v45, 0.0  ;;  %v8456_v63 = vld [vmem:[%s12377_s29 + $0xf8] sm:$0xff] }
 0x19b   : > { %6703 = vmatmul.msk.f32.gmra.mxu1 %vm1815_vm4, %v8157_v19 }
 0x19d   : > { %v2170_v31 = vpop.f32.mrf.mxu3 }
 0x19f   : > { %v1368_v56 = vpop.f32.mrf.mxu0 }
 0x1a0   : > { %v1369_v7 = vadd.f32 %v8056_v38, %v1368_v56  ;;  %v915_v56 = vld [vmem:[%s7979_s9 + $0x170] sm:$0xff] }
 0x1a1   : > { %v2974_v50 = vpop.f32.mrf.mxu2 }
 0x1a2   : > { %v1598_v48 = vmax.f32 %v1369_v7, 0.0  ;;  %6540 = vmatmul.msk.f32.gmra.mxu0 %vm975_vm2, %v914_v29  ;;  %6627 = vmatmul.msk.f32.gmra.mxu3 %vm1815_vm4, %v8456_v63  ;;  %v8471_v29 = vld [vmem:[%s12377_s29 + $0x100] sm:$0xff] }
 0x1a3   : > { %6704 = vmatmul.msk.f32.gmra.mxu1 %vm1815_vm4, %v8168_v25 }
 0x1a4   : > { %v8459_v39 = vpack.c.bf16 %v1598_v48, %v1597_v32  ;;  %v916_v48 = vld [vmem:[%s7979_s9 + $0x178] sm:$0xff] }
 0x1a5   : > { %v2173_v45 = vpop.f32.mrf.mxu3 }
 0x1a6   : > { %12393 = vst [vmem:[#allocation27_spill] sm:$0xff] %v8459_v39  ;;  %6819 = vmatmul.msk.bf16.gmra.mxu2 %vm2793_vm5, %v8459_v39 }
 0x1a7   : > { %v1371_v61 = vpop.f32.mrf.mxu0 }
 0x1a8   : > { %v1372_v32 = vadd.f32 %v8056_v38, %v1371_v61 }
 0x1a9   : > { %v2977_v4 = vpop.f32.mrf.mxu2 }
 0x1aa   : > { %6541 = vmatmul.msk.f32.gmra.mxu0 %vm975_vm2, %v915_v56  ;;  %6628 = vmatmul.msk.f32.gmra.mxu3 %vm1815_vm4, %v8471_v29  ;;  %v1599_v39 = vmax.f32 %v1372_v32, 0.0  ;;  %v8484_v56 = vld [vmem:[%s12377_s29 + $0x108] sm:$0xff]  ;;  %v2978_v47 = vadd.f32 %v2977_v4, %v8417_v22  ;;  %v2970_v22 = vadd.f32 %v8421_v46, %v8365_v11 }
 0x1ab   : > { %6705 = vmatmul.msk.f32.gmra.mxu1 %vm1815_vm4, %v8181_v30  ;;  %v8570_v30 = vld [vmem:[%s12377_s29 + $0x128] sm:$0xff] }
 0x1ac   : > { %v3460_v11 = vadd.f32 %v8521_v16, %v2970_v22  ;;  %v921_v22 = vld [vmem:[%s7979_s9 + $0x1a0] sm:$0xff] }
 0x1ad   : > { %v2176_v7 = vpop.f32.mrf.mxu3 }
 0x1af   : > { %v1374_v3 = vpop.f32.mrf.mxu0 }
 0x1b0   : > { %v1375_v21 = vadd.f32 %v8056_v38, %v1374_v3  ;;  %v917_v3 = vld [vmem:[%s7979_s9 + $0x180] sm:$0xff] }
 0x1b1   : > { %v2979_v54 = vpop.f32.mrf.mxu2 }
 0x1b2   : > { %v1600_v61 = vmax.f32 %v1375_v21, 0.0  ;;  %6542 = vmatmul.msk.f32.gmra.mxu0 %vm975_vm2, %v916_v48  ;;  %6629 = vmatmul.msk.f32.gmra.mxu3 %vm1815_vm4, %v8484_v56  ;;  %v8501_v21 = vld [vmem:[%s12377_s29 + $0x110] sm:$0xff]  ;;  %v2980_v19 = vadd.f32 %v2979_v54, %v2167_v55  ;;  %v2975_v54 = vadd.f32 %v2974_v50, %v8401_v60  ;;  %v8546_v60 = vld [vmem:[%s12377_s29 + $0x120] sm:$0xff] }
 0x1b3   : > { %6706 = vmatmul.msk.f32.gmra.mxu1 %vm1815_vm4, %v8192_v37  ;;  %v8596_v37 = vld [vmem:[%s12377_s29 + $0x130] sm:$0xff] }
 0x1b4   : > { %v8487_v26 = vpack.c.bf16 %v1600_v61, %v1599_v39  ;;  %v3464_v50 = vadd.f32 %v8521_v16, %v2975_v54 }
 0x1b5   : > { %v8495_v32 = vpop.f32.mrf.mxu3 }
 0x1b6   : > { %12394 = vst [vmem:[#allocation28_spill] sm:$0xff] %v8487_v26  ;;  %6820 = vmatmul.msk.bf16.gmra.mxu2 %vm2793_vm5, %v8487_v26  ;;  %v918_v26 = vld [vmem:[%s7979_s9 + $0x188] sm:$0xff]  ;;  %v3656_v46 = vmax.f32 %v3464_v50, 0.0  ;;  %v3450_v50 = vadd.f32 %v8521_v16, %v8340_v36  ;;  %v3446_v36 = vadd.f32 %v8521_v16, %v8308_v1 }
 0x1b7   : > { %v1377_v8 = vpop.f32.mrf.mxu0 }
 0x1b8   : > { %v1378_v39 = vadd.f32 %v8056_v38, %v1377_v8  ;;  %v8519_v8 = vld [vmem:[%s12377_s29 + $0x118] sm:$0xff] }
 0x1b9   : > { %v2982_v9 = vpop.f32.mrf.mxu2 }
 0x1ba   : > { %6543 = vmatmul.msk.f32.gmra.mxu0 %vm975_vm2, %v917_v3  ;;  %6630 = vmatmul.msk.f32.gmra.mxu3 %vm1815_vm4, %v8501_v21  ;;  %v1601_v57 = vmax.f32 %v1378_v39, 0.0  ;;  %v2983_v41 = vadd.f32 %v2982_v9, %v2170_v31 }
 0x1bb   : > { %6707 = vmatmul.msk.f32.gmra.mxu1 %vm1815_vm4, %v8205_v44 }
 0x1bc   : > { %v3470_v9 = vadd.f32 %v8521_v16, %v2983_v41 }
 0x1bd   : > { %v8512_v61 = vpop.f32.mrf.mxu3 }
 0x1be   : > { %v3662_v4 = vmax.f32 %v3470_v9, 0.0 }
 0x1bf   : > { %v1380_v48 = vpop.f32.mrf.mxu0 }
 0x1c0   : > { %v1381_v3 = vadd.f32 %v8056_v38, %v1380_v48 }
 0x1c1   : > { %v2984_v27 = vpop.f32.mrf.mxu2 }
 0x1c2   : > { %v1602_v5 = vmax.f32 %v1381_v3, 0.0  ;;  %v2985_v58 = vadd.f32 %v2984_v27, %v2173_v45  ;;  %6544 = vmatmul.msk.f32.gmra.mxu0 %vm975_vm2, %v918_v26  ;;  %6631 = vmatmul.msk.f32.gmra.mxu3 %vm1815_vm4, %v8519_v8  ;;  %v3468_v27 = vadd.f32 %v8521_v16, %v2980_v19  ;;  %v920_v3 = vld [vmem:[%s7979_s9 + $0x198] sm:$0xff]  ;;  %v3458_v19 = vadd.f32 %v8521_v16, %v8409_v12 }
 0x1c3   : > { %v3652_v12 = vmax.f32 %v3460_v11, 0.0  ;;  %v3642_v11 = vmax.f32 %v3450_v50, 0.0  ;;  %6708 = vmatmul.msk.f32.gmra.mxu1 %vm1815_vm4, %v8216_v53  ;;  %v924_v50 = vld [vmem:[%s7979_s9 + $0x1b8] sm:$0xff] }
 0x1c4   : > { %v8526_v31 = vpack.c.bf16 %v1602_v5, %v1601_v57  ;;  %v3472_v39 = vadd.f32 %v8521_v16, %v2985_v58  ;;  %v919_v5 = vld [vmem:[%s7979_s9 + $0x190] sm:$0xff]  ;;  %v2973_v58 = vadd.f32 %v8438_v28, %v8381_v24  ;;  %v3466_v57 = vadd.f32 %v8521_v16, %v2978_v47 }
 0x1c5   : > { %v8537_v41 = vpop.f32.mrf.mxu3  ;;  %v3660_v47 = vmax.f32 %v3468_v27, 0.0 }
 0x1c6   : > { %12396 = vst [vmem:[#allocation29_spill] sm:$0xff] %v8526_v31  ;;  %v3664_v55 = vmax.f32 %v3472_v39, 0.0  ;;  %6821 = vmatmul.msk.bf16.gmra.mxu2 %vm2793_vm5, %v8526_v31  ;;  %v3462_v24 = vadd.f32 %v8521_v16, %v2973_v58  ;;  %v3658_v28 = vmax.f32 %v3466_v57, 0.0  ;;  %v3454_v58 = vadd.f32 %v8521_v16, %v8373_v18 }
 0x1c7   : > { %v1383_v26 = vpop.f32.mrf.mxu0  ;;  %v3650_v57 = vmax.f32 %v3458_v19, 0.0  ;;  %v922_v19 = vld [vmem:[%s7979_s9 + $0x1a8] sm:$0xff] }
 0x1c8   : > { %3849 = vmatpush.msrb.mxu1 %v3664_v55  ;;  %v1384_v14 = vadd.f32 %v8056_v38, %v1383_v26  ;;  %v3654_v9 = vmax.f32 %v3462_v24, 0.0  ;;  %v3456_v55 = vadd.f32 %v8521_v16, %v8390_v51  ;;  %v3452_v51 = vadd.f32 %v8521_v16, %v8354_v2 }
 0x1c9   : > { %v2987_v25 = vpop.f32.mrf.mxu2  ;;  %v3448_v2 = vadd.f32 %v8521_v16, %v8321_v20  ;;  %v3444_v20 = vadd.f32 %v8521_v16, %v8293_v52 }
 0x1ca   : > { %v8551_v45 = vadd.f32 %v2987_v25, %v2176_v7  ;;  %6545 = vmatmul.msk.f32.gmra.mxu0 %vm975_vm2, %v919_v5  ;;  %3850 = vmatpush.msrb.mxu1 %v3662_v4  ;;  %v1603_v39 = vmax.f32 %v1384_v14, 0.0  ;;  %v3644_v14 = vmax.f32 %v3452_v51, 0.0  ;;  %v8636_v51 = vld [vmem:[%s12377_s29 + $0x140] sm:$0xff] }
 0x1cb   : > { %6632 = vmatmul.msk.f32.gmra.mxu3 %vm1815_vm4, %v8546_v60  ;;  %6709 = vmatmul.msk.f32.gmra.mxu1 %vm1815_vm4, %v8230_v62 }
 0x1cc   : > { %3851 = vmatpush.msrb.mxu1 %v3660_v47  ;;  %v3646_v47 = vmax.f32 %v3454_v58, 0.0  ;;  %v923_v58 = vld [vmem:[%s7979_s9 + $0x1b0] sm:$0xff] }
 0x1cd   : > { %v8561_v48 = vpop.f32.mrf.mxu3 }
 0x1ce   : > { %3852 = vmatpush.msrb.mxu1 %v3658_v28 }
 0x1cf   : > { %v1386_v7 = vpop.f32.mrf.mxu0 }
 0x1d0   : > { %v1387_v54 = vadd.f32 %v8056_v38, %v1386_v7  ;;  %3853 = vmatpush.msrb.mxu1 %v3656_v46 }
 0x1d1   : > { %v2989_v27 = vpop.f32.mrf.mxu2 }
 0x1d2   : > { %v1604_v26 = vmax.f32 %v1387_v54, 0.0  ;;  %v8575_v5 = vadd.f32 %v2989_v27, %v8495_v32  ;;  %6546 = vmatmul.msk.f32.gmra.mxu0 %vm975_vm2, %v920_v3  ;;  %3854 = vmatpush.msrb.mxu1 %v3654_v9  ;;  %v3648_v32 = vmax.f32 %v3456_v55, 0.0  ;;  %v3638_v9 = vmax.f32 %v3446_v36, 0.0  ;;  %v8618_v27 = vld [vmem:[%s12377_s29 + $0x138] sm:$0xff] }
 0x1d3   : > { %6633 = vmatmul.msk.f32.gmra.mxu3 %vm1815_vm4, %v8570_v30  ;;  %v3636_v55 = vmax.f32 %v3444_v20, 0.0  ;;  %6710 = vmatmul.msk.f32.gmra.mxu1 %vm1815_vm4, %v8241_v6  ;;  %v925_v20 = vld [vmem:[%s7979_s9 + $0x1c0] sm:$0xff] }
 0x1d4   : > { %v8580_v4 = vpack.c.bf16 %v1604_v26, %v1603_v39  ;;  %3855 = vmatpush.msrb.mxu1 %v3652_v12 }
 0x1d5   : > { %v2191_v18 = vpop.f32.mrf.mxu3 }
 0x1d6   : > { %12397 = vst [vmem:[#allocation30_spill] sm:$0xff] %v8580_v4  ;;  %6822 = vmatmul.msk.bf16.gmra.mxu2 %vm2793_vm5, %v8580_v4  ;;  %3856 = vmatpush.msrb.mxu1 %v3650_v57 }
 0x1d7   : > { %v1389_v25 = vpop.f32.mrf.mxu0 }
 0x1d8   : > { %3857 = vmatpush.msrb.mxu1 %v3648_v32  ;;  %v1390_v46 = vadd.f32 %v8056_v38, %v1389_v25 }
 0x1d9   : > { %v2992_v24 = vpop.f32.mrf.mxu2 }
 0x1da   : > { %v8601_v28 = vadd.f32 %v2992_v24, %v8512_v61  ;;  %6547 = vmatmul.msk.f32.gmra.mxu0 %vm975_vm2, %v921_v22  ;;  %3858 = vmatpush.msrb.mxu1 %v3646_v47  ;;  %v3640_v61 = vmax.f32 %v3448_v2, 0.0  ;;  %v1605_v1 = vmax.f32 %v1390_v46, 0.0 }
 0x1db   : > { %6634 = vmatmul.msk.f32.gmra.mxu3 %vm1815_vm4, %v8596_v37  ;;  %6711 = vmatmul.msk.f32.gmra.mxu1 %vm1815_vm4, %v8254_v13 }
 0x1dc   : > { %3859 = vmatpush.msrb.mxu1 %v3644_v14 }
 0x1dd   : > { %v2194_v3 = vpop.f32.mrf.mxu3 }
 0x1de   : > { %3860 = vmatpush.msrb.mxu1 %v3642_v11 }
 0x1df   : > { %v1392_v7 = vpop.f32.mrf.mxu0 }
 0x1e0   : > { %v1393_v39 = vadd.f32 %v8056_v38, %v1392_v7  ;;  %3861 = vmatpush.msrb.mxu1 %v3640_v61  ;;  %v8671_v61 = vld [vmem:[%s12377_s29 + $0x150] sm:$0xff] }
 0x1e1   : > { %v2994_v54 = vpop.f32.mrf.mxu2 }
 0x1e2   : > { %v1606_v44 = vmax.f32 %v1393_v39, 0.0  ;;  %v8621_v52 = vadd.f32 %v2994_v54, %v8537_v41  ;;  %6548 = vmatmul.msk.f32.gmra.mxu0 %vm975_vm2, %v922_v19  ;;  %3862 = vmatpush.msrb.mxu1 %v3638_v9 }
 0x1e3   : > { %6635 = vmatmul.msk.f32.gmra.mxu3 %vm1815_vm4, %v8618_v27  ;;  %6712 = vmatmul.msk.f32.gmra.mxu1 %vm1815_vm4, %v8265_v23 }
 0x1e4   : > { %v8624_v26 = vpack.c.bf16 %v1606_v44, %v1605_v1  ;;  %3863 = vmatpush.msrb.mxu1 %v3636_v55  ;;  %v926_v1 = vld [vmem:[%s7979_s9 + $0x1c8] sm:$0xff]  ;;  %v8688_v44 = vld [vmem:[%s12377_s29 + $0x158] sm:$0xff] }
 0x1e5   : > { %v2197_v41 = vpop.f32.mrf.mxu3 }
 0x1e6   : > { %12398 = vst [vmem:[#allocation31_spill] sm:$0xff] %v8624_v26  ;;  %6823 = vmatmul.msk.bf16.gmra.mxu2 %vm2793_vm5, %v8624_v26 }
 0x1e7   : > { %v1395_v12 = vpop.f32.mrf.mxu0 }
 0x1e8   : > { %v1396_v25 = vadd.f32 %v8056_v38, %v1395_v12 }
 0x1e9   : > { %v2997_v57 = vpop.f32.mrf.mxu2 }
 0x1ea   : > { %v8639_v32 = vadd.f32 %v2997_v57, %v8561_v48  ;;  %6549 = vmatmul.msk.f32.gmra.mxu0 %vm975_vm2, %v923_v58  ;;  %v1607_v47 = vmax.f32 %v1396_v25, 0.0  ;;  %v8652_v48 = vld [vmem:[%s12377_s29 + $0x148] sm:$0xff]  ;;  %v927_v25 = vld [vmem:[%s7979_s9 + $0x1d0] sm:$0xff] }
 0x1eb   : > { %6636 = vmatmul.msk.f32.gmra.mxu3 %vm1815_vm4, %v8636_v51  ;;  %6713 = vmatmul.msk.f32.gmra.mxu1 %vm1815_vm4, %v8280_v34 }
 0x1ed   : > { %v2200_v22 = vpop.f32.mrf.mxu3 }
 0x1ef   : > { %v1398_v53 = vpop.f32.mrf.mxu0 }
 0x1f0   : > { %v1399_v24 = vadd.f32 %v8056_v38, %v1398_v53  ;;  %v8707_v53 = vld [vmem:[%s12377_s29 + $0x160] sm:$0xff] }
 0x1f1   : > { %v2999_v2 = vpop.f32.mrf.mxu2 }
 0x1f2   : > { %v1608_v14 = vmax.f32 %v1399_v24, 0.0  ;;  %v8654_v36 = vadd.f32 %v2999_v2, %v2191_v18  ;;  %6550 = vmatmul.msk.f32.gmra.mxu0 %vm975_vm2, %v924_v50  ;;  %v928_v2 = vld [vmem:[%s7979_s9 + $0x1d8] sm:$0xff] }
 0x1f3   : > { %6637 = vmatmul.msk.f32.gmra.mxu3 %vm1815_vm4, %v8652_v48  ;;  %6714 = vmatmul.msk.f32.gmra.mxu1 %vm1815_vm4, %v8291_v49 }
 0x1f4   : > { %v8657_v11 = vpack.c.bf16 %v1608_v14, %v1607_v47 }
 0x1f5   : > { %v8665_v46 = vpop.f32.mrf.mxu3 }
 0x1f6   : > { %12399 = vst [vmem:[#allocation32_spill] sm:$0xff] %v8657_v11  ;;  %6824 = vmatmul.msk.bf16.gmra.mxu2 %vm2793_vm5, %v8657_v11  ;;  %v8803_v11 = vld [vmem:[%s12377_s29 + $0x188] sm:$0xff] }
 0x1f7   : > { %v1401_v62 = vpop.f32.mrf.mxu0 }
 0x1f8   : > { %v1402_v19 = vadd.f32 %v8056_v38, %v1401_v62 }
 0x1f9   : > { %v3002_v18 = vpop.f32.mrf.mxu2 }
 0x1fa   : > { %v8673_v7 = vadd.f32 %v3002_v18, %v2194_v3  ;;  %6551 = vmatmul.msk.f32.gmra.mxu0 %vm975_vm2, %v925_v20  ;;  %v1609_v39 = vmax.f32 %v1402_v19, 0.0  ;;  %v8726_v20 = vld [vmem:[%s12377_s29 + $0x168] sm:$0xff] }
 0x1fb   : > { %6638 = vmatmul.msk.f32.gmra.mxu3 %vm1815_vm4, %v8671_v61  ;;  %6715 = vmatmul.msk.f32.gmra.mxu1 %vm1815_vm4, %v8306_v0 }
 0x1fd   : > { %v8681_v9 = vpop.f32.mrf.mxu3 }
 0x1ff   : > { %v1404_v6 = vpop.f32.mrf.mxu0 }
 0x200   : > { %v1405_v54 = vadd.f32 %v8056_v38, %v1404_v6 }
 0x201   : > { %v3004_v3 = vpop.f32.mrf.mxu2 }
 0x202   : > { %v1610_v55 = vmax.f32 %v1405_v54, 0.0  ;;  %v8690_v12 = vadd.f32 %v3004_v3, %v2197_v41  ;;  %6552 = vmatmul.msk.f32.gmra.mxu0 %vm975_vm2, %v926_v1  ;;  %v929_v1 = vld [vmem:[%s7979_s9 + $0x1e0] sm:$0xff]  ;;  %v8745_v54 = vld [vmem:[%s12377_s29 + $0x170] sm:$0xff] }
 0x203   : > { %6639 = vmatmul.msk.f32.gmra.mxu3 %vm1815_vm4, %v8688_v44 }
 0x204   : > { %v8693_v13 = vpack.c.bf16 %v1610_v55, %v1609_v39 }
 0x205   : > { %v8701_v57 = vpop.f32.mrf.mxu3 }
 0x206   : > { %12400 = vst [vmem:[#allocation33_spill] sm:$0xff] %v8693_v13  ;;  %6825 = vmatmul.msk.bf16.gmra.mxu2 %vm2793_vm5, %v8693_v13 }
 0x207   : > { %v1407_v58 = vpop.f32.mrf.mxu0 }
 0x208   : > { %v1408_v47 = vadd.f32 %v8056_v38, %v1407_v58  ;;  %v930_v58 = vld [vmem:[%s7979_s9 + $0x1e8] sm:$0xff] }
 0x209   : > { %v3007_v41 = vpop.f32.mrf.mxu2 }
 0x20a   : > { %v8709_v50 = vadd.f32 %v3007_v41, %v2200_v22  ;;  %6553 = vmatmul.msk.f32.gmra.mxu0 %vm975_vm2, %v927_v25  ;;  %v1611_v14 = vmax.f32 %v1408_v47, 0.0  ;;  %v8757_v41 = vld [vmem:[%s12378_s1] ss:$0 sm:$0xff] }
 0x20b   : > { %6640 = vmatmul.msk.f32.gmra.mxu3 %vm1815_vm4, %v8707_v53 }
 0x20d   : > { %v8717_v24 = vpop.f32.mrf.mxu3 }
 0x20f   : > { %v1410_v23 = vpop.f32.mrf.mxu0 }
 0x210   : > { %v1411_v62 = vadd.f32 %v8056_v38, %v1410_v23 }
 0x211   : > { %v8721_v22 = vpop.f32.mrf.mxu2 }
 0x212   : > { %v1612_v18 = vmax.f32 %v1411_v62, 0.0  ;;  %6554 = vmatmul.msk.f32.gmra.mxu0 %vm975_vm2, %v928_v2 }
 0x213   : > { %6641 = vmatmul.msk.f32.gmra.mxu3 %vm1815_vm4, %v8726_v20 }
 0x214   : > { %v8729_v34 = vpack.c.bf16 %v1612_v18, %v1611_v14  ;;  %v8774_v14 = vpop.f32.mrf.mxu1  ;;  %6716 = vmatmul.msk.f32.gmra.mxu1 %vm1815_vm4, %v8319_v17  ;;  %v7450_v17 = vld [vmem:[%s12376_s6 + $0x4] sm:$0xf] }
 0x215   : > { %v8737_v6 = vpop.f32.mrf.mxu3 }
 0x216   : > { %12401 = vst [vmem:[#allocation34_spill] sm:$0xff] %v8729_v34  ;;  %6826 = vmatmul.msk.bf16.gmra.mxu2 %vm2793_vm5, %v8729_v34 }
 0x217   : > { %v1413_v19 = vpop.f32.mrf.mxu0 }
 0x218   : > { %v1414_v3 = vadd.f32 %v8056_v38, %v1413_v19  ;;  %v8765_v38 = vld [vmem:[%s12377_s29 + $0x178] sm:$0xff]  ;;  %v931_v19 = vld [vmem:[%s7979_s9 + $0x1f0] sm:$0xff] }
 0x219   : > { %v8740_v39 = vpop.f32.mrf.mxu2 }
 0x21a   : > { %6555 = vmatmul.msk.f32.gmra.mxu0 %vm975_vm2, %v929_v1  ;;  %v1613_v25 = vmax.f32 %v1414_v3, 0.0  ;;  %v8782_v3 = vld [vmem:[%s12377_s29 + $0x180] sm:$0xff] }
 0x21b   : > { %6642 = vmatmul.msk.f32.gmra.mxu3 %vm1815_vm4, %v8745_v54 }
 0x21d   : > { %v2218_v55 = vpop.f32.mrf.mxu3 }
 0x21f   : > { %v1416_v49 = vpop.f32.mrf.mxu0 }
 0x220   : > { %v1417_v47 = vadd.f32 %v8757_v41, %v1416_v49 }
 0x221   : > { %v8760_v23 = vpop.f32.mrf.mxu2 }
 0x222   : > { %v1614_v0 = vmax.f32 %v1417_v47, 0.0  ;;  %6556 = vmatmul.msk.f32.gmra.mxu0 %vm975_vm2, %v930_v58  ;;  %v6793_v58 = vld [vmem:[%s12376_s6 + $0x8] sm:$0xf0] }
 0x223   : > { %6643 = vmatmul.msk.f32.gmra.mxu3 %vm1815_vm4, %v8765_v38 }
 0x224   : > { %v8768_v2 = vpack.c.bf16 %v1614_v0, %v1613_v25  ;;  %v8794_v25 = vpop.f32.mrf.mxu1  ;;  %6717 = vmatmul.msk.f32.gmra.mxu1 %vm1815_vm4, %v8338_v35 }
 0x225   : > { %v2221_v18 = vpop.f32.mrf.mxu3  ;;  %12403 = vst [vmem:[#allocation36_spill] sm:$0xff] %v8794_v25 }
 0x226   : > { %12402 = vst [vmem:[#allocation35_spill] sm:$0xff] %v8768_v2  ;;  %6827 = vmatmul.msk.bf16.gmra.mxu2 %vm2793_vm5, %v8768_v2 }
 0x227   : > { %v1419_v62 = vpop.f32.mrf.mxu0 }
 0x228   : > { %v1420_v49 = vadd.f32 %v8757_v41, %v1419_v62  ;;  %v6796_v62 = vor.u32 %v7450_v17, %v6793_v58 }
 0x229   : > { %v3017_v1 = vpop.f32.mrf.mxu2 }
 0x22a   : > { %6557 = vmatmul.msk.f32.gmra.mxu0 %vm975_vm2, %v931_v19  ;;  %v932_v19 = vld [vmem:[%s7979_s9 + $0x1f8] sm:$0xff]  ;;  %v1615_v2 = vmax.f32 %v1420_v49, 0.0  ;;  %7577 = vmatpush.bf16.msrb.mxu3 %v6796_v62 }
 0x22b   : > { %6644 = vmatmul.msk.f32.gmra.mxu3 %vm1815_vm4, %v8782_v3  ;;  %3194 = vmatpush.bf16.msrb.mxu0 %v6796_v62 }
 0x22c   : > { %v8812_v49 = vpop.f32.mrf.mxu1  ;;  %6718 = vmatmul.msk.f32.gmra.mxu1 %vm1815_vm4, %v8352_v40 }
 0x22d   : > { %v2224_v0 = vpop.f32.mrf.mxu3  ;;  %12405 = vst [vmem:[#allocation38_spill] sm:$0xff] %v8812_v49 }
 0x22f   : > { %v1422_v47 = vpop.f32.mrf.mxu0 }
 0x230   : > { %v1423_v34 = vadd.f32 %v8757_v41, %v1422_v47 }
 0x231   : > { %v3019_v13 = vpop.f32.mrf.mxu2 }
 0x232   : > { %v1616_v26 = vmax.f32 %v1423_v34, 0.0  ;;  %6558 = vmatmul.msk.f32.gmra.mxu0 %vm975_vm2, %v932_v19  ;;  %v933_v34 = vld [vmem:[%s7979_s9 + $0x200] sm:$0xff] }
 0x233   : > { %6645 = vmatmul.msk.f32.gmra.mxu3 %vm1815_vm4, %v8803_v11 }
 0x234   : > { %v8806_v35 = vpack.c.bf16 %v1616_v26, %v1615_v2  ;;  %v8822_v26 = vld [vmem:[%s12377_s29 + $0x190] sm:$0xff]  ;;  %v8828_v19 = vpop.f32.mrf.mxu1  ;;  %6719 = vmatmul.msk.f32.gmra.mxu1 %vm1815_vm4, %v8371_v15  ;;  %v3018_v15 = vadd.f32 %v3017_v1, %v8717_v24  ;;  %v3013_v1 = vadd.f32 %v8740_v39, %v8681_v9 }
 0x235   : > { %v8816_v58 = vpop.f32.mrf.mxu3  ;;  %12406 = vst [vmem:[#allocation39_spill] sm:$0xff] %v8822_v26 }
 0x236   : > { %12404 = vst [vmem:[#allocation37_spill] sm:$0xff] %v8806_v35  ;;  %6828 = vmatmul.msk.bf16.gmra.mxu2 %vm2793_vm5, %v8806_v35  ;;  %v934_v35 = vld [vmem:[%s7979_s9 + $0x208] sm:$0xff]  ;;  %v3494_v39 = vadd.f32 %v8521_v16, %v3013_v1 }
 0x237   : > { %v1425_v17 = vpop.f32.mrf.mxu0  ;;  %12407 = vst [vmem:[#allocation40_spill] sm:$0xff] %v8828_v19  ;;  %v8894_v1 = vld [vmem:[%s12377_s29 + $0x1a8] sm:$0xff] }
 0x238   : > { %v1426_v2 = vadd.f32 %v8757_v41, %v1425_v17  ;;  %v8839_v17 = vld [vmem:[%s12377_s29 + $0x198] sm:$0xff] }
 0x239   : > { %v3022_v47 = vpop.f32.mrf.mxu2 }
 0x23a   : > { %6559 = vmatmul.msk.f32.gmra.mxu0 %vm975_vm2, %v933_v34  ;;  %v1617_v25 = vmax.f32 %v1426_v2, 0.0  ;;  %v3023_v49 = vadd.f32 %v3022_v47, %v2218_v55  ;;  %v3020_v34 = vadd.f32 %v3019_v13, %v8737_v6 }
 0x23b   : > { %6646 = vmatmul.msk.f32.gmra.mxu3 %vm1815_vm4, %v8822_v26 }
 0x23c   : > { %v3502_v2 = vadd.f32 %v8521_v16, %v3023_v49 }
 0x23d   : > { %v8832_v62 = vpop.f32.mrf.mxu3 }
 0x23f   : > { %v1428_v40 = vpop.f32.mrf.mxu0 }
 0x240   : > { %v1429_v4 = vadd.f32 %v8757_v41, %v1428_v40  ;;  %v3015_v40 = vadd.f32 %v8760_v23, %v8701_v57  ;;  %v3498_v57 = vadd.f32 %v8521_v16, %v3018_v15  ;;  %v3694_v23 = vmax.f32 %v3502_v2, 0.0 }
 0x241   : > { %v3024_v31 = vpop.f32.mrf.mxu2 }
 0x242   : > { %v1618_v19 = vmax.f32 %v1429_v4, 0.0  ;;  %v3025_v26 = vadd.f32 %v3024_v31, %v2221_v18  ;;  %6560 = vmatmul.msk.f32.gmra.mxu0 %vm975_vm2, %v934_v35  ;;  %v3500_v4 = vadd.f32 %v8521_v16, %v3020_v34  ;;  %v8855_v31 = vpop.f32.mrf.mxu1  ;;  %6720 = vmatmul.msk.f32.gmra.mxu1 %vm1815_vm4, %v8388_v43  ;;  %v935_v18 = vld [vmem:[%s7979_s9 + $0x210] sm:$0xff]  ;;  %v8868_v35 = vld [vmem:[%s12377_s29 + $0x1a0] sm:$0xff]  ;;  %v3010_v43 = vadd.f32 %v8721_v22, %v8665_v46 }
 0x243   : > { %6647 = vmatmul.msk.f32.gmra.mxu3 %vm1815_vm4, %v8839_v17  ;;  %12409 = vst [vmem:[#allocation42_spill] sm:$0xff] %v8855_v31  ;;  %v3496_v49 = vadd.f32 %v8521_v16, %v3015_v40  ;;  %v3686_v40 = vmax.f32 %v3494_v39, 0.0 }
 0x244   : > { %v8845_v55 = vpack.c.bf16 %v1618_v19, %v1617_v25  ;;  %v3504_v47 = vadd.f32 %v8521_v16, %v3025_v26  ;;  %v3692_v9 = vmax.f32 %v3500_v4, 0.0  ;;  %v3690_v19 = vmax.f32 %v3498_v57, 0.0 }
 0x245   : > { %v8859_v6 = vpop.f32.mrf.mxu3  ;;  %v3492_v46 = vadd.f32 %v8521_v16, %v3010_v43  ;;  %v3688_v22 = vmax.f32 %v3496_v49, 0.0 }
 0x246   : > { %12408 = vst [vmem:[#allocation41_spill] sm:$0xff] %v8845_v55  ;;  %v3696_v13 = vmax.f32 %v3504_v47, 0.0  ;;  %6829 = vmatmul.msk.bf16.gmra.mxu2 %vm2793_vm5, %v8845_v55  ;;  %v936_v47 = vld [vmem:[%s7979_s9 + $0x218] sm:$0xff] }
 0x247   : > { %v1431_v24 = vpop.f32.mrf.mxu0 }
 0x248   : > { %3869 = vmatpush.msra.mxu2 %v3696_v13  ;;  %v1432_v34 = vadd.f32 %v8757_v41, %v1431_v24  ;;  %v3490_v24 = vadd.f32 %v8521_v16, %v8709_v50  ;;  %v3486_v50 = vadd.f32 %v8521_v16, %v8673_v7  ;;  %v3482_v7 = vadd.f32 %v8521_v16, %v8639_v32 }
 0x249   : > { %v3027_v25 = vpop.f32.mrf.mxu2 }
 0x24a   : > { %v8873_v26 = vadd.f32 %v3027_v25, %v2224_v0  ;;  %6561 = vmatmul.msk.f32.gmra.mxu0 %vm975_vm2, %v935_v18  ;;  %3870 = vmatpush.msra.mxu2 %v3694_v23  ;;  %v8881_v0 = vpop.f32.mrf.mxu1  ;;  %v1619_v4 = vmax.f32 %v1432_v34, 0.0  ;;  %v3684_v23 = vmax.f32 %v3492_v46, 0.0  ;;  %v3488_v25 = vadd.f32 %v8521_v16, %v8690_v12  ;;  %v937_v34 = vld [vmem:[%s7979_s9 + $0x220] sm:$0xff] }
 0x24b   : > { %6648 = vmatmul.msk.f32.gmra.mxu3 %vm1815_vm4, %v8868_v35  ;;  %12410 = vst [vmem:[#allocation43_spill] sm:$0xff] %v8881_v0  ;;  %6721 = vmatmul.msk.f32.gmra.mxu1 %vm1815_vm4, %v8407_v10  ;;  %v3682_v49 = vmax.f32 %v3490_v24, 0.0  ;;  %v3484_v12 = vadd.f32 %v8521_v16, %v8654_v36  ;;  %v3678_v46 = vmax.f32 %v3486_v50, 0.0  ;;  %v3480_v36 = vadd.f32 %v8521_v16, %v8621_v52 }
 0x24c   : > { %3871 = vmatpush.msra.mxu2 %v3692_v9  ;;  %v3476_v52 = vadd.f32 %v8521_v16, %v8575_v5 }
 0x24e   : > { %3872 = vmatpush.msra.mxu2 %v3690_v19  ;;  %v8885_v2 = vpop.f32.mrf.mxu3  ;;  %v3680_v19 = vmax.f32 %v3488_v25, 0.0 }
 0x24f   : > { %v1434_v15 = vpop.f32.mrf.mxu0 }
 0x250   : > { %v1435_v13 = vadd.f32 %v8757_v41, %v1434_v15  ;;  %3873 = vmatpush.msra.mxu2 %v3688_v22  ;;  %v8924_v15 = vld [vmem:[%s12377_s29 + $0x1b0] sm:$0xff] }
 0x251   : > { %v3029_v18 = vpop.f32.mrf.mxu2 }
 0x252   : > { %v1620_v57 = vmax.f32 %v1435_v13, 0.0  ;;  %v8897_v10 = vadd.f32 %v3029_v18, %v8816_v58  ;;  %6562 = vmatmul.msk.f32.gmra.mxu0 %vm975_vm2, %v936_v47  ;;  %3874 = vmatpush.msra.mxu2 %v3686_v40  ;;  %v8910_v58 = vpop.f32.mrf.mxu1  ;;  %v3676_v47 = vmax.f32 %v3484_v12, 0.0  ;;  %v3478_v40 = vadd.f32 %v8521_v16, %v8601_v28 }
 0x253   : > { %6649 = vmatmul.msk.f32.gmra.mxu3 %vm1815_vm4, %v8894_v1  ;;  %12412 = vst [vmem:[#allocation45_spill] sm:$0xff] %v8910_v58  ;;  %6722 = vmatmul.msk.f32.gmra.mxu1 %vm1815_vm4, %v8426_v42  ;;  %v3672_v18 = vmax.f32 %v3480_v36, 0.0  ;;  %v3474_v28 = vadd.f32 %v8521_v16, %v8551_v45  ;;  %v8970_v36 = vld [vmem:[%s12377_s29 + $0x1c0] sm:$0xff]  ;;  %v947_v58 = vld [vmem:[%s7979_s9 + $0x270] sm:$0xff] }
 0x254   : > { %v8902_v43 = vpack.c.bf16 %v1620_v57, %v1619_v4  ;;  %3875 = vmatpush.msra.mxu2 %v3684_v23  ;;  %v3674_v4 = vmax.f32 %v3482_v7, 0.0  ;;  %v938_v57 = vld [vmem:[%s7979_s9 + $0x228] sm:$0xff]  ;;  %v3670_v50 = vmax.f32 %v3478_v40, 0.0 }
 0x255   : > { %v3666_v45 = vmax.f32 %v3474_v28, 0.0 }
 0x256   : > { %12411 = vst [vmem:[#allocation44_spill] sm:$0xff] %v8902_v43  ;;  %6830 = vmatmul.msk.bf16.gmra.mxu2 %vm2793_vm5, %v8902_v43  ;;  %v8916_v39 = vpop.f32.mrf.mxu3 }
 0x257   : > { %3876 = vmatpush.msra.mxu2 %v3682_v49  ;;  %v1437_v9 = vpop.f32.mrf.mxu0 }
 0x258   : > { %v1438_v32 = vadd.f32 %v8757_v41, %v1437_v9  ;;  %v3668_v9 = vmax.f32 %v3476_v52, 0.0  ;;  %v940_v52 = vld [vmem:[%s7979_s9 + $0x238] sm:$0xff] }
 0x259   : > { %3877 = vmatpush.msra.mxu2 %v3680_v19  ;;  %v3032_v22 = vpop.f32.mrf.mxu2 }
 0x25a   : > { %v8927_v42 = vadd.f32 %v3032_v22, %v8832_v62  ;;  %6563 = vmatmul.msk.f32.gmra.mxu0 %vm975_vm2, %v937_v34  ;;  %v8937_v62 = vpop.f32.mrf.mxu1  ;;  %v1621_v23 = vmax.f32 %v1438_v32, 0.0 }
 0x25b   : > { %3878 = vmatpush.msra.mxu2 %v3678_v46  ;;  %6650 = vmatmul.msk.f32.gmra.mxu3 %vm1815_vm4, %v8924_v15  ;;  %12413 = vst [vmem:[#allocation46_spill] sm:$0xff] %v8937_v62  ;;  %v939_v46 = vld [vmem:[%s7979_s9 + $0x230] sm:$0xff]  ;;  %v948_v62 = vld [vmem:[%s7979_s9 + $0x278] sm:$0xff] }
 0x25c   : > { %6723 = vmatmul.msk.f32.gmra.mxu1 %vm1815_vm4, %v8443_v59  ;;  %v8950_v59 = vld [vmem:[%s12377_s29 + $0x1b8] sm:$0xff] }
 0x25d   : > { %3879 = vmatpush.msra.mxu2 %v3676_v47 }
 0x25e   : > { %v2242_v24 = vpop.f32.mrf.mxu3 }
 0x25f   : > { %3880 = vmatpush.msra.mxu2 %v3674_v4  ;;  %v1440_v13 = vpop.f32.mrf.mxu0 }
 0x260   : > { %v1441_v25 = vadd.f32 %v8757_v41, %v1440_v13 }
 0x261   : > { %3881 = vmatpush.msra.mxu2 %v3672_v18  ;;  %v3034_v49 = vpop.f32.mrf.mxu2 }
 0x262   : > { %v1622_v5 = vmax.f32 %v1441_v25, 0.0  ;;  %v8953_v12 = vadd.f32 %v3034_v49, %v8859_v6  ;;  %6564 = vmatmul.msk.f32.gmra.mxu0 %vm975_vm2, %v938_v57  ;;  %v8962_v34 = vpop.f32.mrf.mxu1  ;;  %v8988_v57 = vld [vmem:[%s12377_s29 + $0x1c8] sm:$0xff] }
 0x263   : > { %3882 = vmatpush.msra.mxu2 %v3670_v50  ;;  %6651 = vmatmul.msk.f32.gmra.mxu3 %vm1815_vm4, %v8950_v59  ;;  %12415 = vst [vmem:[#allocation48_spill] sm:$0xff] %v8962_v34 }
 0x264   : > { %v8956_v19 = vpack.c.bf16 %v1622_v5, %v1621_v23  ;;  %6724 = vmatmul.msk.f32.gmra.mxu1 %vm1815_vm4, %v8456_v63 }
 0x265   : > { %3883 = vmatpush.msra.mxu2 %v3668_v9  ;;  %v9010_v9 = vld [vmem:[%s12377_s29 + $0x1d0] sm:$0xff] }
 0x266   : > { %12414 = vst [vmem:[#allocation47_spill] sm:$0xff] %v8956_v19  ;;  %6831 = vmatmul.msk.bf16.gmra.mxu2 %vm2793_vm5, %v8956_v19  ;;  %v2245_v7 = vpop.f32.mrf.mxu3  ;;  %v946_v19 = vld [vmem:[%s7979_s9 + $0x268] sm:$0xff] }
 0x267   : > { %3884 = vmatpush.msra.mxu2 %v3666_v45  ;;  %v1443_v6 = vpop.f32.mrf.mxu0 }
 0x268   : > { %v1444_v32 = vadd.f32 %v8757_v41, %v1443_v6 }
 0x269   : > { %v3037_v22 = vpop.f32.mrf.mxu2 }
 0x26a   : > { %v8973_v47 = vadd.f32 %v3037_v22, %v8885_v2  ;;  %6565 = vmatmul.msk.f32.gmra.mxu0 %vm975_vm2, %v939_v46  ;;  %v8979_v63 = vpop.f32.mrf.mxu1  ;;  %v1623_v13 = vmax.f32 %v1444_v32, 0.0  ;;  %v942_v32 = vld [vmem:[%s7979_s9 + $0x248] sm:$0xff] }
 0x26b   : > { %6652 = vmatmul.msk.f32.gmra.mxu3 %vm1815_vm4, %v8970_v36  ;;  %12416 = vst [vmem:[#allocation49_spill] sm:$0xff] %v8979_v63 }
 0x26c   : > { %6725 = vmatmul.msk.f32.gmra.mxu1 %vm1815_vm4, %v8471_v29 }
 0x26e   : > { %v2248_v4 = vpop.f32.mrf.mxu3 }
 0x26f   : > { %v1446_v40 = vpop.f32.mrf.mxu0 }
 0x270   : > { %v1447_v2 = vadd.f32 %v8757_v41, %v1446_v40 }
 0x271   : > { %v3039_v18 = vpop.f32.mrf.mxu2 }
 0x272   : > { %v1624_v23 = vmax.f32 %v1447_v2, 0.0  ;;  %v8991_v25 = vadd.f32 %v3039_v18, %v8916_v39  ;;  %6566 = vmatmul.msk.f32.gmra.mxu0 %vm975_vm2, %v940_v52  ;;  %v9000_v28 = vpop.f32.mrf.mxu1  ;;  %v941_v39 = vld [vmem:[%s7979_s9 + $0x240] sm:$0xff] }
 0x273   : > { %6653 = vmatmul.msk.f32.gmra.mxu3 %vm1815_vm4, %v8988_v57  ;;  %12418 = vst [vmem:[#allocation51_spill] sm:$0xff] %v9000_v28 }
 0x274   : > { %v8994_v29 = vpack.c.bf16 %v1624_v23, %v1623_v13  ;;  %6726 = vmatmul.msk.f32.gmra.mxu1 %vm1815_vm4, %v8484_v56  ;;  %v9029_v13 = vld [vmem:[%s12377_s29 + $0x1d8] sm:$0xff] }
 0x276   : > { %12417 = vst [vmem:[#allocation50_spill] sm:$0xff] %v8994_v29  ;;  %6832 = vmatmul.msk.bf16.gmra.mxu2 %vm2793_vm5, %v8994_v29  ;;  %v9004_v49 = vpop.f32.mrf.mxu3 }
 0x277   : > { %v1449_v50 = vpop.f32.mrf.mxu0 }
 0x278   : > { %v1450_v6 = vadd.f32 %v8757_v41, %v1449_v50 }
 0x279   : > { %v3042_v5 = vpop.f32.mrf.mxu2 }
 0x27a   : > { %v9012_v45 = vadd.f32 %v3042_v5, %v2242_v24  ;;  %6567 = vmatmul.msk.f32.gmra.mxu0 %vm975_vm2, %v941_v39  ;;  %v9018_v56 = vpop.f32.mrf.mxu1  ;;  %v1625_v40 = vmax.f32 %v1450_v6, 0.0  ;;  %v9050_v6 = vld [vmem:[%s12377_s29 + $0x1e0] sm:$0xff] }
 0x27b   : > { %6654 = vmatmul.msk.f32.gmra.mxu3 %vm1815_vm4, %v9010_v9  ;;  %12419 = vst [vmem:[#allocation52_spill] sm:$0xff] %v9018_v56 }
 0x27c   : > { %6727 = vmatmul.msk.f32.gmra.mxu1 %vm1815_vm4, %v8501_v21 }
 0x27e   : > { %v9022_v22 = vpop.f32.mrf.mxu3 }
 0x27f   : > { %v1452_v46 = vpop.f32.mrf.mxu0 }
 0x280   : > { %v1453_v24 = vadd.f32 %v8757_v41, %v1452_v46 }
 0x281   : > { %v3044_v52 = vpop.f32.mrf.mxu2 }
 0x282   : > { %v1626_v2 = vmax.f32 %v1453_v24, 0.0  ;;  %v9031_v18 = vadd.f32 %v3044_v52, %v2245_v7  ;;  %6568 = vmatmul.msk.f32.gmra.mxu0 %vm975_vm2, %v942_v32  ;;  %v9040_v23 = vpop.f32.mrf.mxu1  ;;  %v943_v7 = vld [vmem:[%s7979_s9 + $0x250] sm:$0xff]  ;;  %v944_v52 = vld [vmem:[%s7979_s9 + $0x258] sm:$0xff] }
 0x283   : > { %6655 = vmatmul.msk.f32.gmra.mxu3 %vm1815_vm4, %v9029_v13  ;;  %12421 = vst [vmem:[#allocation54_spill] sm:$0xff] %v9040_v23 }
 0x284   : > { %v9034_v21 = vpack.c.bf16 %v1626_v2, %v1625_v40  ;;  %6728 = vmatmul.msk.f32.gmra.mxu1 %vm1815_vm4, %v8519_v8 }
 0x286   : > { %12420 = vst [vmem:[#allocation53_spill] sm:$0xff] %v9034_v21  ;;  %6833 = vmatmul.msk.bf16.gmra.mxu2 %vm2793_vm5, %v9034_v21  ;;  %v9044_v39 = vpop.f32.mrf.mxu3 }
 0x287   : > { %v1455_v50 = vpop.f32.mrf.mxu0 }
 0x288   : > { %v1456_v32 = vadd.f32 %v8757_v41, %v1455_v50  ;;  %v9071_v50 = vld [vmem:[%s12377_s29 + $0x1e8] sm:$0xff] }
 0x289   : > { %v3047_v5 = vpop.f32.mrf.mxu2 }
 0x28a   : > { %v9052_v46 = vadd.f32 %v3047_v5, %v2248_v4  ;;  %6569 = vmatmul.msk.f32.gmra.mxu0 %vm975_vm2, %v943_v7  ;;  %v9058_v8 = vpop.f32.mrf.mxu1  ;;  %v1627_v2 = vmax.f32 %v1456_v32, 0.0 }
 0x28b   : > { %6656 = vmatmul.msk.f32.gmra.mxu3 %vm1815_vm4, %v9050_v6  ;;  %12422 = vst [vmem:[#allocation55_spill] sm:$0xff] %v9058_v8 }
 0x28c   : > { %6729 = vmatmul.msk.f32.gmra.mxu1 %vm1815_vm4, %v8546_v60 }
 0x28e   : > { %v9062_v24 = vpop.f32.mrf.mxu3 }
 0x28f   : > { %v1458_v40 = vpop.f32.mrf.mxu0 }
 0x290   : > { %v1459_v4 = vadd.f32 %v8757_v41, %v1458_v40 }
 0x291   : > { %v9066_v5 = vpop.f32.mrf.mxu2 }
 0x292   : > { %v1628_v7 = vmax.f32 %v1459_v4, 0.0  ;;  %6570 = vmatmul.msk.f32.gmra.mxu0 %vm975_vm2, %v944_v52  ;;  %v9080_v60 = vpop.f32.mrf.mxu1  ;;  %v945_v4 = vld [vmem:[%s7979_s9 + $0x260] sm:$0xff]  ;;  %v9092_v52 = vld [vmem:[%s12377_s29 + $0x1f0] sm:$0xff] }
 0x293   : > { %6657 = vmatmul.msk.f32.gmra.mxu3 %vm1815_vm4, %v9071_v50  ;;  %12424 = vst [vmem:[#allocation57_spill] sm:$0xff] %v9080_v60 }
 0x294   : > { %v9074_v21 = vpack.c.bf16 %v1628_v7, %v1627_v2  ;;  %6730 = vmatmul.msk.f32.gmra.mxu1 %vm1815_vm4, %v8570_v30 }
 0x296   : > { %12423 = vst [vmem:[#allocation56_spill] sm:$0xff] %v9074_v21  ;;  %6834 = vmatmul.msk.bf16.gmra.mxu2 %vm2793_vm5, %v9074_v21  ;;  %v9084_v40 = vpop.f32.mrf.mxu3 }
 0x297   : > { %v1461_v32 = vpop.f32.mrf.mxu0 }
 0x298   : > { %v1462_v2 = vadd.f32 %v8757_v41, %v1461_v32  ;;  %v9109_v32 = vld [vmem:[%s12377_s29 + $0x1f8] sm:$0xff] }
 0x299   : > { %v9087_v29 = vpop.f32.mrf.mxu2 }
 0x29a   : > { %6571 = vmatmul.msk.f32.gmra.mxu0 %vm975_vm2, %v945_v4  ;;  %v9098_v7 = vpop.f32.mrf.mxu1  ;;  %v1629_v43 = vmax.f32 %v1462_v2, 0.0 }
 0x29b   : > { %6658 = vmatmul.msk.f32.gmra.mxu3 %vm1815_vm4, %v9092_v52  ;;  %12425 = vst [vmem:[#allocation58_spill] sm:$0xff] %v9098_v7 }
 0x29c   : > { %6731 = vmatmul.msk.f32.gmra.mxu1 %vm1815_vm4, %v8596_v37 }
 0x29e   : > { %v2266_v21 = vpop.f32.mrf.mxu3 }
 0x29f   : > { %v1464_v30 = vpop.f32.mrf.mxu0 }
 0x2a0   : > { %v1465_v55 = vadd.f32 %v8757_v41, %v1464_v30 }
 0x2a1   : > { %v9104_v31 = vpop.f32.mrf.mxu2 }
 0x2a2   : > { %v1630_v4 = vmax.f32 %v1465_v55, 0.0  ;;  %6572 = vmatmul.msk.f32.gmra.mxu0 %vm975_vm2, %v946_v19  ;;  %v9118_v37 = vpop.f32.mrf.mxu1 }
 0x2a3   : > { %6659 = vmatmul.msk.f32.gmra.mxu3 %vm1815_vm4, %v9109_v32  ;;  %12427 = vst [vmem:[#allocation60_spill] sm:$0xff] %v9118_v37 }
 0x2a4   : > { %v9112_v0 = vpack.c.bf16 %v1630_v4, %v1629_v43  ;;  %6732 = vmatmul.msk.f32.gmra.mxu1 %vm1815_vm4, %v8618_v27  ;;  %v9126_v43 = vld [vmem:[%s12377_s29 + $0x200] sm:$0xff] }
 0x2a6   : > { %12426 = vst [vmem:[#allocation59_spill] sm:$0xff] %v9112_v0  ;;  %6835 = vmatmul.msk.bf16.gmra.mxu2 %vm2793_vm5, %v9112_v0  ;;  %v2269_v30 = vpop.f32.mrf.mxu3 }
 0x2a7   : > { %v1467_v2 = vpop.f32.mrf.mxu0 }
 0x2a8   : > { %v1468_v19 = vadd.f32 %v8757_v41, %v1467_v2 }
 0x2a9   : > { %v3057_v55 = vpop.f32.mrf.mxu2 }
 0x2aa   : > { %6573 = vmatmul.msk.f32.gmra.mxu0 %vm975_vm2, %v947_v58  ;;  %v9132_v4 = vpop.f32.mrf.mxu1  ;;  %v1631_v34 = vmax.f32 %v1468_v19, 0.0  ;;  %v9141_v58 = vld [vmem:[%s12377_s29 + $0x208] sm:$0xff] }
 0x2ab   : > { %6660 = vmatmul.msk.f32.gmra.mxu3 %vm1815_vm4, %v9126_v43  ;;  %12428 = vst [vmem:[#allocation61_spill] sm:$0xff] %v9132_v4 }
 0x2ac   : > { %6733 = vmatmul.msk.f32.gmra.mxu1 %vm1815_vm4, %v8636_v51 }
 0x2ae   : > { %v2272_v0 = vpop.f32.mrf.mxu3 }
 0x2af   : > { %v1470_v27 = vpop.f32.mrf.mxu0 }
 0x2b0   : > { %v1471_v63 = vadd.f32 %v8757_v41, %v1470_v27 }
 0x2b1   : > { %v3059_v28 = vpop.f32.mrf.mxu2 }
 0x2b2   : > { %v1632_v2 = vmax.f32 %v1471_v63, 0.0  ;;  %6574 = vmatmul.msk.f32.gmra.mxu0 %vm975_vm2, %v948_v62  ;;  %v9150_v51 = vpop.f32.mrf.mxu1  ;;  %v949_v63 = vld [vmem:[%s7979_s9 + $0x280] sm:$0xff]  ;;  %v9160_v62 = vld [vmem:[%s12377_s29 + $0x210] sm:$0xff] }
 0x2b3   : > { %6661 = vmatmul.msk.f32.gmra.mxu3 %vm1815_vm4, %v9141_v58  ;;  %12430 = vst [vmem:[#allocation63_spill] sm:$0xff] %v9150_v51  ;;  %v950_v51 = vld [vmem:[%s7979_s9 + $0x288] sm:$0xff] }
 0x2b4   : > { %v9144_v4 = vpack.c.bf16 %v1632_v2, %v1631_v34  ;;  %6734 = vmatmul.msk.f32.gmra.mxu1 %vm1815_vm4, %v8652_v48 }
 0x2b6   : > { %12429 = vst [vmem:[#allocation62_spill] sm:$0xff] %v9144_v4  ;;  %6836 = vmatmul.msk.bf16.gmra.mxu2 %vm2793_vm5, %v9144_v4  ;;  %v9154_v27 = vpop.f32.mrf.mxu3 }
 0x2b7   : > { %v1473_v19 = vpop.f32.mrf.mxu0 }
 0x2b8   : > { %v1474_v34 = vadd.f32 %v8757_v41, %v1473_v19  ;;  %v9177_v19 = vld [vmem:[%s12377_s29 + $0x218] sm:$0xff] }
 0x2b9   : > { %v3062_v56 = vpop.f32.mrf.mxu2 }
 0x2ba   : > { %6575 = vmatmul.msk.f32.gmra.mxu0 %vm975_vm2, %v949_v63  ;;  %v9166_v2 = vpop.f32.mrf.mxu1  ;;  %v1633_v23 = vmax.f32 %v1474_v34, 0.0  ;;  %v3063_v37 = vadd.f32 %v3062_v56, %v2266_v21  ;;  %v3058_v56 = vadd.f32 %v3057_v55, %v9062_v24  ;;  %v951_v24 = vld [vmem:[%s7979_s9 + $0x290] sm:$0xff] }
 0x2bb   : > { %6662 = vmatmul.msk.f32.gmra.mxu3 %vm1815_vm4, %v9160_v62  ;;  %12431 = vst [vmem:[#allocation64_spill] sm:$0xff] %v9166_v2 }
 0x2bc   : > { %6735 = vmatmul.msk.f32.gmra.mxu1 %vm1815_vm4, %v8671_v61  ;;  %v3060_v61 = vadd.f32 %v3059_v28, %v9084_v40  ;;  %v3534_v21 = vadd.f32 %v8521_v16, %v3063_v37  ;;  %v3055_v28 = vadd.f32 %v9104_v31, %v9044_v39  ;;  %v3530_v37 = vadd.f32 %v8521_v16, %v3058_v56 }
 0x2bd   : > { %v3050_v39 = vadd.f32 %v9066_v5, %v9004_v49 }
 0x2be   : > { %v9170_v4 = vpop.f32.mrf.mxu3 }
 0x2bf   : > { %v1476_v48 = vpop.f32.mrf.mxu0  ;;  %v3524_v49 = vadd.f32 %v8521_v16, %v3050_v39  ;;  %v3518_v39 = vadd.f32 %v8521_v16, %v9012_v45  ;;  %v3514_v45 = vadd.f32 %v8521_v16, %v8973_v47 }
 0x2c0   : > { %v1477_v8 = vadd.f32 %v8757_v41, %v1476_v48 }
 0x2c1   : > { %v3064_v60 = vpop.f32.mrf.mxu2 }
 0x2c2   : > { %v1634_v63 = vmax.f32 %v1477_v8, 0.0  ;;  %v3065_v7 = vadd.f32 %v3064_v60, %v2269_v30  ;;  %6576 = vmatmul.msk.f32.gmra.mxu0 %vm975_vm2, %v950_v51  ;;  %v9190_v8 = vpop.f32.mrf.mxu1  ;;  %v3726_v30 = vmax.f32 %v3534_v21, 0.0  ;;  %v3528_v51 = vadd.f32 %v8521_v16, %v3055_v28  ;;  %v952_v21 = vld [vmem:[%s7979_s9 + $0x298] sm:$0xff] }
 0x2c3   : > { %6663 = vmatmul.msk.f32.gmra.mxu3 %vm1815_vm4, %v9177_v19  ;;  %12433 = vst [vmem:[#allocation66_spill] sm:$0xff] %v9190_v8 }
 0x2c4   : > { %v9181_v2 = vpack.c.bf16 %v1634_v63, %v1633_v23  ;;  %v3536_v34 = vadd.f32 %v8521_v16, %v3065_v7  ;;  %6736 = vmatmul.msk.f32.gmra.mxu1 %vm1815_vm4, %v8688_v44  ;;  %v3532_v23 = vadd.f32 %v8521_v16, %v3060_v61  ;;  %v3053_v7 = vadd.f32 %v9087_v29, %v9022_v22  ;;  %v9206_v44 = vld [vmem:[%s12377_s29 + $0x220] sm:$0xff] }
 0x2c5   : > { %v3722_v61 = vmax.f32 %v3530_v37, 0.0  ;;  %v3720_v56 = vmax.f32 %v3528_v51, 0.0 }
 0x2c6   : > { %12432 = vst [vmem:[#allocation65_spill] sm:$0xff] %v9181_v2  ;;  %v3728_v48 = vmax.f32 %v3536_v34, 0.0  ;;  %6837 = vmatmul.msk.bf16.gmra.mxu2 %vm2793_vm5, %v9181_v2  ;;  %v9197_v40 = vpop.f32.mrf.mxu3  ;;  %v3724_v29 = vmax.f32 %v3532_v23, 0.0  ;;  %v3526_v63 = vadd.f32 %v8521_v16, %v3053_v7  ;;  %v3522_v23 = vadd.f32 %v8521_v16, %v9052_v46 }
 0x2c7   : > { %v1479_v60 = vpop.f32.mrf.mxu0  ;;  %v3716_v46 = vmax.f32 %v3524_v49, 0.0  ;;  %v3710_v49 = vmax.f32 %v3518_v39, 0.0 }
 0x2c8   : > { %3889 = vmatpush.msra.mxu0 %v3728_v48  ;;  %v1480_v22 = vadd.f32 %v8757_v41, %v1479_v60  ;;  %v3718_v60 = vmax.f32 %v3526_v63, 0.0  ;;  %v3714_v51 = vmax.f32 %v3522_v23, 0.0 }
 0x2c9   : > { %v3067_v55 = vpop.f32.mrf.mxu2 }
 0x2ca   : > { %v9208_v31 = vadd.f32 %v3067_v55, %v2272_v0  ;;  %6577 = vmatmul.msk.f32.gmra.mxu0 %vm975_vm2, %v951_v24  ;;  %v9218_v0 = vpop.f32.mrf.mxu1  ;;  %v1635_v48 = vmax.f32 %v1480_v22, 0.0 }
 0x2cb   : > { %3890 = vmatpush.msra.mxu0 %v3726_v30  ;;  %6664 = vmatmul.msk.f32.gmra.mxu3 %vm1815_vm4, %v9206_v44  ;;  %12434 = vst [vmem:[#allocation67_spill] sm:$0xff] %v9218_v0  ;;  %v3520_v30 = vadd.f32 %v8521_v16, %v9031_v18  ;;  %v3516_v18 = vadd.f32 %v8521_v16, %v8991_v25  ;;  %v963_v0 = vld [vmem:[%s7979_s9 + $0x2f0] sm:$0xff] }
 0x2cc   : > { %6737 = vmatmul.msk.f32.gmra.mxu1 %vm1815_vm4, %v8707_v53  ;;  %v9232_v53 = vld [vmem:[%s12377_s29 + $0x228] sm:$0xff]  ;;  %v3512_v25 = vadd.f32 %v8521_v16, %v8953_v12  ;;  %v3508_v12 = vadd.f32 %v8521_v16, %v8897_v10 }
 0x2cd   : > { %3891 = vmatpush.msra.mxu0 %v3724_v29  ;;  %v3712_v63 = vmax.f32 %v3520_v30, 0.0 }
 0x2ce   : > { %v9223_v34 = vpop.f32.mrf.mxu3 }
 0x2cf   : > { %3892 = vmatpush.msra.mxu0 %v3722_v61  ;;  %v1482_v5 = vpop.f32.mrf.mxu0  ;;  %v953_v61 = vld [vmem:[%s7979_s9 + $0x2a0] sm:$0xff] }
 0x2d0   : > { %v1483_v28 = vadd.f32 %v8757_v41, %v1482_v5 }
 0x2d1   : > { %3893 = vmatpush.msra.mxu0 %v3720_v56  ;;  %v3069_v24 = vpop.f32.mrf.mxu2  ;;  %v9262_v56 = vld [vmem:[%s12377_s29 + $0x230] sm:$0xff] }
 0x2d2   : > { %v1636_v7 = vmax.f32 %v1483_v28, 0.0  ;;  %v9235_v37 = vadd.f32 %v3069_v24, %v9154_v27  ;;  %6578 = vmatmul.msk.f32.gmra.mxu0 %vm975_vm2, %v952_v21  ;;  %v9248_v27 = vpop.f32.mrf.mxu1  ;;  %v3708_v21 = vmax.f32 %v3516_v18, 0.0  ;;  %v3706_v28 = vmax.f32 %v3514_v45, 0.0 }
 0x2d3   : > { %3894 = vmatpush.msra.mxu0 %v3718_v60  ;;  %6665 = vmatmul.msk.f32.gmra.mxu3 %vm1815_vm4, %v9232_v53  ;;  %12436 = vst [vmem:[#allocation69_spill] sm:$0xff] %v9248_v27  ;;  %v3704_v24 = vmax.f32 %v3512_v25, 0.0  ;;  %v9308_v25 = vld [vmem:[%s12377_s29 + $0x240] sm:$0xff] }
 0x2d4   : > { %v9240_v55 = vpack.c.bf16 %v1636_v7, %v1635_v48  ;;  %6738 = vmatmul.msk.f32.gmra.mxu1 %vm1815_vm4, %v8726_v20  ;;  %v3510_v48 = vadd.f32 %v8521_v16, %v8927_v42  ;;  %v954_v7 = vld [vmem:[%s7979_s9 + $0x2a8] sm:$0xff]  ;;  %v3506_v42 = vadd.f32 %v8521_v16, %v8873_v26 }
 0x2d5   : > { %3895 = vmatpush.msra.mxu0 %v3716_v46 }
 0x2d6   : > { %12435 = vst [vmem:[#allocation68_spill] sm:$0xff] %v9240_v55  ;;  %6838 = vmatmul.msk.bf16.gmra.mxu2 %vm2793_vm5, %v9240_v55  ;;  %v9254_v22 = vpop.f32.mrf.mxu3  ;;  %v3702_v39 = vmax.f32 %v3510_v48, 0.0  ;;  %v3698_v26 = vmax.f32 %v3506_v42, 0.0 }
 0x2d7   : > { %3896 = vmatpush.msra.mxu0 %v3714_v51  ;;  %v1485_v29 = vpop.f32.mrf.mxu0 }
 0x2d8   : > { %v1486_v47 = vadd.f32 %v8757_v41, %v1485_v29  ;;  %v3700_v29 = vmax.f32 %v3508_v12, 0.0 }
 0x2d9   : > { %3897 = vmatpush.msra.mxu0 %v3712_v63  ;;  %v3072_v5 = vpop.f32.mrf.mxu2 }
 0x2da   : > { %v9265_v20 = vadd.f32 %v3072_v5, %v9170_v4  ;;  %6579 = vmatmul.msk.f32.gmra.mxu0 %vm975_vm2, %v953_v61  ;;  %v9275_v4 = vpop.f32.mrf.mxu1  ;;  %v1637_v30 = vmax.f32 %v1486_v47, 0.0  ;;  %v2948_v47 = vadd.f32 %v8275_v33, %v8774_v14  ;;  %v9329_v14 = vld [vmem:[%s12377_s29 + $0x248] sm:$0xff] }
 0x2db   : > { %3898 = vmatpush.msra.mxu0 %v3710_v49  ;;  %6666 = vmatmul.msk.f32.gmra.mxu3 %vm1815_vm4, %v9262_v56  ;;  %12437 = vst [vmem:[#allocation70_spill] sm:$0xff] %v9275_v4  ;;  %v955_v49 = vld [vmem:[%s7979_s9 + $0x2b0] sm:$0xff]  ;;  %v964_v4 = vld [vmem:[%s7979_s9 + $0x2f8] sm:$0xff] }
 0x2dc   : > { %6739 = vmatmul.msk.f32.gmra.mxu1 %vm1815_vm4, %v8745_v54  ;;  %v9288_v54 = vld [vmem:[%s12377_s29 + $0x238] sm:$0xff] }
 0x2dd   : > { %3899 = vmatpush.msra.mxu0 %v3708_v21 }
 0x2de   : > { %v2290_v60 = vpop.f32.mrf.mxu3 }
 0x2df   : > { %3900 = vmatpush.msra.mxu0 %v3706_v28  ;;  %v1488_v23 = vpop.f32.mrf.mxu0 }
 0x2e0   : > { %v1489_v46 = vadd.f32 %v8757_v41, %v1488_v23  ;;  %v956_v23 = vld [vmem:[%s7979_s9 + $0x2b8] sm:$0xff] }
 0x2e1   : > { %3901 = vmatpush.msra.mxu0 %v3704_v24  ;;  %v3074_v51 = vpop.f32.mrf.mxu2 }
 0x2e2   : > { %v1638_v10 = vmax.f32 %v1489_v46, 0.0  ;;  %v9291_v18 = vadd.f32 %v3074_v51, %v9197_v40  ;;  %6580 = vmatmul.msk.f32.gmra.mxu0 %vm975_vm2, %v954_v7  ;;  %v9300_v61 = vpop.f32.mrf.mxu1 }
 0x2e3   : > { %3902 = vmatpush.msra.mxu0 %v3702_v39  ;;  %6667 = vmatmul.msk.f32.gmra.mxu3 %vm1815_vm4, %v9288_v54  ;;  %12439 = vst [vmem:[#allocation72_spill] sm:$0xff] %v9300_v61 }
 0x2e4   : > { %v9294_v63 = vpack.c.bf16 %v1638_v10, %v1637_v30  ;;  %6740 = vmatmul.msk.f32.gmra.mxu1 %vm1815_vm4, %v8765_v38 }
 0x2e5   : > { %3903 = vmatpush.msra.mxu0 %v3700_v29 }
 0x2e6   : > { %12438 = vst [vmem:[#allocation71_spill] sm:$0xff] %v9294_v63  ;;  %6839 = vmatmul.msk.bf16.gmra.mxu2 %vm2793_vm5, %v9294_v63  ;;  %v2293_v45 = vpop.f32.mrf.mxu3 }
 0x2e7   : > { %3904 = vmatpush.msra.mxu0 %v3698_v26  ;;  %v1491_v40 = vpop.f32.mrf.mxu0  ;;  %v9351_v26 = vld [vmem:[%s12377_s29 + $0x250] sm:$0xff] }
 0x2e8   : > { %v1492_v38 = vadd.f32 %v8757_v41, %v1491_v40 }
 0x2e9   : > { %v3077_v5 = vpop.f32.mrf.mxu2 }
 0x2ea   : > { %v9311_v21 = vadd.f32 %v3077_v5, %v9223_v34  ;;  %6581 = vmatmul.msk.f32.gmra.mxu0 %vm975_vm2, %v955_v49  ;;  %v9319_v48 = vpop.f32.mrf.mxu1  ;;  %v3442_v34 = vadd.f32 %v8521_v16, %v2948_v47  ;;  %v1639_v24 = vmax.f32 %v1492_v38, 0.0 }
 0x2eb   : > { %6668 = vmatmul.msk.f32.gmra.mxu3 %vm1815_vm4, %v9308_v25  ;;  %12440 = vst [vmem:[#allocation73_spill] sm:$0xff] %v9319_v48 }
 0x2ec   : > { %6741 = vmatmul.msk.f32.gmra.mxu1 %vm1815_vm4, %v8782_v3  ;;  %v3634_v42 = vmax.f32 %v3442_v34, 0.0 }
 0x2ee   : > { %v2296_v12 = vpop.f32.mrf.mxu3  ;;  %3864 = vmatpush.msrb.mxu1 %v3634_v42 }
 0x2ef   : > { %v1494_v28 = vpop.f32.mrf.mxu0 }
 0x2f0   : > { %v1495_v7 = vadd.f32 %v8757_v41, %v1494_v28  ;;  %v12444_v28 = vld [vmem:[#allocation39_spill] sm:$0xff] }
 0x2f1   : > { %v3079_v33 = vpop.f32.mrf.mxu2 }
 0x2f2   : > { %v1640_v30 = vmax.f32 %v1495_v7, 0.0  ;;  %v9332_v46 = vadd.f32 %v3079_v33, %v9254_v22  ;;  %6582 = vmatmul.msk.f32.gmra.mxu0 %vm975_vm2, %v956_v23  ;;  %v9341_v39 = vpop.f32.mrf.mxu1  ;;  %v957_v22 = vld [vmem:[%s7979_s9 + $0x2c0] sm:$0xff] }
 0x2f3   : > { %6669 = vmatmul.msk.f32.gmra.mxu3 %vm1815_vm4, %v9329_v14  ;;  %12442 = vst [vmem:[#allocation75_spill] sm:$0xff] %v9341_v39 }
 0x2f4   : > { %v9335_v3 = vpack.c.bf16 %v1640_v30, %v1639_v24  ;;  %6742 = vmatmul.msk.f32.gmra.mxu1 %vm1815_vm4, %v8803_v11  ;;  %v958_v11 = vld [vmem:[%s7979_s9 + $0x2c8] sm:$0xff]  ;;  %v9370_v24 = vld [vmem:[%s12377_s29 + $0x258] sm:$0xff] }
 0x2f6   : > { %12441 = vst [vmem:[#allocation74_spill] sm:$0xff] %v9335_v3  ;;  %6840 = vmatmul.msk.bf16.gmra.mxu2 %vm2793_vm5, %v9335_v3  ;;  %v9343_v10 = vpop.f32.mrf.mxu3  ;;  %v962_v3 = vld [vmem:[%s7979_s9 + $0x2e8] sm:$0xff] }
 0x2f7   : > { %v1497_v51 = vpop.f32.mrf.mxu0 }
 0x2f8   : > { %v1498_v49 = vadd.f32 %v8757_v41, %v1497_v51 }
 0x2f9   : > { %v3082_v29 = vpop.f32.mrf.mxu2 }
 0x2fa   : > { %v9353_v40 = vadd.f32 %v3082_v29, %v2290_v60  ;;  %6583 = vmatmul.msk.f32.gmra.mxu0 %vm975_vm2, %v957_v22  ;;  %v9359_v5 = vpop.f32.mrf.mxu1  ;;  %v1641_v23 = vmax.f32 %v1498_v49, 0.0  ;;  %v959_v29 = vld [vmem:[%s7979_s9 + $0x2d0] sm:$0xff]  ;;  %v9391_v49 = vld [vmem:[%s12377_s29 + $0x260] sm:$0xff] }
 0x2fb   : > { %6670 = vmatmul.msk.f32.gmra.mxu3 %vm1815_vm4, %v9351_v26  ;;  %12443 = vst [vmem:[#allocation76_spill] sm:$0xff] %v9359_v5 }
 0x2fc   : > { %6743 = vmatmul.msk.f32.gmra.mxu1 %vm1815_vm4, %v12444_v28 }
 0x2fe   : > { %v9361_v38 = vpop.f32.mrf.mxu3 }
 0x2ff   : > { %v1500_v47 = vpop.f32.mrf.mxu0 }
 0x300   : > { %v1501_v60 = vadd.f32 %v8757_v41, %v1500_v47 }
 0x301   : > { %v3084_v34 = vpop.f32.mrf.mxu2 }
 0x302   : > { %v1642_v7 = vmax.f32 %v1501_v60, 0.0  ;;  %v9372_v33 = vadd.f32 %v3084_v34, %v2293_v45  ;;  %6584 = vmatmul.msk.f32.gmra.mxu0 %vm975_vm2, %v958_v11  ;;  %v9381_v42 = vpop.f32.mrf.mxu1  ;;  %v960_v60 = vld [vmem:[%s7979_s9 + $0x2d8] sm:$0xff] }
 0x303   : > { %6671 = vmatmul.msk.f32.gmra.mxu3 %vm1815_vm4, %v9370_v24  ;;  %12446 = vst [vmem:[#allocation77_spill] sm:$0xff] %v9381_v42 }
 0x304   : > { %v9375_v30 = vpack.c.bf16 %v1642_v7, %v1641_v23  ;;  %6744 = vmatmul.msk.f32.gmra.mxu1 %vm1815_vm4, %v8839_v17 }
 0x306   : > { %12445 = vst [vmem:[#allocation39_spill] sm:$0xff] %v9375_v30  ;;  %6841 = vmatmul.msk.bf16.gmra.mxu2 %vm2793_vm5, %v9375_v30  ;;  %v9383_v22 = vpop.f32.mrf.mxu3 }
 0x307   : > { %v1503_v51 = vpop.f32.mrf.mxu0 }
 0x308   : > { %v1504_v11 = vadd.f32 %v8757_v41, %v1503_v51  ;;  %v9412_v51 = vld [vmem:[%s12377_s29 + $0x268] sm:$0xff] }
 0x309   : > { %v3087_v45 = vpop.f32.mrf.mxu2 }
 0x30a   : > { %v9393_v47 = vadd.f32 %v3087_v45, %v2296_v12  ;;  %6585 = vmatmul.msk.f32.gmra.mxu0 %vm975_vm2, %v959_v29  ;;  %v9399_v28 = vpop.f32.mrf.mxu1  ;;  %v1643_v34 = vmax.f32 %v1504_v11, 0.0 }
 0x30b   : > { %6672 = vmatmul.msk.f32.gmra.mxu3 %vm1815_vm4, %v9391_v49  ;;  %12447 = vst [vmem:[#allocation78_spill] sm:$0xff] %v9399_v28 }
 0x30c   : > { %6745 = vmatmul.msk.f32.gmra.mxu1 %vm1815_vm4, %v8868_v35 }
 0x30e   : > { %v9401_v17 = vpop.f32.mrf.mxu3 }
 0x30f   : > { %v1506_v23 = vpop.f32.mrf.mxu0 }
 0x310   : > { %v1507_v12 = vadd.f32 %v8757_v41, %v1506_v23  ;;  %v961_v23 = vld [vmem:[%s7979_s9 + $0x2e0] sm:$0xff]  ;;  %s848_s9 = sand.u32 1, %s7749_s4  }
 0x311   : > { %v9407_v7 = vpop.f32.mrf.mxu2  ;;  %s6490_s10 = sshll.u32 %s848_s9, 3  ;;  %s6375_s6 = scalar_lea.sflag [#allocation3], %s848_s9 }
 0x312   : > { %v1644_v29 = vmax.f32 %v1507_v12, 0.0  ;;  %6586 = vmatmul.msk.f32.gmra.mxu0 %vm975_vm2, %v960_v60  ;;  %v9421_v41 = vpop.f32.mrf.mxu1  ;;  %v9433_v60 = vld [vmem:[%s12377_s29 + $0x270] sm:$0xff] }
 0x313   : > { %6673 = vmatmul.msk.f32.gmra.mxu3 %vm1815_vm4, %v9412_v51  ;;  %12449 = vst [vmem:[#allocation80_spill] sm:$0xff] %v9421_v41 }
 0x314   : > { %v9415_v45 = vpack.c.bf16 %v1644_v29, %v1643_v34  ;;  %6746 = vmatmul.msk.f32.gmra.mxu1 %vm1815_vm4, %v8894_v1  ;;  %v9439_v34 = vld [vmem:[%s12378_s1] ss:$0 sm:$0xff]  ;;  %s12785_s1 = sshll.u32 %s7964_s11, 2 }
 0x316   : > { %12448 = vst [vmem:[#allocation79_spill] sm:$0xff] %v9415_v45  ;;  %6842 = vmatmul.msk.bf16.gmra.mxu2 %vm2793_vm5, %v9415_v45  ;;  %v9423_v11 = vpop.f32.mrf.mxu3 }
 0x317   : > { %v1509_v35 = vpop.f32.mrf.mxu0 }
 0x318   : > { %v1510_v29 = vadd.f32 %v9439_v34, %v1509_v35  ;;  %v9453_v35 = vld [vmem:[%s12377_s29 + $0x278] sm:$0xff] }
 0x319   : > { %v9428_v12 = vpop.f32.mrf.mxu2 }
 0x31a   : > { %6587 = vmatmul.msk.f32.gmra.mxu0 %vm975_vm2, %v961_v23  ;;  %v9444_v1 = vpop.f32.mrf.mxu1  ;;  %v1645_v23 = vmax.f32 %v1510_v29, 0.0 }
 0x31b   : > { %6674 = vmatmul.msk.f32.gmra.mxu3 %vm1815_vm4, %v9433_v60  ;;  %12450 = vst [vmem:[#allocation81_spill] sm:$0xff] %v9444_v1 }
 0x31c   : > { %6747 = vmatmul.msk.f32.gmra.mxu1 %vm1815_vm4, %v8924_v15 }
 0x31e   : > { %v2314_v30 = vpop.f32.mrf.mxu3 }
 0x31f   : > { %v1512_v45 = vpop.f32.mrf.mxu0 }
 0x320   : > { %v1513_v63 = vadd.f32 %v9439_v34, %v1512_v45 }
 0x321   : > { %v3094_v55 = vpop.f32.mrf.mxu2 }
 0x322   : > { %v1646_v2 = vmax.f32 %v1513_v63, 0.0  ;;  %6588 = vmatmul.msk.f32.gmra.mxu0 %vm975_vm2, %v962_v3  ;;  %v9462_v15 = vpop.f32.mrf.mxu1 }
 0x323   : > { %6675 = vmatmul.msk.f32.gmra.mxu3 %vm1815_vm4, %v9453_v35  ;;  %12452 = vst [vmem:[#allocation83_spill] sm:$0xff] %v9462_v15 }
 0x324   : > { %v9456_v8 = vpack.c.bf16 %v1646_v2, %v1645_v23  ;;  %6748 = vmatmul.msk.f32.gmra.mxu1 %vm1815_vm4, %v8950_v59  ;;  %v9470_v2 = vld [vmem:[%s12377_s29 + $0x280] sm:$0xff] }
 0x326   : > { %12451 = vst [vmem:[#allocation82_spill] sm:$0xff] %v9456_v8  ;;  %6843 = vmatmul.msk.bf16.gmra.mxu2 %vm2793_vm5, %v9456_v8  ;;  %v2317_v29 = vpop.f32.mrf.mxu3 }
 0x327   : > { %v1515_v45 = vpop.f32.mrf.mxu0 }
 0x328   : > { %v1516_v3 = vadd.f32 %v9439_v34, %v1515_v45 }
 0x329   : > { %v3097_v63 = vpop.f32.mrf.mxu2 }
 0x32a   : > { %6589 = vmatmul.msk.f32.gmra.mxu0 %vm975_vm2, %v963_v0  ;;  %v9476_v23 = vpop.f32.mrf.mxu1  ;;  %v1647_v59 = vmax.f32 %v1516_v3, 0.0  ;;  %v9485_v0 = vld [vmem:[%s12377_s29 + $0x288] sm:$0xff]  ;;  %v3098_v41 = vadd.f32 %v3097_v63, %v9401_v17 }
 0x32b   : > { %6676 = vmatmul.msk.f32.gmra.mxu3 %vm1815_vm4, %v9470_v2  ;;  %12453 = vst [vmem:[#allocation84_spill] sm:$0xff] %v9476_v23 }
 0x32c   : > { %6749 = vmatmul.msk.f32.gmra.mxu1 %vm1815_vm4, %v8970_v36  ;;  %v3562_v17 = vadd.f32 %v8521_v16, %v3098_v41 }
 0x32e   : > { %v2320_v27 = vpop.f32.mrf.mxu3 }
 0x32f   : > { %v1518_v8 = vpop.f32.mrf.mxu0 }
 0x330   : > { %v1519_v61 = vadd.f32 %v9439_v34, %v1518_v8 }
 0x331   : > { %v3099_v48 = vpop.f32.mrf.mxu2 }
 0x332   : > { %v1648_v45 = vmax.f32 %v1519_v61, 0.0  ;;  %6590 = vmatmul.msk.f32.gmra.mxu0 %vm975_vm2, %v964_v4  ;;  %v9494_v36 = vpop.f32.mrf.mxu1  ;;  %v9503_v4 = vld [vmem:[%s12377_s29 + $0x290] sm:$0xff]  ;;  %v12457_v61 = vld [vmem:[#allocation13_spill] sm:$0xff] }
 0x333   : > { %6677 = vmatmul.msk.f32.gmra.mxu3 %vm1815_vm4, %v9485_v0  ;;  %12455 = vst [vmem:[#allocation86_spill] sm:$0xff] %v9494_v36 }
 0x334   : > { %v9488_v39 = vpack.c.bf16 %v1648_v45, %v1647_v59  ;;  %6750 = vmatmul.msk.f32.gmra.mxu1 %vm1815_vm4, %v8988_v57  ;;  %12456 = vst [vmem:[#allocation87_spill] sm:$0xff] %v9503_v4 }
 0x336   : > { %12454 = vst [vmem:[#allocation85_spill] sm:$0xff] %v9488_v39  ;;  %6844 = vmatmul.msk.bf16.gmra.mxu2 %vm2793_vm5, %v9488_v39  ;;  %v9496_v3 = vpop.f32.mrf.mxu3 }
 0x337   : > { %v1521_v8 = vpop.f32.mrf.mxu0 }
 0x338   : > { %v1522_v59 = vadd.f32 %v9439_v34, %v1521_v8  ;;  %v9520_v8 = vld [vmem:[%s12377_s29 + $0x298] sm:$0xff] }
 0x339   : > { %v3102_v23 = vpop.f32.mrf.mxu2 }
 0x33a   : > { %6853 = vmatmul.msk.bf16.vlgmr.msrb.gmra.mxu0 %vm2793_vm5, %v12457_v61  ;;  %v9510_v45 = vpop.f32.mrf.mxu1  ;;  %v1649_v57 = vmax.f32 %v1522_v59, 0.0  ;;  %v3103_v5 = vadd.f32 %v3102_v23, %v2314_v30  ;;  %v3100_v61 = vadd.f32 %v3099_v48, %v9423_v11  ;;  %v9546_v11 = vld [vmem:[%s12377_s29 + $0x2a0] sm:$0xff] }
 0x33b   : > { %6678 = vmatmul.msk.f32.gmra.mxu3 %vm1815_vm4, %v9503_v4  ;;  %12458 = vst [vmem:[#allocation13_spill] sm:$0xff] %v9510_v45 }
 0x33c   : > { %6751 = vmatmul.msk.f32.gmra.mxu1 %vm1815_vm4, %v9010_v9  ;;  %v3566_v1 = vadd.f32 %v8521_v16, %v3103_v5  ;;  %v3564_v30 = vadd.f32 %v8521_v16, %v3100_v61  ;;  %v3093_v5 = vadd.f32 %v9428_v12, %v9361_v38  ;;  %v3754_v12 = vmax.f32 %v3562_v17, 0.0 }
 0x33d   : > { %v3550_v17 = vadd.f32 %v8521_v16, %v9353_v40  ;;  %v3546_v40 = vadd.f32 %v8521_v16, %v9311_v21 }
 0x33e   : > { %v9512_v36 = vpop.f32.mrf.mxu3  ;;  %v3756_v38 = vmax.f32 %v3564_v30, 0.0  ;;  %v3558_v41 = vadd.f32 %v8521_v16, %v3093_v5 }
 0x33f   : > { %v1524_v39 = vpop.f32.mrf.mxu0  ;;  %v3738_v21 = vmax.f32 %v3546_v40, 0.0 }
 0x340   : > { %v1525_v42 = vadd.f32 %v9439_v34, %v1524_v39  ;;  %v3095_v39 = vadd.f32 %v3094_v55, %v9383_v22  ;;  %v3758_v55 = vmax.f32 %v3566_v1, 0.0  ;;  %v3750_v61 = vmax.f32 %v3558_v41, 0.0 }
 0x341   : > { %v3104_v28 = vpop.f32.mrf.mxu2 }
 0x342   : > { %v1650_v15 = vmax.f32 %v1525_v42, 0.0  ;;  %v3105_v45 = vadd.f32 %v3104_v28, %v2317_v29  ;;  %v9534_v48 = vpop.f32.mrf.mxu1  ;;  %v3560_v29 = vadd.f32 %v8521_v16, %v3095_v39 }
 0x343   : > { %6679 = vmatmul.msk.f32.gmra.mxu3 %vm1815_vm4, %v9520_v8  ;;  %12460 = vst [vmem:[#allocation89_spill] sm:$0xff] %v9534_v48 }
 0x344   : > { %v9525_v4 = vpack.c.bf16 %v1650_v15, %v1649_v57  ;;  %v3568_v9 = vadd.f32 %v8521_v16, %v3105_v45  ;;  %6752 = vmatmul.msk.f32.gmra.mxu1 %vm1815_vm4, %v9029_v13  ;;  %v3090_v15 = vadd.f32 %v9407_v7, %v9343_v10  ;;  %v12461_v13 = vld [vmem:[#allocation14_spill] sm:$0xff]  ;;  %v3752_v7 = vmax.f32 %v3560_v29, 0.0 }
 0x345   : > { %v3554_v57 = vadd.f32 %v8521_v16, %v9393_v47 }
 0x346   : > { %12459 = vst [vmem:[#allocation88_spill] sm:$0xff] %v9525_v4  ;;  %v3760_v23 = vmax.f32 %v3568_v9, 0.0  ;;  %6845 = vmatmul.msk.bf16.gmra.mxu2 %vm2793_vm5, %v9525_v4  ;;  %v9536_v28 = vpop.f32.mrf.mxu3  ;;  %v3556_v10 = vadd.f32 %v8521_v16, %v3090_v15  ;;  %v3548_v15 = vadd.f32 %v8521_v16, %v9332_v46  ;;  %v9598_v46 = vld [vmem:[%s12377_s29 + $0x2b0] sm:$0xff] }
 0x347   : > { %v1527_v42 = vpop.f32.mrf.mxu0 }
 0x348   : > { %3909 = vmatpush.msra.mxu1 %v3760_v23  ;;  %v1528_v1 = vadd.f32 %v9439_v34, %v1527_v42  ;;  %v9572_v23 = vld [vmem:[%s12377_s29 + $0x2a8] sm:$0xff]  ;;  %v3552_v42 = vadd.f32 %v8521_v16, %v9372_v33  ;;  %v3748_v47 = vmax.f32 %v3556_v10, 0.0  ;;  %v3740_v10 = vmax.f32 %v3548_v15, 0.0 }
 0x349   : > { %v3107_v22 = vpop.f32.mrf.mxu2 }
 0x34a   : > { %v9551_v63 = vadd.f32 %v3107_v22, %v2320_v27  ;;  %6854 = vmatmul.msk.bf16.gmra.mxu0 %vm2793_vm5, %v12461_v13  ;;  %3910 = vmatpush.msra.mxu1 %v3758_v55  ;;  %v9560_v27 = vpop.f32.mrf.mxu1  ;;  %v1651_v9 = vmax.f32 %v1528_v1, 0.0  ;;  %v3746_v55 = vmax.f32 %v3554_v57, 0.0  ;;  %v3744_v33 = vmax.f32 %v3552_v42, 0.0 }
 0x34b   : > { %6680 = vmatmul.msk.f32.gmra.mxu3 %vm1815_vm4, %v9546_v11  ;;  %12462 = vst [vmem:[#allocation14_spill] sm:$0xff] %v9560_v27 }
 0x34c   : > { %3911 = vmatpush.msra.mxu1 %v3756_v38  ;;  %v3742_v38 = vmax.f32 %v3550_v17, 0.0 }
 0x34d   : > { %6753 = vmatmul.msk.f32.gmra.mxu1 %vm1815_vm4, %v9050_v6 }
 0x34e   : > { %3912 = vmatpush.msra.mxu1 %v3754_v12  ;;  %v9562_v45 = vpop.f32.mrf.mxu3  ;;  %v3544_v12 = vadd.f32 %v8521_v16, %v9291_v18 }
 0x34f   : > { %v1530_v59 = vpop.f32.mrf.mxu0 }
 0x350   : > { %v1531_v39 = vadd.f32 %v9439_v34, %v1530_v59  ;;  %3913 = vmatpush.msra.mxu1 %v3752_v7  ;;  %v3540_v59 = vadd.f32 %v8521_v16, %v9235_v37  ;;  %v3736_v18 = vmax.f32 %v3544_v12, 0.0  ;;  %v9622_v37 = vld [vmem:[%s12377_s29 + $0x2b8] sm:$0xff] }
 0x351   : > { %v3109_v30 = vpop.f32.mrf.mxu2 }
 0x352   : > { %v1652_v5 = vmax.f32 %v1531_v39, 0.0  ;;  %v9577_v6 = vadd.f32 %v3109_v30, %v9496_v3  ;;  %3914 = vmatpush.msra.mxu1 %v3750_v61  ;;  %v9589_v3 = vpop.f32.mrf.mxu1 }
 0x353   : > { %6681 = vmatmul.msk.f32.gmra.mxu3 %vm1815_vm4, %v9572_v23  ;;  %12464 = vst [vmem:[#allocation91_spill] sm:$0xff] %v9589_v3  ;;  %v12476_v3 = vld [vmem:[#allocation15_spill] sm:$0xff] }
 0x354   : > { %v9581_v22 = vpack.c.bf16 %v1652_v5, %v1651_v9  ;;  %3915 = vmatpush.msra.mxu1 %v3748_v47 }
 0x355   : > { %6754 = vmatmul.msk.f32.gmra.mxu1 %vm1815_vm4, %v9071_v50  ;;  %v3542_v50 = vadd.f32 %v8521_v16, %v9265_v20  ;;  %v3538_v20 = vadd.f32 %v8521_v16, %v9208_v31 }
 0x356   : > { %12463 = vst [vmem:[#allocation90_spill] sm:$0xff] %v9581_v22  ;;  %6846 = vmatmul.msk.bf16.gmra.mxu2 %vm2793_vm5, %v9581_v22  ;;  %3916 = vmatpush.msra.mxu1 %v3746_v55  ;;  %v2335_v13 = vpop.f32.mrf.mxu3  ;;  %v9758_v22 = vld [vmem:[%s12377_s29 + $0x2f8] sm:$0xff] }
 0x357   : > { %v1533_v29 = vpop.f32.mrf.mxu0  ;;  %v3734_v9 = vmax.f32 %v3542_v50, 0.0  ;;  %v3730_v17 = vmax.f32 %v3538_v20, 0.0 }
 0x358   : > { %3917 = vmatpush.msra.mxu1 %v3744_v33  ;;  %v1534_v7 = vadd.f32 %v9439_v34, %v1533_v29  ;;  %v9640_v29 = vld [vmem:[%s12377_s29 + $0x2c0] sm:$0xff] }
 0x359   : > { %v3112_v41 = vpop.f32.mrf.mxu2 }
 0x35a   : > { %v9603_v1 = vadd.f32 %v3112_v41, %v9512_v36  ;;  %3918 = vmatpush.msra.mxu1 %v3742_v38  ;;  %v9612_v57 = vpop.f32.mrf.mxu1  ;;  %v1653_v39 = vmax.f32 %v1534_v7, 0.0 }
 0x35b   : > { %6682 = vmatmul.msk.f32.gmra.mxu3 %vm1815_vm4, %v9598_v46  ;;  %12465 = vst [vmem:[#allocation92_spill] sm:$0xff] %v9612_v57 }
 0x35c   : > { %3919 = vmatpush.msra.mxu1 %v3740_v10 }
 0x35d   : > { %6755 = vmatmul.msk.f32.gmra.mxu1 %vm1815_vm4, %v9092_v52  ;;  %v3732_v52 = vmax.f32 %v3540_v59, 0.0 }
 0x35e   : > { %3920 = vmatpush.msra.mxu1 %v3738_v21  ;;  %v2338_v61 = vpop.f32.mrf.mxu3 }
 0x35f   : > { %v1536_v36 = vpop.f32.mrf.mxu0 }
 0x360   : > { %v1537_v30 = vadd.f32 %v9439_v34, %v1536_v36  ;;  %3921 = vmatpush.msra.mxu1 %v3736_v18 }
 0x361   : > { %v3114_v42 = vpop.f32.mrf.mxu2 }
 0x362   : > { %v1654_v5 = vmax.f32 %v1537_v30, 0.0  ;;  %v9625_v47 = vadd.f32 %v3114_v42, %v9536_v28  ;;  %3922 = vmatpush.msra.mxu1 %v3734_v9  ;;  %v9633_v31 = vpop.f32.mrf.mxu1 }
 0x363   : > { %6683 = vmatmul.msk.f32.gmra.mxu3 %vm1815_vm4, %v9622_v37  ;;  %12467 = vst [vmem:[#allocation94_spill] sm:$0xff] %v9633_v31 }
 0x364   : > { %v9627_v55 = vpack.c.bf16 %v1654_v5, %v1653_v39  ;;  %3923 = vmatpush.msra.mxu1 %v3732_v52 }
 0x365   : > { %6756 = vmatmul.msk.f32.gmra.mxu1 %vm1815_vm4, %v9109_v32 }
 0x366   : > { %12466 = vst [vmem:[#allocation93_spill] sm:$0xff] %v9627_v55  ;;  %6847 = vmatmul.msk.bf16.gmra.mxu2 %vm2793_vm5, %v9627_v55  ;;  %3924 = vmatpush.msra.mxu1 %v3730_v17  ;;  %v2341_v33 = vpop.f32.mrf.mxu3 }
 0x367   : > { %v1539_v15 = vpop.f32.mrf.mxu0 }
 0x368   : > { %v1540_v38 = vadd.f32 %v9439_v34, %v1539_v15 }
 0x369   : > { %v3117_v28 = vpop.f32.mrf.mxu2 }
 0x36a   : > { %v9643_v40 = vadd.f32 %v3117_v28, %v9562_v45  ;;  %v9648_v41 = vpop.f32.mrf.mxu1  ;;  %v1655_v32 = vmax.f32 %v1540_v38, 0.0  ;;  %v9658_v45 = vld [vmem:[%s12377_s29 + $0x2c8] sm:$0xff] }
 0x36b   : > { %6684 = vmatmul.msk.f32.gmra.mxu3 %vm1815_vm4, %v9640_v29  ;;  %12468 = vst [vmem:[#allocation95_spill] sm:$0xff] %v9648_v41 }
 0x36d   : > { %6757 = vmatmul.msk.f32.gmra.mxu1 %vm1815_vm4, %v9126_v43 }
 0x36e   : > { %v9650_v10 = vpop.f32.mrf.mxu3 }
 0x36f   : > { %v1542_v12 = vpop.f32.mrf.mxu0 }
 0x370   : > { %v1543_v50 = vadd.f32 %v9439_v34, %v1542_v12 }
 0x371   : > { %v3119_v21 = vpop.f32.mrf.mxu2 }
 0x372   : > { %v1656_v7 = vmax.f32 %v1543_v50, 0.0  ;;  %v9660_v59 = vadd.f32 %v3119_v21, %v2335_v13  ;;  %v9668_v43 = vpop.f32.mrf.mxu1  ;;  %v9677_v13 = vld [vmem:[%s12377_s29 + $0x2d0] sm:$0xff] }
 0x373   : > { %6685 = vmatmul.msk.f32.gmra.mxu3 %vm1815_vm4, %v9658_v45  ;;  %12470 = vst [vmem:[#allocation97_spill] sm:$0xff] %v9668_v43  ;;  %v12480_v43 = vld [vmem:[#allocation16_spill] sm:$0xff] }
 0x374   : > { %v9662_v18 = vpack.c.bf16 %v1656_v7, %v1655_v32 }
 0x375   : > { %6758 = vmatmul.msk.f32.gmra.mxu1 %vm1815_vm4, %v9141_v58 }
 0x376   : > { %12469 = vst [vmem:[#allocation96_spill] sm:$0xff] %v9662_v18  ;;  %6848 = vmatmul.msk.bf16.gmra.mxu2 %vm2793_vm5, %v9662_v18  ;;  %v9670_v20 = vpop.f32.mrf.mxu3 }
 0x377   : > { %v1545_v36 = vpop.f32.mrf.mxu0 }
 0x378   : > { %v1546_v30 = vadd.f32 %v9439_v34, %v1545_v36 }
 0x379   : > { %v3122_v9 = vpop.f32.mrf.mxu2 }
 0x37a   : > { %v9679_v39 = vadd.f32 %v3122_v9, %v2338_v61  ;;  %v9684_v42 = vpop.f32.mrf.mxu1  ;;  %v1657_v58 = vmax.f32 %v1546_v30, 0.0  ;;  %v9694_v61 = vld [vmem:[%s12377_s29 + $0x2d8] sm:$0xff] }
 0x37b   : > { %6686 = vmatmul.msk.f32.gmra.mxu3 %vm1815_vm4, %v9677_v13  ;;  %12471 = vst [vmem:[#allocation98_spill] sm:$0xff] %v9684_v42 }
 0x37d   : > { %6759 = vmatmul.msk.f32.gmra.mxu1 %vm1815_vm4, %v9160_v62 }
 0x37e   : > { %v9686_v52 = vpop.f32.mrf.mxu3 }
 0x37f   : > { %v1548_v5 = vpop.f32.mrf.mxu0 }
 0x380   : > { %v1549_v17 = vadd.f32 %v9439_v34, %v1548_v5 }
 0x381   : > { %v3124_v15 = vpop.f32.mrf.mxu2 }
 0x382   : > { %v1658_v28 = vmax.f32 %v1549_v17, 0.0  ;;  %v9696_v38 = vadd.f32 %v3124_v15, %v2341_v33  ;;  %v9704_v62 = vpop.f32.mrf.mxu1  ;;  %v9715_v33 = vld [vmem:[%s12377_s29 + $0x2e0] sm:$0xff]  ;;  %v9730_v17 = vld [vmem:[%s12377_s29 + $0x2e8] sm:$0xff] }
 0x383   : > { %6687 = vmatmul.msk.f32.gmra.mxu3 %vm1815_vm4, %v9694_v61  ;;  %12473 = vst [vmem:[#allocation100_spill] sm:$0xff] %v9704_v62 }
 0x384   : > { %v9698_v12 = vpack.c.bf16 %v1658_v28, %v1657_v58 }
 0x385   : > { %6760 = vmatmul.msk.f32.gmra.mxu1 %vm1815_vm4, %v9177_v19 }
 0x386   : > { %12472 = vst [vmem:[#allocation99_spill] sm:$0xff] %v9698_v12  ;;  %6849 = vmatmul.msk.bf16.gmra.mxu2 %vm2793_vm5, %v9698_v12  ;;  %v9706_v50 = vpop.f32.mrf.mxu3 }
 0x387   : > { %v1551_v32 = vpop.f32.mrf.mxu0 }
 0x388   : > { %v1552_v7 = vadd.f32 %v9439_v34, %v1551_v32 }
 0x389   : > { %v9710_v21 = vpop.f32.mrf.mxu2 }
 0x38a   : > { %v9720_v36 = vpop.f32.mrf.mxu1  ;;  %v1659_v19 = vmax.f32 %v1552_v7, 0.0 }
 0x38b   : > { %6688 = vmatmul.msk.f32.gmra.mxu3 %vm1815_vm4, %v9715_v33 }
 0x38d   : > { %6761 = vmatmul.msk.f32.gmra.mxu1 %vm1815_vm4, %v9206_v44 }
 0x38e   : > { %v2356_v30 = vpop.f32.mrf.mxu3 }
 0x38f   : > { %v1554_v9 = vpop.f32.mrf.mxu0 }
 0x390   : > { %v1555_v5 = vadd.f32 %v9439_v34, %v1554_v9 }
 0x391   : > { %v9725_v58 = vpop.f32.mrf.mxu2 }
 0x392   : > { %v1660_v15 = vmax.f32 %v1555_v5, 0.0  ;;  %v9738_v44 = vpop.f32.mrf.mxu1  ;;  %v9745_v5 = vld [vmem:[%s12377_s29 + $0x2f0] sm:$0xff] }
 0x393   : > { %6689 = vmatmul.msk.f32.gmra.mxu3 %vm1815_vm4, %v9730_v17 }
 0x394   : > { %v9732_v28 = vpack.c.bf16 %v1660_v15, %v1659_v19 }
 0x395   : > { %6762 = vmatmul.msk.f32.gmra.mxu1 %vm1815_vm4, %v9232_v53 }
 0x396   : > { %12474 = vst [vmem:[#allocation101_spill] sm:$0xff] %v9732_v28  ;;  %6850 = vmatmul.msk.bf16.gmra.mxu2 %vm2793_vm5, %v9732_v28  ;;  %v2359_v7 = vpop.f32.mrf.mxu3 }
 0x397   : > { %v1557_v32 = vpop.f32.mrf.mxu0 }
 0x398   : > { %v1558_v19 = vadd.f32 %v9439_v34, %v1557_v32 }
 0x399   : > { %v3132_v9 = vpop.f32.mrf.mxu2 }
 0x39a   : > { %v9750_v15 = vpop.f32.mrf.mxu1  ;;  %v1661_v18 = vmax.f32 %v1558_v19, 0.0 }
 0x39b   : > { %6690 = vmatmul.msk.f32.gmra.mxu3 %vm1815_vm4, %v9745_v5 }
 0x39d   : > { %6763 = vmatmul.msk.f32.gmra.mxu1 %vm1815_vm4, %v9262_v56 }
 0x39e   : > { %v2362_v12 = vpop.f32.mrf.mxu3 }
 0x39f   : > { %v1560_v28 = vpop.f32.mrf.mxu0 }
 0x3a0   : > { %v1561_v53 = vadd.f32 %v9439_v34, %v1560_v28 }
 0x3a1   : > { %v3134_v55 = vpop.f32.mrf.mxu2 }
 0x3a2   : > { %v1662_v32 = vmax.f32 %v1561_v53, 0.0  ;;  %v9766_v48 = vpop.f32.mrf.mxu1 }
 0x3a3   : > { %6691 = vmatmul.msk.f32.gmra.mxu3 %vm1815_vm4, %v9758_v22 }
 0x3a4   : > { %v9760_v4 = vpack.c.bf16 %v1662_v32, %v1661_v18 }
 0x3a5   : > { %6764 = vmatmul.msk.f32.gmra.mxu1 %vm1815_vm4, %v9288_v54 }
 0x3a6   : > { %12475 = vst [vmem:[#allocation102_spill] sm:$0xff] %v9760_v4  ;;  %6851 = vmatmul.msk.bf16.gmra.mxu2 %vm2793_vm5, %v9760_v4  ;;  %v2365_v19 = vpop.f32.mrf.mxu3 }
 0x3a7   : > { %v1563_v56 = vpop.f32.mrf.mxu0 }
 0x3a8   : > { %v1564_v27 = vadd.f32 %v9439_v34, %v1563_v56 }
 0x3a9   : > { %v3137_v28 = vpop.f32.mrf.mxu2 }
 0x3aa   : > { %v9773_v18 = vpop.f32.mrf.mxu1  ;;  %v1663_v4 = vmax.f32 %v1564_v27, 0.0 }
 0x3ab   : > { %6855 = vmatmul.msk.bf16.vlgmr.msrb.gmra.mxu3 %vm2793_vm5, %v12476_v3  ;;  %12477 = vst [vmem:[#allocation15_spill] sm:$0xff] %v9773_v18 }
 0x3ad   : > { %6765 = vmatmul.msk.f32.gmra.mxu1 %vm1815_vm4, %v9308_v25 }
 0x3ae   : > { %v9775_v32 = vpop.f32.mrf.mxu3 }
 0x3af   : > { %v1566_v53 = vpop.f32.mrf.mxu0 }
 0x3b0   : > { %v1567_v57 = vadd.f32 %v9439_v34, %v1566_v53  ;;  %v3138_v53 = vadd.f32 %v3137_v28, %v2356_v30  ;;  %v12483_v28 = vld [vmem:[#allocation17_spill] sm:$0xff] }
 0x3b1   : > { %v3139_v31 = vpop.f32.mrf.mxu2 }
 0x3b2   : > { %v1664_v41 = vmax.f32 %v1567_v57, 0.0  ;;  %v9784_v56 = vpop.f32.mrf.mxu1  ;;  %v3140_v57 = vadd.f32 %v3139_v31, %v2359_v7  ;;  %v3594_v31 = vadd.f32 %v8521_v16, %v3138_v53 }
 0x3b3   : > { %12479 = vst [vmem:[#allocation104_spill] sm:$0xff] %v9784_v56  ;;  %v3135_v56 = vadd.f32 %v3134_v55, %v9706_v50  ;;  %v3130_v55 = vadd.f32 %v9725_v58, %v9670_v20 }
 0x3b4   : > { %v9780_v54 = vpack.c.bf16 %v1664_v41, %v1663_v4 }
 0x3b5   : > { %6766 = vmatmul.msk.f32.gmra.mxu1 %vm1815_vm4, %v9329_v14  ;;  %v3592_v50 = vadd.f32 %v8521_v16, %v3135_v56 }
 0x3b6   : > { %12478 = vst [vmem:[#allocation103_spill] sm:$0xff] %v9780_v54  ;;  %6852 = vmatmul.msk.bf16.gmra.mxu2 %vm2793_vm5, %v9780_v54  ;;  %v9786_v3 = vpop.f32.mrf.mxu3 }
 0x3b9   : > { %v3142_v18 = vpop.f32.mrf.mxu2 }
 0x3ba   : > { %v9792_v25 = vpop.f32.mrf.mxu1  ;;  %v3143_v4 = vadd.f32 %v3142_v18, %v2362_v12 }
 0x3bb   : > { %6856 = vmatmul.msk.bf16.gmra.mxu3 %vm2793_vm5, %v12480_v43  ;;  %12481 = vst [vmem:[#allocation16_spill] sm:$0xff] %v9792_v25  ;;  %v3596_v43 = vadd.f32 %v8521_v16, %v3140_v57  ;;  %v3580_v57 = vadd.f32 %v8521_v16, %v9660_v59 }
 0x3bc   : > { %v3598_v54 = vadd.f32 %v8521_v16, %v3143_v4  ;;  %v3582_v4 = vadd.f32 %v8521_v16, %v9679_v39  ;;  %v3576_v39 = vadd.f32 %v8521_v16, %v9625_v47 }
 0x3bd   : > { %6767 = vmatmul.msk.f32.gmra.mxu1 %vm1815_vm4, %v9351_v26  ;;  %v3133_v26 = vadd.f32 %v3132_v9, %v9686_v52  ;;  %v3788_v7 = vmax.f32 %v3596_v43, 0.0  ;;  %v3588_v52 = vadd.f32 %v8521_v16, %v3130_v55  ;;  %v3784_v9 = vmax.f32 %v3592_v50, 0.0 }
 0x3be   : > { %v9794_v34 = vpop.f32.mrf.mxu3  ;;  %v3790_v12 = vmax.f32 %v3598_v54, 0.0  ;;  %v3584_v54 = vadd.f32 %v8521_v16, %v9696_v38  ;;  %v3578_v38 = vadd.f32 %v8521_v16, %v9643_v40  ;;  %v3772_v59 = vmax.f32 %v3580_v57, 0.0  ;;  %v12489_v57 = vld [vmem:[#allocation87_spill] sm:$0xff] }
 0x3bf   : > { %v3780_v56 = vmax.f32 %v3588_v52, 0.0  ;;  %v3768_v40 = vmax.f32 %v3576_v39, 0.0  ;;  %v12487_v52 = vld [vmem:[#allocation19_spill] sm:$0xff] }
 0x3c1   : > { %v3144_v27 = vpop.f32.mrf.mxu2 }
 0x3c2   : > { %v3145_v41 = vadd.f32 %v3144_v27, %v2365_v19  ;;  %v9802_v25 = vpop.f32.mrf.mxu1  ;;  %v3128_v19 = vadd.f32 %v9710_v21, %v9650_v10 }
 0x3c3   : > { %12482 = vst [vmem:[#allocation105_spill] sm:$0xff] %v9802_v25 }
 0x3c4   : > { %v3600_v14 = vadd.f32 %v8521_v16, %v3145_v41  ;;  %v3586_v10 = vadd.f32 %v8521_v16, %v3128_v19 }
 0x3c5   : > { %6768 = vmatmul.msk.f32.gmra.mxu1 %vm1815_vm4, %v9370_v24  ;;  %v3590_v24 = vadd.f32 %v8521_v16, %v3133_v26  ;;  %v3574_v26 = vadd.f32 %v8521_v16, %v9603_v1  ;;  %v3570_v1 = vadd.f32 %v8521_v16, %v9551_v63 }
 0x3c6   : > { %v3792_v42 = vmax.f32 %v3600_v14, 0.0  ;;  %v2377_v62 = vpop.f32.mrf.mxu3  ;;  %v3778_v27 = vmax.f32 %v3586_v10, 0.0  ;;  %v3774_v14 = vmax.f32 %v3582_v4, 0.0 }
 0x3c7   : > { %v3782_v21 = vmax.f32 %v3590_v24, 0.0  ;;  %v3766_v47 = vmax.f32 %v3574_v26, 0.0 }
 0x3c8   : > { %3929 = vmatpush.msrb.mxu2 %v3792_v42  ;;  %v3786_v42 = vmax.f32 %v3594_v31, 0.0  ;;  %v3770_v31 = vmax.f32 %v3578_v38, 0.0 }
 0x3c9   : > { %v9808_v30 = vpop.f32.mrf.mxu2 }
 0x3ca   : > { %3930 = vmatpush.msrb.mxu2 %v3790_v12  ;;  %v9819_v18 = vpop.f32.mrf.mxu1  ;;  %v12486_v12 = vld [vmem:[#allocation18_spill] sm:$0xff] }
 0x3cb   : > { %6857 = vmatmul.msk.bf16.gmra.mxu3 %vm2793_vm5, %v12483_v28  ;;  %12484 = vst [vmem:[#allocation17_spill] sm:$0xff] %v9819_v18 }
 0x3cc   : > { %3931 = vmatpush.msrb.mxu2 %v3788_v7 }
 0x3cd   : > { %6769 = vmatmul.msk.f32.gmra.mxu1 %vm1815_vm4, %v9391_v49  ;;  %v3776_v49 = vmax.f32 %v3584_v54, 0.0 }
 0x3ce   : > { %3932 = vmatpush.msrb.mxu2 %v3786_v42  ;;  %v9821_v20 = vpop.f32.mrf.mxu3 }
 0x3d0   : > { %3933 = vmatpush.msrb.mxu2 %v3784_v9 }
 0x3d1   : > { %v9826_v58 = vpop.f32.mrf.mxu2 }
 0x3d2   : > { %3934 = vmatpush.msrb.mxu2 %v3782_v21  ;;  %v9834_v41 = vpop.f32.mrf.mxu1 }
 0x3d3   : > { %12485 = vst [vmem:[#allocation106_spill] sm:$0xff] %v9834_v41 }
 0x3d4   : > { %3935 = vmatpush.msrb.mxu2 %v3780_v56  ;;  %v12488_v56 = vld [vmem:[#allocation20_spill] sm:$0xff] }
 0x3d5   : > { %6770 = vmatmul.msk.f32.gmra.mxu1 %vm1815_vm4, %v9412_v51  ;;  %v3572_v51 = vadd.f32 %v8521_v16, %v9577_v6  ;;  %v3762_v6 = vmax.f32 %v3570_v1, 0.0 }
 0x3d6   : > { %3936 = vmatpush.msrb.mxu2 %v3778_v27  ;;  %v2383_v53 = vpop.f32.mrf.mxu3 }
 0x3d7   : > { %v3764_v24 = vmax.f32 %v3572_v51, 0.0 }
 0x3d8   : > { %3937 = vmatpush.msrb.mxu2 %v3776_v49 }
 0x3d9   : > { %v9840_v43 = vpop.f32.mrf.mxu2 }
 0x3da   : > { %3938 = vmatpush.msrb.mxu2 %v3774_v14  ;;  %v9850_v55 = vpop.f32.mrf.mxu1  ;;  %v12490_v14 = vld [vmem:[#allocation21_spill] sm:$0xff] }
 0x3db   : > { %6858 = vmatmul.msk.bf16.gmra.mxu3 %vm2793_vm5, %v12486_v12 }
 0x3dc   : > { %3939 = vmatpush.msrb.mxu2 %v3772_v59 }
 0x3dd   : > { %6771 = vmatmul.msk.f32.gmra.mxu1 %vm1815_vm4, %v9433_v60 }
 0x3de   : > { %3940 = vmatpush.msrb.mxu2 %v3770_v31  ;;  %v9852_v50 = vpop.f32.mrf.mxu3 }
 0x3e0   : > { %3941 = vmatpush.msrb.mxu2 %v3768_v40  ;;  %v12491_v40 = vld [vmem:[#allocation22_spill] sm:$0xff] }
 0x3e1   : > { %v3154_v7 = vpop.f32.mrf.mxu2 }
 0x3e2   : > { %v9858_v19 = vadd.f32 %v3154_v7, %v2377_v62  ;;  %3942 = vmatpush.msrb.mxu2 %v3766_v47  ;;  %v9860_v28 = vpop.f32.mrf.mxu1 }
 0x3e4   : > { %3943 = vmatpush.msrb.mxu2 %v3764_v24 }
 0x3e5   : > { %6772 = vmatmul.msk.f32.gmra.mxu1 %vm1815_vm4, %v9453_v35 }
 0x3e6   : > { %3944 = vmatpush.msrb.mxu2 %v3762_v6  ;;  %v2389_v42 = vpop.f32.mrf.mxu3  ;;  %v12492_v6 = vld [vmem:[#allocation23_spill] sm:$0xff] }
 0x3e9   : > { %v9864_v60 = vpop.f32.mrf.mxu2 }
 0x3ea   : > { %v9868_v63 = vpop.f32.mrf.mxu1 }
 0x3eb   : > { %6859 = vmatmul.msk.bf16.gmra.mxu3 %vm2793_vm5, %v12487_v52 }
 0x3ed   : > { %6773 = vmatmul.msk.f32.gmra.mxu1 %vm1815_vm4, %v9470_v2 }
 0x3ee   : > { %v9870_v62 = vpop.f32.mrf.mxu3 }
 0x3f1   : > { %v3159_v9 = vpop.f32.mrf.mxu2 }
 0x3f2   : > { %v9874_v10 = vadd.f32 %v3159_v9, %v2383_v53  ;;  %v9876_v21 = vpop.f32.mrf.mxu1 }
 0x3f5   : > { %6774 = vmatmul.msk.f32.gmra.mxu1 %vm1815_vm4, %v9485_v0 }
 0x3f6   : > { %v2395_v54 = vpop.f32.mrf.mxu3 }
 0x3f9   : > { %v9880_v35 = vpop.f32.mrf.mxu2 }
 0x3fa   : > { %v9884_v4 = vpop.f32.mrf.mxu1 }
 0x3fb   : > { %6860 = vmatmul.msk.bf16.gmra.mxu3 %vm2793_vm5, %v12488_v56  ;;  %v12495_v56 = vld [vmem:[#allocation24_spill] sm:$0xff] }
 0x3fd   : > { %6775 = vmatmul.msk.f32.gmra.mxu1 %vm1815_vm4, %v12489_v57 }
 0x3fe   : > { %v2398_v27 = vpop.f32.mrf.mxu3 }
 0x401   : > { %v3164_v2 = vpop.f32.mrf.mxu2 }
 0x402   : > { %v9888_v49 = vadd.f32 %v3164_v2, %v2389_v42  ;;  %v9890_v53 = vpop.f32.mrf.mxu1 }
 0x405   : > { %6776 = vmatmul.msk.f32.gmra.mxu1 %vm1815_vm4, %v9520_v8 }
 0x406   : > { %v2401_v38 = vpop.f32.mrf.mxu3 }
 0x409   : > { %v3167_v0 = vpop.f32.mrf.mxu2 }
 0x40a   : > { %v9896_v39 = vpop.f32.mrf.mxu1 }
 0x40b   : > { %6861 = vmatmul.msk.bf16.gmra.mxu3 %vm2793_vm5, %v12490_v14 }
 0x40d   : > { %6777 = vmatmul.msk.f32.gmra.mxu1 %vm1815_vm4, %v9546_v11 }
 0x40e   : > { %v2404_v59 = vpop.f32.mrf.mxu3 }
 0x411   : > { %v3169_v26 = vpop.f32.mrf.mxu2 }
 0x412   : > { %v9900_v31 = vpop.f32.mrf.mxu1 }
 0x415   : > { %6778 = vmatmul.msk.f32.gmra.mxu1 %vm1815_vm4, %v9572_v23 }
 0x416   : > { %v2407_v12 = vpop.f32.mrf.mxu3 }
 0x419   : > { %v3172_v51 = vpop.f32.mrf.mxu2 }
 0x41a   : > { %v9906_v8 = vpop.f32.mrf.mxu1 }
 0x41b   : > { %6862 = vmatmul.msk.bf16.gmra.mxu3 %vm2793_vm5, %v12491_v40 }
 0x41d   : > { %6779 = vmatmul.msk.f32.gmra.mxu1 %vm1815_vm4, %v9598_v46 }
 0x41e   : > { %v2410_v1 = vpop.f32.mrf.mxu3 }
 0x421   : > { %v3174_v47 = vpop.f32.mrf.mxu2 }
 0x422   : > { %v9910_v7 = vpop.f32.mrf.mxu1  ;;  %v3175_v25 = vadd.f32 %v3174_v47, %v2401_v38  ;;  %v3168_v38 = vadd.f32 %v3167_v0, %v9870_v62  ;;  %v3616_v0 = vadd.f32 %v8521_v16, %v9888_v49  ;;  %v3153_v49 = vadd.f32 %v9840_v43, %v9794_v34 }
 0x425   : > { %6780 = vmatmul.msk.f32.gmra.mxu1 %vm1815_vm4, %v9622_v37 }
 0x426   : > { %v2413_v11 = vpop.f32.mrf.mxu3 }
 0x429   : > { %v3177_v24 = vpop.f32.mrf.mxu2 }
 0x42a   : > { %v9916_v23 = vpop.f32.mrf.mxu1 }
 0x42b   : > { %6863 = vmatmul.msk.bf16.gmra.mxu3 %vm2793_vm5, %v12492_v6  ;;  %12493 = vst [vmem:[#allocation18_spill] sm:$0xff] %v9916_v23  ;;  %v3178_v23 = vadd.f32 %v3177_v24, %v2404_v59 }
 0x42d   : > { %6781 = vmatmul.msk.f32.gmra.mxu1 %vm1815_vm4, %v9640_v29 }
 0x42e   : > { %v9918_v42 = vpop.f32.mrf.mxu3 }
 0x431   : > { %v3179_v52 = vpop.f32.mrf.mxu2 }
 0x432   : > { %v9922_v46 = vpop.f32.mrf.mxu1  ;;  %v3180_v40 = vadd.f32 %v3179_v52, %v2407_v12  ;;  %v3626_v12 = vadd.f32 %v8521_v16, %v3178_v23  ;;  %v12497_v52 = vld [vmem:[#allocation25_spill] sm:$0xff]  ;;  %v3158_v23 = vadd.f32 %v9864_v60, %v9821_v20 }
 0x433   : > { %12494 = vst [vmem:[#allocation19_spill] sm:$0xff] %v9922_v46 }
 0x434   : > { %v3628_v18 = vadd.f32 %v8521_v16, %v3180_v40  ;;  %v3610_v20 = vadd.f32 %v8521_v16, %v3158_v23  ;;  %v3150_v40 = vadd.f32 %v9826_v58, %v9786_v3 }
 0x435   : > { %6782 = vmatmul.msk.f32.gmra.mxu1 %vm1815_vm4, %v9658_v45 }
 0x436   : > { %v9924_v9 = vpop.f32.mrf.mxu3  ;;  %v3820_v24 = vmax.f32 %v3628_v18, 0.0  ;;  %v3618_v18 = vadd.f32 %v8521_v16, %v3168_v38  ;;  %v3802_v34 = vmax.f32 %v3610_v20, 0.0  ;;  %v3604_v43 = vadd.f32 %v8521_v16, %v3150_v40 }
 0x439   : > { %v3182_v37 = vpop.f32.mrf.mxu2 }
 0x43a   : > { %v9930_v57 = vpop.f32.mrf.mxu1  ;;  %v3183_v29 = vadd.f32 %v3182_v37, %v2410_v1  ;;  %v3170_v1 = vadd.f32 %v3169_v26, %v2395_v54  ;;  %v3818_v37 = vmax.f32 %v3626_v12, 0.0 }
 0x43b   : > { %6864 = vmatmul.msk.bf16.gmra.mxu3 %vm2793_vm5, %v12495_v56  ;;  %12496 = vst [vmem:[#allocation20_spill] sm:$0xff] %v9930_v57 }
 0x43c   : > { %v3630_v46 = vadd.f32 %v8521_v16, %v3183_v29  ;;  %v3810_v29 = vmax.f32 %v3618_v18, 0.0 }
 0x43d   : > { %6783 = vmatmul.msk.f32.gmra.mxu1 %vm1815_vm4, %v9677_v13  ;;  %v3173_v13 = vadd.f32 %v3172_v51, %v2398_v27 }
 0x43e   : > { %v9932_v2 = vpop.f32.mrf.mxu3  ;;  %v3822_v59 = vmax.f32 %v3630_v46, 0.0 }
 0x43f   : > { %v3622_v47 = vadd.f32 %v8521_v16, %v3173_v13 }
 0x441   : > { %v3184_v14 = vpop.f32.mrf.mxu2  ;;  %v3814_v62 = vmax.f32 %v3622_v47, 0.0 }
 0x442   : > { %v3185_v6 = vadd.f32 %v3184_v14, %v2413_v11  ;;  %v9939_v41 = vpop.f32.mrf.mxu1  ;;  %v3624_v11 = vadd.f32 %v8521_v16, %v3175_v25  ;;  %v3163_v25 = vadd.f32 %v9880_v35, %v9852_v50  ;;  %v3808_v50 = vmax.f32 %v3616_v0, 0.0 }
 0x444   : > { %v3632_v45 = vadd.f32 %v8521_v16, %v3185_v6  ;;  %v3816_v27 = vmax.f32 %v3624_v11, 0.0  ;;  %v3614_v46 = vadd.f32 %v8521_v16, %v3163_v25 }
 0x445   : > { %6784 = vmatmul.msk.f32.gmra.mxu1 %vm1815_vm4, %v9694_v61  ;;  %v3620_v61 = vadd.f32 %v8521_v16, %v3170_v1  ;;  %v3826_v1 = vld [vmem:[%s12499_s2] sm:$0x77] }
 0x446   : > { %v3824_v56 = vmax.f32 %v3632_v45, 0.0  ;;  %v9941_v57 = vpop.f32.mrf.mxu3  ;;  %v3806_v60 = vmax.f32 %v3614_v46, 0.0  ;;  %v3148_v45 = vadd.f32 %v9808_v30, %v9775_v32  ;;  %v3796_v30 = vmax.f32 %v3604_v43, 0.0  ;;  %3832 = vst [vmem:[#allocation1] ss:$2 sm:$0xff] %v3826_v1  ;;  %v12504_v46 = vld [vmem:[#allocation60_spill] sm:$0xff] }
 0x447   : > { %v3812_v26 = vmax.f32 %v3620_v61, 0.0 }
 0x448   : > { %3949 = vmatpush.msrb.mxu0 %v3824_v56  ;;  %v12498_v56 = vld [vmem:[#allocation26_spill] sm:$0xff] }
 0x44a   : > { %3950 = vmatpush.msrb.mxu0 %v3822_v59  ;;  %v9952_v51 = vpop.f32.mrf.mxu1 }
 0x44b   : > { %6865 = vmatmul.msk.bf16.gmra.mxu3 %vm2793_vm5, %v12497_v52  ;;  %v10006_v52 = vpop.f32.mrf.mxu0 }
 0x44c   : > { %3951 = vmatpush.msrb.mxu0 %v3820_v24 }
 0x44d   : > { %6785 = vmatmul.msk.f32.gmra.mxu1 %vm1815_vm4, %v9715_v33  ;;  %v3612_v33 = vadd.f32 %v8521_v16, %v9874_v10  ;;  %v3608_v10 = vadd.f32 %v8521_v16, %v9858_v19  ;;  %v3602_v19 = vadd.f32 %v8521_v16, %v3148_v45  ;;  %v10003_v24 = vld.sshfl [vmem:[#allocation1] sm:$0xff pattern:$0x75316420]  ;;  %v12507_v45 = vld [vmem:[#allocation29_spill] sm:$0xff] }
 0x44e   : > { %3952 = vmatpush.msrb.mxu0 %v3818_v37  ;;  %v9954_v54 = vpop.f32.mrf.mxu3  ;;  %v12501_v37 = vld [vmem:[#allocation28_spill] sm:$0xff] }
 0x44f   : > { %v3804_v6 = vmax.f32 %v3612_v33, 0.0  ;;  %v3800_v13 = vmax.f32 %v3608_v10, 0.0  ;;  %v3794_v12 = vmax.f32 %v3602_v19, 0.0  ;;  %v12505_v33 = vld [vmem:[#allocation55_spill] sm:$0xff] }
 0x450   : > { %3953 = vmatpush.msrb.mxu0 %v3816_v27 }
 0x452   : > { %3954 = vmatpush.msrb.mxu0 %v3814_v62  ;;  %v9968_v35 = vpop.f32.mrf.mxu1  ;;  %v7644_v62 = vld [vmem:[%s12395_s0] sm:$0x3]  ;;  %s12833_s0 = sld [smem:[#allocation122_spill]] }
 0x453   : > { %v3198_v27 = vpop.f32.mrf.mxu0  ;;  %v10014_v0 = vperm.slane %v7644_v62, 1 }
 0x454   : > { %3955 = vmatpush.msrb.mxu0 %v3812_v26  ;;  %v12503_v26 = vld [vmem:[#allocation57_spill] sm:$0xff] }
 0x455   : > { %6786 = vmatmul.msk.f32.gmra.mxu1 %vm1815_vm4, %v9730_v17  ;;  %v3606_v17 = vadd.f32 %v8521_v16, %v3153_v49 }
 0x456   : > { %3956 = vmatpush.msrb.mxu0 %v3810_v29  ;;  %v9970_v14 = vpop.f32.mrf.mxu3 }
 0x457   : > { %v3798_v32 = vmax.f32 %v3606_v17, 0.0  ;;  %v12508_v17 = vld [vmem:[#allocation52_spill] sm:$0xff] }
 0x458   : > { %3957 = vmatpush.msrb.mxu0 %v3808_v50  ;;  %s6386_s27 = scalar_lea.hbm %s12833_s0, %s7574_s8 }
 0x45a   : > { %3958 = vmatpush.msrb.mxu0 %v3806_v60  ;;  %v9987_v3 = vpop.f32.mrf.mxu1  ;;  %v12506_v60 = vld [vmem:[#allocation54_spill] sm:$0xff] }
 0x45b   : > { %6866 = vmatmul.msk.bf16.gmra.mxu3 %vm2793_vm5, %v12498_v56 }
 0x45c   : > { %3959 = vmatpush.msrb.mxu0 %v3804_v6 }
 0x45d   : > { %6787 = vmatmul.msk.f32.gmra.mxu1 %vm1815_vm4, %v9745_v5  ;;  %v12500_v5 = vld [vmem:[#allocation27_spill] sm:$0xff] }
 0x45e   : > { %3960 = vmatpush.msrb.mxu0 %v3802_v34  ;;  %v3221_v58 = vpop.f32.mrf.mxu3 }
 0x45f   : > { %v3222_v56 = vadd.f32 %v3221_v58, %v12508_v17 }
 0x460   : > { %3961 = vmatpush.msrb.mxu0 %v3800_v13  ;;  %v3201_v13 = vpop.f32.mrf.mxu0 }
 0x462   : > { %3962 = vmatpush.msrb.mxu0 %v3798_v32  ;;  %v9992_v59 = vpop.f32.mrf.mxu1  ;;  %v12509_v32 = vld [vmem:[#allocation51_spill] sm:$0xff] }
 0x464   : > { %3963 = vmatpush.msrb.mxu0 %v3796_v30  ;;  %v3219_v30 = vadd.f32 %v9970_v14, %v12509_v32 }
 0x465   : > { %6788 = vmatmul.msk.f32.gmra.mxu1 %vm1815_vm4, %v9758_v22  ;;  %v12502_v22 = vld [vmem:[#allocation58_spill] sm:$0xff] }
 0x466   : > { %3964 = vmatpush.msrb.mxu0 %v3794_v12  ;;  %v3223_v11 = vpop.f32.mrf.mxu3 }
 0x467   : > { %v3224_v40 = vadd.f32 %v3223_v11, %v12506_v60  ;;  %v12510_v11 = vld [vmem:[#allocation49_spill] sm:$0xff] }
 0x469   : > { %v3465_v12 = vadd.f32 %v10014_v0, %v3224_v40 }
 0x46a   : > { %v10001_v16 = vpop.f32.mrf.mxu1 }
 0x46b   : > { %6867 = vmatmul.msk.bf16.gmra.mxu3 %vm2793_vm5, %v12500_v5  ;;  %v3217_v5 = vadd.f32 %v9954_v54, %v12510_v11  ;;  %v12513_v54 = vld [vmem:[#allocation45_spill] sm:$0xff] }
 0x46d   : > { %3865 = vmatmul.f32.vlgmr.msrb.gmra.mxu1 %v10003_v24 }
 0x46e   : > { %v3226_v38 = vpop.f32.mrf.mxu3 }
 0x46f   : > { %v3227_v50 = vadd.f32 %v3226_v38, %v12505_v33  ;;  %v3463_v38 = vadd.f32 %v10014_v0, %v3222_v56  ;;  %v12514_v33 = vld [vmem:[#allocation43_spill] sm:$0xff] }
 0x471   : > { %v3467_v34 = vadd.f32 %v10014_v0, %v3227_v50  ;;  %v3655_v62 = vmax.f32 %v3463_v38, 0.0  ;;  %v3207_v50 = vadd.f32 %v9918_v42, %v12514_v33 }
 0x473   : > { %v3659_v58 = vmax.f32 %v3467_v34, 0.0  ;;  %v3451_v17 = vadd.f32 %v10014_v0, %v3207_v50  ;;  %v12518_v34 = vld [vmem:[#allocation38_spill] sm:$0xff]  ;;  %v12524_v50 = vld [vmem:[#allocation35_spill] sm:$0xff] }
 0x476   : > { %v3228_v47 = vpop.f32.mrf.mxu3 }
 0x477   : > { %v3229_v23 = vadd.f32 %v3228_v47, %v12503_v26  ;;  %v12511_v47 = vld [vmem:[#allocation48_spill] sm:$0xff] }
 0x479   : > { %v3469_v10 = vadd.f32 %v10014_v0, %v3229_v23  ;;  %v3209_v23 = vadd.f32 %v9924_v9, %v12513_v54  ;;  %v12522_v54 = vld [vmem:[#allocation33_spill] sm:$0xff] }
 0x47b   : > { %6868 = vmatmul.msk.bf16.gmra.mxu3 %vm2793_vm5, %v12501_v37  ;;  %v3661_v1 = vmax.f32 %v3469_v10, 0.0  ;;  %v3214_v37 = vadd.f32 %v9941_v57, %v12511_v47  ;;  %v3453_v40 = vadd.f32 %v10014_v0, %v3209_v23  ;;  %v12516_v10 = vld [vmem:[#allocation30_spill] sm:$0xff] }
 0x47e   : > { %v3231_v61 = vpop.f32.mrf.mxu3 }
 0x47f   : > { %v3232_v25 = vadd.f32 %v3231_v61, %v12502_v22  ;;  %v3461_v61 = vadd.f32 %v10014_v0, %v3219_v30  ;;  %v3657_v22 = vmax.f32 %v3465_v12, 0.0  ;;  %v3645_v30 = vmax.f32 %v3453_v40, 0.0  ;;  %v12519_v12 = vld [vmem:[#allocation36_spill] sm:$0xff] }
 0x481   : > { %v3471_v49 = vadd.f32 %v10014_v0, %v3232_v25  ;;  %v12512_v25 = vld [vmem:[#allocation46_spill] sm:$0xff]  ;;  %v3653_v57 = vmax.f32 %v3461_v61, 0.0 }
 0x482   : > { %v3212_v14 = vadd.f32 %v9932_v2, %v12512_v25 }
 0x483   : > { %v3663_v43 = vmax.f32 %v3471_v49, 0.0 }
 0x484   : > { %v3455_v49 = vadd.f32 %v10014_v0, %v3212_v14  ;;  %v12521_v14 = vld [vmem:[#allocation32_spill] sm:$0xff] }
 0x486   : > { %v3233_v18 = vpop.f32.mrf.mxu3  ;;  %v3647_v56 = vmax.f32 %v3455_v49, 0.0  ;;  %v10076_v49 = vld.sshfl [vmem:[#allocation1 + $0x8] sm:$0xff pattern:$0x75316420] }
 0x487   : > { %v3234_v29 = vadd.f32 %v3233_v18, %v12504_v46  ;;  %v3459_v18 = vadd.f32 %v10014_v0, %v3217_v5  ;;  %v3457_v46 = vadd.f32 %v10014_v0, %v3214_v37  ;;  %v3643_v5 = vmax.f32 %v3451_v17, 0.0  ;;  %3885 = vmatmul.f32.vlgmr.msra.gmra.mxu2 %v10076_v49 }
 0x489   : > { %v3473_v20 = vadd.f32 %v10014_v0, %v3234_v29  ;;  %v3203_v29 = vpop.f32.mrf.mxu0  ;;  %v3651_v2 = vmax.f32 %v3459_v18, 0.0  ;;  %v3649_v9 = vmax.f32 %v3457_v46, 0.0 }
 0x48b   : > { %v3665_v6 = vmax.f32 %v3473_v20, 0.0  ;;  %6869 = vmatmul.msk.bf16.gmra.mxu3 %vm2793_vm5, %v12507_v45  ;;  %v12515_v20 = vld [vmem:[#allocation42_spill] sm:$0xff] }
 0x48c   : > { %v3204_v60 = vadd.f32 %v3203_v29, %v12515_v20 }
 0x48d   : > { %3969 = vmatpush.msrb.mxu1 %v3665_v6  ;;  %v12517_v6 = vld [vmem:[#allocation40_spill] sm:$0xff] }
 0x48e   : > { %v10027_v19 = vpop.f32.mrf.mxu3  ;;  %v3202_v45 = vadd.f32 %v3201_v13, %v12517_v6  ;;  %v3449_v32 = vadd.f32 %v10014_v0, %v3204_v60  ;;  %v12525_v60 = vld [vmem:[#allocation37_spill] sm:$0xff] }
 0x48f   : > { %3970 = vmatpush.msrb.mxu1 %v3663_v43  ;;  %v3199_v43 = vadd.f32 %v3198_v27, %v12518_v34 }
 0x490   : > { %v3447_v11 = vadd.f32 %v10014_v0, %v3202_v45  ;;  %v3641_v38 = vmax.f32 %v3449_v32, 0.0  ;;  %v12527_v45 = vld [vmem:[#allocation80_spill] sm:$0xff] }
 0x491   : > { %3971 = vmatpush.msrb.mxu1 %v3661_v1  ;;  %v3197_v1 = vadd.f32 %v10006_v52, %v12519_v12  ;;  %v3445_v13 = vadd.f32 %v10014_v0, %v3199_v43  ;;  %v12529_v43 = vld [vmem:[#allocation78_spill] sm:$0xff] }
 0x492   : > { %v3639_v47 = vmax.f32 %v3447_v11, 0.0 }
 0x493   : > { %3972 = vmatpush.msrb.mxu1 %v3659_v58  ;;  %v3443_v58 = vadd.f32 %v10014_v0, %v3197_v1  ;;  %v3637_v37 = vmax.f32 %v3445_v13, 0.0  ;;  %v12530_v1 = vld [vmem:[#allocation77_spill] sm:$0xff] }
 0x495   : > { %3973 = vmatpush.msrb.mxu1 %v3657_v22  ;;  %v3635_v61 = vmax.f32 %v3443_v58, 0.0  ;;  %v12520_v22 = vld [vmem:[#allocation31_spill] sm:$0xff]  ;;  %v12532_v58 = vld [vmem:[#allocation76_spill] sm:$0xff] }
 0x496   : > { %v10041_v26 = vpop.f32.mrf.mxu3 }
 0x497   : > { %3974 = vmatpush.msrb.mxu1 %v3655_v62 }
 0x499   : > { %3975 = vmatpush.msrb.mxu1 %v3653_v57  ;;  %v12523_v57 = vld [vmem:[#allocation34_spill] sm:$0xff] }
 0x49b   : > { %6870 = vmatmul.msk.bf16.gmra.mxu3 %vm2793_vm5, %v12516_v10  ;;  %3976 = vmatpush.msrb.mxu1 %v3651_v2  ;;  %v12526_v10 = vld [vmem:[#allocation81_spill] sm:$0xff] }
 0x49d   : > { %3977 = vmatpush.msrb.mxu1 %v3649_v9 }
 0x49e   : > { %v10055_v42 = vpop.f32.mrf.mxu3 }
 0x49f   : > { %3978 = vmatpush.msrb.mxu1 %v3647_v56  ;;  %v12528_v56 = vld [vmem:[#allocation83_spill] sm:$0xff] }
 0x4a1   : > { %3979 = vmatpush.msrb.mxu1 %v3645_v30 }
 0x4a3   : > { %3980 = vmatpush.msrb.mxu1 %v3643_v5 }
 0x4a5   : > { %3981 = vmatpush.msrb.mxu1 %v3641_v38  ;;  %v12531_v38 = vld [vmem:[#allocation41_spill] sm:$0xff] }
 0x4a6   : > { %v10064_v27 = vpop.f32.mrf.mxu3 }
 0x4a7   : > { %3982 = vmatpush.msrb.mxu1 %v3639_v47 }
 0x4a9   : > { %3983 = vmatpush.msrb.mxu1 %v3637_v37 }
 0x4ab   : > { %6871 = vmatmul.msk.bf16.gmra.mxu3 %vm2793_vm5, %v12520_v22  ;;  %3984 = vmatpush.msrb.mxu1 %v3635_v61 }
 0x4ae   : > { %v3246_v52 = vpop.f32.mrf.mxu3 }
 0x4b6   : > { %v3248_v25 = vpop.f32.mrf.mxu3 }
 0x4bb   : > { %6872 = vmatmul.msk.bf16.gmra.mxu3 %vm2793_vm5, %v12521_v14  ;;  %v12533_v14 = vld [vmem:[#allocation75_spill] sm:$0xff] }
 0x4be   : > { %v3251_v18 = vpop.f32.mrf.mxu3 }
 0x4c6   : > { %v3253_v62 = vpop.f32.mrf.mxu3 }
 0x4cb   : > { %6873 = vmatmul.msk.bf16.gmra.mxu3 %vm2793_vm5, %v12522_v54 }
 0x4ce   : > { %v3256_v23 = vpop.f32.mrf.mxu3 }
 0x4d6   : > { %v3258_v46 = vpop.f32.mrf.mxu3 }
 0x4d7   : > { %v3259_v54 = vadd.f32 %v3258_v46, %v12533_v14 }
 0x4db   : > { %6874 = vmatmul.msk.bf16.gmra.mxu3 %vm2793_vm5, %v12523_v57 }
 0x4de   : > { %v3261_v29 = vpop.f32.mrf.mxu3 }
 0x4df   : > { %v3262_v47 = vadd.f32 %v3261_v29, %v12532_v58 }
 0x4e6   : > { %v3263_v33 = vpop.f32.mrf.mxu3 }
 0x4e7   : > { %v3264_v11 = vadd.f32 %v3263_v33, %v12530_v1 }
 0x4e9   : > { %v3497_v57 = vadd.f32 %v10014_v0, %v3264_v11  ;;  %v12539_v11 = vld [vmem:[#allocation66_spill] sm:$0xff] }
 0x4eb   : > { %6875 = vmatmul.msk.bf16.gmra.mxu3 %vm2793_vm5, %v12524_v50  ;;  %v12534_v50 = vld [vmem:[#allocation73_spill] sm:$0xff] }
 0x4ee   : > { %v3266_v2 = vpop.f32.mrf.mxu3 }
 0x4ef   : > { %v3267_v32 = vadd.f32 %v3266_v2, %v12529_v43  ;;  %v3257_v2 = vadd.f32 %v3256_v23, %v12534_v50 }
 0x4f1   : > { %v3499_v37 = vadd.f32 %v10014_v0, %v3267_v32  ;;  %v3491_v46 = vadd.f32 %v10014_v0, %v3257_v2 }
 0x4f3   : > { %v3683_v1 = vmax.f32 %v3491_v46, 0.0 }
 0x4f6   : > { %v3268_v20 = vpop.f32.mrf.mxu3 }
 0x4f7   : > { %v3269_v17 = vadd.f32 %v3268_v20, %v12527_v45  ;;  %v3495_v20 = vadd.f32 %v10014_v0, %v3262_v47 }
 0x4f9   : > { %v3501_v5 = vadd.f32 %v10014_v0, %v3269_v17  ;;  %v3687_v17 = vmax.f32 %v3495_v20, 0.0 }
 0x4fb   : > { %6876 = vmatmul.msk.bf16.gmra.mxu3 %vm2793_vm5, %v12525_v60  ;;  %v3693_v33 = vmax.f32 %v3501_v5, 0.0  ;;  %v3691_v60 = vmax.f32 %v3499_v37, 0.0 }
 0x4fe   : > { %v3271_v40 = vpop.f32.mrf.mxu3 }
 0x4ff   : > { %v3272_v9 = vadd.f32 %v3271_v40, %v12526_v10  ;;  %v12535_v40 = vld [vmem:[#allocation72_spill] sm:$0xff]  ;;  %v3493_v10 = vadd.f32 %v10014_v0, %v3259_v54 }
 0x500   : > { %v3254_v29 = vadd.f32 %v3253_v62, %v12535_v40 }
 0x501   : > { %v3503_v30 = vadd.f32 %v10014_v0, %v3272_v9  ;;  %v3689_v9 = vmax.f32 %v3497_v57, 0.0  ;;  %v3685_v32 = vmax.f32 %v3493_v10, 0.0  ;;  %v12543_v57 = vld [vmem:[#allocation61_spill] sm:$0xff] }
 0x502   : > { %v3489_v43 = vadd.f32 %v10014_v0, %v3254_v29 }
 0x503   : > { %v3695_v61 = vmax.f32 %v3503_v30, 0.0  ;;  %v12538_v30 = vld [vmem:[#allocation67_spill] sm:$0xff] }
 0x504   : > { %v3247_v62 = vadd.f32 %v3246_v52, %v12538_v30 }
 0x506   : > { %v3273_v6 = vpop.f32.mrf.mxu3  ;;  %v3483_v47 = vadd.f32 %v10014_v0, %v3247_v62  ;;  %v3827_v62 = vld [vmem:[%s12499_s2 + $0x8] sm:$0x77] }
 0x507   : > { %v3274_v34 = vadd.f32 %v3273_v6, %v12528_v56  ;;  %v12536_v6 = vld [vmem:[#allocation70_spill] sm:$0xff]  ;;  %3834 = vst [vmem:[#allocation1 + $0x10] ss:$2 sm:$0xff] %v3827_v62 }
 0x508   : > { %v3252_v45 = vadd.f32 %v3251_v18, %v12536_v6  ;;  %v3244_v18 = vadd.f32 %v10064_v27, %v12539_v11  ;;  %v3675_v2 = vmax.f32 %v3483_v47, 0.0 }
 0x509   : > { %v3505_v12 = vadd.f32 %v10014_v0, %v3274_v34  ;;  %v12537_v34 = vld [vmem:[#allocation69_spill] sm:$0xff] }
 0x50a   : > { %v3249_v23 = vadd.f32 %v3248_v25, %v12537_v34  ;;  %v3681_v25 = vmax.f32 %v3489_v43, 0.0  ;;  %v3481_v27 = vadd.f32 %v10014_v0, %v3244_v18  ;;  %v12546_v34 = vld [vmem:[#allocation53_spill] sm:$0xff] }
 0x50b   : > { %v3697_v13 = vmax.f32 %v3505_v12, 0.0  ;;  %6877 = vmatmul.msk.bf16.gmra.mxu3 %vm2793_vm5, %v12531_v38  ;;  %v3487_v12 = vadd.f32 %v10014_v0, %v3252_v45  ;;  %v12541_v38 = vld [vmem:[#allocation64_spill] sm:$0xff]  ;;  %v12545_v45 = vld [vmem:[#allocation50_spill] sm:$0xff] }
 0x50c   : > { %v3485_v5 = vadd.f32 %v10014_v0, %v3249_v23  ;;  %v3242_v58 = vadd.f32 %v10055_v42, %v12541_v38  ;;  %v3673_v20 = vmax.f32 %v3481_v27, 0.0 }
 0x50d   : > { %3989 = vmatpush.msra.mxu2 %v3697_v13  ;;  %v12540_v13 = vld [vmem:[#allocation44_spill] sm:$0xff]  ;;  %v3679_v52 = vmax.f32 %v3487_v12, 0.0 }
 0x50e   : > { %v10093_v22 = vpop.f32.mrf.mxu3  ;;  %v3677_v54 = vmax.f32 %v3485_v5, 0.0  ;;  %v3479_v50 = vadd.f32 %v10014_v0, %v3242_v58  ;;  %v10142_v11 = vld.sshfl [vmem:[#allocation1 + $0x10] sm:$0xff pattern:$0x75316420] }
 0x50f   : > { %3990 = vmatpush.msra.mxu2 %v3695_v61  ;;  %v12542_v61 = vld [vmem:[#allocation63_spill] sm:$0xff]  ;;  %3905 = vmatmul.f32.vlgmr.msra.gmra.mxu0 %v10142_v11 }
 0x510   : > { %v3239_v14 = vadd.f32 %v10041_v26, %v12542_v61  ;;  %v3671_v40 = vmax.f32 %v3479_v50, 0.0 }
 0x511   : > { %3991 = vmatpush.msra.mxu2 %v3693_v33  ;;  %v3237_v33 = vadd.f32 %v10027_v19, %v12543_v57 }
 0x512   : > { %v3477_v42 = vadd.f32 %v10014_v0, %v3239_v14 }
 0x513   : > { %3992 = vmatpush.msra.mxu2 %v3691_v60  ;;  %v3475_v60 = vadd.f32 %v10014_v0, %v3237_v33 }
 0x514   : > { %v3669_v29 = vmax.f32 %v3477_v42, 0.0 }
 0x515   : > { %3993 = vmatpush.msra.mxu2 %v3689_v9  ;;  %v3667_v10 = vmax.f32 %v3475_v60, 0.0  ;;  %v12544_v9 = vld [vmem:[#allocation47_spill] sm:$0xff] }
 0x516   : > { %v10103_v56 = vpop.f32.mrf.mxu3 }
 0x517   : > { %3994 = vmatpush.msra.mxu2 %v3687_v17 }
 0x519   : > { %3995 = vmatpush.msra.mxu2 %v3685_v32  ;;  %v12547_v32 = vld [vmem:[#allocation56_spill] sm:$0xff] }
 0x51b   : > { %6878 = vmatmul.msk.bf16.gmra.mxu3 %vm2793_vm5, %v12540_v13  ;;  %3996 = vmatpush.msra.mxu2 %v3683_v1  ;;  %v12548_v1 = vld [vmem:[#allocation59_spill] sm:$0xff]  ;;  %v12549_v13 = vld [vmem:[#allocation62_spill] sm:$0xff] }
 0x51d   : > { %3997 = vmatpush.msra.mxu2 %v3681_v25 }
 0x51e   : > { %v10117_v37 = vpop.f32.mrf.mxu3 }
 0x51f   : > { %3998 = vmatpush.msra.mxu2 %v3679_v52 }
 0x521   : > { %3999 = vmatpush.msra.mxu2 %v3677_v54  ;;  %v12550_v54 = vld [vmem:[#allocation100_spill] sm:$0xff] }
 0x523   : > { %4000 = vmatpush.msra.mxu2 %v3675_v2  ;;  %v12551_v2 = vld [vmem:[#allocation65_spill] sm:$0xff] }
 0x525   : > { %4001 = vmatpush.msra.mxu2 %v3673_v20 }
 0x526   : > { %v10127_v26 = vpop.f32.mrf.mxu3 }
 0x527   : > { %4002 = vmatpush.msra.mxu2 %v3671_v40 }
 0x529   : > { %4003 = vmatpush.msra.mxu2 %v3669_v29 }
 0x52b   : > { %6879 = vmatmul.msk.bf16.gmra.mxu3 %vm2793_vm5, %v12544_v9  ;;  %4004 = vmatpush.msra.mxu2 %v3667_v10  ;;  %v12554_v10 = vld [vmem:[#allocation95_spill] sm:$0xff] }
 0x52e   : > { %v3286_v19 = vpop.f32.mrf.mxu3 }
 0x536   : > { %v3288_v6 = vpop.f32.mrf.mxu3 }
 0x53b   : > { %6880 = vmatmul.msk.bf16.gmra.mxu3 %vm2793_vm5, %v12545_v45 }
 0x53e   : > { %v3291_v46 = vpop.f32.mrf.mxu3 }
 0x546   : > { %v3293_v17 = vpop.f32.mrf.mxu3 }
 0x54b   : > { %6881 = vmatmul.msk.bf16.gmra.mxu3 %vm2793_vm5, %v12546_v34 }
 0x54e   : > { %v3296_v23 = vpop.f32.mrf.mxu3 }
 0x54f   : > { %v3297_v9 = vadd.f32 %v3296_v23, %v12554_v10 }
 0x556   : > { %v3298_v43 = vpop.f32.mrf.mxu3 }
 0x55b   : > { %6882 = vmatmul.msk.bf16.gmra.mxu3 %vm2793_vm5, %v12547_v32  ;;  %v12555_v32 = vld [vmem:[#allocation94_spill] sm:$0xff] }
 0x55e   : > { %v3301_v30 = vpop.f32.mrf.mxu3 }
 0x566   : > { %v3303_v12 = vpop.f32.mrf.mxu3 }
 0x567   : > { %v3304_v57 = vadd.f32 %v3303_v12, %v12550_v54  ;;  %v12560_v54 = vld [vmem:[#allocation68_spill] sm:$0xff] }
 0x569   : > { %v3529_v40 = vadd.f32 %v10014_v0, %v3304_v57  ;;  %v12561_v57 = vld [vmem:[#allocation13_spill] sm:$0xff] }
 0x56b   : > { %6883 = vmatmul.msk.bf16.gmra.mxu3 %vm2793_vm5, %v12548_v1  ;;  %v3721_v12 = vmax.f32 %v3529_v40, 0.0  ;;  %v12556_v1 = vld [vmem:[#allocation92_spill] sm:$0xff] }
 0x56e   : > { %v3306_v18 = vpop.f32.mrf.mxu3 }
 0x56f   : > { %v3307_v61 = vadd.f32 %v3306_v18, %v9720_v36  ;;  %v12553_v36 = vld [vmem:[#allocation97_spill] sm:$0xff]  ;;  %v3292_v18 = vadd.f32 %v3291_v46, %v12556_v1 }
 0x570   : > { %v3299_v60 = vadd.f32 %v3298_v43, %v12553_v36  ;;  %v3523_v43 = vadd.f32 %v10014_v0, %v3297_v9 }
 0x572   : > { %v3525_v62 = vadd.f32 %v10014_v0, %v3299_v60 }
 0x576   : > { %v3308_v5 = vpop.f32.mrf.mxu3 }
 0x577   : > { %v3309_v47 = vadd.f32 %v3308_v5, %v9738_v44  ;;  %v3531_v44 = vadd.f32 %v10014_v0, %v3307_v61  ;;  %v3715_v61 = vmax.f32 %v3523_v43, 0.0 }
 0x579   : > { %v3533_v33 = vadd.f32 %v10014_v0, %v3309_v47  ;;  %v3723_v34 = vmax.f32 %v3531_v44, 0.0  ;;  %v12558_v47 = vld [vmem:[#allocation14_spill] sm:$0xff] }
 0x57b   : > { %6884 = vmatmul.msk.bf16.gmra.mxu3 %vm2793_vm5, %v12549_v13  ;;  %v3725_v29 = vmax.f32 %v3533_v33, 0.0  ;;  %v3282_v33 = vadd.f32 %v10117_v37, %v12561_v57 }
 0x57d   : > { %v3511_v60 = vadd.f32 %v10014_v0, %v3282_v33 }
 0x57e   : > { %v3311_v25 = vpop.f32.mrf.mxu3 }
 0x57f   : > { %v3312_v38 = vadd.f32 %v3311_v25, %v9750_v15  ;;  %v12552_v15 = vld [vmem:[#allocation98_spill] sm:$0xff]  ;;  %v12557_v25 = vld [vmem:[#allocation91_spill] sm:$0xff]  ;;  %v3703_v9 = vmax.f32 %v3511_v60, 0.0 }
 0x580   : > { %v3302_v42 = vadd.f32 %v3301_v30, %v12552_v15  ;;  %v3294_v30 = vadd.f32 %v3293_v17, %v12555_v32  ;;  %v3289_v23 = vadd.f32 %v3288_v6, %v12557_v25  ;;  %v3287_v17 = vadd.f32 %v3286_v19, %v12558_v47  ;;  %v12562_v15 = vld [vmem:[#allocation86_spill] sm:$0xff]  ;;  %v12564_v32 = vld [vmem:[#allocation71_spill] sm:$0xff]  ;;  %v10205_v47 = vpop.f32.mrf.mxu1 }
 0x581   : > { %v3535_v14 = vadd.f32 %v10014_v0, %v3312_v38  ;;  %v12567_v25 = vld [vmem:[#allocation79_spill] sm:$0xff] }
 0x582   : > { %v3527_v45 = vadd.f32 %v10014_v0, %v3302_v42  ;;  %v3521_v38 = vadd.f32 %v10014_v0, %v3294_v30  ;;  %v3279_v42 = vadd.f32 %v10103_v56, %v12562_v15 }
 0x583   : > { %v3727_v20 = vmax.f32 %v3535_v14, 0.0  ;;  %v12559_v14 = vld [vmem:[#allocation89_spill] sm:$0xff] }
 0x584   : > { %v3719_v5 = vmax.f32 %v3527_v45, 0.0  ;;  %v3284_v46 = vadd.f32 %v10127_v26, %v12559_v14  ;;  %v3713_v6 = vmax.f32 %v3521_v38, 0.0  ;;  %v3509_v37 = vadd.f32 %v10014_v0, %v3279_v42  ;;  %v12569_v14 = vld [vmem:[#allocation85_spill] sm:$0xff] }
 0x586   : > { %v3313_v58 = vpop.f32.mrf.mxu3  ;;  %v3513_v26 = vadd.f32 %v10014_v0, %v3284_v46  ;;  %v3701_v45 = vmax.f32 %v3509_v37, 0.0 }
 0x587   : > { %v3314_v52 = vadd.f32 %v3313_v58, %v9766_v48  ;;  %v3717_v58 = vmax.f32 %v3525_v62, 0.0  ;;  %v12565_v62 = vld [vmem:[#allocation74_spill] sm:$0xff] }
 0x589   : > { %v3537_v27 = vadd.f32 %v10014_v0, %v3314_v52  ;;  %v3519_v52 = vadd.f32 %v10014_v0, %v3292_v18  ;;  %v12566_v18 = vld [vmem:[#allocation39_spill] sm:$0xff] }
 0x58b   : > { %v3729_v50 = vmax.f32 %v3537_v27, 0.0  ;;  %6885 = vmatmul.msk.bf16.gmra.mxu3 %vm2793_vm5, %v12551_v2  ;;  %v3517_v27 = vadd.f32 %v10014_v0, %v3289_v23  ;;  %v3711_v19 = vmax.f32 %v3519_v52, 0.0 }
 0x58d   : > { %4009 = vmatpush.msra.mxu0 %v3729_v50  ;;  %v3515_v50 = vadd.f32 %v10014_v0, %v3287_v17  ;;  %v3709_v44 = vmax.f32 %v3517_v27, 0.0  ;;  %v10207_v17 = vld.sshfl [vmem:[#allocation1 + $0x18] sm:$0xff pattern:$0x75316420] }
 0x58e   : > { %v10159_v48 = vpop.f32.mrf.mxu3  ;;  %3925 = vmatmul.f32.vlgmr.msra.gmra.mxu1 %v10207_v17 }
 0x58f   : > { %4010 = vmatpush.msra.mxu0 %v3727_v20  ;;  %v12563_v20 = vld [vmem:[#allocation84_spill] sm:$0xff]  ;;  %v3707_v40 = vmax.f32 %v3515_v50, 0.0 }
 0x590   : > { %v3277_v36 = vadd.f32 %v10093_v22, %v12563_v20 }
 0x591   : > { %4011 = vmatpush.msra.mxu0 %v3725_v29  ;;  %v3705_v29 = vmax.f32 %v3513_v26, 0.0 }
 0x592   : > { %v3507_v10 = vadd.f32 %v10014_v0, %v3277_v36 }
 0x593   : > { %4012 = vmatpush.msra.mxu0 %v3723_v34 }
 0x594   : > { %v3699_v34 = vmax.f32 %v3507_v10, 0.0 }
 0x595   : > { %4013 = vmatpush.msra.mxu0 %v3721_v12 }
 0x596   : > { %v10169_v13 = vpop.f32.mrf.mxu3 }
 0x597   : > { %4014 = vmatpush.msra.mxu0 %v3719_v5 }
 0x599   : > { %4015 = vmatpush.msra.mxu0 %v3717_v58  ;;  %v12568_v58 = vld [vmem:[#allocation82_spill] sm:$0xff] }
 0x59b   : > { %6886 = vmatmul.msk.bf16.gmra.mxu3 %vm2793_vm5, %v12560_v54  ;;  %4016 = vmatpush.msra.mxu0 %v3715_v61 }
 0x59d   : > { %4017 = vmatpush.msra.mxu0 %v3713_v6 }
 0x59e   : > { %v10183_v2 = vpop.f32.mrf.mxu3 }
 0x59f   : > { %4018 = vmatpush.msra.mxu0 %v3711_v19 }
 0x5a1   : > { %4019 = vmatpush.msra.mxu0 %v3709_v44  ;;  %v12570_v44 = vld [vmem:[#allocation88_spill] sm:$0xff] }
 0x5a3   : > { %4020 = vmatpush.msra.mxu0 %v3707_v40 }
 0x5a5   : > { %4021 = vmatpush.msra.mxu0 %v3705_v29 }
 0x5a6   : > { %v10193_v56 = vpop.f32.mrf.mxu3 }
 0x5a7   : > { %4022 = vmatpush.msra.mxu0 %v3703_v9 }
 0x5a9   : > { %4023 = vmatpush.msra.mxu0 %v3701_v45 }
 0x5ab   : > { %6887 = vmatmul.msk.bf16.gmra.mxu3 %vm2793_vm5, %v12564_v32  ;;  %4024 = vmatpush.msra.mxu0 %v3699_v34  ;;  %v12571_v32 = vld [vmem:[#allocation106_spill] sm:$0xff] }
 0x5ae   : > { %v3326_v22 = vpop.f32.mrf.mxu3 }
 0x5b6   : > { %v3328_v30 = vpop.f32.mrf.mxu3 }
 0x5bb   : > { %6888 = vmatmul.msk.bf16.gmra.mxu3 %vm2793_vm5, %v12565_v62 }
 0x5be   : > { %v3331_v12 = vpop.f32.mrf.mxu3 }
 0x5bf   : > { %v3332_v9 = vadd.f32 %v3331_v12, %v9850_v55 }
 0x5c6   : > { %v3333_v1 = vpop.f32.mrf.mxu3 }
 0x5cb   : > { %6889 = vmatmul.msk.bf16.gmra.mxu3 %vm2793_vm5, %v12566_v18 }
 0x5ce   : > { %v3336_v43 = vpop.f32.mrf.mxu3 }
 0x5cf   : > { %v3337_v60 = vadd.f32 %v3336_v43, %v9868_v63  ;;  %v3329_v63 = vadd.f32 %v3328_v30, %v12571_v32  ;;  %v12572_v43 = vld [vmem:[#allocation17_spill] sm:$0xff] }
 0x5d1   : > { %v3549_v12 = vadd.f32 %v10014_v0, %v3329_v63  ;;  %v3828_v63 = vld [vmem:[%s12499_s2 + $0x10] sm:$0x77]  ;;  %s867_s2 = scalar_lea.vmem %s12786_s3, %s12785_s1  ;;  %s850_s3 = scalar_lea.vmem [#allocation2], %s6490_s10 }
 0x5d2   : > { %3836 = vst [vmem:[#allocation1 + $0x20] ss:$2 sm:$0xff] %v3828_v63  ;;  %s6388_s11 = sshll.u32 %s850_s3, 4  ;;  %s6389_s11 = int_to_ptr.vmem [resolvable:$true] %s6388_s11 }
 0x5d6   : > { %v3338_v5 = vpop.f32.mrf.mxu3 }
 0x5db   : > { %6890 = vmatmul.msk.bf16.gmra.mxu3 %vm2793_vm5, %v12567_v25  ;;  %v12573_v25 = vld [vmem:[#allocation105_spill] sm:$0xff] }
 0x5dc   : > { %v3324_v55 = vadd.f32 %v10193_v56, %v12573_v25 }
 0x5de   : > { %v3341_v23 = vpop.f32.mrf.mxu3  ;;  %v3545_v56 = vadd.f32 %v10014_v0, %v3324_v55 }
 0x5e6   : > { %v3343_v38 = vpop.f32.mrf.mxu3 }
 0x5e7   : > { %v3344_v15 = vadd.f32 %v3343_v38, %v9890_v53  ;;  %v12575_v38 = vld [vmem:[#allocation16_spill] sm:$0xff] }
 0x5e9   : > { %v3561_v36 = vadd.f32 %v10014_v0, %v3344_v15 }
 0x5eb   : > { %6891 = vmatmul.msk.bf16.gmra.mxu3 %vm2793_vm5, %v12568_v58  ;;  %v3753_v10 = vmax.f32 %v3561_v36, 0.0  ;;  %v3322_v58 = vadd.f32 %v10183_v2, %v12575_v38 }
 0x5ee   : > { %v3346_v52 = vpop.f32.mrf.mxu3 }
 0x5ef   : > { %v3347_v33 = vadd.f32 %v3346_v52, %v9896_v39  ;;  %v3339_v39 = vadd.f32 %v3338_v5, %v9876_v21  ;;  %v3555_v21 = vadd.f32 %v10014_v0, %v3337_v60  ;;  %v12580_v60 = vld [vmem:[#allocation99_spill] sm:$0xff] }
 0x5f1   : > { %v3557_v29 = vadd.f32 %v10014_v0, %v3339_v39  ;;  %v3747_v5 = vmax.f32 %v3555_v21, 0.0 }
 0x5f3   : > { %v3749_v18 = vmax.f32 %v3557_v29, 0.0 }
 0x5f6   : > { %v3348_v61 = vpop.f32.mrf.mxu3 }
 0x5f7   : > { %v3349_v6 = vadd.f32 %v3348_v61, %v9900_v31  ;;  %v3563_v31 = vadd.f32 %v10014_v0, %v3347_v33 }
 0x5f9   : > { %v3565_v42 = vadd.f32 %v10014_v0, %v3349_v6  ;;  %v3755_v37 = vmax.f32 %v3563_v31, 0.0  ;;  %v12579_v31 = vld [vmem:[#allocation96_spill] sm:$0xff] }
 0x5fb   : > { %6892 = vmatmul.msk.bf16.gmra.mxu3 %vm2793_vm5, %v12569_v14  ;;  %v3757_v53 = vmax.f32 %v3565_v42, 0.0  ;;  %v12576_v14 = vld [vmem:[#allocation104_spill] sm:$0xff] }
 0x5fe   : > { %v3351_v46 = vpop.f32.mrf.mxu3 }
 0x5ff   : > { %v3352_v27 = vadd.f32 %v3351_v46, %v9906_v8  ;;  %v3342_v8 = vadd.f32 %v3341_v23, %v9884_v4  ;;  %v3334_v4 = vadd.f32 %v3333_v1, %v9860_v28  ;;  %v3327_v28 = vadd.f32 %v3326_v22, %v12572_v43  ;;  %v12574_v23 = vld [vmem:[#allocation90_spill] sm:$0xff] }
 0x600   : > { %v3551_v1 = vadd.f32 %v10014_v0, %v3332_v9  ;;  %v3319_v46 = vadd.f32 %v10169_v13, %v12576_v14  ;;  %v12583_v43 = vld [vmem:[#allocation102_spill] sm:$0xff] }
 0x601   : > { %v3567_v50 = vadd.f32 %v10014_v0, %v3352_v27  ;;  %v3559_v40 = vadd.f32 %v10014_v0, %v3342_v8  ;;  %v3553_v62 = vadd.f32 %v10014_v0, %v3334_v4  ;;  %v3547_v52 = vadd.f32 %v10014_v0, %v3327_v28  ;;  %v10288_v28 = vld.sshfl [vmem:[#allocation1 + $0x20] sm:$0xff pattern:$0x75316420] }
 0x602   : > { %v3743_v22 = vmax.f32 %v3551_v1, 0.0  ;;  %v3741_v27 = vmax.f32 %v3549_v12, 0.0  ;;  %v3541_v2 = vadd.f32 %v10014_v0, %v3319_v46  ;;  %3945 = vmatmul.f32.vlgmr.msrb.gmra.mxu2 %v10288_v28  ;;  %v12584_v12 = vld [vmem:[#allocation103_spill] sm:$0xff] }
 0x603   : > { %v3759_v20 = vmax.f32 %v3567_v50, 0.0  ;;  %v3751_v45 = vmax.f32 %v3559_v40, 0.0  ;;  %v3745_v30 = vmax.f32 %v3553_v62, 0.0  ;;  %v3739_v33 = vmax.f32 %v3547_v52, 0.0 }
 0x604   : > { %v3737_v50 = vmax.f32 %v3545_v56, 0.0  ;;  %v3733_v42 = vmax.f32 %v3541_v2, 0.0 }
 0x606   : > { %v3353_v54 = vpop.f32.mrf.mxu3 }
 0x607   : > { %v3354_v57 = vadd.f32 %v3353_v54, %v9910_v7  ;;  %v12577_v54 = vld [vmem:[#allocation15_spill] sm:$0xff] }
 0x608   : > { %v3317_v6 = vadd.f32 %v10159_v48, %v12577_v54 }
 0x609   : > { %v3569_v19 = vadd.f32 %v10014_v0, %v3354_v57  ;;  %v3543_v57 = vadd.f32 %v10014_v0, %v3322_v58 }
 0x60a   : > { %4005 = vmatmul.f32.vlgmr.msra.gmra.mxu2 %v10076_v49 }
 0x60b   : > { %v3761_v26 = vmax.f32 %v3569_v19, 0.0  ;;  %6893 = vmatmul.msk.bf16.gmra.mxu3 %vm2793_vm5, %v12570_v44  ;;  %v3539_v19 = vadd.f32 %v10014_v0, %v3317_v6  ;;  %v3735_v15 = vmax.f32 %v3543_v57, 0.0  ;;  %v12578_v44 = vld [vmem:[#allocation93_spill] sm:$0xff] }
 0x60d   : > { %4029 = vmatpush.msra.mxu1 %v3761_v26  ;;  %v3731_v26 = vmax.f32 %v3539_v19, 0.0 }
 0x60e   : > { %v10224_v7 = vpop.f32.mrf.mxu3 }
 0x60f   : > { %4030 = vmatpush.msra.mxu1 %v3759_v20  ;;  %v2655_v20 = vpop.f32.mrf.mxu1 }
 0x610   : > { %3985 = vmatmul.f32.vlgmr.msrb.gmra.mxu1 %v10003_v24  ;;  %v7760_v24 = vmov 0  }
 0x611   : > { %4031 = vmatpush.msra.mxu1 %v3757_v53  ;;  %7622 = vset.pattern.permute.xlu0 %v7760_v24 }
 0x612   : > { %7624 = vset.pattern.permute.xlu2 %v7760_v24 }
 0x613   : > { %4032 = vmatpush.msra.mxu1 %v3755_v37 }
 0x615   : > { %4033 = vmatpush.msra.mxu1 %v3753_v10  ;;  %v12581_v10 = vld [vmem:[#allocation101_spill] sm:$0xff] }
 0x616   : > { %v10234_v34 = vpop.f32.mrf.mxu3 }
 0x617   : > { %4034 = vmatpush.msra.mxu1 %v3751_v45  ;;  %v2658_v36 = vpop.f32.mrf.mxu1  ;;  %v12192_v45 = vmov 1  }
 0x618   : > { %7623 = vset.pattern.permute.xlu1 %v12192_v45 }
 0x619   : > { %4035 = vmatpush.msra.mxu1 %v3749_v18  ;;  %v4091_v18 = vld [vmem:[%s12582_s5 + $0x8] sm:$0x1] }
 0x61b   : > { %6894 = vmatmul.msk.bf16.gmra.mxu3 %vm2793_vm5, %v12574_v23  ;;  %4036 = vmatpush.msra.mxu1 %v3747_v5 }
 0x61d   : > { %4037 = vmatpush.msra.mxu1 %v3745_v30 }
 0x61e   : > { %v10248_v61 = vpop.f32.mrf.mxu3 }
 0x61f   : > { %4038 = vmatpush.msra.mxu1 %v3743_v22  ;;  %v2661_v40 = vpop.f32.mrf.mxu1 }
 0x621   : > { %4039 = vmatpush.msra.mxu1 %v3741_v27 }
 0x623   : > { %4040 = vmatpush.msra.mxu1 %v3739_v33 }
 0x625   : > { %4041 = vmatpush.msra.mxu1 %v3737_v50 }
 0x626   : > { %v10258_v13 = vpop.f32.mrf.mxu3 }
 0x627   : > { %4042 = vmatpush.msra.mxu1 %v3735_v15  ;;  %v2664_v4 = vpop.f32.mrf.mxu1 }
 0x629   : > { %4043 = vmatpush.msra.mxu1 %v3733_v42 }
 0x62b   : > { %6895 = vmatmul.msk.bf16.gmra.mxu3 %vm2793_vm5, %v12578_v44  ;;  %4044 = vmatpush.msra.mxu1 %v3731_v26 }
 0x62c   : > { %4045 = vmatmul.f32.vlgmr.msra.gmra.mxu1 %v10207_v17  ;;  %v4090_v17 = vld [vmem:[%s12582_s5] sm:$0xff]  ;;  %s6390_s5 = sshll.u32 %s6386_s27, 4  ;;  %s6391_s5 = int_to_ptr.hbm [resolvable:$true] %s6390_s5 }
 0x62d   : > { %4107 = vperm.xlu1 %7623, %v4090_v17   ;;  %4095 = vperm.xlu0 %7622, %v4090_v17  }
 0x62e   : > { %v10262_v48 = vpop.f32.mrf.mxu3 }
 0x62f   : > { %v2667_v9 = vpop.f32.mrf.mxu1 }
 0x635   : > { %4111 = vperm.xlu1 %7623, %v4091_v18   ;;  %4100 = vperm.xlu0 %7622, %v4091_v18  }
 0x636   : > { %v10264_v8 = vpop.f32.mrf.mxu3 }
 0x637   : > { %v2670_v32 = vpop.f32.mrf.mxu1 }
 0x63b   : > { %6896 = vmatmul.msk.bf16.gmra.mxu3 %vm2793_vm5, %v12579_v31 }
 0x63d   : > { %7626 = vset.pattern.permute.xlu0 %v12192_v45  ;;  %v7506_v45 = vld [vmem:[%s12113_s22 + $0x64] sm:$0xf] }
 0x63e   : > { %v10269_v39 = vpop.f32.mrf.mxu3 }
 0x63f   : > { %v10291_v5 = vpop.f32.mrf.mxu1 }
 0x646   : > { %v3373_v53 = vpop.f32.mrf.mxu3 }
 0x647   : > { %v2676_v55 = vpop.f32.mrf.mxu1 }
 0x64b   : > { %6897 = vmatmul.msk.bf16.gmra.mxu3 %vm2793_vm5, %v12580_v60 }
 0x64e   : > { %v3376_v37 = vpop.f32.mrf.mxu3 }
 0x64f   : > { %v10297_v30 = vpop.f32.mrf.mxu1  ;;  %v3377_v26 = vadd.f32 %v3376_v37, %v10001_v16  ;;  %v3369_v16 = vadd.f32 %v10264_v8, %v9968_v35  ;;  %v12585_v8 = vld [vmem:[#allocation20_spill] sm:$0xff] }
 0x650   : > { %v3362_v17 = vadd.f32 %v10248_v61, %v12585_v8 }
 0x651   : > { %v3581_v24 = vadd.f32 %v10014_v0, %v3369_v16 }
 0x656   : > { %v3378_v29 = vpop.f32.mrf.mxu3 }
 0x657   : > { %v2682_v6 = vpop.f32.mrf.mxu1  ;;  %v3379_v19 = vadd.f32 %v3378_v29, %v10205_v47  ;;  %v3587_v47 = vadd.f32 %v10014_v0, %v3377_v26 }
 0x65b   : > { %6898 = vmatmul.msk.bf16.gmra.mxu3 %vm2793_vm5, %v12581_v10 }
 0x65e   : > { %v3381_v21 = vpop.f32.mrf.mxu3 }
 0x65f   : > { %v3382_v57 = vadd.f32 %v3381_v21, %v2655_v20  ;;  %v3374_v20 = vadd.f32 %v3373_v53, %v9992_v59  ;;  %v10314_v10 = vpop.f32.mrf.mxu1  ;;  %v3364_v21 = vadd.f32 %v10258_v13, %v9939_v41  ;;  %v3773_v41 = vmax.f32 %v3581_v24, 0.0 }
 0x661   : > { %v3591_v44 = vadd.f32 %v10014_v0, %v3382_v57  ;;  %v3585_v37 = vadd.f32 %v10014_v0, %v3374_v20  ;;  %v3577_v18 = vadd.f32 %v10014_v0, %v3364_v21 }
 0x663   : > { %v3777_v35 = vmax.f32 %v3585_v37, 0.0 }
 0x666   : > { %v3383_v62 = vpop.f32.mrf.mxu3 }
 0x667   : > { %v3384_v27 = vadd.f32 %v3383_v62, %v2658_v36  ;;  %v3589_v36 = vadd.f32 %v10014_v0, %v3379_v19  ;;  %v2688_v13 = vpop.f32.mrf.mxu1 }
 0x669   : > { %v3593_v15 = vadd.f32 %v10014_v0, %v3384_v27  ;;  %v3781_v59 = vmax.f32 %v3589_v36, 0.0 }
 0x66b   : > { %6899 = vmatmul.msk.bf16.gmra.mxu3 %vm2793_vm5, %v12583_v43  ;;  %v3785_v60 = vmax.f32 %v3593_v15, 0.0  ;;  %v12587_v43 = vld [vmem:[#allocation18_spill] sm:$0xff] }
 0x66e   : > { %v3386_v1 = vpop.f32.mrf.mxu3 }
 0x66f   : > { %v3387_v14 = vadd.f32 %v3386_v1, %v2661_v40  ;;  %v3372_v40 = vadd.f32 %v10269_v39, %v9987_v3  ;;  %v3779_v39 = vmax.f32 %v3587_v47, 0.0  ;;  %v3357_v1 = vadd.f32 %v10224_v7, %v12587_v43 }
 0x671   : > { %v3595_v33 = vadd.f32 %v10014_v0, %v3387_v14  ;;  %v3583_v3 = vadd.f32 %v10014_v0, %v3372_v40  ;;  %v10345_v14 = vpop.f32.mrf.mxu1 }
 0x673   : > { %v3787_v31 = vmax.f32 %v3595_v33, 0.0  ;;  %v3775_v63 = vmax.f32 %v3583_v3, 0.0 }
 0x676   : > { %v3388_v25 = vpop.f32.mrf.mxu3 }
 0x677   : > { %v3389_v52 = vadd.f32 %v3388_v25, %v2664_v4  ;;  %v3783_v4 = vmax.f32 %v3591_v44, 0.0  ;;  %v3575_v25 = vadd.f32 %v10014_v0, %v3362_v17 }
 0x679   : > { %v3597_v54 = vadd.f32 %v10014_v0, %v3389_v52 }
 0x67b   : > { %6900 = vmatmul.msk.bf16.gmra.mxu3 %vm2793_vm5, %v12584_v12  ;;  %v3789_v42 = vmax.f32 %v3597_v54, 0.0 }
 0x67e   : > { %v3391_v23 = vpop.f32.mrf.mxu3 }
 0x67f   : > { %v3392_v38 = vadd.f32 %v3391_v23, %v2667_v9  ;;  %v3367_v9 = vadd.f32 %v10262_v48, %v9952_v51  ;;  %v12586_v51 = vld [vmem:[#allocation19_spill] sm:$0xff]  ;;  %v3769_v23 = vmax.f32 %v3577_v18, 0.0 }
 0x680   : > { %v3359_v48 = vadd.f32 %v10234_v34, %v12586_v51  ;;  %v3571_v34 = vadd.f32 %v10014_v0, %v3357_v1 }
 0x681   : > { %v3599_v46 = vadd.f32 %v10014_v0, %v3392_v38  ;;  %v3767_v38 = vmax.f32 %v3575_v25, 0.0 }
 0x682   : > { %v3573_v12 = vadd.f32 %v10014_v0, %v3359_v48 }
 0x683   : > { %v3791_v2 = vmax.f32 %v3599_v46, 0.0 }
 0x684   : > { %v3765_v7 = vmax.f32 %v3573_v12, 0.0 }
 0x686   : > { %v3393_v58 = vpop.f32.mrf.mxu3 }
 0x687   : > { %v3394_v22 = vadd.f32 %v3393_v58, %v2670_v32  ;;  %v3579_v32 = vadd.f32 %v10014_v0, %v3367_v9 }
 0x689   : > { %v3601_v56 = vadd.f32 %v10014_v0, %v3394_v22  ;;  %v3771_v61 = vmax.f32 %v3579_v32, 0.0  ;;  %v3763_v22 = vmax.f32 %v3571_v34, 0.0 }
 0x68b   : > { %v3793_v49 = vmax.f32 %v3601_v56, 0.0  ;;  %v2694_v56 = vpop.f32.mrf.mxu1 }
 0x68d   : > { %4049 = vmatpush.msrb.mxu2 %v3793_v49 }
 0x68e   : > { %v10303_v50 = vpop.f32.mrf.mxu3 }
 0x68f   : > { %4050 = vmatpush.msrb.mxu2 %v3791_v2 }
 0x691   : > { %4051 = vmatpush.msrb.mxu2 %v3789_v42 }
 0x693   : > { %4052 = vmatpush.msrb.mxu2 %v3787_v31 }
 0x695   : > { %4053 = vmatpush.msrb.mxu2 %v3785_v60 }
 0x696   : > { %v3398_v29 = vpop.f32.mrf.mxu3 }
 0x697   : > { %v10319_v53 = vadd.f32 %v3398_v29, %v2676_v55  ;;  %4054 = vmatpush.msrb.mxu2 %v3783_v4  ;;  %v10338_v55 = vld.sshfl [vmem:[#allocation1 + $0x28] sm:$0xff pattern:$0x75316420] }
 0x698   : > { %3965 = vmatmul.f32.vlgmr.msrb.gmra.mxu0 %v10338_v55 }
 0x699   : > { %4055 = vmatpush.msrb.mxu2 %v3781_v59 }
 0x69b   : > { %4056 = vmatpush.msrb.mxu2 %v3779_v39 }
 0x69d   : > { %4057 = vmatpush.msrb.mxu2 %v3777_v35 }
 0x69e   : > { %v10330_v62 = vpop.f32.mrf.mxu3 }
 0x69f   : > { %4058 = vmatpush.msrb.mxu2 %v3775_v63  ;;  %v4108_v26 = vpop.permute.xlu1 %4107  ;;  %v4096_v44 = vpop.permute.xlu0 %4095 }
 0x6a0   : > { %4025 = vmatmul.f32.vlgmr.msra.gmra.mxu0 %v10142_v11 }
 0x6a1   : > { %4059 = vmatpush.msrb.mxu2 %v3773_v41 }
 0x6a3   : > { %4060 = vmatpush.msrb.mxu2 %v3771_v61 }
 0x6a5   : > { %4061 = vmatpush.msrb.mxu2 %v3769_v23 }
 0x6a6   : > { %v3403_v58 = vpop.f32.mrf.mxu3 }
 0x6a7   : > { %v10343_v52 = vadd.f32 %v3403_v58, %v2682_v6  ;;  %4062 = vmatpush.msrb.mxu2 %v3767_v38  ;;  %v10355_v6 = vpop.f32.mrf.mxu1  ;;  %v4112_v29 = vpop.permute.xlu1 %4111 }
 0x6a8   : > { %v4101_v59 = vpop.permute.xlu0 %4100 }
 0x6a9   : > { %4063 = vmatpush.msrb.mxu2 %v3765_v7 }
 0x6ab   : > { %4064 = vmatpush.msrb.mxu2 %v3763_v22 }
 0x6ac   : > { %4065 = vmatmul.f32.vlgmr.msrb.gmra.mxu2 %v10288_v28  ;;  %v4089_v28 = vld [vmem:[%s863_s7] sm:$0x3]  ;;  %s7715_s7 = scalar_lea.hbm %s12833_s0, 16 }
 0x6ad   : > { %v4105_v15 = vperm.slane %v4089_v28, 1  ;;  %v4092_v42 = vperm.slane %v4089_v28, 0 }
 0x6ae   : > { %v10349_v46 = vpop.f32.mrf.mxu3 }
 0x6af   : > { %v10359_v2 = vpop.f32.mrf.mxu1  ;;  %v4114_v20 = vsub.f32 %v4105_v15, %v4108_v26  ;;  %v4103_v36 = vsub.f32 %v4092_v42, %v4096_v44  ;;  %v4115_v37 = vsub.f32 %v4105_v15, %v4112_v29  ;;  %v4104_v3 = vsub.f32 %v4092_v42, %v4101_v59 }
 0x6b1   : > { %v4118_v60 = vmul.f32 %v4114_v20, %v4114_v20  ;;  %v4116_v40 = vmul.f32 %v4103_v36, %v4103_v36  ;;  %v4119_v39 = vmul.f32 %v4115_v37, %v4115_v37  ;;  %v4117_v21 = vmul.f32 %v4104_v3, %v4104_v3 }
 0x6b3   : > { %v4120_v47 = vadd.f32 %v4118_v60, %v4116_v40  ;;  %v4121_v35 = vadd.f32 %v4119_v39, %v4117_v21 }
 0x6b5   : > { %v4122_v9 = vsub.f32 0.0, %v4120_v47  ;;  %v4123_v8 = vsub.f32 0.0, %v4121_v35 }
 0x6b6   : > { %v3408_v27 = vpop.f32.mrf.mxu3 }
 0x6b7   : > { %v10351_v54 = vadd.f32 %v3408_v27, %v2688_v13  ;;  %v10367_v11 = vpop.f32.mrf.mxu1  ;;  %v4124_v24 = vmul.f32 10.0, %v4122_v9  ;;  %v4125_v51 = vmul.f32 10.0, %v4123_v8 }
 0x6b9   : > { %v4126_v63 = vsel %vm1815_vm4, %v4124_v24, -inf  ;;  %v4128_v48 = vsel %vm4127_vm6, %v4125_v51, -inf }
 0x6ba   : > { %v4129_v18 = vmax.f32 %v4126_v63, %v4128_v48 }
 0x6bc   : > { %v4130_v41 = vrot.slane %v4129_v18, 4 }
 0x6be   : > { %v10353_v49 = vpop.f32.mrf.mxu3  ;;  %v4131_v43 = vmax.f32 %v4129_v18, %v4130_v41 }
 0x6bf   : > { %v2706_v4 = vpop.f32.mrf.mxu1 }
 0x6c0   : > { %v4132_v25 = vrot.slane %v4131_v43, 2 }
 0x6c2   : > { %v4133_v61 = vmax.f32 %v4131_v43, %v4132_v25 }
 0x6c4   : > { %v4134_v12 = vrot.slane %v4133_v61, 1 }
 0x6c6   : > { %v3413_v57 = vpop.f32.mrf.mxu3  ;;  %v4135_v34 = vmax.f32 %v4133_v61, %v4134_v12 }
 0x6c7   : > { %v10357_v33 = vadd.f32 %v3413_v57, %v2694_v56  ;;  %v2709_v32 = vpop.f32.mrf.mxu1 }
 0x6c8   : > { %v4136_v38 = vsub.f32 %v4124_v24, %v4135_v34  ;;  %v4137_v58 = vsub.f32 %v4125_v51, %v4135_v34 }
 0x6c9   : > { %v3617_v34 = vadd.f32 %v10014_v0, %v10357_v33 }
 0x6ca   : > { %v4138_v7 = vmul.f32 1.442695, %v4136_v38  ;;  %v4140_v22 = vmul.f32 1.442695, %v4137_v58 }
 0x6cc   : > { %7632 = vpow2.f32 %v4138_v7  ;;  %v3407_v7 = vadd.f32 %v10349_v46, %v10314_v10  ;;  %v3402_v10 = vadd.f32 %v10330_v62, %v10297_v30  ;;  %v3397_v30 = vadd.f32 %v10303_v50, %v10291_v5 }
 0x6cd   : > { %7634 = vpow2.f32 %v4140_v22 }
 0x6ce   : > { %v10362_v19 = vpop.f32.mrf.mxu3  ;;  %v3611_v46 = vadd.f32 %v10014_v0, %v3407_v7  ;;  %v3607_v62 = vadd.f32 %v10014_v0, %v3402_v10  ;;  %v3603_v5 = vadd.f32 %v10014_v0, %v3397_v30 }
 0x6cf   : > { %v2712_v1 = vpop.f32.mrf.mxu1 }
 0x6d0   : > { %v3799_v50 = vmax.f32 %v3607_v62, 0.0  ;;  %v7454_v62 = vld [vmem:[%s12108_s17] sm:$0xff] }
 0x6d2   : > { %v10373_v57 = vpop.eup %7632 }
 0x6d3   : > { %v10375_v28 = vpop.eup %7634  ;;  %v4142_v15 = vsel %vm1815_vm4, %v10373_v57, 0.0 }
 0x6d4   : > { %v4143_v42 = vsel %vm4127_vm6, %v10375_v28, 0.0 }
 0x6d5   : > { %v4144_v44 = vadd.f32 %v4143_v42, %v4142_v15  ;;  %v3613_v15 = vadd.f32 %v10014_v0, %v10351_v54  ;;  %v3809_v42 = vmax.f32 %v3617_v34, 0.0  ;;  %v4170_v34 = vld [vmem:[%s12591_s13 + $0x18] sm:$0x1] }
 0x6d6   : > { %v10369_v31 = vpop.f32.mrf.mxu3 }
 0x6d7   : > { %v2715_v56 = vpop.f32.mrf.mxu1  ;;  %v4145_v40 = vrot.slane %v4144_v44, 4  ;;  %v3805_v54 = vmax.f32 %v3613_v15, 0.0 }
 0x6d9   : > { %v4146_v37 = vadd.f32 %v4145_v40, %v4144_v44  ;;  %v3609_v40 = vadd.f32 %v10014_v0, %v10343_v52 }
 0x6db   : > { %v4147_v21 = vrot.slane %v4146_v37, 2 }
 0x6dd   : > { %v4148_v51 = vadd.f32 %v4147_v21, %v4146_v37  ;;  %v3801_v21 = vmax.f32 %v3609_v40, 0.0  ;;  %v7485_v40 = vld [vmem:[%s12109_s18 + $0x78] sm:$0xff] }
 0x6de   : > { %v3421_v16 = vpop.f32.mrf.mxu3 }
 0x6df   : > { %v2718_v26 = vpop.f32.mrf.mxu1  ;;  %v3422_v8 = vadd.f32 %v3421_v16, %v10367_v11 }
 0x6e1   : > { %v3623_v43 = vadd.f32 %v10014_v0, %v3422_v8 }
 0x6e6   : > { %v3423_v17 = vpop.f32.mrf.mxu3 }
 0x6e7   : > { %v3424_v3 = vadd.f32 %v3423_v17, %v2706_v4  ;;  %v3866_v35 = vpop.f32.mrf.mxu1  ;;  %v3417_v4 = vadd.f32 %v10362_v19, %v10355_v6  ;;  %v3886_v17 = vpop.f32.mrf.mxu2 }
 0x6e9   : > { %v3625_v18 = vadd.f32 %v10014_v0, %v3424_v3  ;;  %v3619_v12 = vadd.f32 %v10014_v0, %v3417_v4 }
 0x6eb   : > { %v3817_v61 = vmax.f32 %v3625_v18, 0.0 }
 0x6ee   : > { %v3426_v13 = vpop.f32.mrf.mxu3 }
 0x6ef   : > { %v3427_v29 = vadd.f32 %v3426_v13, %v2709_v32  ;;  %v3419_v32 = vadd.f32 %v10369_v31, %v10359_v2  ;;  %v4149_v13 = vrot.slane %v4148_v51, 1  ;;  %v3906_v2 = vpop.f32.mrf.mxu0  ;;  %v3412_v31 = vadd.f32 %v10353_v49, %v10345_v14  ;;  %v3926_v19 = vpop.f32.mrf.mxu1 }
 0x6f1   : > { %v3627_v63 = vadd.f32 %v10014_v0, %v3427_v29  ;;  %v4150_v16 = vadd.f32 %v4149_v13, %v4148_v51  ;;  %v3621_v25 = vadd.f32 %v10014_v0, %v3419_v32  ;;  %v3615_v22 = vadd.f32 %v10014_v0, %v3412_v31  ;;  %v4231_v31 = vld [vmem:[%s12592_s14 + $0x10] sm:$0xff] }
 0x6f3   : > { %v3819_v11 = vmax.f32 %v3627_v63, 0.0  ;;  %7636 = vrcp.f32 %v4150_v16  ;;  %v3813_v38 = vmax.f32 %v3621_v25, 0.0  ;;  %vm4156_vm7 = vweird.f32 %v4150_v16 }
 0x6f4   : > { %v4160_v44 = vand.u32 2147483647, %v4150_v16  ;;  %v3795_v63 = vmax.f32 %v3603_v5, 0.0  ;;  %v7466_v5 = vld [vmem:[%s12108_s17 + $0x60] sm:$0xff] }
 0x6f6   : > { %v3428_v23 = vpop.f32.mrf.mxu3  ;;  %vm4161_vm10 = vcmp.eq.f32.partialorder %v4160_v44, 8.507059e+37  ;;  %v7474_v44 = vld [vmem:[%s12109_s18 + $0x20] sm:$0xff] }
 0x6f7   : > { %v3429_v60 = vadd.f32 %v3428_v23, %v2712_v1  ;;  %v3887_v1 = vadd.f32 %v3886_v17, %v3866_v35  ;;  %v3815_v23 = vmax.f32 %v3623_v43, 0.0 }
 0x6f9   : > { %v3629_v39 = vadd.f32 %v10014_v0, %v3429_v60  ;;  %v3907_v6 = vadd.f32 %v3906_v2, %v3887_v1  ;;  %v7637_v58 = vpop.eup %7636  ;;  %v4230_v2 = vld [vmem:[%s12592_s14 + $0x8] sm:$0xff] }
 0x6fa   : > { %v4152_v49 = vmul.f32 %v7637_v58, %v4150_v16  ;;  %vm4157_vm8 = vweird.f32 %v7637_v58 }
 0x6fb   : > { %v3821_v41 = vmax.f32 %v3629_v39, 0.0  ;;  %v3927_v14 = vadd.f32 %v3926_v19, %v3907_v6  ;;  %vm10408_vm9 = vmor %vm4156_vm7, %vm4157_vm8  ;;  %v3605_v39 = vadd.f32 %v10014_v0, %v10319_v53  ;;  %v3986_v53 = vpop.f32.mrf.mxu1  ;;  %v4303_v6 = vld [vmem:[%s12106_s15 + $0x10] sm:$0xff] }
 0x6fc   : > { %v4153_v33 = vsub.f32 1.0, %v4152_v49  ;;  %v7460_v49 = vld [vmem:[%s12108_s17 + $0x30] sm:$0xff] }
 0x6fd   : > { %v3797_v8 = vmax.f32 %v3605_v39, 0.0 }
 0x6fe   : > { %v3431_v27 = vpop.f32.mrf.mxu3  ;;  %v4154_v60 = vmul.f32 %v7637_v58, %v4153_v33  ;;  %v7458_v33 = vld [vmem:[%s12108_s17 + $0x20] sm:$0xff] }
 0x6ff   : > { %v3432_v20 = vadd.f32 %v3431_v27, %v2715_v56  ;;  %v3811_v56 = vmax.f32 %v3619_v12, 0.0  ;;  %v3946_v27 = vpop.f32.mrf.mxu2  ;;  %v4301_v12 = vld [vmem:[%s12106_s15] sm:$0xff] }
 0x701   : > { %v3631_v59 = vadd.f32 %v10014_v0, %v3432_v20  ;;  %v3807_v20 = vmax.f32 %v3615_v22, 0.0 }
 0x703   : > { %v3823_v48 = vmax.f32 %v3631_v59, 0.0  ;;  %v4155_v59 = vadd.f32 %v7637_v58, %v4154_v60  ;;  %v7472_v60 = vld [vmem:[%s12109_s18 + $0x10] sm:$0xff] }
 0x705   : > { %v4159_v52 = vsel %vm10408_vm9, %v7637_v58, %v4155_v59  ;;  %v7483_v59 = vld [vmem:[%s12109_s18 + $0x68] sm:$0xff] }
 0x706   : > { %v3433_v36 = vpop.f32.mrf.mxu3 }
 0x707   : > { %v3434_v47 = vadd.f32 %v3433_v36, %v2718_v26  ;;  %v4162_v26 = vand.u32 2147483648, %v4150_v16  ;;  %v3947_v36 = vadd.f32 %v3946_v27, %v3927_v14  ;;  %v7477_v14 = vld [vmem:[%s12109_s18 + $0x38] sm:$0xff]  ;;  %v7476_v27 = vld [vmem:[%s12109_s18 + $0x30] sm:$0xff] }
 0x709   : > { %v3633_v9 = vadd.f32 %v10014_v0, %v3434_v47  ;;  %v4163_v29 = vor.u32 1.1754944e-38, %v4162_v26  ;;  %v7475_v26 = vld [vmem:[%s12109_s18 + $0x28] sm:$0xff]  ;;  %v7484_v47 = vld [vmem:[%s12109_s18 + $0x70] sm:$0xff] }
 0x70b   : > { %v3825_v24 = vmax.f32 %v3633_v9, 0.0  ;;  %v3803_v9 = vmax.f32 %v3611_v46, 0.0  ;;  %v7457_v46 = vld [vmem:[%s12108_s17 + $0x18] sm:$0xff] }
 0x70d   : > { %4069 = vmatpush.msrb.mxu0 %v3825_v24  ;;  %v4164_v24 = vsel %vm4161_vm10, %v4163_v29, %v4159_v52  ;;  %v7455_v29 = vld [vmem:[%s12108_s17 + $0x8] sm:$0xff]  ;;  %v7469_v52 = vld [vmem:[%s12108_s17 + $0x78] sm:$0xff] }
 0x70e   : > { %v4165_v35 = vmul.f32 %v10373_v57, %v4164_v24  ;;  %v4166_v51 = vmul.f32 %v10375_v28, %v4164_v24  ;;  %v4046_v57 = vpop.f32.mrf.mxu1  ;;  %v4167_v28 = vld [vmem:[%s12591_s13] sm:$0xff]  ;;  %v7468_v24 = vld [vmem:[%s12108_s17 + $0x70] sm:$0xff] }
 0x70f   : > { %4070 = vmatpush.msrb.mxu0 %v3823_v48  ;;  %v4006_v48 = vpop.f32.mrf.mxu2 }
 0x710   : > { %v4007_v32 = vadd.f32 %v4006_v48, %v3986_v53  ;;  %v7463_v53 = vld [vmem:[%s12108_s17 + $0x48] sm:$0xff]  ;;  %v7481_v48 = vld [vmem:[%s12109_s18 + $0x58] sm:$0xff] }
 0x711   : > { %4071 = vmatpush.msrb.mxu0 %v3821_v41 }
 0x713   : > { %4072 = vmatpush.msrb.mxu0 %v3819_v11 }
 0x715   : > { %4073 = vmatpush.msrb.mxu0 %v3817_v61  ;;  %v3966_v37 = vpop.f32.mrf.mxu0  ;;  %v4229_v61 = vld [vmem:[%s12592_s14] sm:$0xff] }
 0x716   : > { %v3967_v3 = vadd.f32 %v3966_v37, %v3947_v36  ;;  %v7456_v36 = vld [vmem:[%s12108_s17 + $0x10] sm:$0xff]  ;;  %v7471_v37 = vld [vmem:[%s12109_s18 + $0x8] sm:$0xff] }
 0x717   : > { %4074 = vmatpush.msrb.mxu0 %v3815_v23  ;;  %v4302_v23 = vld [vmem:[%s12106_s15 + $0x8] sm:$0xff] }
 0x718   : > { %6901 = vmatpush.msk.msrb.mxu1 %vm2104_vm3, %v3967_v3 }
 0x719   : > { %4075 = vmatpush.msrb.mxu0 %v3813_v38  ;;  %6902 = vmatmul.msk.f32.vlgmr.msrb.gmra.mxu1 %vm1815_vm4, %v4165_v35  ;;  %v4168_v38 = vld [vmem:[%s12591_s13 + $0x8] sm:$0xff] }
 0x71b   : > { %4076 = vmatpush.msrb.mxu0 %v3811_v56  ;;  %v7461_v56 = vld [vmem:[%s12108_s17 + $0x38] sm:$0xff] }
 0x71d   : > { %4077 = vmatpush.msrb.mxu0 %v3809_v42  ;;  %v4026_v0 = vpop.f32.mrf.mxu0  ;;  %v7459_v42 = vld [vmem:[%s12108_s17 + $0x28] sm:$0xff] }
 0x71e   : > { %v4027_v18 = vadd.f32 %v4026_v0, %v4007_v32  ;;  %v7143_v32 = vld [vmem:[%s12114_s23 + $0x70] sm:$0xf]  ;;  %v7525_v0 = vld [vmem:[%s12114_s23 + $0x74] sm:$0xf0] }
 0x71f   : > { %4078 = vmatpush.msrb.mxu0 %v3807_v20  ;;  %v7473_v20 = vld [vmem:[%s12109_s18 + $0x18] sm:$0xff] }
 0x720   : > { %v4047_v13 = vadd.f32 %v4046_v57, %v4027_v18  ;;  %v7462_v57 = vld [vmem:[%s12108_s17 + $0x40] sm:$0xff]  ;;  %v10590_v18 = vor.u32 %v7525_v0, %v7143_v32  ;;  %v7161_v32 = vld [vmem:[%s12114_s23 + $0x98] sm:$0xf0] }
 0x721   : > { %4079 = vmatpush.msrb.mxu0 %v3805_v54  ;;  %6903 = vmatmul.msk.f32.gmra.mxu1 %vm1815_vm4, %v4166_v51 }
 0x723   : > { %4080 = vmatpush.msrb.mxu0 %v3803_v9  ;;  %v7470_v9 = vld [vmem:[%s12109_s18] sm:$0xff] }
 0x725   : > { %4081 = vmatpush.msrb.mxu0 %v3801_v21 }
 0x727   : > { %4082 = vmatpush.msrb.mxu0 %v3799_v50  ;;  %v7465_v50 = vld [vmem:[%s12108_s17 + $0x58] sm:$0xff] }
 0x729   : > { %4083 = vmatpush.msrb.mxu0 %v3797_v8 }
 0x72b   : > { %4084 = vmatpush.msrb.mxu0 %v3795_v63  ;;  %v7464_v63 = vld [vmem:[%s12108_s17 + $0x50] sm:$0xff] }
 0x72c   : > { %4085 = vmatmul.f32.vlgmr.msrb.gmra.mxu0 %v10338_v55  ;;  %v4169_v55 = vld [vmem:[%s12591_s13 + $0x10] sm:$0x1] }
 0x72f   : > { %v4066_v4 = vpop.f32.mrf.mxu2 }
 0x730   : > { %v4067_v17 = vadd.f32 %v4066_v4, %v4047_v13  ;;  %v10596_v4 = vld [vmem:[%s12109_s18 + $0x50] sm:$0xff] }
 0x796   : > { %v4200_v41 = vpop.f32.mrf.mxu1 }
 0x797   : > { %v10433_v1 = vadd.f32 %v4200_v41, %v4167_v28 }
 0x79e   : > { %v4203_v16 = vpop.f32.mrf.mxu1 }
 0x79f   : > { %v10435_v25 = vadd.f32 %v4203_v16, %v4169_v55  ;;  %v10610_v55 = vld [vmem:[%s12109_s18 + $0x48] sm:$0xff]  ;;  %v7521_v16 = vld [vmem:[%s12114_s23 + $0x54] sm:$0xf0] }
 0x7a1   : > { %6907 = vmatpush.msk.msra.mxu0 %vm4242_vm11, %v10435_v25 }
 0x7a3   : > { %4264 = vmatpush.msra.mxu0 %v10433_v1 }
 0x7a4   : > { %6908 = vmatmul.msk.f32.vlgmr.msra.gmra.mxu0 %vm4232_vm12, %v4229_v61 }
 0x7a9   : > { %v4086_v43 = vpop.f32.mrf.mxu0 }
 0x7aa   : > { %v4087_v11 = vadd.f32 %v4086_v43, %v4067_v17  ;;  %v7135_v17 = vld [vmem:[%s12114_s23 + $0x60] sm:$0xf]  ;;  %v7523_v43 = vld [vmem:[%s12114_s23 + $0x64] sm:$0xf0] }
 0x7ab   : > { %v10605_v28 = vor.u32 %v7523_v43, %v7135_v17  ;;  %v7153_v17 = vld [vmem:[%s12114_s23 + $0x88] sm:$0xf0] }
 0x7ac   : > { %6904 = vmatpush.msk.msra.mxu2 %vm2104_vm3, %v4087_v11  ;;  %v7127_v11 = vld [vmem:[%s12114_s23 + $0x50] sm:$0xf]  ;;  %vm6370_vm3 = vcmask 1043456  }
 0x7ad   : > { %6905 = vmatmul.msk.f32.vlgmr.msra.gmra.mxu2 %vm1815_vm4, %v4165_v35  ;;  %v7467_v35 = vld [vmem:[%s12108_s17 + $0x68] sm:$0xff] }
 0x7ae   : > { %7578 = vmatpush.msk.msrb.mxu2 %vm4242_vm11, %v10435_v25 }
 0x7b0   : > { %7579 = vmatpush.msrb.mxu2 %v10433_v1 }
 0x7b2   : > { %6915 = vmatpush.msk.msra.mxu2 %vm4242_vm11, %v10435_v25 }
 0x7b4   : > { %4328 = vmatpush.msra.mxu2 %v10433_v1 }
 0x7b5   : > { %6906 = vmatmul.msk.f32.gmra.mxu2 %vm1815_vm4, %v4166_v51  ;;  %v10572_v51 = vld [vmem:[%s12109_s18 + $0x60] sm:$0xff] }
 0x7bd   : > { %6909 = vmatmul.msk.f32.vlgmr.msrb.gmra.mxu2 %vm4232_vm12, %v4230_v2 }
 0x7be   : > { %4551 = vmatpush.bf16.msrb.mxu2 %v7485_v40 }
 0x7c2   : > { %4552 = vmatpush.bf16.msrb.mxu2 %v7484_v47  ;;  %v7538_v47 = vld [vmem:[%s12114_s23 + $0xe4] sm:$0xf] }
 0x7c5   : > { %6910 = vmatmul.msk.f32.gmra.mxu2 %vm4232_vm12, %v4231_v31 }
 0x7c6   : > { %4553 = vmatpush.bf16.msrb.mxu2 %v7483_v59  ;;  %v7536_v59 = vld [vmem:[%s12114_s23 + $0xd4] sm:$0xf] }
 0x7ca   : > { %4554 = vmatpush.bf16.msrb.mxu2 %v10572_v51 }
 0x7cd   : > { %6916 = vmatmul.msk.f32.vlgmr.msra.gmra.mxu2 %vm4232_vm12, %v4301_v12 }
 0x7ce   : > { %4555 = vmatpush.bf16.msrb.mxu2 %v7481_v48 }
 0x7d2   : > { %4556 = vmatpush.bf16.msrb.mxu2 %v10596_v4 }
 0x7d5   : > { %6917 = vmatmul.msk.f32.gmra.mxu2 %vm4232_vm12, %v4302_v23 }
 0x7d6   : > { %4557 = vmatpush.bf16.msrb.mxu2 %v10610_v55 }
 0x7dd   : > { %6918 = vmatmul.msk.f32.gmra.mxu2 %vm4232_vm12, %v4303_v6 }
 0x821   : > { %v4266_v30 = vpop.f32.mrf.mxu0 }
 0x830   : > { %v4223_v19 = vpop.f32.mrf.mxu2 }
 0x831   : > { %v10480_v22 = vadd.f32 %v4223_v19, %v4168_v38  ;;  %v7517_v19 = vld [vmem:[%s12114_s23 + $0x34] sm:$0xf0]  ;;  %v7103_v38 = vld [vmem:[%s12114_s23 + $0x20] sm:$0xf] }
 0x838   : > { %v4226_v58 = vpop.f32.mrf.mxu2 }
 0x839   : > { %v10478_v7 = vadd.f32 %v4226_v58, %v4170_v34  ;;  %v7515_v58 = vld [vmem:[%s12114_s23 + $0x24] sm:$0xf0] }
 0x83b   : > { %6911 = vmatpush.msk.msra.mxu1 %vm4242_vm11, %v10478_v7  ;;  %6919 = vmatpush.msk.msrb.mxu0 %vm4242_vm11, %v10478_v7 }
 0x83d   : > { %4290 = vmatpush.msra.mxu1 %v10480_v22  ;;  %4354 = vmatpush.msrb.mxu0 %v10480_v22 }
 0x83e   : > { %6912 = vmatmul.msk.f32.vlgmr.msra.gmra.mxu1 %vm4232_vm12, %v4229_v61  ;;  %6920 = vmatmul.msk.f32.vlgmr.msrb.gmra.mxu0 %vm4232_vm12, %v4301_v12  ;;  %v10619_v61 = vor.u32 %v7521_v16, %v7127_v11  ;;  %v7519_v12 = vld [vmem:[%s12114_s23 + $0x44] sm:$0xf0]  ;;  %v10748_v16 = vpack.c.bf16 %v10435_v25, %v10433_v1 }
 0x83f   : > { %4665 = vmatpush.bf16.msra.mxu0 %v7461_v56  ;;  %4533 = vmatpush.bf16.msrb.mxu1 %v7477_v14  ;;  %v10653_v56 = vor.u32 %v7515_v58, %v7103_v38  ;;  %v7095_v14 = vld [vmem:[%s12114_s23 + $0x10] sm:$0xf] }
 0x840   : > { %v4269_v15 = vpop.f32.mrf.mxu2 }
 0x841   : > { %v4365_v39 = vpack.c.bf16 %v4269_v15, %v4266_v30  ;;  %v7087_v15 = vld [vmem:[%s12114_s23] sm:$0xf]  ;;  %v7193_v30 = vld [vmem:[%s12114_s23 + $0xd8] sm:$0xf0] }
 0x843   : > { %4666 = vmatpush.bf16.msra.mxu0 %v7460_v49  ;;  %4534 = vmatpush.bf16.msrb.mxu1 %v7476_v27  ;;  %v7513_v49 = vld [vmem:[%s12114_s23 + $0x14] sm:$0xf0] }
 0x844   : > { %v10662_v27 = vor.u32 %v7513_v49, %v7095_v14 }
 0x846   : > { %6913 = vmatmul.msk.f32.gmra.mxu1 %vm4232_vm12, %v4230_v2  ;;  %6921 = vmatmul.msk.f32.gmra.mxu0 %vm4232_vm12, %v4302_v23  ;;  %v10626_v2 = vld [vmem:[%s12109_s18 + $0x40] sm:$0xff]  ;;  %12593 = vst [vmem:[#allocation87_spill] sm:$0xff] %v10662_v27 }
 0x847   : > { %4667 = vmatpush.bf16.msra.mxu0 %v7459_v42  ;;  %4535 = vmatpush.bf16.msrb.mxu1 %v7475_v26  ;;  %v7511_v42 = vld [vmem:[%s12114_s23 + $0x4] sm:$0xf0] }
 0x848   : > { %v4272_v10 = vpop.f32.mrf.mxu2  ;;  %4558 = vmatpush.bf16.msrb.mxu2 %v10626_v2  ;;  %v10671_v26 = vor.u32 %v7511_v42, %v7087_v15  ;;  %v10769_v15 = vld [vmem:[%s12111_s20 + $0x30] sm:$0xff]  ;;  %v10775_v42 = vld [vmem:[%s12111_s20 + $0x28] sm:$0xff] }
 0x849   : > { %v4367_v8 = vpack.c.bf16 %v4272_v10, %v4272_v10  ;;  %v7540_v10 = vld [vmem:[%s12114_s23 + $0xf4] sm:$0xf] }
 0x84a   : > { %12594 = vst [vmem:[#allocation21_spill] sm:$0xff] %v10671_v26 }
 0x84b   : > { %4668 = vmatpush.bf16.msra.mxu0 %v7458_v33  ;;  %4536 = vmatpush.bf16.msrb.mxu1 %v7474_v44 }
 0x84e   : > { %6914 = vmatmul.msk.f32.gmra.mxu1 %vm4232_vm12, %v4231_v31  ;;  %6922 = vmatmul.msk.f32.gmra.mxu0 %vm4232_vm12, %v4303_v6  ;;  %v7119_v31 = vld [vmem:[%s12114_s23 + $0x40] sm:$0xf]  ;;  %v7111_v6 = vld [vmem:[%s12114_s23 + $0x30] sm:$0xf] }
 0x84f   : > { %4669 = vmatpush.bf16.msra.mxu0 %v7457_v46  ;;  %4537 = vmatpush.bf16.msrb.mxu1 %v7473_v20  ;;  %v10635_v23 = vor.u32 %v7519_v12, %v7119_v31  ;;  %v10644_v34 = vor.u32 %v7517_v19, %v7111_v6  ;;  %v7209_v46 = vld [vmem:[%s12114_s23 + $0xf8] sm:$0xf0]  ;;  %v10755_v6 = vpack.c.bf16 %v10478_v7, %v10480_v22 }
 0x850   : > { %v4330_v54 = vpop.f32.mrf.mxu2  ;;  %v10761_v19 = vld [vmem:[%s12111_s20 + $0x38] sm:$0xff] }
 0x851   : > { %4781 = vmatpush.bf16.msra.mxu2 %v10761_v19 }
 0x853   : > { %4670 = vmatpush.bf16.msra.mxu0 %v7456_v36  ;;  %4538 = vmatpush.bf16.msrb.mxu1 %v7472_v60  ;;  %v10680_v60 = vor.u32 %v7540_v10, %v7209_v46  ;;  %v10793_v10 = vld [vmem:[%s12111_s20 + $0x10] sm:$0xff]  ;;  %v10799_v46 = vld [vmem:[%s12111_s20 + $0x8] sm:$0xff] }
 0x855   : > { %12595 = vst [vmem:[#allocation22_spill] sm:$0xff] %v10680_v60  ;;  %4782 = vmatpush.bf16.msra.mxu2 %v10769_v15 }
 0x857   : > { %4671 = vmatpush.bf16.msra.mxu0 %v7455_v29  ;;  %4539 = vmatpush.bf16.msrb.mxu1 %v7471_v37  ;;  %v7201_v29 = vld [vmem:[%s12114_s23 + $0xe8] sm:$0xf0] }
 0x858   : > { %v4333_v3 = vpop.f32.mrf.mxu2  ;;  %v10689_v37 = vor.u32 %v7538_v47, %v7201_v29  ;;  %v7199_v47 = vld [vmem:[%s12114_s23 + $0xe0] sm:$0xf]  ;;  %v7539_v29 = vld [vmem:[%s12114_s23 + $0xe4] sm:$0xf0] }
 0x859   : > { %v4401_v21 = vpack.c.bf16 %v4333_v3, %v4330_v54  ;;  %v7185_v3 = vld [vmem:[%s12114_s23 + $0xc8] sm:$0xf0]  ;;  %4783 = vmatpush.bf16.msra.mxu2 %v10775_v42 }
 0x85a   : > { %12596 = vst [vmem:[#allocation23_spill] sm:$0xff] %v10689_v37 }
 0x85b   : > { %4672 = vmatpush.bf16.msra.mxu0 %v7454_v62  ;;  %4540 = vmatpush.bf16.msrb.mxu1 %v7470_v9  ;;  %v10698_v62 = vor.u32 %v7536_v59, %v7193_v30  ;;  %v7534_v9 = vld [vmem:[%s12114_s23 + $0xc4] sm:$0xf]  ;;  %v10823_v59 = vor.u32 %v7539_v29, %v7199_v47  ;;  %v7159_v29 = vld [vmem:[%s12114_s23 + $0x90] sm:$0xf] }
 0x85d   : > { %12597 = vst [vmem:[#allocation24_spill] sm:$0xff] %v10698_v62 }
 0x85e   : > { %4673 = vmatmul.bf16.vlgmr.msra.gmra.mxu0 %v4365_v39  ;;  %4541 = vmatmul.bf16.vlgmr.msrb.gmra.mxu1 %v4401_v21  ;;  %v10707_v21 = vor.u32 %v7534_v9, %v7185_v3  ;;  %12604 = vst [vmem:[#allocation60_spill] sm:$0xff] %v10823_v59  ;;  %v7191_v9 = vld [vmem:[%s12114_s23 + $0xd0] sm:$0xf]  ;;  %v7537_v3 = vld [vmem:[%s12114_s23 + $0xd4] sm:$0xf0] }
 0x85f   : > { %4683 = vmatpush.bf16.msra.mxu1 %v7469_v52 }
 0x860   : > { %v4336_v41 = vpop.f32.mrf.mxu2  ;;  %12598 = vst [vmem:[#allocation25_spill] sm:$0xff] %v10707_v21 }
 0x861   : > { %v4403_v13 = vpack.c.bf16 %v4336_v41, %v4336_v41 }
 0x863   : > { %4684 = vmatpush.bf16.msra.mxu1 %v7468_v24  ;;  %v7532_v24 = vld [vmem:[%s12114_s23 + $0xb4] sm:$0xf] }
 0x867   : > { %4685 = vmatpush.bf16.msra.mxu1 %v7467_v35  ;;  %v7177_v35 = vld [vmem:[%s12114_s23 + $0xb8] sm:$0xf0] }
 0x86b   : > { %4686 = vmatpush.bf16.msra.mxu1 %v7466_v5 }
 0x86e   : > { %4678 = vmatmul.bf16.gmra.mxu0 %v4367_v8  ;;  %4546 = vmatmul.bf16.gmra.mxu1 %v4403_v13  ;;  %v10716_v8 = vor.u32 %v7532_v24, %v7177_v35  ;;  %v7526_v13 = vld [vmem:[%s12114_s23 + $0x84] sm:$0xf]  ;;  %v7183_v24 = vld [vmem:[%s12114_s23 + $0xc0] sm:$0xf]  ;;  %v7535_v35 = vld [vmem:[%s12114_s23 + $0xc4] sm:$0xf0] }
 0x86f   : > { %4687 = vmatpush.bf16.msra.mxu1 %v7465_v50  ;;  %v10743_v43 = vor.u32 %v7526_v13, %v7153_v17  ;;  %v7167_v17 = vld [vmem:[%s12114_s23 + $0xa0] sm:$0xf] }
 0x870   : > { %12599 = vst [vmem:[#allocation26_spill] sm:$0xff] %v10716_v8 }
 0x871   : > { %12602 = vst [vmem:[#allocation58_spill] sm:$0xff] %v10743_v43 }
 0x873   : > { %4688 = vmatpush.bf16.msra.mxu1 %v7464_v63  ;;  %v7530_v63 = vld [vmem:[%s12114_s23 + $0xa4] sm:$0xf] }
 0x877   : > { %4689 = vmatpush.bf16.msra.mxu1 %v7463_v53  ;;  %v7169_v53 = vld [vmem:[%s12114_s23 + $0xa8] sm:$0xf0] }
 0x878   : > { %v10725_v48 = vor.u32 %v7530_v63, %v7169_v53  ;;  %v7175_v53 = vld [vmem:[%s12114_s23 + $0xb0] sm:$0xf] }
 0x87a   : > { %12600 = vst [vmem:[#allocation27_spill] sm:$0xff] %v10725_v48 }
 0x87b   : > { %4690 = vmatpush.bf16.msra.mxu1 %v7462_v57  ;;  %v7528_v57 = vld [vmem:[%s12114_s23 + $0x94] sm:$0xf] }
 0x87c   : > { %v10734_v0 = vor.u32 %v7528_v57, %v7161_v32  ;;  %v7533_v57 = vld [vmem:[%s12114_s23 + $0xb4] sm:$0xf0] }
 0x87d   : > { %v10850_v13 = vor.u32 %v7533_v57, %v7175_v53 }
 0x87e   : > { %12601 = vst [vmem:[#allocation28_spill] sm:$0xff] %v10734_v0 }
 0x87f   : > { %5042 = vmatpush.bf16.msrb.mxu1 %v10590_v18  ;;  %12607 = vst [vmem:[#allocation29_spill] sm:$0xff] %v10850_v13 }
 0x883   : > { %5043 = vmatpush.bf16.msrb.mxu1 %v10605_v28 }
 0x887   : > { %5044 = vmatpush.bf16.msrb.mxu1 %v10619_v61 }
 0x88b   : > { %5045 = vmatpush.bf16.msrb.mxu1 %v10635_v23 }
 0x88f   : > { %5046 = vmatpush.bf16.msrb.mxu1 %v10644_v34 }
 0x893   : > { %5047 = vmatpush.bf16.msrb.mxu1 %v10653_v56 }
 0x897   : > { %5048 = vmatpush.bf16.msrb.mxu1 %v10662_v27 }
 0x89b   : > { %5049 = vmatpush.bf16.msrb.mxu1 %v10671_v26 }
 0x8bb   : > { %v4292_v33 = vpop.f32.mrf.mxu1  ;;  %v4356_v44 = vpop.f32.mrf.mxu0 }
 0x8c3   : > { %v4295_v20 = vpop.f32.mrf.mxu1  ;;  %v4359_v36 = vpop.f32.mrf.mxu0 }
 0x8c4   : > { %v4366_v40 = vpack.c.bf16 %v4295_v20, %v4292_v33  ;;  %v4402_v54 = vpack.c.bf16 %v4359_v36, %v4356_v44  ;;  %v10781_v33 = vld [vmem:[%s12111_s20 + $0x20] sm:$0xff]  ;;  %v10787_v44 = vld [vmem:[%s12111_s20 + $0x18] sm:$0xff]  ;;  %v7207_v36 = vld [vmem:[%s12114_s23 + $0xf0] sm:$0xf] }
 0x8c5   : > { %4784 = vmatpush.bf16.msra.mxu2 %v10781_v33  ;;  %v10805_v20 = vld [vmem:[%s12111_s20] sm:$0xff] }
 0x8c6   : > { %4559 = vmatmul.bf16.vlgmr.msrb.gmra.mxu2 %v4402_v54  ;;  %4691 = vmatmul.bf16.vlgmr.msra.gmra.mxu1 %v4366_v40  ;;  %v7541_v40 = vld [vmem:[%s12114_s23 + $0xf4] sm:$0xf0] }
 0x8c7   : > { %5084 = vmatpush.bf16.msra.mxu1 %v10680_v60  ;;  %v10814_v54 = vor.u32 %v7541_v40, %v7207_v36 }
 0x8c9   : > { %4785 = vmatpush.bf16.msra.mxu2 %v10787_v44  ;;  %12603 = vst [vmem:[#allocation57_spill] sm:$0xff] %v10814_v54 }
 0x8cb   : > { %5085 = vmatpush.bf16.msra.mxu1 %v10689_v37  ;;  %v4298_v52 = vpop.f32.mrf.mxu1  ;;  %v4362_v39 = vpop.f32.mrf.mxu0 }
 0x8cc   : > { %v4368_v5 = vpack.c.bf16 %v4298_v52, %v4298_v52  ;;  %v4404_v50 = vpack.c.bf16 %v4362_v39, %v4362_v39  ;;  %v10832_v52 = vor.u32 %v7537_v3, %v7191_v9  ;;  %v7529_v9 = vld [vmem:[%s12114_s23 + $0x94] sm:$0xf0] }
 0x8cd   : > { %4786 = vmatpush.bf16.msra.mxu2 %v10793_v10 }
 0x8ce   : > { %12605 = vst [vmem:[#allocation55_spill] sm:$0xff] %v10832_v52 }
 0x8cf   : > { %5086 = vmatpush.bf16.msra.mxu1 %v10698_v62 }
 0x8d1   : > { %4787 = vmatpush.bf16.msra.mxu2 %v10799_v46 }
 0x8d3   : > { %5087 = vmatpush.bf16.msra.mxu1 %v10707_v21 }
 0x8d5   : > { %4788 = vmatpush.bf16.msra.mxu2 %v10805_v20 }
 0x8d6   : > { %4564 = vmatmul.bf16.gmra.mxu2 %v4404_v50  ;;  %4696 = vmatmul.bf16.gmra.mxu1 %v4368_v5  ;;  %v10841_v50 = vor.u32 %v7535_v35, %v7183_v24 }
 0x8d7   : > { %5088 = vmatpush.bf16.msra.mxu1 %v10716_v8 }
 0x8d8   : > { %12606 = vst [vmem:[#allocation54_spill] sm:$0xff] %v10841_v50 }
 0x8d9   : > { %5056 = vmatpush.bf16.msrb.mxu2 %v10814_v54 }
 0x8db   : > { %5089 = vmatpush.bf16.msra.mxu1 %v10725_v48  ;;  %v4674_v41 = vpop.f32.mrf.mxu0  ;;  %v4542_v38 = vpop.f32.mrf.mxu1 }
 0x8dd   : > { %5057 = vmatpush.bf16.msrb.mxu2 %v10823_v59 }
 0x8df   : > { %5090 = vmatpush.bf16.msra.mxu1 %v10734_v0 }
 0x8e1   : > { %5058 = vmatpush.bf16.msrb.mxu2 %v10832_v52 }
 0x8e3   : > { %5091 = vmatpush.bf16.msra.mxu1 %v10743_v43  ;;  %v4676_v11 = vpop.f32.mrf.mxu0  ;;  %v4544_v58 = vpop.f32.mrf.mxu1 }
 0x8e5   : > { %5059 = vmatpush.bf16.msrb.mxu2 %v10841_v50 }
 0x8e6   : > { %5050 = vmatmul.bf16.vlgmr.msrb.gmra.mxu1 %v10748_v16 }
 0x8e9   : > { %5060 = vmatpush.bf16.msrb.mxu2 %v10850_v13 }
 0x8eb   : > { %v10751_v31 = vpop.f32.mrf.mxu0  ;;  %v10764_v14 = vpop.f32.mrf.mxu1 }
 0x8f3   : > { %v4681_v12 = vpop.f32.mrf.mxu0  ;;  %v4549_v49 = vpop.f32.mrf.mxu1 }
 0x8f4   : > { %v7531_v12 = vld [vmem:[%s12114_s23 + $0xa4] sm:$0xf0] }
 0x8f6   : > { %5092 = vmatmul.bf16.vlgmr.msra.gmra.mxu1 %v10755_v6 }
 0x943   : > { %v4692_v30 = vpop.f32.mrf.mxu1 }
 0x949   : > { %v4560_v39 = vpop.f32.mrf.mxu2 }
 0x94a   : > { %v4561_v5 = vadd.f32 %v4560_v39, %v4542_v38  ;;  %v10859_v38 = vor.u32 %v7531_v12, %v7167_v17  ;;  %v10873_v39 = vor.u32 %v7529_v9, %v7159_v29 }
 0x94b   : > { %v4694_v63 = vpop.f32.mrf.mxu1 }
 0x94c   : > { %v4675_v32 = vadd.f32 %v4674_v41, %v4561_v5  ;;  %12608 = vst [vmem:[#allocation52_spill] sm:$0xff] %v10859_v38  ;;  %v10864_v41 = vld [vmem:[%s12110_s19] ss:$0 sm:$0xff]  ;;  %5061 = vmatpush.bf16.msrb.mxu2 %v10859_v38 }
 0x94d   : > { %12609 = vst [vmem:[#allocation51_spill] sm:$0xff] %v10864_v41 }
 0x94e   : > { %v4693_v36 = vadd.f32 %v4692_v30, %v4675_v32  ;;  %12610 = vst [vmem:[#allocation49_spill] sm:$0xff] %v10873_v39  ;;  %v7151_v30 = vld [vmem:[%s12114_s23 + $0x80] sm:$0xf] }
 0x950   : > { %v4705_v24 = vadd.f32 %v10864_v41, %v4693_v36  ;;  %5062 = vmatpush.bf16.msrb.mxu2 %v10873_v39 }
 0x951   : > { %v4562_v49 = vpop.f32.mrf.mxu2 }
 0x952   : > { %v4563_v40 = vadd.f32 %v4562_v49, %v4544_v58  ;;  %v7527_v58 = vld [vmem:[%s12114_s23 + $0x84] sm:$0xf0]  ;;  %v4708_v57 = vmax.f32 %v4705_v24, 0.0 }
 0x953   : > { %v4697_v47 = vpop.f32.mrf.mxu1 }
 0x954   : > { %v4677_v3 = vadd.f32 %v4676_v11, %v4563_v40  ;;  %v10884_v11 = vor.u32 %v7527_v58, %v7151_v30 }
 0x956   : > { %v4695_v35 = vadd.f32 %v4694_v63, %v4677_v3  ;;  %12611 = vst [vmem:[#allocation48_spill] sm:$0xff] %v10884_v11  ;;  %5063 = vmatpush.bf16.msrb.mxu2 %v10884_v11 }
 0x958   : > { %v4706_v5 = vadd.f32 %v10864_v41, %v4695_v35  ;;  %v7145_v35 = vld [vmem:[%s12114_s23 + $0x78] sm:$0xf0] }
 0x959   : > { %v4565_v53 = vpop.f32.mrf.mxu2 }
 0x95a   : > { %v4709_v32 = vmax.f32 %v4706_v5, 0.0  ;;  %v4566_v17 = vadd.f32 %v4565_v53, %v10764_v14  ;;  %v10894_v14 = vld [vmem:[%s12112_s21] ss:$0 sm:$0xff] }
 0x95b   : > { %v4699_v12 = vpop.f32.mrf.mxu1  ;;  %12612 = vst [vmem:[#allocation46_spill] sm:$0xff] %v10894_v14  ;;  %v10908_v53 = vld [vmem:[%s12107_s16] sm:$0xff] }
 0x95c   : > { %v4711_v49 = vpack.c.bf16 %v4709_v32, %v4708_v57  ;;  %v4680_v40 = vadd.f32 %v10751_v31, %v4566_v17  ;;  %12613 = vst [vmem:[#allocation45_spill] sm:$0xff] %v10908_v53  ;;  %v7522_v32 = vld [vmem:[%s12114_s23 + $0x64] sm:$0xf]  ;;  %v7137_v17 = vld [vmem:[%s12114_s23 + $0x68] sm:$0xf0] }
 0x95e   : > { %4789 = vmatmul.bf16.vlgmr.msra.gmra.mxu2 %v4711_v49  ;;  %v4698_v36 = vadd.f32 %v4697_v47, %v4680_v40  ;;  %v7524_v47 = vld [vmem:[%s12114_s23 + $0x74] sm:$0xf]  ;;  %v7271_v49 = vld [vmem:[%s12113_s22 + $0x70] sm:$0xf]  ;;  %v7509_v40 = vld [vmem:[%s12113_s22 + $0x74] sm:$0xf0] }
 0x95f   : > { %v10910_v57 = vor.u32 %v7524_v47, %v7145_v35  ;;  %v10956_v47 = vld [vmem:[%s12107_s16 + $0x8] sm:$0x1] }
 0x960   : > { %v4707_v29 = vadd.f32 %v10864_v41, %v4698_v36  ;;  %v10927_v36 = vor.u32 %v7522_v32, %v7137_v17  ;;  %12618 = vst [vmem:[#allocation38_spill] sm:$0xff] %v10956_v47  ;;  %v7247_v17 = vld [vmem:[%s12113_s22 + $0x40] sm:$0xf]  ;;  %v7560_v41 = vld [vmem:[%s12116_s25 + $0x94] sm:$0xf] }
 0x961   : > { %v4567_v63 = vpop.f32.mrf.mxu2  ;;  %12614 = vst [vmem:[#allocation43_spill] sm:$0xff] %v10910_v57 }
 0x962   : > { %v4710_v9 = vmax.f32 %v4707_v29, 0.0  ;;  %12615 = vst [vmem:[#allocation42_spill] sm:$0xff] %v10927_v36  ;;  %v10929_v63 = vor.u32 %v7509_v40, %v7271_v49  ;;  %v7263_v29 = vld [vmem:[%s12113_s22 + $0x60] sm:$0xf]  ;;  %v7516_v40 = vld [vmem:[%s12114_s23 + $0x34] sm:$0xf] }
 0x964   : > { %v4712_v3 = vpack.c.bf16 %v4710_v9, %v4710_v9  ;;  %12616 = vst [vmem:[#allocation30_spill] sm:$0xff] %v10929_v63  ;;  %v7507_v9 = vld [vmem:[%s12113_s22 + $0x64] sm:$0xf0]  ;;  %5178 = vmatpush.bf16.msra.mxu2 %v10929_v63  ;;  %v7562_v63 = vld [vmem:[%s12116_s25 + $0xa4] sm:$0xf] }
 0x96e   : > { %4794 = vmatmul.bf16.gmra.mxu2 %v4712_v3  ;;  %v7520_v3 = vld [vmem:[%s12114_s23 + $0x54] sm:$0xf] }
 0x97e   : > { %5064 = vmatmul.bf16.vlgmr.msrb.gmra.mxu2 %v10755_v6 }
 0x9e1   : > { %v4790_v30 = vpop.f32.mrf.mxu2 }
 0x9e2   : > { %v4791_v5 = vadd.f32 %v10894_v14, %v4790_v30  ;;  %v7129_v30 = vld [vmem:[%s12114_s23 + $0x58] sm:$0xf0] }
 0x9e3   : > { %v10958_v35 = vor.u32 %v7520_v3, %v7129_v30  ;;  %v7239_v3 = vld [vmem:[%s12113_s22 + $0x30] sm:$0xf]  ;;  %v7501_v30 = vld [vmem:[%s12113_s22 + $0x34] sm:$0xf0] }
 0x9e5   : > { %12619 = vst [vmem:[#allocation36_spill] sm:$0xff] %v10958_v35 }
 0x9e9   : > { %v4792_v58 = vpop.f32.mrf.mxu2 }
 0x9ea   : > { %v4793_v6 = vadd.f32 %v10894_v14, %v4792_v58  ;;  %v10944_v58 = vor.u32 %v7507_v9, %v7263_v29  ;;  %v7113_v29 = vld [vmem:[%s12114_s23 + $0x38] sm:$0xf0] }
 0x9ec   : > { %12617 = vst [vmem:[#allocation40_spill] sm:$0xff] %v10944_v58  ;;  %5179 = vmatpush.bf16.msra.mxu2 %v10944_v58  ;;  %v7564_v58 = vld [vmem:[%s12116_s25 + $0xb4] sm:$0xf] }
 0x9f1   : > { %v4795_v31 = vpop.f32.mrf.mxu2 }
 0x9f2   : > { %v4796_v24 = vadd.f32 %v10894_v14, %v4795_v31  ;;  %v7255_v31 = vld [vmem:[%s12113_s22 + $0x50] sm:$0xf]  ;;  %v7551_v14 = vld [vmem:[%s12116_s25 + $0x44] sm:$0xf0] }
 0x9f4   : > { %4821 = vmatpush.msrb.mxu0 %v4796_v24  ;;  %v7505_v24 = vld [vmem:[%s12113_s22 + $0x54] sm:$0xf0] }
 0x9f5   : > { %v10967_v32 = vor.u32 %v7505_v24, %v7255_v31  ;;  %v10996_v31 = vor.u32 %v7516_v40, %v7113_v29  ;;  %v7514_v24 = vld [vmem:[%s12114_s23 + $0x24] sm:$0xf]  ;;  %v7097_v40 = vld [vmem:[%s12114_s23 + $0x18] sm:$0xf0] }
 0x9f6   : > { %4822 = vmatpush.msrb.mxu0 %v4793_v6  ;;  %v7518_v6 = vld [vmem:[%s12114_s23 + $0x44] sm:$0xf] }
 0x9f7   : > { %12620 = vst [vmem:[#allocation31_spill] sm:$0xff] %v10967_v32  ;;  %5180 = vmatpush.bf16.msra.mxu2 %v10967_v32  ;;  %v7542_v32 = vld [vmem:[%s12116_s25 + $0x4] sm:$0xf] }
 0x9f8   : > { %4823 = vmatpush.msrb.mxu0 %v4791_v5  ;;  %v7121_v5 = vld [vmem:[%s12114_s23 + $0x48] sm:$0xf0]  ;;  %12623 = vst [vmem:[#allocation34_spill] sm:$0xff] %v10996_v31 }
 0x9f9   : > { %v4797_v12 = vpop.f32.mrf.mxu2  ;;  %7083 = vmatmul.msk.f32.vlgmr.msrb.gmra.mxu0 %vm4801_vm13, %v10908_v53  ;;  %v10978_v49 = vor.u32 %v7518_v6, %v7121_v5  ;;  %v7105_v6 = vld [vmem:[%s12114_s23 + $0x28] sm:$0xf0]  ;;  %v11005_v5 = vor.u32 %v7501_v30, %v7239_v3  ;;  %v7510_v3 = vld [vmem:[%s12114_s23 + $0x4] sm:$0xf]  ;;  %v7311_v53 = vld [vmem:[%s12116_s25 + $0x40] sm:$0xf] }
 0x9fa   : > { %5070 = vmatpush.bf16.msra.mxu0 %v10910_v57  ;;  %v7503_v12 = vld [vmem:[%s12113_s22 + $0x44] sm:$0xf0]  ;;  %v7089_v30 = vld [vmem:[%s12114_s23 + $0x8] sm:$0xf0]  ;;  %v7569_v57 = vld [vmem:[%s12116_s25 + $0xd4] sm:$0xf0] }
 0x9fb   : > { %12621 = vst [vmem:[#allocation32_spill] sm:$0xff] %v10978_v49  ;;  %v10987_v9 = vor.u32 %v7503_v12, %v7247_v17  ;;  %v11008_v17 = vor.u32 %v7514_v24, %v7105_v6  ;;  %v7512_v12 = vld [vmem:[%s12114_s23 + $0x14] sm:$0xf]  ;;  %v7273_v6 = vld [vmem:[%s12113_s22 + $0x78] sm:$0xf0] }
 0x9fc   : > { %12624 = vst [vmem:[#allocation35_spill] sm:$0xff] %v11005_v5  ;;  %v11018_v29 = vor.u32 %v7512_v12, %v7097_v40  ;;  %v7508_v24 = vld [vmem:[%s12113_s22 + $0x74] sm:$0xf]  ;;  %v11033_v12 = vor.u32 %v7510_v3, %v7089_v30  ;;  %v7257_v30 = vld [vmem:[%s12113_s22 + $0x58] sm:$0xf0] }
 0x9fd   : > { %12622 = vst [vmem:[#allocation33_spill] sm:$0xff] %v10987_v9  ;;  %5181 = vmatpush.bf16.msra.mxu2 %v10987_v9  ;;  %v11035_v40 = vor.u32 %v7508_v24, %v7273_v6  ;;  %v7504_v3 = vld [vmem:[%s12113_s22 + $0x54] sm:$0xf]  ;;  %v7502_v6 = vld [vmem:[%s12113_s22 + $0x44] sm:$0xf] }
 0x9fe   : > { %5071 = vmatpush.bf16.msra.mxu0 %v10927_v36  ;;  %12625 = vst [vmem:[#allocation37_spill] sm:$0xff] %v11008_v17  ;;  %v11055_v24 = vor.u32 %v7504_v3, %v7257_v30  ;;  %v7241_v3 = vld [vmem:[%s12113_s22 + $0x38] sm:$0xf0]  ;;  %v7383_v36 = vld [vmem:[%s12116_s25 + $0xd0] sm:$0xf] }
 0x9ff   : > { %12626 = vst [vmem:[#allocation81_spill] sm:$0xff] %v11018_v29 }
 0xa00   : > { %12627 = vst [vmem:[#allocation80_spill] sm:$0xff] %v11033_v12 }
 0xa01   : > { %7084 = vmatmul.msk.f32.gmra.mxu0 %vm4801_vm13, %v10956_v47  ;;  %5182 = vmatpush.bf16.msra.mxu2 %v11005_v5  ;;  %12628 = vst [vmem:[#allocation83_spill] sm:$0xff] %v11035_v40  ;;  %v7571_v47 = vld [vmem:[%s12116_s25 + $0xe4] sm:$0xf0] }
 0xa02   : > { %5072 = vmatpush.bf16.msra.mxu0 %v10958_v35  ;;  %12630 = vst [vmem:[#allocation77_spill] sm:$0xff] %v11055_v24  ;;  %v7319_v35 = vld [vmem:[%s12116_s25 + $0x50] sm:$0xf]  ;;  %v7559_v5 = vld [vmem:[%s12116_s25 + $0x84] sm:$0xf0] }
 0xa06   : > { %5073 = vmatpush.bf16.msra.mxu0 %v10978_v49  ;;  %v7335_v49 = vld [vmem:[%s12116_s25 + $0x70] sm:$0xf] }
 0xa0a   : > { %5074 = vmatpush.bf16.msra.mxu0 %v10996_v31 }
 0xa0e   : > { %5075 = vmatpush.bf16.msra.mxu0 %v11008_v17  ;;  %v7265_v17 = vld [vmem:[%s12113_s22 + $0x68] sm:$0xf0] }
 0xa0f   : > { %v11045_v31 = vor.u32 %v7506_v45, %v7265_v17  ;;  %v7249_v45 = vld [vmem:[%s12113_s22 + $0x48] sm:$0xf0] }
 0xa10   : > { %v11064_v17 = vor.u32 %v7502_v6, %v7249_v45  ;;  %v7499_v6 = vld [vmem:[%s12113_s22 + $0x24] sm:$0xf0]  ;;  %v7498_v45 = vld [vmem:[%s12113_s22 + $0x24] sm:$0xf] }
 0xa11   : > { %12629 = vst [vmem:[#allocation78_spill] sm:$0xff] %v11045_v31 }
 0xa12   : > { %5076 = vmatpush.bf16.msra.mxu0 %v11018_v29  ;;  %12631 = vst [vmem:[#allocation41_spill] sm:$0xff] %v11064_v17 }
 0xa16   : > { %5077 = vmatpush.bf16.msra.mxu0 %v11033_v12 }
 0xa19   : > { %5078 = vmatmul.bf16.vlgmr.msra.gmra.mxu0 %v10748_v16  ;;  %v7500_v16 = vld [vmem:[%s12113_s22 + $0x34] sm:$0xf] }
 0xa1a   : > { %5192 = vmatpush.bf16.msrb.mxu0 %v11035_v40  ;;  %v11073_v30 = vor.u32 %v7500_v16, %v7241_v3  ;;  %v7233_v16 = vld [vmem:[%s12113_s22 + $0x28] sm:$0xf0]  ;;  %v7496_v40 = vld [vmem:[%s12113_s22 + $0x14] sm:$0xf] }
 0xa1b   : > { %v11090_v3 = vor.u32 %v7498_v45, %v7233_v16  ;;  %v7215_v16 = vld [vmem:[%s12113_s22] sm:$0xf] }
 0xa1c   : > { %12632 = vst [vmem:[#allocation76_spill] sm:$0xff] %v11073_v30 }
 0xa1d   : > { %12634 = vst [vmem:[#allocation73_spill] sm:$0xff] %v11090_v3 }
 0xa1e   : > { %5193 = vmatpush.bf16.msrb.mxu0 %v11045_v31 }
 0xa22   : > { %5194 = vmatpush.bf16.msrb.mxu0 %v11055_v24  ;;  %v7231_v24 = vld [vmem:[%s12113_s22 + $0x20] sm:$0xf] }
 0xa23   : > { %v11085_v31 = vor.u32 %v7499_v6, %v7231_v24  ;;  %v7225_v6 = vld [vmem:[%s12113_s22 + $0x18] sm:$0xf0] }
 0xa24   : > { %v11108_v45 = vor.u32 %v7496_v40, %v7225_v6  ;;  %v7217_v40 = vld [vmem:[%s12113_s22 + $0x8] sm:$0xf0] }
 0xa25   : > { %12633 = vst [vmem:[#allocation75_spill] sm:$0xff] %v11085_v31  ;;  %5183 = vmatpush.bf16.msra.mxu2 %v11085_v31 }
 0xa26   : > { %5195 = vmatpush.bf16.msrb.mxu0 %v11064_v17  ;;  %v7497_v17 = vld [vmem:[%s12113_s22 + $0x14] sm:$0xf0]  ;;  %12636 = vst [vmem:[#allocation70_spill] sm:$0xff] %v11108_v45 }
 0xa2a   : > { %5196 = vmatpush.bf16.msrb.mxu0 %v11073_v30  ;;  %v7223_v30 = vld [vmem:[%s12113_s22 + $0x10] sm:$0xf] }
 0xa2b   : > { %v11102_v24 = vor.u32 %v7497_v17, %v7223_v30  ;;  %v7495_v17 = vld [vmem:[%s12113_s22 + $0x4] sm:$0xf0]  ;;  %v7494_v30 = vld [vmem:[%s12113_s22 + $0x4] sm:$0xf] }
 0xa2c   : > { %v11121_v12 = vor.u32 %v7495_v17, %v7215_v16  ;;  %v11126_v6 = vor.u32 %v7494_v30, %v7217_v40  ;;  %v7557_v16 = vld [vmem:[%s12116_s25 + $0x74] sm:$0xf0]  ;;  %v7327_v17 = vld [vmem:[%s12116_s25 + $0x60] sm:$0xf]  ;;  %v7555_v40 = vld [vmem:[%s12116_s25 + $0x64] sm:$0xf0] }
 0xa2d   : > { %12635 = vst [vmem:[#allocation72_spill] sm:$0xff] %v11102_v24  ;;  %5184 = vmatpush.bf16.msra.mxu2 %v11102_v24  ;;  %v11139_v30 = vor.u32 %v7557_v16, %v7335_v49  ;;  %v7391_v49 = vld [vmem:[%s12116_s25 + $0xe0] sm:$0xf]  ;;  %v11156_v16 = vor.u32 %v7555_v40, %v7327_v17  ;;  %v7556_v17 = vld [vmem:[%s12116_s25 + $0x74] sm:$0xf] }
 0xa2e   : > { %5197 = vmatpush.bf16.msrb.mxu0 %v11090_v3  ;;  %12637 = vst [vmem:[#allocation69_spill] sm:$0xff] %v11121_v12  ;;  %v7337_v40 = vld [vmem:[%s12116_s25 + $0x78] sm:$0xf0]  ;;  %v7351_v24 = vld [vmem:[%s12116_s25 + $0x90] sm:$0xf] }
 0xa2f   : > { %12638 = vst [vmem:[#allocation67_spill] sm:$0xff] %v11126_v6  ;;  %5420 = vmatpush.bf16.msrb.mxu1 %v11139_v30 }
 0xa30   : > { %12639 = vst [vmem:[#allocation66_spill] sm:$0xff] %v11139_v30 }
 0xa31   : > { %5185 = vmatpush.bf16.msra.mxu2 %v11121_v12  ;;  %12641 = vst [vmem:[#allocation64_spill] sm:$0xff] %v11156_v16 }
 0xa32   : > { %5198 = vmatpush.bf16.msrb.mxu0 %v11108_v45 }
 0xa33   : > { %5421 = vmatpush.bf16.msrb.mxu1 %v11156_v16 }
 0xa36   : > { %5199 = vmatpush.bf16.msrb.mxu0 %v11126_v6 }
 0xa76   : > { %v4825_v45 = vpop.f32.mrf.mxu0 }
 0xa7e   : > { %v4828_v3 = vpop.f32.mrf.mxu0 }
 0xa7f   : > { %v4831_v29 = vpack.c.bf16 %v4828_v3, %v4825_v45  ;;  %v7399_v3 = vld [vmem:[%s12116_s25 + $0xf0] sm:$0xf]  ;;  %v7573_v45 = vld [vmem:[%s12116_s25 + $0xf4] sm:$0xf0] }
 0xa80   : > { %v11150_v6 = vor.u32 %v7573_v45, %v7399_v3  ;;  %v11168_v3 = vor.u32 %v7571_v47, %v7391_v49  ;;  %v11176_v45 = vor.u32 %v7556_v17, %v7337_v40  ;;  %v7554_v47 = vld [vmem:[%s12116_s25 + $0x64] sm:$0xf]  ;;  %v7329_v49 = vld [vmem:[%s12116_s25 + $0x68] sm:$0xf0] }
 0xa81   : > { %5186 = vmatmul.bf16.vlgmr.msra.gmra.mxu2 %v4831_v29  ;;  %5200 = vmatmul.bf16.vlgmr.msrb.gmra.mxu0 %v4831_v29  ;;  %v7553_v29 = vld [vmem:[%s12116_s25 + $0x54] sm:$0xf0]  ;;  %v11194_v40 = vor.u32 %v7554_v47, %v7329_v49  ;;  %v11212_v47 = vor.u32 %v7551_v14, %v7311_v53  ;;  %v7295_v14 = vld [vmem:[%s12116_s25 + $0x20] sm:$0xf]  ;;  %v7547_v53 = vld [vmem:[%s12116_s25 + $0x24] sm:$0xf0] }
 0xa82   : > { %12640 = vst [vmem:[#allocation44_spill] sm:$0xff] %v11150_v6  ;;  %5434 = vmatpush.bf16.msrb.mxu2 %v11150_v6  ;;  %v11191_v17 = vor.u32 %v7553_v29, %v7319_v35  ;;  %5448 = vmatpush.bf16.msra.mxu0 %v11176_v45  ;;  %v11203_v6 = vor.u32 %v7569_v57, %v7383_v36  ;;  %v7375_v35 = vld [vmem:[%s12116_s25 + $0xc0] sm:$0xf]  ;;  %v7567_v29 = vld [vmem:[%s12116_s25 + $0xc4] sm:$0xf0] }
 0xa83   : > { %12642 = vst [vmem:[#allocation63_spill] sm:$0xff] %v11168_v3  ;;  %v7303_v57 = vld [vmem:[%s12116_s25 + $0x30] sm:$0xf]  ;;  %v7549_v36 = vld [vmem:[%s12116_s25 + $0x34] sm:$0xf0]  ;;  %v11222_v49 = vor.u32 %v7567_v29, %v7375_v35 }
 0xa84   : > { %12643 = vst [vmem:[#allocation61_spill] sm:$0xff] %v11176_v45  ;;  %5422 = vmatpush.bf16.msrb.mxu1 %v11191_v17  ;;  %v11225_v45 = vor.u32 %v7549_v36, %v7303_v57  ;;  %v7552_v35 = vld [vmem:[%s12116_s25 + $0x54] sm:$0xf]  ;;  %v7321_v29 = vld [vmem:[%s12116_s25 + $0x58] sm:$0xf0] }
 0xa85   : > { %12644 = vst [vmem:[#allocation47_spill] sm:$0xff] %v11191_v17  ;;  %v11244_v57 = vor.u32 %v7552_v35, %v7321_v29  ;;  %v7367_v36 = vld [vmem:[%s12116_s25 + $0xb0] sm:$0xf]  ;;  %v7545_v35 = vld [vmem:[%s12116_s25 + $0x14] sm:$0xf0] }
 0xa86   : > { %12645 = vst [vmem:[#allocation50_spill] sm:$0xff] %v11194_v40  ;;  %5435 = vmatpush.bf16.msrb.mxu2 %v11168_v3  ;;  %5449 = vmatpush.bf16.msra.mxu0 %v11194_v40  ;;  %v11235_v40 = vor.u32 %v7547_v53, %v7295_v14  ;;  %v7565_v14 = vld [vmem:[%s12116_s25 + $0xb4] sm:$0xf0]  ;;  %v7548_v3 = vld [vmem:[%s12116_s25 + $0x34] sm:$0xf] }
 0xa87   : > { %12646 = vst [vmem:[#allocation53_spill] sm:$0xff] %v11203_v6  ;;  %v11253_v53 = vor.u32 %v7565_v14, %v7367_v36  ;;  %v7359_v14 = vld [vmem:[%s12116_s25 + $0xa0] sm:$0xf] }
 0xa88   : > { %12647 = vst [vmem:[#allocation56_spill] sm:$0xff] %v11212_v47  ;;  %5423 = vmatpush.bf16.msrb.mxu1 %v11212_v47 }
 0xa89   : > { %12648 = vst [vmem:[#allocation59_spill] sm:$0xff] %v11222_v49 }
 0xa8a   : > { %5436 = vmatpush.bf16.msrb.mxu2 %v11203_v6  ;;  %12649 = vst [vmem:[#allocation62_spill] sm:$0xff] %v11225_v45  ;;  %5450 = vmatpush.bf16.msra.mxu0 %v11244_v57  ;;  %v7550_v6 = vld [vmem:[%s12116_s25 + $0x44] sm:$0xf] }
 0xa8b   : > { %12650 = vst [vmem:[#allocation100_spill] sm:$0xff] %v11235_v40 }
 0xa8c   : > { %5424 = vmatpush.bf16.msrb.mxu1 %v11225_v45  ;;  %12651 = vst [vmem:[#allocation65_spill] sm:$0xff] %v11244_v57  ;;  %v7313_v57 = vld [vmem:[%s12116_s25 + $0x48] sm:$0xf0] }
 0xa8d   : > { %12652 = vst [vmem:[#allocation98_spill] sm:$0xff] %v11253_v53  ;;  %v11270_v36 = vor.u32 %v7550_v6, %v7313_v57  ;;  %v7543_v6 = vld [vmem:[%s12116_s25 + $0x4] sm:$0xf0] }
 0xa8e   : > { %5437 = vmatpush.bf16.msrb.mxu2 %v11222_v49  ;;  %v7287_v49 = vld [vmem:[%s12116_s25 + $0x10] sm:$0xf] }
 0xa8f   : > { %v11261_v29 = vor.u32 %v7545_v35, %v7287_v49  ;;  %12654 = vst [vmem:[#allocation95_spill] sm:$0xff] %v11270_v36  ;;  %v7563_v49 = vld [vmem:[%s12116_s25 + $0xa4] sm:$0xf0]  ;;  %5451 = vmatpush.bf16.msra.mxu0 %v11270_v36  ;;  %v7305_v36 = vld [vmem:[%s12116_s25 + $0x38] sm:$0xf0] }
 0xa90   : > { %5425 = vmatpush.bf16.msrb.mxu1 %v11235_v40  ;;  %v11280_v35 = vor.u32 %v7563_v49, %v7359_v14  ;;  %v7572_v14 = vld [vmem:[%s12116_s25 + $0xf4] sm:$0xf]  ;;  %v11300_v49 = vor.u32 %v7548_v3, %v7305_v36  ;;  %v7546_v36 = vld [vmem:[%s12116_s25 + $0x24] sm:$0xf] }
 0xa91   : > { %12653 = vst [vmem:[#allocation97_spill] sm:$0xff] %v11261_v29 }
 0xa92   : > { %5438 = vmatpush.bf16.msrb.mxu2 %v11253_v53  ;;  %12655 = vst [vmem:[#allocation94_spill] sm:$0xff] %v11280_v35  ;;  %v7279_v53 = vld [vmem:[%s12116_s25] sm:$0xf] }
 0xa93   : > { %v11288_v57 = vor.u32 %v7543_v6, %v7279_v53  ;;  %12657 = vst [vmem:[#allocation91_spill] sm:$0xff] %v11300_v49  ;;  %v7401_v53 = vld [vmem:[%s12116_s25 + $0xf8] sm:$0xf0]  ;;  %v11305_v6 = vpop.f32.mrf.mxu1  ;;  %5452 = vmatpush.bf16.msra.mxu0 %v11300_v49  ;;  %v7343_v49 = vld [vmem:[%s12116_s25 + $0x80] sm:$0xf] }
 0xa94   : > { %5426 = vmatpush.bf16.msrb.mxu1 %v11261_v29  ;;  %v11308_v12 = vor.u32 %v7572_v14, %v7401_v53  ;;  %v7297_v14 = vld [vmem:[%s12116_s25 + $0x28] sm:$0xf0]  ;;  %v7570_v53 = vld [vmem:[%s12116_s25 + $0xe4] sm:$0xf]  ;;  %v11344_v9 = vor.u32 %v7559_v5, %v7343_v49  ;;  %v7385_v5 = vld [vmem:[%s12116_s25 + $0xd8] sm:$0xf0] }
 0xa95   : > { %12656 = vst [vmem:[#allocation92_spill] sm:$0xff] %v11288_v57  ;;  %v11330_v31 = vor.u32 %v7546_v36, %v7297_v14  ;;  %v7544_v14 = vld [vmem:[%s12116_s25 + $0x14] sm:$0xf] }
 0xa96   : > { %5439 = vmatpush.bf16.msrb.mxu2 %v11280_v35  ;;  %12658 = vst [vmem:[#allocation14_spill] sm:$0xff] %v11308_v12  ;;  %v7561_v35 = vld [vmem:[%s12116_s25 + $0x94] sm:$0xf0]  ;;  %v5079_v36 = vpop.f32.mrf.mxu0 }
 0xa97   : > { %v11317_v3 = vor.u32 %v7561_v35, %v7351_v24  ;;  %12660 = vst [vmem:[#allocation68_spill] sm:$0xff] %v11330_v31  ;;  %v7393_v24 = vld [vmem:[%s12116_s25 + $0xe8] sm:$0xf0]  ;;  %5453 = vmatpush.bf16.msra.mxu0 %v11330_v31 }
 0xa98   : > { %5427 = vmatpush.bf16.msrb.mxu1 %v11288_v57  ;;  %v11335_v35 = vor.u32 %v7570_v53, %v7393_v24  ;;  %12662 = vst [vmem:[#allocation86_spill] sm:$0xff] %v11344_v9  ;;  %v7289_v53 = vld [vmem:[%s12116_s25 + $0x18] sm:$0xf0]  ;;  %v7568_v24 = vld [vmem:[%s12116_s25 + $0xd4] sm:$0xf] }
 0xa99   : > { %12659 = vst [vmem:[#allocation89_spill] sm:$0xff] %v11317_v3  ;;  %v11357_v31 = vor.u32 %v7544_v14, %v7289_v53  ;;  %v11362_v49 = vor.u32 %v7568_v24, %v7385_v5  ;;  %v7281_v14 = vld [vmem:[%s12116_s25 + $0x8] sm:$0xf0]  ;;  %v7566_v53 = vld [vmem:[%s12116_s25 + $0xc4] sm:$0xf]  ;;  %v5065_v5 = vpop.f32.mrf.mxu2 }
 0xa9a   : > { %5440 = vmatpush.bf16.msrb.mxu2 %v11317_v3  ;;  %12661 = vst [vmem:[#allocation13_spill] sm:$0xff] %v11335_v35  ;;  %v7377_v24 = vld [vmem:[%s12116_s25 + $0xc8] sm:$0xf0]  ;;  %v5066_v47 = vadd.f32 %v5065_v5, %v11305_v6 }
 0xa9b   : > { %12663 = vst [vmem:[#allocation84_spill] sm:$0xff] %v11357_v31  ;;  %5454 = vmatpush.bf16.msra.mxu0 %v11357_v31  ;;  %v5053_v3 = vpop.f32.mrf.mxu1  ;;  %v11380_v31 = vor.u32 %v7566_v53, %v7377_v24  ;;  %v7361_v53 = vld [vmem:[%s12116_s25 + $0xa8] sm:$0xf0] }
 0xa9c   : > { %5462 = vmatpush.bf16.msra.mxu1 %v11308_v12  ;;  %12664 = vst [vmem:[#allocation71_spill] sm:$0xff] %v11362_v49 }
 0xa9d   : > { %12666 = vst [vmem:[#allocation39_spill] sm:$0xff] %v11380_v31 }
 0xa9e   : > { %5441 = vmatpush.bf16.msrb.mxu2 %v11344_v9  ;;  %v11375_v9 = vor.u32 %v7542_v32, %v7281_v14  ;;  %v7369_v32 = vld [vmem:[%s12116_s25 + $0xb8] sm:$0xf0]  ;;  %v5081_v24 = vpop.f32.mrf.mxu0 }
 0xa9f   : > { %v11390_v14 = vor.u32 %v7564_v58, %v7369_v32  ;;  %v7353_v58 = vld [vmem:[%s12116_s25 + $0x98] sm:$0xf0] }
 0xaa0   : > { %5463 = vmatpush.bf16.msra.mxu1 %v11335_v35  ;;  %12665 = vst [vmem:[#allocation74_spill] sm:$0xff] %v11375_v9  ;;  %5455 = vmatpush.bf16.msra.mxu0 %v11375_v9  ;;  %v11399_v9 = vor.u32 %v7562_v63, %v7361_v53  ;;  %v7345_v63 = vld [vmem:[%s12116_s25 + $0x88] sm:$0xf0]  ;;  %v5206_v35 = vld [vmem:[%s12115_s24] sm:$0x3] }
 0xaa1   : > { %12667 = vst [vmem:[#allocation79_spill] sm:$0xff] %v11390_v14  ;;  %v11427_v43 = vperm.slane %v5206_v35, 0 }
 0xaa2   : > { %12668 = vst [vmem:[#allocation82_spill] sm:$0xff] %v11399_v9 }
 0xaa3   : > { %v5093_v32 = vpop.f32.mrf.mxu1 }
 0xaa4   : > { %5464 = vmatpush.bf16.msra.mxu1 %v11362_v49  ;;  %v11408_v49 = vor.u32 %v7560_v41, %v7353_v58  ;;  %v11422_v58 = vperm.slane %v5206_v35, 1 }
 0xaa6   : > { %12669 = vst [vmem:[#allocation85_spill] sm:$0xff] %v11408_v49 }
 0xaa8   : > { %5465 = vmatpush.bf16.msra.mxu1 %v11380_v31  ;;  %v5067_v31 = vpop.f32.mrf.mxu2 }
 0xaab   : > { %v5095_v57 = vpop.f32.mrf.mxu1 }
 0xaac   : > { %5466 = vmatpush.bf16.msra.mxu1 %v11390_v14  ;;  %v7558_v14 = vld [vmem:[%s12116_s25 + $0x84] sm:$0xf]  ;;  %v5096_v40 = vadd.f32 %v5095_v57, %v5081_v24 }
 0xaad   : > { %v11420_v12 = vor.u32 %v7558_v14, %v7345_v63 }
 0xaaf   : > { %12670 = vst [vmem:[#allocation88_spill] sm:$0xff] %v11420_v12 }
 0xab0   : > { %5467 = vmatpush.bf16.msra.mxu1 %v11399_v9  ;;  %v5094_v9 = vadd.f32 %v5093_v32, %v5079_v36  ;;  %v5068_v36 = vadd.f32 %v5067_v31, %v5053_v3  ;;  %v5254_v31 = vld [vmem:[%s12117_s26] sm:$0x3] }
 0xab4   : > { %5468 = vmatpush.bf16.msra.mxu1 %v11408_v49 }
 0xab8   : > { %5469 = vmatpush.bf16.msra.mxu1 %v11420_v12 }
 0xafe   : > { %v5201_v53 = vpop.f32.mrf.mxu0 }
 0xaff   : > { %v5202_v41 = vadd.f32 %v5201_v53, %v5094_v9 }
 0xb01   : > { %v5213_v17 = vadd.f32 %v11422_v58, %v5202_v41 }
 0xb03   : > { %v5217_v9 = vmax.f32 %v5213_v17, 0.0  ;;  %v11435_v17 = vperm.slane %v5254_v31, 0 }
 0xb04   : > { %v5187_v29 = vpop.f32.mrf.mxu2 }
 0xb05   : > { %v5188_v30 = vadd.f32 %v5187_v29, %v5066_v47 }
 0xb06   : > { %v5203_v45 = vpop.f32.mrf.mxu0 }
 0xb07   : > { %v5204_v16 = vadd.f32 %v5203_v45, %v5096_v40  ;;  %v5212_v53 = vadd.f32 %v11427_v43, %v5188_v30 }
 0xb09   : > { %v5215_v14 = vadd.f32 %v11422_v58, %v5204_v16  ;;  %v5216_v6 = vmax.f32 %v5212_v53, 0.0 }
 0xb0b   : > { %v5219_v32 = vmax.f32 %v5215_v14, 0.0 }
 0xb0c   : > { %v5189_v63 = vpop.f32.mrf.mxu2 }
 0xb0d   : > { %v5221_v49 = vpack.c.bf16 %v5219_v32, %v5217_v9  ;;  %v5190_v12 = vadd.f32 %v5189_v63, %v5068_v36  ;;  %v11451_v36 = vld [vmem:[%s12592_s14] sm:$0xff]  ;;  %v11455_v9 = vperm.slane %v5254_v31, 1  ;;  %v11481_v31 = vld [vmem:[%s12109_s18 + $0x70] sm:$0xff] }
 0xb0f   : > { %v5214_v57 = vadd.f32 %v11427_v43, %v5190_v12  ;;  %5442 = vmatmul.bf16.vlgmr.msrb.gmra.mxu2 %v5221_v49 }
 0xb11   : > { %v5218_v5 = vmax.f32 %v5214_v57, 0.0 }
 0xb13   : > { %v5220_v24 = vpack.c.bf16 %v5218_v5, %v5216_v6  ;;  %v11471_v5 = vld [vmem:[%s12592_s14 + $0x8] sm:$0xff] }
 0xb15   : > { %5428 = vmatmul.bf16.vlgmr.msrb.gmra.mxu1 %v5220_v24  ;;  %5456 = vmatmul.bf16.vlgmr.msra.gmra.mxu0 %v5220_v24 }
 0xb25   : > { %5470 = vmatmul.bf16.vlgmr.msra.gmra.mxu1 %v5221_v49 }
 0xb92   : > { %v5429_v16 = vpop.f32.mrf.mxu1  ;;  %v5443_v45 = vpop.f32.mrf.mxu2 }
 0xb93   : > { %v5430_v30 = vadd.f32 %v5429_v16, %v11435_v17  ;;  %v5457_v47 = vpop.f32.mrf.mxu0 }
 0xb94   : > { %v5458_v32 = vadd.f32 %v5457_v47, %v11455_v9  ;;  %v11536_v47 = vld [vmem:[%s12109_s18 + $0x30] sm:$0xff] }
 0xb95   : > { %v5444_v3 = vadd.f32 %v5443_v45, %v5430_v30  ;;  %v11511_v45 = vld [vmem:[%s12109_s18 + $0x38] sm:$0xff]  ;;  %v11517_v30 = vld [vmem:[%s12592_s14 + $0x10] sm:$0xff] }
 0xb97   : > { %v11443_v49 = vadd.f32 %v5444_v3, %v10433_v1  ;;  %v11552_v3 = vld [vmem:[%s12108_s17 + $0x28] sm:$0xff] }
 0xb9a   : > { %v5431_v40 = vpop.f32.mrf.mxu1  ;;  %v5445_v29 = vpop.f32.mrf.mxu2 }
 0xb9b   : > { %v5432_v12 = vadd.f32 %v5431_v40, %v11435_v17  ;;  %v5459_v1 = vpop.f32.mrf.mxu0  ;;  %v11524_v40 = vld [vmem:[%s12109_s18 + $0x68] sm:$0xff] }
 0xb9c   : > { %v5460_v63 = vadd.f32 %v5459_v1, %v11455_v9  ;;  %v11578_v1 = vld [vmem:[%s12109_s18 + $0x20] sm:$0xff] }
 0xb9d   : > { %v5446_v35 = vadd.f32 %v5445_v29, %v5432_v12  ;;  %v11530_v12 = vld [vmem:[%s12108_s17 + $0x30] sm:$0xff]  ;;  %v11543_v29 = vld [vmem:[%s12106_s15 + $0x8] sm:$0xff] }
 0xb9f   : > { %v11440_v41 = vadd.f32 %v5446_v35, %v10435_v25  ;;  %v11463_v25 = vld [vmem:[%s12109_s18 + $0x78] sm:$0xff] }
 0xba0   : > { %v11566_v35 = vld [vmem:[%s12109_s18 + $0x58] sm:$0xff] }
 0xba1   : > { %7405 = vmatpush.msk.msra.mxu2 %vm4242_vm11, %v11440_v41 }
 0xba2   : > { %v5471_v14 = vpop.f32.mrf.mxu1 }
 0xba3   : > { %5501 = vmatpush.msra.mxu2 %v11443_v49  ;;  %v5472_v57 = vadd.f32 %v5471_v14, %v5458_v32  ;;  %v11572_v14 = vld [vmem:[%s12108_s17 + $0x20] sm:$0xff]  ;;  %v11585_v32 = vld [vmem:[%s12106_s15 + $0x10] sm:$0xff] }
 0xba4   : > { %7406 = vmatmul.msk.f32.vlgmr.msra.gmra.mxu2 %vm4232_vm12, %v11451_v36 }
 0xba5   : > { %7413 = vmatpush.msk.msrb.mxu2 %vm4242_vm11, %v11440_v41  ;;  %v11485_v16 = vadd.f32 %v5472_v57, %v10480_v22  ;;  %v11505_v22 = vld [vmem:[%s12108_s17 + $0x38] sm:$0xff]  ;;  %v11615_v57 = vld [vmem:[%s12109_s18 + $0x10] sm:$0xff] }
 0xba6   : > { %12671 = vst [vmem:[#allocation106_spill] sm:$0xff] %v11615_v57 }
 0xba7   : > { %5553 = vmatpush.msrb.mxu2 %v11443_v49 }
 0xba9   : > { %5616 = vmatpush.bf16.msra.mxu2 %v11463_v25 }
 0xbaa   : > { %v5473_v53 = vpop.f32.mrf.mxu1 }
 0xbab   : > { %v5474_v6 = vadd.f32 %v5473_v53, %v5460_v63  ;;  %v11594_v63 = vld [vmem:[%s12108_s17 + $0x18] sm:$0xff]  ;;  %v11609_v53 = vld [vmem:[%s12108_s17 + $0x10] sm:$0xff] }
 0xbac   : > { %7407 = vmatmul.msk.f32.gmra.mxu2 %vm4232_vm12, %v11471_v5 }
 0xbad   : > { %v11476_v24 = vadd.f32 %v5474_v6, %v10478_v7  ;;  %5617 = vmatpush.bf16.msra.mxu2 %v11481_v31  ;;  %v11496_v7 = vld [vmem:[%s12106_s15] sm:$0xff]  ;;  %v11629_v6 = vld [vmem:[%s12109_s18 + $0x8] sm:$0xff] }
 0xbae   : > { %12673 = vst [vmem:[#allocation105_spill] sm:$0xff] %v11629_v6 }
 0xbaf   : > { %7409 = vmatpush.msk.msrb.mxu0 %vm4242_vm11, %v11476_v24  ;;  %7417 = vmatpush.msk.msrb.mxu1 %vm4242_vm11, %v11476_v24 }
 0xbb1   : > { %5527 = vmatpush.msrb.mxu0 %v11485_v16  ;;  %5579 = vmatpush.msrb.mxu1 %v11485_v16 }
 0xbb2   : > { %7418 = vmatmul.msk.f32.vlgmr.msrb.gmra.mxu1 %vm4232_vm12, %v11496_v7  ;;  %7410 = vmatmul.msk.f32.vlgmr.msrb.gmra.mxu0 %vm4232_vm12, %v11451_v36 }
 0xbb3   : > { %5634 = vmatpush.bf16.msra.mxu1 %v11505_v22  ;;  %5598 = vmatpush.bf16.msra.mxu0 %v11511_v45 }
 0xbb4   : > { %7408 = vmatmul.msk.f32.gmra.mxu2 %vm4232_vm12, %v11517_v30 }
 0xbb5   : > { %5618 = vmatpush.bf16.msra.mxu2 %v11524_v40 }
 0xbb7   : > { %5635 = vmatpush.bf16.msra.mxu1 %v11530_v12  ;;  %5599 = vmatpush.bf16.msra.mxu0 %v11536_v47 }
 0xbb9   : > { %5619 = vmatpush.bf16.msra.mxu2 %v10572_v51  ;;  %v11558_v51 = vld [vmem:[%s12109_s18 + $0x28] sm:$0xff] }
 0xbba   : > { %7419 = vmatmul.msk.f32.gmra.mxu1 %vm4232_vm12, %v11543_v29  ;;  %7411 = vmatmul.msk.f32.gmra.mxu0 %vm4232_vm12, %v11471_v5 }
 0xbbb   : > { %5636 = vmatpush.bf16.msra.mxu1 %v11552_v3  ;;  %5600 = vmatpush.bf16.msra.mxu0 %v11558_v51 }
 0xbbc   : > { %7414 = vmatmul.msk.f32.vlgmr.msrb.gmra.mxu2 %vm4232_vm12, %v11496_v7 }
 0xbbd   : > { %5620 = vmatpush.bf16.msra.mxu2 %v11566_v35 }
 0xbbf   : > { %5637 = vmatpush.bf16.msra.mxu1 %v11572_v14  ;;  %5601 = vmatpush.bf16.msra.mxu0 %v11578_v1 }
 0xbc1   : > { %5621 = vmatpush.bf16.msra.mxu2 %v10596_v4  ;;  %v11600_v4 = vld [vmem:[%s12109_s18 + $0x18] sm:$0xff] }
 0xbc2   : > { %7420 = vmatmul.msk.f32.gmra.mxu1 %vm4232_vm12, %v11585_v32  ;;  %7412 = vmatmul.msk.f32.gmra.mxu0 %vm4232_vm12, %v11517_v30 }
 0xbc3   : > { %5638 = vmatpush.bf16.msra.mxu1 %v11594_v63  ;;  %5602 = vmatpush.bf16.msra.mxu0 %v11600_v4 }
 0xbc4   : > { %7415 = vmatmul.msk.f32.gmra.mxu2 %vm4232_vm12, %v11543_v29 }
 0xbc5   : > { %5622 = vmatpush.bf16.msra.mxu2 %v10610_v55  ;;  %v11623_v55 = vld [vmem:[%s12108_s17 + $0x8] sm:$0xff] }
 0xbc6   : > { %12672 = vst [vmem:[#allocation17_spill] sm:$0xff] %v11623_v55 }
 0xbc7   : > { %5639 = vmatpush.bf16.msra.mxu1 %v11609_v53  ;;  %5603 = vmatpush.bf16.msra.mxu0 %v11615_v57 }
 0xbc9   : > { %5623 = vmatpush.bf16.msra.mxu2 %v10626_v2  ;;  %v11638_v2 = vld [vmem:[%s12108_s17] sm:$0xff] }
 0xbca   : > { %12674 = vst [vmem:[#allocation90_spill] sm:$0xff] %v11638_v2 }
 0xbcb   : > { %5640 = vmatpush.bf16.msra.mxu1 %v11623_v55  ;;  %5604 = vmatpush.bf16.msra.mxu0 %v11629_v6  ;;  %v11650_v6 = vld [vmem:[%s12108_s17 + $0x78] sm:$0xff] }
 0xbcc   : > { %7416 = vmatmul.msk.f32.gmra.mxu2 %vm4232_vm12, %v11585_v32  ;;  %12676 = vst [vmem:[#allocation104_spill] sm:$0xff] %v11650_v6 }
 0xbcd   : > { %5678 = vmatpush.bf16.msrb.mxu2 %v10761_v19  ;;  %v11644_v19 = vld [vmem:[%s12109_s18] sm:$0xff] }
 0xbce   : > { %12675 = vst [vmem:[#allocation16_spill] sm:$0xff] %v11644_v19 }
 0xbcf   : > { %5641 = vmatpush.bf16.msra.mxu1 %v11638_v2  ;;  %5605 = vmatpush.bf16.msra.mxu0 %v11644_v19  ;;  %v11664_v19 = vld [vmem:[%s12108_s17 + $0x68] sm:$0xff] }
 0xbd0   : > { %12678 = vst [vmem:[#allocation93_spill] sm:$0xff] %v11664_v19 }
 0xbd1   : > { %5679 = vmatpush.bf16.msrb.mxu2 %v10769_v15  ;;  %v11657_v15 = vld [vmem:[%s12108_s17 + $0x70] sm:$0xff] }
 0xbd2   : > { %12677 = vst [vmem:[#allocation15_spill] sm:$0xff] %v11657_v15 }
 0xbd3   : > { %5652 = vmatpush.bf16.msrb.mxu0 %v11650_v6 }
 0xbd5   : > { %5680 = vmatpush.bf16.msrb.mxu2 %v10775_v42  ;;  %v11671_v42 = vld [vmem:[%s12108_s17 + $0x60] sm:$0xff] }
 0xbd6   : > { %12679 = vst [vmem:[#allocation96_spill] sm:$0xff] %v11671_v42 }
 0xbd7   : > { %5653 = vmatpush.bf16.msrb.mxu0 %v11657_v15 }
 0xbd9   : > { %5681 = vmatpush.bf16.msrb.mxu2 %v10781_v33  ;;  %v11678_v33 = vld [vmem:[%s12108_s17 + $0x58] sm:$0xff] }
 0xbda   : > { %12680 = vst [vmem:[#allocation99_spill] sm:$0xff] %v11678_v33 }
 0xbdb   : > { %5654 = vmatpush.bf16.msrb.mxu0 %v11664_v19 }
 0xbdd   : > { %5682 = vmatpush.bf16.msrb.mxu2 %v10787_v44  ;;  %v11685_v44 = vld [vmem:[%s12108_s17 + $0x50] sm:$0xff] }
 0xbde   : > { %12681 = vst [vmem:[#allocation101_spill] sm:$0xff] %v11685_v44 }
 0xbdf   : > { %5655 = vmatpush.bf16.msrb.mxu0 %v11671_v42 }
 0xbe1   : > { %5683 = vmatpush.bf16.msrb.mxu2 %v10793_v10  ;;  %v11692_v10 = vld [vmem:[%s12108_s17 + $0x48] sm:$0xff] }
 0xbe2   : > { %12682 = vst [vmem:[#allocation102_spill] sm:$0xff] %v11692_v10 }
 0xbe3   : > { %5656 = vmatpush.bf16.msrb.mxu0 %v11678_v33 }
 0xbe5   : > { %5684 = vmatpush.bf16.msrb.mxu2 %v10799_v46  ;;  %v11698_v46 = vld [vmem:[%s12108_s17 + $0x40] sm:$0xff] }
 0xbe6   : > { %12683 = vst [vmem:[#allocation103_spill] sm:$0xff] %v11698_v46 }
 0xbe7   : > { %5657 = vmatpush.bf16.msrb.mxu0 %v11685_v44 }
 0xbe9   : > { %5685 = vmatpush.bf16.msrb.mxu2 %v10805_v20 }
 0xbeb   : > { %5658 = vmatpush.bf16.msrb.mxu0 %v11692_v10 }
 0xbef   : > { %5659 = vmatpush.bf16.msrb.mxu0 %v11698_v46 }
 0xc27   : > { %v5503_v33 = vpop.f32.mrf.mxu2 }
 0xc2f   : > { %v5506_v42 = vpop.f32.mrf.mxu2  ;;  %v5581_v19 = vpop.f32.mrf.mxu1 }
 0xc30   : > { %v5590_v44 = vpack.c.bf16 %v5506_v42, %v5503_v33 }
 0xc32   : > { %5642 = vmatmul.bf16.vlgmr.msra.gmra.mxu1 %v5590_v44  ;;  %v12684_v44 = vld [vmem:[#allocation58_spill] sm:$0xff] }
 0xc37   : > { %v5509_v20 = vpop.f32.mrf.mxu2  ;;  %v5584_v15 = vpop.f32.mrf.mxu1 }
 0xc38   : > { %v5595_v6 = vpack.c.bf16 %v5584_v15, %v5581_v19  ;;  %v5592_v10 = vpack.c.bf16 %v5509_v20, %v5509_v20  ;;  %v12686_v20 = vld [vmem:[#allocation64_spill] sm:$0xff] }
 0xc3a   : > { %5624 = vmatmul.bf16.vlgmr.msra.gmra.mxu2 %v5595_v6 }
 0xc3b   : > { %5736 = vmatpush.bf16.msra.mxu2 %v10814_v54 }
 0xc3f   : > { %v5555_v2 = vpop.f32.mrf.mxu2  ;;  %5737 = vmatpush.bf16.msra.mxu2 %v10823_v59  ;;  %v5587_v55 = vpop.f32.mrf.mxu1 }
 0xc40   : > { %v5597_v46 = vpack.c.bf16 %v5587_v55, %v5587_v55 }
 0xc42   : > { %5647 = vmatmul.bf16.gmra.mxu1 %v5592_v10  ;;  %v11727_v10 = vpack.c.bf16 %v11440_v41, %v11443_v49 }
 0xc43   : > { %5738 = vmatpush.bf16.msra.mxu2 %v10832_v52 }
 0xc47   : > { %v5558_v57 = vpop.f32.mrf.mxu2  ;;  %5739 = vmatpush.bf16.msra.mxu2 %v10841_v50 }
 0xc48   : > { %v5594_v42 = vpack.c.bf16 %v5558_v57, %v5555_v2  ;;  %v5529_v57 = vpop.f32.mrf.mxu0 }
 0xc4a   : > { %5606 = vmatmul.bf16.vlgmr.msra.gmra.mxu0 %v5594_v42  ;;  %5629 = vmatmul.bf16.gmra.mxu2 %v5597_v46  ;;  %v12685_v46 = vld [vmem:[#allocation66_spill] sm:$0xff]  ;;  %v12687_v42 = vld [vmem:[#allocation47_spill] sm:$0xff] }
 0xc4b   : > { %5722 = vmatpush.bf16.msra.mxu0 %v10590_v18  ;;  %5740 = vmatpush.bf16.msra.mxu2 %v10850_v13 }
 0xc4f   : > { %5723 = vmatpush.bf16.msra.mxu0 %v10605_v28  ;;  %5741 = vmatpush.bf16.msra.mxu2 %v10859_v38  ;;  %v5561_v6 = vpop.f32.mrf.mxu2 }
 0xc50   : > { %v5596_v55 = vpack.c.bf16 %v5561_v6, %v5561_v6  ;;  %v5532_v2 = vpop.f32.mrf.mxu0  ;;  %v12688_v6 = vld [vmem:[#allocation56_spill] sm:$0xff] }
 0xc51   : > { %v5591_v19 = vpack.c.bf16 %v5532_v2, %v5529_v57  ;;  %v12689_v57 = vld [vmem:[#allocation62_spill] sm:$0xff]  ;;  %v12690_v2 = vld [vmem:[#allocation100_spill] sm:$0xff] }
 0xc53   : > { %5724 = vmatpush.bf16.msra.mxu0 %v10619_v61  ;;  %5742 = vmatpush.bf16.msra.mxu2 %v10873_v39  ;;  %v12699_v39 = vld [vmem:[#allocation85_spill] sm:$0xff] }
 0xc57   : > { %5725 = vmatpush.bf16.msra.mxu0 %v10635_v23  ;;  %5743 = vmatpush.bf16.msra.mxu2 %v10884_v11  ;;  %v12697_v11 = vld [vmem:[#allocation79_spill] sm:$0xff] }
 0xc58   : > { %v5535_v15 = vpop.f32.mrf.mxu0 }
 0xc59   : > { %v5593_v33 = vpack.c.bf16 %v5535_v15, %v5535_v15  ;;  %v12692_v15 = vld [vmem:[#allocation92_spill] sm:$0xff] }
 0xc5a   : > { %5611 = vmatmul.bf16.gmra.mxu0 %v5596_v55  ;;  %v5721_v55 = vpack.c.bf16 %v11476_v24, %v11485_v16 }
 0xc5b   : > { %5726 = vmatpush.bf16.msra.mxu0 %v10644_v34 }
 0xc5f   : > { %5727 = vmatpush.bf16.msra.mxu0 %v10653_v56 }
 0xc63   : > { %5728 = vmatpush.bf16.msra.mxu0 %v10662_v27 }
 0xc67   : > { %5729 = vmatpush.bf16.msra.mxu0 %v10671_v26 }
 0xc6a   : > { %5660 = vmatmul.bf16.vlgmr.msrb.gmra.mxu0 %v5591_v19  ;;  %v12691_v19 = vld [vmem:[#allocation97_spill] sm:$0xff] }
 0xc6b   : > { %5764 = vmatpush.bf16.msrb.mxu0 %v10680_v60 }
 0xc6f   : > { %5765 = vmatpush.bf16.msrb.mxu0 %v10689_v37  ;;  %v12701_v37 = vld [vmem:[#allocation51_spill] sm:$0xff] }
 0xc73   : > { %5766 = vmatpush.bf16.msrb.mxu0 %v10698_v62 }
 0xc77   : > { %5767 = vmatpush.bf16.msrb.mxu0 %v10707_v21 }
 0xc7a   : > { %5665 = vmatmul.bf16.gmra.mxu0 %v5593_v33  ;;  %v12693_v33 = vld [vmem:[#allocation14_spill] sm:$0xff] }
 0xc7b   : > { %5768 = vmatpush.bf16.msrb.mxu0 %v10716_v8 }
 0xc7f   : > { %5769 = vmatpush.bf16.msrb.mxu0 %v10725_v48 }
 0xc83   : > { %5770 = vmatpush.bf16.msrb.mxu0 %v10734_v0  ;;  %v12698_v0 = vld [vmem:[#allocation82_spill] sm:$0xff] }
 0xc87   : > { %5771 = vmatpush.bf16.msrb.mxu0 %v12684_v44 }
 0xc8a   : > { %5730 = vmatmul.bf16.vlgmr.msra.gmra.mxu0 %v11727_v10 }
 0xc8b   : > { %5816 = vmatpush.bf16.msra.mxu0 %v12685_v46  ;;  %v12694_v46 = vld [vmem:[#allocation13_spill] sm:$0xff] }
 0xc8f   : > { %5817 = vmatpush.bf16.msra.mxu0 %v12686_v20 }
 0xc93   : > { %5818 = vmatpush.bf16.msra.mxu0 %v12687_v42  ;;  %v12695_v42 = vld [vmem:[#allocation71_spill] sm:$0xff] }
 0xc97   : > { %5819 = vmatpush.bf16.msra.mxu0 %v12688_v6  ;;  %v12696_v6 = vld [vmem:[#allocation39_spill] sm:$0xff] }
 0xc9a   : > { %5772 = vmatmul.bf16.vlgmr.msrb.gmra.mxu0 %v5721_v55 }
 0xc9b   : > { %5820 = vmatpush.bf16.msra.mxu0 %v12689_v57 }
 0xc9f   : > { %5821 = vmatpush.bf16.msra.mxu0 %v12690_v2 }
 0xca3   : > { %5822 = vmatpush.bf16.msra.mxu0 %v12691_v19  ;;  %v12700_v19 = vld [vmem:[#allocation88_spill] sm:$0xff] }
 0xca7   : > { %5823 = vmatpush.bf16.msra.mxu0 %v12692_v15 }
 0xcab   : > { %5858 = vmatpush.bf16.msrb.mxu0 %v12693_v33 }
 0xcaf   : > { %5859 = vmatpush.bf16.msrb.mxu0 %v12694_v46  ;;  %v5643_v20 = vpop.f32.mrf.mxu1 }
 0xcb3   : > { %5860 = vmatpush.bf16.msrb.mxu0 %v12695_v42 }
 0xcb7   : > { %5861 = vmatpush.bf16.msrb.mxu0 %v12696_v6  ;;  %v5645_v44 = vpop.f32.mrf.mxu1 }
 0xcbb   : > { %5862 = vmatpush.bf16.msrb.mxu0 %v12697_v11 }
 0xcbd   : > { %v5625_v57 = vpop.f32.mrf.mxu2 }
 0xcbf   : > { %5863 = vmatpush.bf16.msrb.mxu0 %v12698_v0  ;;  %v5648_v2 = vpop.f32.mrf.mxu1 }
 0xcc3   : > { %5864 = vmatpush.bf16.msrb.mxu0 %v12699_v39 }
 0xcc5   : > { %v5627_v15 = vpop.f32.mrf.mxu2 }
 0xcc7   : > { %5865 = vmatpush.bf16.msrb.mxu0 %v12700_v19  ;;  %v5607_v33 = vpop.f32.mrf.mxu0  ;;  %v5650_v48 = vpop.f32.mrf.mxu1 }
 0xcc8   : > { %v5626_v6 = vadd.f32 %v5625_v57, %v5607_v33 }
 0xcca   : > { %v5644_v11 = vadd.f32 %v5643_v20, %v5626_v6  ;;  %v12715_v20 = vld [vmem:[#allocation94_spill] sm:$0xff] }
 0xccb   : > { %v12717_v6 = vld [vmem:[#allocation86_spill] sm:$0xff] }
 0xccd   : > { %v5630_v46 = vpop.f32.mrf.mxu2 }
 0xccf   : > { %v5609_v38 = vpop.f32.mrf.mxu0 }
 0xcd0   : > { %v5628_v50 = vadd.f32 %v5627_v15, %v5609_v38  ;;  %v12703_v38 = vld [vmem:[#allocation40_spill] sm:$0xff] }
 0xcd2   : > { %v5646_v0 = vadd.f32 %v5645_v44, %v5628_v50  ;;  %v12713_v44 = vld [vmem:[#allocation59_spill] sm:$0xff] }
 0xcd5   : > { %v5632_v8 = vpop.f32.mrf.mxu2 }
 0xcd7   : > { %v5612_v42 = vpop.f32.mrf.mxu0 }
 0xcd8   : > { %v5631_v60 = vadd.f32 %v5630_v46, %v5612_v42  ;;  %v12714_v46 = vld [vmem:[#allocation98_spill] sm:$0xff]  ;;  %v12716_v42 = vld [vmem:[#allocation89_spill] sm:$0xff] }
 0xcda   : > { %v5649_v8 = vadd.f32 %v5648_v2, %v5631_v60  ;;  %v12709_v60 = vld [vmem:[#allocation69_spill] sm:$0xff] }
 0xcdf   : > { %v5614_v13 = vpop.f32.mrf.mxu0 }
 0xce0   : > { %v12702_v13 = vld [vmem:[#allocation30_spill] sm:$0xff] }
 0xce7   : > { %v5661_v21 = vpop.f32.mrf.mxu0 }
 0xce8   : > { %v5662_v62 = vadd.f32 %v5661_v21, %v5644_v11  ;;  %v12704_v11 = vld [vmem:[#allocation31_spill] sm:$0xff] }
 0xcea   : > { %v5670_v59 = vadd.f32 %v12701_v37, %v5662_v62 }
 0xcec   : > { %v5673_v54 = vmax.f32 %v5670_v59, 0.0  ;;  %v12706_v59 = vld [vmem:[#allocation35_spill] sm:$0xff] }
 0xcef   : > { %v5663_v52 = vpop.f32.mrf.mxu0 }
 0xcf0   : > { %v5664_v39 = vadd.f32 %v5663_v52, %v5646_v0  ;;  %v12705_v0 = vld [vmem:[#allocation33_spill] sm:$0xff] }
 0xcf2   : > { %v5671_v19 = vadd.f32 %v12701_v37, %v5664_v39  ;;  %v12712_v39 = vld [vmem:[#allocation53_spill] sm:$0xff] }
 0xcf4   : > { %v5674_v48 = vmax.f32 %v5671_v19, 0.0 }
 0xcf6   : > { %v5676_v26 = vpack.c.bf16 %v5674_v48, %v5673_v54  ;;  %v12707_v54 = vld [vmem:[#allocation75_spill] sm:$0xff] }
 0xcf7   : > { %v5666_v27 = vpop.f32.mrf.mxu0 }
 0xcf8   : > { %5686 = vmatmul.bf16.vlgmr.msrb.gmra.mxu2 %v5676_v26  ;;  %v5667_v57 = vadd.f32 %v5666_v27, %v5649_v8  ;;  %v12708_v26 = vld [vmem:[#allocation72_spill] sm:$0xff] }
 0xcf9   : > { %5778 = vmatpush.bf16.msrb.mxu2 %v12702_v13  ;;  %v12710_v27 = vld [vmem:[#allocation44_spill] sm:$0xff] }
 0xcfa   : > { %v5672_v21 = vadd.f32 %v12701_v37, %v5667_v57  ;;  %v12711_v37 = vld [vmem:[#allocation63_spill] sm:$0xff] }
 0xcfc   : > { %v5675_v62 = vmax.f32 %v5672_v21, 0.0  ;;  %v12719_v21 = vld [vmem:[#allocation45_spill] sm:$0xff] }
 0xcfd   : > { %5779 = vmatpush.bf16.msrb.mxu2 %v12703_v38 }
 0xcfe   : > { %v5677_v52 = vpack.c.bf16 %v5675_v62, %v5675_v62  ;;  %v12721_v62 = vld [vmem:[#allocation42_spill] sm:$0xff] }
 0xcff   : > { %v5668_v50 = vpop.f32.mrf.mxu0 }
 0xd00   : > { %v12720_v50 = vld [vmem:[#allocation43_spill] sm:$0xff] }
 0xd01   : > { %5780 = vmatpush.bf16.msrb.mxu2 %v12704_v11 }
 0xd05   : > { %5781 = vmatpush.bf16.msrb.mxu2 %v12705_v0 }
 0xd08   : > { %5691 = vmatmul.bf16.gmra.mxu2 %v5677_v52  ;;  %v12722_v52 = vld [vmem:[#allocation38_spill] sm:$0xff] }
 0xd09   : > { %5782 = vmatpush.bf16.msrb.mxu2 %v12706_v59 }
 0xd0d   : > { %5783 = vmatpush.bf16.msrb.mxu2 %v12707_v54 }
 0xd11   : > { %5784 = vmatpush.bf16.msrb.mxu2 %v12708_v26 }
 0xd15   : > { %5785 = vmatpush.bf16.msrb.mxu2 %v12709_v60 }
 0xd18   : > { %5744 = vmatmul.bf16.vlgmr.msra.gmra.mxu2 %v5721_v55  ;;  %v12718_v55 = vld [vmem:[#allocation46_spill] sm:$0xff] }
 0xd19   : > { %5830 = vmatpush.bf16.msra.mxu2 %v12710_v27 }
 0xd1d   : > { %5831 = vmatpush.bf16.msra.mxu2 %v12711_v37 }
 0xd21   : > { %5832 = vmatpush.bf16.msra.mxu2 %v12712_v39 }
 0xd25   : > { %5833 = vmatpush.bf16.msra.mxu2 %v12713_v44 }
 0xd29   : > { %5834 = vmatpush.bf16.msra.mxu2 %v12714_v46 }
 0xd2d   : > { %5835 = vmatpush.bf16.msra.mxu2 %v12715_v20 }
 0xd31   : > { %5836 = vmatpush.bf16.msra.mxu2 %v12716_v42 }
 0xd35   : > { %5837 = vmatpush.bf16.msra.mxu2 %v12717_v6  ;;  %v12723_v6 = vld [vmem:[#allocation36_spill] sm:$0xff] }
 0xd7b   : > { %v5687_v2 = vpop.f32.mrf.mxu2 }
 0xd7c   : > { %v5688_v8 = vadd.f32 %v12718_v55, %v5687_v2  ;;  %v12726_v2 = vld [vmem:[#allocation37_spill] sm:$0xff] }
 0xd83   : > { %v5689_v19 = vpop.f32.mrf.mxu2 }
 0xd84   : > { %v5690_v48 = vadd.f32 %v12718_v55, %v5689_v19  ;;  %v12725_v19 = vld [vmem:[#allocation34_spill] sm:$0xff] }
 0xd8b   : > { %v5692_v15 = vpop.f32.mrf.mxu2 }
 0xd8c   : > { %v5693_v33 = vadd.f32 %v12718_v55, %v5692_v15  ;;  %v12724_v15 = vld [vmem:[#allocation32_spill] sm:$0xff]  ;;  %v12727_v55 = vld [vmem:[#allocation81_spill] sm:$0xff] }
 0xd8e   : > { %5709 = vmatpush.msrb.mxu1 %v5693_v33  ;;  %v12728_v33 = vld [vmem:[#allocation80_spill] sm:$0xff] }
 0xd90   : > { %5710 = vmatpush.msrb.mxu1 %v5690_v48  ;;  %v12729_v48 = vld [vmem:[#allocation83_spill] sm:$0xff] }
 0xd92   : > { %5711 = vmatpush.msrb.mxu1 %v5688_v8  ;;  %v12730_v8 = vld [vmem:[#allocation78_spill] sm:$0xff] }
 0xd93   : > { %v5694_v57 = vpop.f32.mrf.mxu2  ;;  %7421 = vmatmul.msk.f32.vlgmr.msrb.gmra.mxu1 %vm4801_vm13, %v12719_v21  ;;  %v12732_v21 = vld [vmem:[#allocation41_spill] sm:$0xff] }
 0xd94   : > { %5750 = vmatpush.bf16.msra.mxu1 %v12720_v50  ;;  %v12731_v57 = vld [vmem:[#allocation77_spill] sm:$0xff] }
 0xd98   : > { %5751 = vmatpush.bf16.msra.mxu1 %v12721_v62 }
 0xd9b   : > { %7422 = vmatmul.msk.f32.gmra.mxu1 %vm4801_vm13, %v12722_v52  ;;  %v12733_v52 = vld [vmem:[#allocation76_spill] sm:$0xff]  ;;  %v5745_v62 = vpop.f32.mrf.mxu2 }
 0xd9c   : > { %5752 = vmatpush.bf16.msra.mxu1 %v12723_v6 }
 0xda0   : > { %5753 = vmatpush.bf16.msra.mxu1 %v12724_v15  ;;  %v12734_v15 = vld [vmem:[#allocation73_spill] sm:$0xff] }
 0xda4   : > { %5754 = vmatpush.bf16.msra.mxu1 %v12725_v19  ;;  %v12735_v19 = vld [vmem:[#allocation70_spill] sm:$0xff] }
 0xda8   : > { %5755 = vmatpush.bf16.msra.mxu1 %v12726_v2  ;;  %v12736_v2 = vld [vmem:[#allocation67_spill] sm:$0xff] }
 0xdac   : > { %5756 = vmatpush.bf16.msra.mxu1 %v12727_v55  ;;  %v12737_v55 = vld [vmem:[#allocation61_spill] sm:$0xff] }
 0xdb0   : > { %5757 = vmatpush.bf16.msra.mxu1 %v12728_v33  ;;  %v12738_v33 = vld [vmem:[#allocation50_spill] sm:$0xff] }
 0xdb3   : > { %5758 = vmatmul.bf16.vlgmr.msra.gmra.mxu1 %v11727_v10  ;;  %v12740_v10 = vld [vmem:[#allocation95_spill] sm:$0xff] }
 0xdb4   : > { %5792 = vmatpush.bf16.msrb.mxu1 %v12729_v48  ;;  %v12739_v48 = vld [vmem:[#allocation65_spill] sm:$0xff] }
 0xdb8   : > { %5793 = vmatpush.bf16.msrb.mxu1 %v12730_v8  ;;  %v12741_v8 = vld [vmem:[#allocation91_spill] sm:$0xff] }
 0xdbc   : > { %5794 = vmatpush.bf16.msrb.mxu1 %v12731_v57  ;;  %v12742_v57 = vld [vmem:[#allocation68_spill] sm:$0xff] }
 0xdc0   : > { %5795 = vmatpush.bf16.msrb.mxu1 %v12732_v21  ;;  %v12743_v21 = vld [vmem:[#allocation84_spill] sm:$0xff] }
 0xdc4   : > { %5796 = vmatpush.bf16.msrb.mxu1 %v12733_v52  ;;  %v12744_v52 = vld [vmem:[#allocation74_spill] sm:$0xff] }
 0xdc8   : > { %5797 = vmatpush.bf16.msrb.mxu1 %v12734_v15 }
 0xdcc   : > { %5798 = vmatpush.bf16.msrb.mxu1 %v12735_v19 }
 0xdd0   : > { %5799 = vmatpush.bf16.msrb.mxu1 %v12736_v2 }
 0xdd4   : > { %5844 = vmatpush.bf16.msra.mxu1 %v12737_v55  ;;  %v5731_v55 = vpop.f32.mrf.mxu0 }
 0xdd8   : > { %5845 = vmatpush.bf16.msra.mxu1 %v12738_v33 }
 0xddc   : > { %5846 = vmatpush.bf16.msra.mxu1 %v12739_v48  ;;  %v5733_v33 = vpop.f32.mrf.mxu0 }
 0xde0   : > { %5847 = vmatpush.bf16.msra.mxu1 %v12740_v10  ;;  %v5747_v10 = vpop.f32.mrf.mxu2 }
 0xde1   : > { %v5748_v37 = vadd.f32 %v5747_v10, %v5733_v33 }
 0xde4   : > { %5848 = vmatpush.bf16.msra.mxu1 %v12741_v8  ;;  %v5773_v50 = vpop.f32.mrf.mxu0 }
 0xde8   : > { %5849 = vmatpush.bf16.msra.mxu1 %v12742_v57 }
 0xdec   : > { %5850 = vmatpush.bf16.msra.mxu1 %v12743_v21  ;;  %v5775_v57 = vpop.f32.mrf.mxu0 }
 0xdf0   : > { %5851 = vmatpush.bf16.msra.mxu1 %v12744_v52  ;;  %v5746_v52 = vadd.f32 %v5745_v62, %v5731_v55 }
 0xe10   : > { %v5713_v15 = vpop.f32.mrf.mxu1 }
 0xe18   : > { %v5716_v19 = vpop.f32.mrf.mxu1 }
 0xe19   : > { %v5719_v6 = vpack.c.bf16 %v5716_v19, %v5713_v15 }
 0xe1b   : > { %5786 = vmatmul.bf16.vlgmr.msrb.gmra.mxu2 %v5719_v6  ;;  %5800 = vmatmul.bf16.vlgmr.msrb.gmra.mxu1 %v5719_v6 }
 0xe30   : > { %v5759_v2 = vpop.f32.mrf.mxu1 }
 0xe31   : > { %v5774_v8 = vadd.f32 %v5773_v50, %v5759_v2 }
 0xe38   : > { %v5761_v48 = vpop.f32.mrf.mxu1 }
 0xe39   : > { %v5776_v21 = vadd.f32 %v5775_v57, %v5761_v48 }
 0xe98   : > { %v5801_v42 = vpop.f32.mrf.mxu1 }
 0xe99   : > { %v5802_v20 = vadd.f32 %v5801_v42, %v5774_v8 }
 0xe9b   : > { %v5807_v39 = vadd.f32 %v5802_v20, %v11422_v58 }
 0xe9d   : > { %v5811_v27 = vmax.f32 %v5807_v39, 0.0 }
 0xe9e   : > { %v5787_v46 = vpop.f32.mrf.mxu2 }
 0xe9f   : > { %v5788_v19 = vadd.f32 %v5787_v46, %v5746_v52 }
 0xea0   : > { %v5803_v44 = vpop.f32.mrf.mxu1 }
 0xea1   : > { %v5804_v15 = vadd.f32 %v5803_v44, %v5776_v21  ;;  %v5806_v54 = vadd.f32 %v5788_v19, %v11427_v43  ;;  %v12756_v19 = vld [vmem:[#allocation102_spill] sm:$0xff] }
 0xea3   : > { %v5809_v6 = vadd.f32 %v5804_v15, %v11422_v58  ;;  %v5810_v2 = vmax.f32 %v5806_v54, 0.0  ;;  %v12755_v15 = vld [vmem:[#allocation101_spill] sm:$0xff] }
 0xea5   : > { %v5813_v60 = vmax.f32 %v5809_v6, 0.0  ;;  %v12757_v6 = vld [vmem:[#allocation103_spill] sm:$0xff] }
 0xea6   : > { %v5789_v26 = vpop.f32.mrf.mxu2 }
 0xea7   : > { %v5815_v59 = vpack.c.bf16 %v5813_v60, %v5811_v27  ;;  %v5790_v50 = vadd.f32 %v5789_v26, %v5748_v37 }
 0xea9   : > { %v5808_v42 = vadd.f32 %v5790_v50, %v11427_v43  ;;  %5838 = vmatmul.bf16.vlgmr.msra.gmra.mxu2 %v5815_v59 }
 0xeab   : > { %v5812_v48 = vmax.f32 %v5808_v42, 0.0 }
 0xead   : > { %v5814_v62 = vpack.c.bf16 %v5812_v48, %v5810_v2 }
 0xeaf   : > { %5824 = vmatmul.bf16.vlgmr.msra.gmra.mxu0 %v5814_v62  ;;  %5852 = vmatmul.bf16.vlgmr.msra.gmra.mxu1 %v5814_v62 }
 0xebf   : > { %5866 = vmatmul.bf16.vlgmr.msrb.gmra.mxu0 %v5815_v59 }
 0xf2c   : > { %v5825_v44 = vpop.f32.mrf.mxu0  ;;  %v5839_v46 = vpop.f32.mrf.mxu2 }
 0xf2d   : > { %v5826_v20 = vadd.f32 %v5825_v44, %v11435_v17  ;;  %v5853_v33 = vpop.f32.mrf.mxu1 }
 0xf2f   : > { %v5840_v60 = vadd.f32 %v5839_v46, %v5826_v20 }
 0xf31   : > { %v11809_v54 = vadd.f32 %v5840_v60, %v11443_v49  ;;  %v5854_v49 = vadd.f32 %v5853_v33, %v11455_v9 }
 0xf34   : > { %v5827_v39 = vpop.f32.mrf.mxu0  ;;  %v5841_v8 = vpop.f32.mrf.mxu2 }
 0xf35   : > { %v5828_v55 = vadd.f32 %v5827_v39, %v11435_v17 }
 0xf37   : > { %v5842_v26 = vadd.f32 %v5841_v8, %v5828_v55 }
 0xf39   : > { %v11806_v27 = vadd.f32 %v5842_v26, %v11440_v41  ;;  %v5855_v41 = vpop.f32.mrf.mxu1 }
 0xf3a   : > { %v5856_v37 = vadd.f32 %v5855_v41, %v11455_v9  ;;  %v12760_v41 = vld [vmem:[#allocation57_spill] sm:$0xff] }
 0xf3b   : > { %7423 = vmatpush.msk.msrb.mxu2 %vm4242_vm11, %v11806_v27  ;;  %7431 = vmatpush.msk.msra.mxu0 %vm4242_vm11, %v11806_v27 }
 0xf3c   : > { %v5867_v59 = vpop.f32.mrf.mxu0 }
 0xf3d   : > { %5897 = vmatpush.msrb.mxu2 %v11809_v54  ;;  %5949 = vmatpush.msra.mxu0 %v11809_v54  ;;  %v5868_v21 = vadd.f32 %v5867_v59, %v5854_v49  ;;  %v12759_v59 = vld [vmem:[#allocation21_spill] sm:$0xff]  ;;  %v12763_v49 = vld [vmem:[#allocation23_spill] sm:$0xff] }
 0xf3e   : > { %7424 = vmatmul.msk.f32.vlgmr.msrb.gmra.mxu2 %vm4232_vm12, %v11451_v36  ;;  %7432 = vmatmul.msk.f32.vlgmr.msra.gmra.mxu0 %vm4232_vm12, %v11496_v7 }
 0xf3f   : > { %6012 = vmatpush.bf16.msrb.mxu0 %v11463_v25  ;;  %v11834_v25 = vadd.f32 %v5868_v21, %v11485_v16  ;;  %v7683_v16 = vld [vmem:[%s12111_s20 + $0x38] sm:$0xff]  ;;  %v12765_v21 = vld [vmem:[#allocation24_spill] sm:$0xff] }
 0xf43   : > { %6013 = vmatpush.bf16.msrb.mxu0 %v11481_v31  ;;  %v7682_v31 = vld [vmem:[%s12109_s18 + $0x40] sm:$0xff] }
 0xf44   : > { %v5869_v57 = vpop.f32.mrf.mxu0 }
 0xf45   : > { %v5870_v52 = vadd.f32 %v5869_v57, %v5856_v37  ;;  %v12764_v37 = vld [vmem:[#allocation55_spill] sm:$0xff] }
 0xf46   : > { %7425 = vmatmul.msk.f32.gmra.mxu2 %vm4232_vm12, %v11471_v5  ;;  %7433 = vmatmul.msk.f32.gmra.mxu0 %vm4232_vm12, %v11543_v29 }
 0xf47   : > { %v11830_v10 = vadd.f32 %v5870_v52, %v11476_v24  ;;  %6014 = vmatpush.bf16.msrb.mxu0 %v11524_v40  ;;  %v7679_v24 = vld [vmem:[%s12109_s18 + $0x60] sm:$0xff]  ;;  %v7685_v40 = vld [vmem:[%s12111_s20 + $0x28] sm:$0xff] }
 0xf49   : > { %7427 = vmatpush.msk.msrb.mxu1 %vm4242_vm11, %v11830_v10  ;;  %7435 = vmatpush.msk.msra.mxu2 %vm4242_vm11, %v11830_v10 }
 0xf4b   : > { %5923 = vmatpush.msrb.mxu1 %v11834_v25  ;;  %5975 = vmatpush.msra.mxu2 %v11834_v25 }
 0xf4c   : > { %7428 = vmatmul.msk.f32.vlgmr.msrb.gmra.mxu1 %vm4232_vm12, %v11451_v36  ;;  %6015 = vmatpush.bf16.msrb.mxu0 %v7679_v24  ;;  %v7680_v36 = vld [vmem:[%s12109_s18 + $0x50] sm:$0xff]  ;;  %v12766_v24 = vld [vmem:[#allocation54_spill] sm:$0xff] }
 0xf4d   : > { %6030 = vmatpush.bf16.msrb.mxu2 %v11505_v22  ;;  %5994 = vmatpush.bf16.msra.mxu1 %v11511_v45  ;;  %v7684_v22 = vld [vmem:[%s12111_s20 + $0x30] sm:$0xff]  ;;  %v12746_v45 = vld [vmem:[#allocation17_spill] sm:$0xff] }
 0xf4e   : > { %7426 = vmatmul.msk.f32.gmra.mxu2 %vm4232_vm12, %v11517_v30  ;;  %7434 = vmatmul.msk.f32.gmra.mxu0 %vm4232_vm12, %v11585_v32 }
 0xf50   : > { %6016 = vmatpush.bf16.msrb.mxu0 %v11566_v35  ;;  %v7687_v35 = vld [vmem:[%s12111_s20 + $0x18] sm:$0xff] }
 0xf51   : > { %6031 = vmatpush.bf16.msrb.mxu2 %v11530_v12  ;;  %5995 = vmatpush.bf16.msra.mxu1 %v11536_v47  ;;  %v12748_v12 = vld [vmem:[#allocation90_spill] sm:$0xff]  ;;  %v12749_v47 = vld [vmem:[#allocation16_spill] sm:$0xff] }
 0xf54   : > { %7429 = vmatmul.msk.f32.gmra.mxu1 %vm4232_vm12, %v11471_v5  ;;  %6017 = vmatpush.bf16.msrb.mxu0 %v7680_v36  ;;  %v7681_v5 = vld [vmem:[%s12109_s18 + $0x48] sm:$0xff] }
 0xf55   : > { %6032 = vmatpush.bf16.msrb.mxu2 %v11552_v3  ;;  %5996 = vmatpush.bf16.msra.mxu1 %v11558_v51  ;;  %v7686_v3 = vld [vmem:[%s12111_s20 + $0x20] sm:$0xff]  ;;  %v12751_v51 = vld [vmem:[#allocation15_spill] sm:$0xff] }
 0xf56   : > { %7436 = vmatmul.msk.f32.vlgmr.msra.gmra.mxu2 %vm4232_vm12, %v11496_v7  ;;  %v12745_v7 = vld [vmem:[#allocation106_spill] sm:$0xff] }
 0xf58   : > { %6018 = vmatpush.bf16.msrb.mxu0 %v7681_v5  ;;  %v12767_v5 = vld [vmem:[#allocation25_spill] sm:$0xff] }
 0xf59   : > { %6033 = vmatpush.bf16.msrb.mxu2 %v11572_v14  ;;  %5997 = vmatpush.bf16.msra.mxu1 %v11578_v1  ;;  %v12752_v14 = vld [vmem:[#allocation93_spill] sm:$0xff]  ;;  %v7688_v1 = vld [vmem:[%s12111_s20 + $0x10] sm:$0xff] }
 0xf5c   : > { %7430 = vmatmul.msk.f32.gmra.mxu1 %vm4232_vm12, %v11517_v30  ;;  %6019 = vmatpush.bf16.msrb.mxu0 %v7682_v31  ;;  %v12747_v30 = vld [vmem:[#allocation105_spill] sm:$0xff] }
 0xf5d   : > { %6034 = vmatpush.bf16.msrb.mxu2 %v11594_v63  ;;  %5998 = vmatpush.bf16.msra.mxu1 %v11600_v4  ;;  %v7689_v63 = vld [vmem:[%s12111_s20 + $0x8] sm:$0xff]  ;;  %v12768_v31 = vld [vmem:[#allocation29_spill] sm:$0xff] }
 0xf5e   : > { %7437 = vmatmul.msk.f32.gmra.mxu2 %vm4232_vm12, %v11543_v29  ;;  %v12750_v29 = vld [vmem:[#allocation104_spill] sm:$0xff]  ;;  %v12754_v4 = vld [vmem:[#allocation99_spill] sm:$0xff] }
 0xf60   : > { %6074 = vmatpush.bf16.msra.mxu0 %v7683_v16  ;;  %v12769_v16 = vld [vmem:[#allocation26_spill] sm:$0xff] }
 0xf61   : > { %6035 = vmatpush.bf16.msrb.mxu2 %v11609_v53  ;;  %5999 = vmatpush.bf16.msra.mxu1 %v12745_v7  ;;  %v7690_v53 = vld [vmem:[%s12111_s20] sm:$0xff]  ;;  %v12770_v7 = vld [vmem:[#allocation52_spill] sm:$0xff] }
 0xf64   : > { %6075 = vmatpush.bf16.msra.mxu0 %v7684_v22  ;;  %v12771_v22 = vld [vmem:[#allocation27_spill] sm:$0xff] }
 0xf65   : > { %6036 = vmatpush.bf16.msrb.mxu2 %v12746_v45  ;;  %6000 = vmatpush.bf16.msra.mxu1 %v12747_v30  ;;  %v12772_v45 = vld [vmem:[#allocation49_spill] sm:$0xff]  ;;  %v12773_v30 = vld [vmem:[#allocation28_spill] sm:$0xff] }
 0xf66   : > { %7438 = vmatmul.msk.f32.gmra.mxu2 %vm4232_vm12, %v11585_v32  ;;  %v12753_v32 = vld [vmem:[#allocation96_spill] sm:$0xff] }
 0xf68   : > { %6076 = vmatpush.bf16.msra.mxu0 %v7685_v40  ;;  %v12774_v40 = vld [vmem:[#allocation48_spill] sm:$0xff] }
 0xf69   : > { %6037 = vmatpush.bf16.msrb.mxu2 %v12748_v12  ;;  %6001 = vmatpush.bf16.msra.mxu1 %v12749_v47  ;;  %v12775_v12 = vld [vmem:[#allocation58_spill] sm:$0xff]  ;;  %v11945_v47 = vpack.c.bf16 %v11806_v27, %v11809_v54 }
 0xf6c   : > { %6077 = vmatpush.bf16.msra.mxu0 %v7686_v3  ;;  %v12777_v3 = vld [vmem:[#allocation64_spill] sm:$0xff] }
 0xf6d   : > { %6048 = vmatpush.bf16.msrb.mxu1 %v12750_v29  ;;  %v12776_v29 = vld [vmem:[#allocation66_spill] sm:$0xff] }
 0xf70   : > { %6078 = vmatpush.bf16.msra.mxu0 %v7687_v35  ;;  %v12779_v35 = vld [vmem:[#allocation56_spill] sm:$0xff] }
 0xf71   : > { %6049 = vmatpush.bf16.msrb.mxu1 %v12751_v51  ;;  %v12778_v51 = vld [vmem:[#allocation47_spill] sm:$0xff] }
 0xf74   : > { %6079 = vmatpush.bf16.msra.mxu0 %v7688_v1  ;;  %v12780_v1 = vld [vmem:[#allocation62_spill] sm:$0xff] }
 0xf75   : > { %6050 = vmatpush.bf16.msrb.mxu1 %v12752_v14  ;;  %v11954_v14 = vpack.c.bf16 %v11830_v10, %v11834_v25 }
 0xf78   : > { %6080 = vmatpush.bf16.msra.mxu0 %v7689_v63  ;;  %v12782_v63 = vld [vmem:[#allocation97_spill] sm:$0xff] }
 0xf79   : > { %6051 = vmatpush.bf16.msrb.mxu1 %v12753_v32  ;;  %v12781_v32 = vld [vmem:[#allocation100_spill] sm:$0xff] }
 0xf7c   : > { %6081 = vmatpush.bf16.msra.mxu0 %v7690_v53  ;;  %v12784_v53 = vld [vmem:[#allocation14_spill] sm:$0xff] }
 0xf7d   : > { %6052 = vmatpush.bf16.msrb.mxu1 %v12754_v4  ;;  %v12783_v4 = vld [vmem:[#allocation92_spill] sm:$0xff] }
 0xf81   : > { %6053 = vmatpush.bf16.msrb.mxu1 %v12755_v15  ;;  %v12787_v15 = vld [vmem:[#allocation13_spill] sm:$0xff] }
 0xf85   : > { %6054 = vmatpush.bf16.msrb.mxu1 %v12756_v19  ;;  %v6272_v19 = vld [vmem:[%s867_s2] sm:$0xf] }
 0xf86   : > { %6276 = vperm.xlu2 %7624, %v6272_v19  }
 0xf89   : > { %6055 = vmatpush.bf16.msrb.mxu1 %v12757_v6  ;;  %v12788_v6 = vld [vmem:[#allocation71_spill] sm:$0xff] }
 0xfbb   : > { %v5951_v50 = vpop.f32.mrf.mxu0 }
 0xfc1   : > { %v5899_v42 = vpop.f32.mrf.mxu2 }
 0xfc3   : > { %v5954_v2 = vpop.f32.mrf.mxu0 }
 0xfc4   : > { %v5990_v48 = vpack.c.bf16 %v5954_v2, %v5951_v50  ;;  %v12789_v50 = vld [vmem:[#allocation39_spill] sm:$0xff] }
 0xfc5   : > { %v12791_v2 = vld [vmem:[#allocation79_spill] sm:$0xff] }
 0xfc6   : > { %6002 = vmatmul.bf16.vlgmr.msra.gmra.mxu1 %v5990_v48  ;;  %v12792_v48 = vld [vmem:[#allocation82_spill] sm:$0xff] }
 0xfc7   : > { %6118 = vmatpush.bf16.msra.mxu1 %v10590_v18  ;;  %v12758_v18 = vld [vmem:[#allocation87_spill] sm:$0xff] }
 0xfc9   : > { %v5902_v62 = vpop.f32.mrf.mxu2  ;;  %v5925_v55 = vpop.f32.mrf.mxu1 }
 0xfca   : > { %v5986_v44 = vpack.c.bf16 %v5902_v62, %v5899_v42  ;;  %v12790_v42 = vmov 1   ;;  %v12793_v62 = vld [vmem:[#allocation85_spill] sm:$0xff] }
 0xfcb   : > { %6119 = vmatpush.bf16.msra.mxu1 %v10605_v28  ;;  %v5957_v46 = vpop.f32.mrf.mxu0  ;;  %7625 = vset.pattern.permute.xlu2 %v12790_v42  ;;  %v12800_v42 = vld [vmem:[#allocation44_spill] sm:$0xff] }
 0xfcc   : > { %6038 = vmatmul.bf16.vlgmr.msrb.gmra.mxu2 %v5986_v44  ;;  %v5992_v39 = vpack.c.bf16 %v5957_v46, %v5957_v46  ;;  %6283 = vperm.xlu2 %7625, %v6272_v19   ;;  %v12794_v44 = vld [vmem:[#allocation88_spill] sm:$0xff]  ;;  %v12799_v19 = vld [vmem:[#allocation69_spill] sm:$0xff] }
 0xfcf   : > { %6120 = vmatpush.bf16.msra.mxu1 %v10619_v61 }
 0xfd1   : > { %v5905_v20 = vpop.f32.mrf.mxu2  ;;  %v5928_v28 = vpop.f32.mrf.mxu1 }
 0xfd2   : > { %v5988_v8 = vpack.c.bf16 %v5905_v20, %v5905_v20  ;;  %v5987_v61 = vpack.c.bf16 %v5928_v28, %v5925_v55 }
 0xfd3   : > { %6121 = vmatpush.bf16.msra.mxu1 %v10635_v23  ;;  %v12761_v23 = vld [vmem:[#allocation22_spill] sm:$0xff] }
 0xfd6   : > { %6007 = vmatmul.bf16.gmra.mxu1 %v5992_v39 }
 0xfd7   : > { %6122 = vmatpush.bf16.msra.mxu1 %v10644_v34  ;;  %v12762_v34 = vld [vmem:[#allocation60_spill] sm:$0xff] }
 0xfd9   : > { %v5977_v33 = vpop.f32.mrf.mxu2  ;;  %v5931_v57 = vpop.f32.mrf.mxu1 }
 0xfda   : > { %v5989_v36 = vpack.c.bf16 %v5931_v57, %v5931_v57 }
 0xfdb   : > { %6123 = vmatpush.bf16.msra.mxu1 %v10653_v56 }
 0xfdc   : > { %6043 = vmatmul.bf16.gmra.mxu2 %v5988_v8 }
 0xfdf   : > { %6124 = vmatpush.bf16.msra.mxu1 %v12758_v18 }
 0xfe1   : > { %v5980_v60 = vpop.f32.mrf.mxu2 }
 0xfe2   : > { %v5991_v26 = vpack.c.bf16 %v5980_v60, %v5977_v33 }
 0xfe3   : > { %6125 = vmatpush.bf16.msra.mxu1 %v12759_v59 }
 0xfe4   : > { %6020 = vmatmul.bf16.vlgmr.msrb.gmra.mxu0 %v5991_v26 }
 0xfe5   : > { %6132 = vmatpush.bf16.msrb.mxu0 %v12760_v41 }
 0xfe6   : > { %6056 = vmatmul.bf16.vlgmr.msrb.gmra.mxu1 %v5987_v61 }
 0xfe7   : > { %6160 = vmatpush.bf16.msrb.mxu1 %v12761_v23 }
 0xfe9   : > { %6133 = vmatpush.bf16.msrb.mxu0 %v12762_v34  ;;  %v5983_v56 = vpop.f32.mrf.mxu2 }
 0xfea   : > { %v5993_v52 = vpack.c.bf16 %v5983_v56, %v5983_v56 }
 0xfeb   : > { %6161 = vmatpush.bf16.msrb.mxu1 %v12763_v49 }
 0xfed   : > { %6134 = vmatpush.bf16.msrb.mxu0 %v12764_v37  ;;  %v7691_v37 = vld [vmem:[%s12110_s19] ss:$0 sm:$0xff] }
 0xfef   : > { %6162 = vmatpush.bf16.msrb.mxu1 %v12765_v21 }
 0xff1   : > { %6135 = vmatpush.bf16.msrb.mxu0 %v12766_v24 }
 0xff3   : > { %6163 = vmatpush.bf16.msrb.mxu1 %v12767_v5 }
 0xff4   : > { %6025 = vmatmul.bf16.gmra.mxu0 %v5993_v52 }
 0xff5   : > { %6136 = vmatpush.bf16.msrb.mxu0 %v12768_v31 }
 0xff6   : > { %6061 = vmatmul.bf16.gmra.mxu1 %v5989_v36 }
 0xff7   : > { %6164 = vmatpush.bf16.msrb.mxu1 %v12769_v16 }
 0xff9   : > { %6137 = vmatpush.bf16.msrb.mxu0 %v12770_v7 }
 0xffb   : > { %6165 = vmatpush.bf16.msrb.mxu1 %v12771_v22 }
 0xffd   : > { %6138 = vmatpush.bf16.msrb.mxu0 %v12772_v45 }
 0xfff   : > { %6166 = vmatpush.bf16.msrb.mxu1 %v12773_v30 }
0x1001   : > { %6139 = vmatpush.bf16.msrb.mxu0 %v12774_v40 }
0x1003   : > { %6167 = vmatpush.bf16.msrb.mxu1 %v12775_v12 }
0x1006   : > { %6126 = vmatmul.bf16.vlgmr.msra.gmra.mxu1 %v11945_v47 }
0x1007   : > { %6212 = vmatpush.bf16.msra.mxu1 %v12776_v29 }
0x100b   : > { %6213 = vmatpush.bf16.msra.mxu1 %v12777_v3 }
0x100f   : > { %6214 = vmatpush.bf16.msra.mxu1 %v12778_v51  ;;  %v6277_v51 = vpop.permute.xlu2 %6276 }
0x1013   : > { %6215 = vmatpush.bf16.msra.mxu1 %v12779_v35  ;;  %v7630_v35 = vld [vmem:[%s12795_s12] ss:$0 sm:$0xff] }
0x1016   : > { %6168 = vmatmul.bf16.vlgmr.msrb.gmra.mxu1 %v11954_v14 }
0x1017   : > { %6216 = vmatpush.bf16.msra.mxu1 %v12780_v1  ;;  %v12796_v1 = vld [vmem:[#allocation35_spill] sm:$0xff] }
0x101b   : > { %6217 = vmatpush.bf16.msra.mxu1 %v12781_v32  ;;  %v12797_v32 = vld [vmem:[#allocation75_spill] sm:$0xff] }
0x101f   : > { %6218 = vmatpush.bf16.msra.mxu1 %v12782_v63 }
0x1023   : > { %6219 = vmatpush.bf16.msra.mxu1 %v12783_v4 }
0x1027   : > { %6254 = vmatpush.bf16.msrb.mxu1 %v12784_v53 }
0x102b   : > { %6255 = vmatpush.bf16.msrb.mxu1 %v12787_v15 }
0x102f   : > { %6256 = vmatpush.bf16.msrb.mxu1 %v12788_v6 }
0x1033   : > { %6257 = vmatpush.bf16.msrb.mxu1 %v12789_v50 }
0x1037   : > { %6258 = vmatpush.bf16.msrb.mxu1 %v12791_v2 }
0x103b   : > { %6259 = vmatpush.bf16.msrb.mxu1 %v12792_v48  ;;  %v12801_v48 = vld [vmem:[#allocation63_spill] sm:$0xff] }
0x103f   : > { %6260 = vmatpush.bf16.msrb.mxu1 %v12793_v62  ;;  %v12802_v62 = vld [vmem:[#allocation53_spill] sm:$0xff] }
0x1043   : > { %6261 = vmatpush.bf16.msrb.mxu1 %v12794_v44  ;;  %v6003_v46 = vpop.f32.mrf.mxu1  ;;  %v12803_v44 = vld [vmem:[#allocation59_spill] sm:$0xff] }
0x104b   : > { %v6005_v20 = vpop.f32.mrf.mxu1 }
0x104f   : > { %v6039_v39 = vpop.f32.mrf.mxu2 }
0x1053   : > { %v6008_v55 = vpop.f32.mrf.mxu1 }
0x1057   : > { %v6041_v33 = vpop.f32.mrf.mxu2 }
0x105b   : > { %v6010_v8 = vpop.f32.mrf.mxu1 }
0x105f   : > { %v6044_v18 = vpop.f32.mrf.mxu2 }
0x1061   : > { %v6021_v28 = vpop.f32.mrf.mxu0 }
0x1062   : > { %v6022_v60 = vadd.f32 %v6021_v28, %v6003_v46  ;;  %v12804_v46 = vld [vmem:[#allocation98_spill] sm:$0xff] }
0x1063   : > { %v6057_v26 = vpop.f32.mrf.mxu1 }
0x1064   : > { %v6040_v59 = vadd.f32 %v6039_v39, %v6022_v60  ;;  %v12806_v39 = vld [vmem:[#allocation89_spill] sm:$0xff] }
0x1066   : > { %v6058_v23 = vadd.f32 %v6057_v26, %v6040_v59 }
0x1067   : > { %v6046_v61 = vpop.f32.mrf.mxu2 }
0x1068   : > { %v6066_v57 = vadd.f32 %v7691_v37, %v6058_v23  ;;  %v7693_v61 = vld [vmem:[%s12107_s16] sm:$0xff] }
0x1069   : > { %v6023_v41 = vpop.f32.mrf.mxu0 }
0x106a   : > { %v6024_v34 = vadd.f32 %v6023_v41, %v6005_v20  ;;  %v6069_v36 = vmax.f32 %v6066_v57, 0.0  ;;  %v12805_v20 = vld [vmem:[#allocation94_spill] sm:$0xff]  ;;  %v12808_v41 = vld [vmem:[#allocation43_spill] sm:$0xff]  ;;  %v12810_v57 = vld [vmem:[#allocation36_spill] sm:$0xff] }
0x106b   : > { %v6059_v49 = vpop.f32.mrf.mxu1 }
0x106c   : > { %v6042_v56 = vadd.f32 %v6041_v33, %v6024_v34 }
0x106e   : > { %v6060_v21 = vadd.f32 %v6059_v49, %v6042_v56  ;;  %v12809_v49 = vld [vmem:[#allocation42_spill] sm:$0xff] }
0x1070   : > { %v6067_v52 = vadd.f32 %v7691_v37, %v6060_v21 }
0x1071   : > { %v6026_v24 = vpop.f32.mrf.mxu0 }
0x1072   : > { %v6070_v5 = vmax.f32 %v6067_v52, 0.0  ;;  %v6027_v31 = vadd.f32 %v6026_v24, %v6008_v55  ;;  %v12811_v52 = vld [vmem:[#allocation32_spill] sm:$0xff] }
0x1073   : > { %v6062_v16 = vpop.f32.mrf.mxu1 }
0x1074   : > { %v6072_v7 = vpack.c.bf16 %v6070_v5, %v6069_v36  ;;  %v6045_v22 = vadd.f32 %v6044_v18, %v6027_v31  ;;  %v7692_v18 = vld [vmem:[%s12112_s21] ss:$0 sm:$0xff]  ;;  %v12813_v5 = vld [vmem:[#allocation37_spill] sm:$0xff] }
0x1075   : > { %v12812_v36 = vld [vmem:[#allocation34_spill] sm:$0xff]  ;;  %v12814_v31 = vld [vmem:[#allocation81_spill] sm:$0xff] }
0x1076   : > { %6082 = vmatmul.bf16.vlgmr.msra.gmra.mxu0 %v6072_v7  ;;  %v6063_v45 = vadd.f32 %v6062_v16, %v6045_v22  ;;  %v12815_v16 = vld [vmem:[#allocation80_spill] sm:$0xff]  ;;  %v12816_v7 = vld [vmem:[#allocation83_spill] sm:$0xff]  ;;  %v12817_v22 = vld [vmem:[#allocation78_spill] sm:$0xff] }
0x1077   : > { %6174 = vmatpush.bf16.msra.mxu0 %v12702_v13  ;;  %v6280_v13 = vsub.f32 %v6277_v51, %v7630_v35  ;;  %v12824_v51 = vld [vmem:[#allocation61_spill] sm:$0xff]  ;;  %v12825_v35 = vld [vmem:[#allocation50_spill] sm:$0xff] }
0x1078   : > { %v6068_v12 = vadd.f32 %v7691_v37, %v6063_v45  ;;  %v7694_v37 = vld [vmem:[%s12107_s16 + $0x8] sm:$0x1]  ;;  %v12818_v45 = vld [vmem:[#allocation77_spill] sm:$0xff] }
0x1079   : > { %v6028_v30 = vpop.f32.mrf.mxu0  ;;  %v6288_v63 = vmul.f32 %v6280_v13, %v6280_v13  ;;  %v12828_v13 = vld [vmem:[#allocation91_spill] sm:$0xff] }
0x107a   : > { %v6071_v29 = vmax.f32 %v6068_v12, 0.0  ;;  %v12819_v30 = vld [vmem:[#allocation41_spill] sm:$0xff] }
0x107b   : > { %v6064_v40 = vpop.f32.mrf.mxu1  ;;  %6175 = vmatpush.bf16.msra.mxu0 %v12703_v38  ;;  %v7631_v38 = vld [vmem:[%s12795_s12 + $0x1] ss:$0 sm:$0xff]  ;;  %v12821_v12 = vld [vmem:[#allocation73_spill] sm:$0xff]  ;;  %s7709_s12 = sshra.s32 %s6391_s5, 4  ;;  %s7710_s12 = int_to_ptr.hbm [resolvable:$true] %s7709_s12 }
0x107c   : > { %v6073_v3 = vpack.c.bf16 %v6071_v29, %v6071_v29  ;;  %v12820_v40 = vld [vmem:[#allocation76_spill] sm:$0xff]  ;;  %v12822_v29 = vld [vmem:[#allocation70_spill] sm:$0xff]  ;;  %s7711_s30 = scalar_lea.hbm %s7710_s12, 8  ;;  %p7716_p0 = scmp.lt.s32.totalorder %s7710_s12, %s12833_s0 }
0x107d   : > { %p7712_p11 = scmp.ne.s32.totalorder %s7710_s12, %s7711_s30  ;;  %p7717_p1 = scmp.lt.s32.totalorder %s7715_s7, %s7711_s30 }
0x107f   : > { %6176 = vmatpush.bf16.msra.mxu0 %v12704_v11  ;;  %v6284_v11 = vpop.permute.xlu2 %6283  ;;  %p7713_p12 = pnand %p7712_p11, %p7939_p5  ;;  %p7718_p2 = por %p7717_p1, %p7716_p0 }
0x1080   : > { %v6287_v4 = vsub.f32 %v6284_v11, %v7631_v38  ;;  %v12829_v38 = vld [vmem:[#allocation68_spill] sm:$0xff]  ;;  %v12831_v11 = vld [vmem:[#allocation74_spill] sm:$0xff] }
0x1081   : > { %p7714_p13 = pneg %p7713_p12 }
0x1082   : > { %v6289_v53 = vmul.f32 %v6287_v4, %v6287_v4 }
0x1083   : > { %6177 = vmatpush.bf16.msra.mxu0 %v12705_v0  ;;  %v12798_v0 = vld [vmem:[#allocation72_spill] sm:$0xff]  ;;  %p7719_p3 = pnand %p7718_p2, %p7714_p13 }
0x1084   : > { %v6290_v15 = vadd.f32 %v6289_v53, %v6288_v63  ;;  %v6127_v53 = vpop.f32.mrf.mxu1 }
0x1086   : > { %6087 = vmatmul.bf16.gmra.mxu0 %v6073_v3  ;;  %v6291_v6 = vsub.f32 0.0, %v6290_v15  ;;  %v12823_v3 = vld [vmem:[#allocation67_spill] sm:$0xff] }
0x1087   : > { %6178 = vmatpush.bf16.msra.mxu0 %v12796_v1  ;;  %v12826_v1 = vld [vmem:[#allocation65_spill] sm:$0xff] }
0x1088   : > { %v6292_v50 = vmul.f32 10.0, %v6291_v6 }
0x108a   : > { %v6294_v2 = vsel %vm6293_vm14, %v6292_v50, -inf }
0x108b   : > { %6179 = vmatpush.bf16.msra.mxu0 %v12797_v32  ;;  %6295 = vmax.xlane.f32.xlu0 %v6294_v2  ;;  %v12830_v32 = vld [vmem:[#allocation84_spill] sm:$0xff] }
0x108c   : > { %v6129_v6 = vpop.f32.mrf.mxu1 }
0x108f   : > { %6180 = vmatpush.bf16.msra.mxu0 %v12798_v0 }
0x1093   : > { %6181 = vmatpush.bf16.msra.mxu0 %v12799_v19 }
0x1096   : > { %6140 = vmatmul.bf16.vlgmr.msrb.gmra.mxu0 %v11954_v14  ;;  %v12807_v14 = vld [vmem:[#allocation86_spill] sm:$0xff] }
0x1097   : > { %6226 = vmatpush.bf16.msrb.mxu0 %v12800_v42 }
0x109b   : > { %6227 = vmatpush.bf16.msrb.mxu0 %v12801_v48  ;;  %v6169_v48 = vpop.f32.mrf.mxu1 }
0x109f   : > { %6228 = vmatpush.bf16.msrb.mxu0 %v12802_v62 }
0x10a3   : > { %6229 = vmatpush.bf16.msrb.mxu0 %v12803_v44 }
0x10a7   : > { %6230 = vmatpush.bf16.msrb.mxu0 %v12804_v46 }
0x10ab   : > { %6231 = vmatpush.bf16.msrb.mxu0 %v12805_v20 }
0x10af   : > { %6232 = vmatpush.bf16.msrb.mxu0 %v12806_v39 }
0x10b3   : > { %6233 = vmatpush.bf16.msrb.mxu0 %v12807_v14 }
0x10f3   : > { %v6083_v55 = vpop.f32.mrf.mxu0 }
0x10f4   : > { %v6084_v26 = vadd.f32 %v7692_v18, %v6083_v55 }
0x10fb   : > { %v6085_v33 = vpop.f32.mrf.mxu0 }
0x10fc   : > { %v6086_v60 = vadd.f32 %v7692_v18, %v6085_v33 }
0x10fe   : > { %v6296_v23 = vpop.xlane.xlu0 %6295 }
0x10ff   : > { %v6297_v34 = vsub.f32 %v6292_v50, %v6296_v23 }
0x1101   : > { %v6298_v56 = vmul.f32 1.442695, %v6297_v34 }
0x1103   : > { %v6088_v8 = vpop.f32.mrf.mxu0  ;;  %7638 = vpow2.f32 %v6298_v56 }
0x1104   : > { %v6089_v28 = vadd.f32 %v7692_v18, %v6088_v8 }
0x1106   : > { %6105 = vmatpush.msra.mxu2 %v6089_v28  ;;  %v6171_v28 = vpop.f32.mrf.mxu1 }
0x1108   : > { %6106 = vmatpush.msra.mxu2 %v6086_v60 }
0x1109   : > { %v12016_v21 = vpop.eup %7638 }
0x110a   : > { %6107 = vmatpush.msra.mxu2 %v6084_v26  ;;  %v6300_v24 = vsel %vm6293_vm14, %v12016_v21, 0.0 }
0x110b   : > { %v6090_v59 = vpop.f32.mrf.mxu0  ;;  %7439 = vmatmul.msk.f32.vlgmr.msra.gmra.mxu2 %vm4801_vm13, %v7693_v61  ;;  %6301 = vadd.xlane.f32.xlu1 %v6300_v24 }
0x110c   : > { %6146 = vmatpush.bf16.msrb.mxu2 %v12808_v41 }
0x1110   : > { %6147 = vmatpush.bf16.msrb.mxu2 %v12809_v49 }
0x1113   : > { %7440 = vmatmul.msk.f32.gmra.mxu2 %vm4801_vm13, %v7694_v37  ;;  %v6141_v15 = vpop.f32.mrf.mxu0 }
0x1114   : > { %6148 = vmatpush.bf16.msrb.mxu2 %v12810_v57  ;;  %v6142_v62 = vadd.f32 %v6141_v15, %v6127_v53 }
0x1118   : > { %6149 = vmatpush.bf16.msrb.mxu2 %v12811_v52 }
0x111b   : > { %v6143_v50 = vpop.f32.mrf.mxu0 }
0x111c   : > { %6150 = vmatpush.bf16.msrb.mxu2 %v12812_v36  ;;  %v6144_v20 = vadd.f32 %v6143_v50, %v6129_v6 }
0x1120   : > { %6151 = vmatpush.bf16.msrb.mxu2 %v12813_v5 }
0x1124   : > { %6152 = vmatpush.bf16.msrb.mxu2 %v12814_v31 }
0x1128   : > { %6153 = vmatpush.bf16.msrb.mxu2 %v12815_v16 }
0x112b   : > { %6154 = vmatmul.bf16.vlgmr.msrb.gmra.mxu2 %v11945_v47  ;;  %v12827_v47 = vld [vmem:[#allocation95_spill] sm:$0xff] }
0x112c   : > { %6188 = vmatpush.bf16.msra.mxu2 %v12816_v7 }
0x1130   : > { %6189 = vmatpush.bf16.msra.mxu2 %v12817_v22 }
0x1134   : > { %6190 = vmatpush.bf16.msra.mxu2 %v12818_v45 }
0x1138   : > { %6191 = vmatpush.bf16.msra.mxu2 %v12819_v30 }
0x113c   : > { %6192 = vmatpush.bf16.msra.mxu2 %v12820_v40 }
0x1140   : > { %6193 = vmatpush.bf16.msra.mxu2 %v12821_v12 }
0x1144   : > { %6194 = vmatpush.bf16.msra.mxu2 %v12822_v29 }
0x1148   : > { %6195 = vmatpush.bf16.msra.mxu2 %v12823_v3 }
0x114c   : > { %6240 = vmatpush.bf16.msrb.mxu2 %v12824_v51 }
0x1150   : > { %6241 = vmatpush.bf16.msrb.mxu2 %v12825_v35 }
0x1154   : > { %6242 = vmatpush.bf16.msrb.mxu2 %v12826_v1 }
0x1158   : > { %6243 = vmatpush.bf16.msrb.mxu2 %v12827_v47 }
0x115c   : > { %6244 = vmatpush.bf16.msrb.mxu2 %v12828_v13 }
0x1160   : > { %6245 = vmatpush.bf16.msrb.mxu2 %v12829_v38 }
0x1164   : > { %6246 = vmatpush.bf16.msrb.mxu2 %v12830_v32 }
0x1168   : > { %6247 = vmatpush.bf16.msrb.mxu2 %v12831_v11 }
0x117e   : > { %v6302_v52 = vpop.xlane.xlu1 %6301 }
0x117f   : > { %7640 = vrcp.f32 %v6302_v52  ;;  %vm6308_vm15 = vweird.f32 %v6302_v52  ;;  %v6314_v22 = vand.u32 2147483648, %v6302_v52  ;;  %v6312_v45 = vand.u32 2147483647, %v6302_v52 }
0x1181   : > { %v6315_v40 = vor.u32 1.1754944e-38, %v6314_v22  ;;  %vm6313_vm2 = vcmp.eq.f32.partialorder %v6312_v45, 8.507059e+37 }
0x118e   : > { %v6109_v63 = vpop.f32.mrf.mxu2 }
0x1196   : > { %v6112_v4 = vpop.f32.mrf.mxu2 }
0x1197   : > { %v6115_v0 = vpack.c.bf16 %v6112_v4, %v6109_v63 }
0x1199   : > { %6182 = vmatmul.bf16.vlgmr.msra.gmra.mxu0 %v6115_v0  ;;  %6196 = vmatmul.bf16.vlgmr.msra.gmra.mxu2 %v6115_v0 }
0x11ae   : > { %v6155_v19 = vpop.f32.mrf.mxu2 }
0x11af   : > { %v6170_v14 = vadd.f32 %v6169_v48, %v6155_v19 }
0x11b6   : > { %v6157_v42 = vpop.f32.mrf.mxu2 }
0x11b7   : > { %v6172_v60 = vadd.f32 %v6171_v28, %v6157_v42 }
0x1216   : > { %v6183_v2 = vpop.f32.mrf.mxu0 }
0x1217   : > { %v6184_v44 = vadd.f32 %v6183_v2, %v6142_v62 }
0x1219   : > { %v6202_v55 = vadd.f32 %v6184_v44, %v11427_v43 }
0x121b   : > { %v6206_v26 = vmax.f32 %v6202_v55, 0.0 }
0x121c   : > { %v6197_v46 = vpop.f32.mrf.mxu2 }
0x121d   : > { %v6198_v8 = vadd.f32 %v6197_v46, %v6170_v14 }
0x121e   : > { %v6185_v39 = vpop.f32.mrf.mxu0 }
0x121f   : > { %v6186_v33 = vadd.f32 %v6185_v39, %v6144_v20  ;;  %v6203_v41 = vadd.f32 %v6198_v8, %v11422_v58 }
0x1221   : > { %v6204_v18 = vadd.f32 %v6186_v33, %v11427_v43  ;;  %v6207_v56 = vmax.f32 %v6203_v41, 0.0  ;;  %v7641_v43 = vpop.eup %7640 }
0x1222   : > { %v6304_v24 = vmul.f32 %v7641_v43, %v6302_v52  ;;  %vm6309_vm0 = vweird.f32 %v7641_v43 }
0x1223   : > { %v6208_v59 = vmax.f32 %v6204_v18, 0.0  ;;  %vm6310_vm1 = vmor %vm6308_vm15, %vm6309_vm0 }
0x1224   : > { %v6199_v61 = vpop.f32.mrf.mxu2  ;;  %v6305_v5 = vsub.f32 1.0, %v6304_v24 }
0x1225   : > { %v6210_v23 = vpack.c.bf16 %v6208_v59, %v6206_v26  ;;  %v6200_v34 = vadd.f32 %v6199_v61, %v6172_v60 }
0x1226   : > { %v6306_v31 = vmul.f32 %v7641_v43, %v6305_v5 }
0x1227   : > { %v6205_v49 = vadd.f32 %v6200_v34, %v11422_v58  ;;  %6220 = vmatmul.bf16.vlgmr.msra.gmra.mxu1 %v6210_v23  ;;  %6248 = vmatmul.bf16.vlgmr.msrb.gmra.mxu2 %v6210_v23 }
0x1228   : > { %v6307_v58 = vadd.f32 %v7641_v43, %v6306_v31 }
0x1229   : > { %v6209_v37 = vmax.f32 %v6205_v49, 0.0 }
0x122a   : > { %v6311_v3 = vsel %vm6310_vm1, %v7641_v43, %v6307_v58 }
0x122b   : > { %v6211_v57 = vpack.c.bf16 %v6209_v37, %v6207_v56  ;;  %v6316_v13 = vsel %vm6313_vm2, %v6315_v40, %v6311_v3 }
0x122c   : > { %v6317_v11 = vmul.f32 %v12016_v21, %v6316_v13 }
0x122d   : > { %6234 = vmatmul.bf16.vlgmr.msrb.gmra.mxu0 %v6211_v57 }
0x1237   : > { %6262 = vmatmul.bf16.vlgmr.msrb.gmra.mxu1 %v6211_v57 }
0x12a4   : > { %v6221_v36 = vpop.f32.mrf.mxu1 }
0x12a5   : > { %v6222_v12 = vadd.f32 %v6221_v36, %v11435_v17 }
0x12aa   : > { %v6235_v16 = vpop.f32.mrf.mxu0  ;;  %v6249_v30 = vpop.f32.mrf.mxu2 }
0x12ab   : > { %v6236_v35 = vadd.f32 %v6235_v16, %v6222_v12 }
0x12ac   : > { %v6223_v7 = vpop.f32.mrf.mxu1 }
0x12ad   : > { %v6224_v29 = vadd.f32 %v6223_v7, %v11435_v17  ;;  %v6268_v32 = vadd.f32 %v6236_v35, %v11809_v54  ;;  %v6250_v17 = vadd.f32 %v6249_v30, %v11455_v9 }
0x12b2   : > { %v6237_v51 = vpop.f32.mrf.mxu0  ;;  %v6251_v63 = vpop.f32.mrf.mxu2 }
0x12b3   : > { %v6238_v1 = vadd.f32 %v6237_v51, %v6224_v29  ;;  %v6252_v4 = vadd.f32 %v6251_v63, %v11455_v9 }
0x12b4   : > { %v6263_v47 = vpop.f32.mrf.mxu1 }
0x12b5   : > { %v6270_v38 = vadd.f32 %v6238_v1, %v11806_v27  ;;  %v6264_v53 = vadd.f32 %v6263_v47, %v6250_v17 }
0x12b7   : > { %7441 = vmatpush.msk.msra.mxu0 %vm4242_vm11, %v6270_v38  ;;  %v6269_v54 = vadd.f32 %v6264_v53, %v11834_v25 }
0x12b9   : > { %6342 = vmatpush.msra.mxu0 %v6268_v32 }
0x12ba   : > { %7442 = vmatmul.msk.f32.vlgmr.msra.gmra.mxu0 %vm4232_vm12, %v6317_v11 }
0x12bc   : > { %v6265_v0 = vpop.f32.mrf.mxu1 }
0x12bd   : > { %v6266_v15 = vadd.f32 %v6265_v0, %v6252_v4 }
0x12bf   : > { %v6271_v27 = vadd.f32 %v6266_v15, %v11830_v10 }
0x12c1   : > { %7443 = vmatpush.msk.msra.mxu2 %vm4242_vm11, %v6271_v27 }
0x12c3   : > { %6362 = vmatpush.msra.mxu2 %v6269_v54 }
0x12c4   : > { %7444 = vmatmul.msk.f32.vlgmr.msra.gmra.mxu2 %vm4232_vm12, %v6317_v11 }
0x1337   : > { %v6344_v25 = vpop.f32.mrf.mxu0 }
0x1347   : > { %v6364_v9 = vpop.f32.mrf.mxu2 }
0x1348   : > { %v6369_v10 = vrot.slane %v6364_v9, 4 }
0x134a   : > { %v6371_v21 = vsel %vm6370_vm3, %v6344_v25, %v6369_v10 }
0x134b   : > { %6373 = vst [vmem:[%s850_s3] sm:$0xff] %v6371_v21 }
0x134c   : > { %7722 = shalt.err (!%p7719_p3)
}
0x134d   : > { %7581 = dma.vmem_to_hbm [thread:$0]  (%p7939_p5), %s6389_s11, 128, %s6391_s5, %s6375_s6  }
0x134e PF: > { %s12835_s9 = sld [smem:[#allocation7_spill]] }
0x134f   : > { %s12836_s3 = sld [smem:[#allocation5_spill]] }
0x1354   : > { %p7587_p4 = scmp.ge.s32.totalorder %s12835_s9, 2 }
0x1355   : > { %s6402_s14 = sand.u32 1, %s12836_s3  }
0x1356   : > { %p7584_p7 = pnand %p7587_p4, %p7943_p6  ;;  %s6403_s10 = scalar_lea.sflag [#allocation3], %s6402_s14 }
0x1358   : > { %p7585_p8 = pneg %p7584_p7 }
0x135a   : > { %7740 = dma.done.wait (%p7585_p8), %s6403_s10, 128  }
0x135b   : > { %7742 = vsyncadd (%p7585_p8), %s6403_s10, 4294967168  ;;  %s12838_s30 = sld [smem:[#allocation9_spill]]  ;;  %s12841_s7 = smov %s7749_s4 }
0x135c   : > { %s12839_s12 = sld [smem:[#allocation6_spill]] }
0x135d   : > { %s12840_s8 = sld [smem:[#allocation10_spill]] }
0x1361   : > { %p37_p9 = scmp.ge.s32.totalorder %s12838_s30, 4  }
0x1362   : > { %s12842_s4 = smov %s12839_s12 }
0x1363   :  { %39 = sbr.rel (!%p37_p9) target bundleno = 20 (0x14), region = 174 }
0x1368   :  { %6409 = vsyncpa [#allocation3], 1 }
0x1369   :  { %6411 = vsyncpa [#allocation3 + $0x1], 1 }

</bundles_post_ra>
